<compile_context>
chip_gen: v7x
topology: tpu7x:2x2x1
jax: 0.10.0
libtpu: 0.0.40
codegen_flags: <defaults>
</compile_context>

<pallas_src>
import functools

import jax
import jax.numpy as jnp
from jax.experimental import pallas as pl
from jax.experimental.pallas import tpu as pltpu

LRELU_BLOCK = 0.2      # slope assumed for 'lrelu' activation inside blocks
LRELU_EXPLICIT = 0.1   # explicit nn.LeakyReLU(0.1)
LANE = 128


def _rup(n, m=LANE):
    return ((n + m - 1) // m) * m


def _leaky(x, slope):
    return jnp.where(x >= 0, x, slope * x)


def _mm(a_f32, w_bf16):
    """(M, K) f32 x (K, N) bf16 -> (M, N) f32 on the MXU."""
    return jnp.dot(a_f32.astype(jnp.bfloat16), w_bf16,
                   preferred_element_type=jnp.float32)


def _conv3x3_flat(x, H, W, w_ref, b_ref, *, pre_slope):
    """3x3 / stride-1 / pad-1 conv as 9 tap-accumulated MXU matmuls.

    x      : (H*W, Cin_pad) f32 value, rows ordered p = i*W + j.
    w_ref  : (9, Cin_pad, Cout_pad) bf16 VMEM ref (tap k = (dh+1)*3 + dw+1).
    b_ref  : (1, Cout_pad) f32 VMEM ref.
    Per tap: sublane roll (XLU) + border mask (VPU) + bf16 matmul, f32 acc.
    """
    M, Cin = x.shape
    if pre_slope is not None:
        x = _leaky(x, pre_slope)
    # Row / col index of every flat row (W is a multiple of 8 at every block
    # resolution used here, so this reshape is a no-op relayout).
    ii = jax.lax.broadcasted_iota(jnp.int32, (H, W, Cin), 0).reshape(M, Cin)
    jj = jax.lax.broadcasted_iota(jnp.int32, (H, W, Cin), 1).reshape(M, Cin)

    acc = None
    k = 0
    for dh in (-1, 0, 1):
        for dw in (-1, 0, 1):
            off = dh * W + dw
            xs = x if off == 0 else pltpu.roll(x, shift=(-off) % M, axis=0)
            conds = []
            if dh == -1:
                conds.append(ii >= 1)
            elif dh == 1:
                conds.append(ii <= H - 2)
            if dw == -1:
                conds.append(jj >= 1)
            elif dw == 1:
                conds.append(jj <= W - 2)
            if conds:
                valid = conds[0]
                for c in conds[1:]:
                    valid = jnp.logical_and(valid, c)
                xs = jnp.where(valid, xs, 0.0)       # zero halo via mask
            t = jnp.dot(xs.astype(jnp.bfloat16), w_ref[k],
                        preferred_element_type=jnp.float32)
            acc = t if acc is None else acc + t
            k += 1
    return acc + b_ref[...]


def _disc_kernel(spatial, skip_flags, num_domain, dim_style, x_ref, *refs):
    """Full Discriminator forward for one batch sample (grid axis 0 = batch)."""
    o_ref = refs[-1]
    dom_ref = refs[-2]
    wit = iter(refs[:-2])

    H, W = spatial
    x = x_ref[0].reshape(H * W, x_ref.shape[-1])          # (H*W, 3) f32

    # --- stem: Conv2dBlock(3, ch, 1, 1, 0, 'none', 'none') (1x1 conv) ------
    w, bia = next(wit), next(wit)
    x = _mm(x, w[...]) + bia[...]                         # (H*W, Cpad)

    # --- residual blocks ----------------------------------------------------
    for has_skip in skip_flags:
        w1, b1 = next(wit), next(wit)
        w2, b2 = next(wit), next(wit)
        h = _conv3x3_flat(x, H, W, w1, b1, pre_slope=LRELU_BLOCK)
        h = _conv3x3_flat(h, H, W, w2, b2, pre_slope=LRELU_BLOCK)
        if has_skip:
            # ResBlockPreActivationWithAvgPool: avgpool(main) + avgpool(1x1 skip)
            ws, bs = next(wit), next(wit)
            s = _mm(x, ws[...]) + bs[...]                 # 1x1 skip conv
            pre_pool = h + s                              # pool is linear
        else:
            # ResBlockPreActivation + nn.AvgPool2d(2)
            pre_pool = x + h
        poolS = next(wit)                                 # (H2*W2, H*W) bf16
        x = jnp.dot(poolS[...], pre_pool.astype(jnp.bfloat16),
                    preferred_element_type=jnp.float32)   # fused 2x2 avg pool
        H, W = H // 2, W // 2

    # --- explicit nn.LeakyReLU(0.1) ------------------------------------------
    x = _leaky(x, LRELU_EXPLICIT)                         # (ah*ah, Cpad)

    # --- head1: Conv2dBlock(ch, ch, ah, 1, 0, 'none', 'lrelu') --------------
    # Full-map conv folded into ah*ah accumulated (1,C)@(C,C) matmuls
    # (avoids a lane-misaligned flatten relayout entirely).
    h1w, h1b = next(wit), next(wit)                       # (ah*ah, C, C), (1, C)
    acc = None
    for p in range(H * W):
        t = jnp.dot(x[p:p + 1, :].astype(jnp.bfloat16), h1w[p],
                    preferred_element_type=jnp.float32)
        acc = t if acc is None else acc + t
    y1 = _leaky(acc + h1b[...], LRELU_BLOCK)              # (1, Cpad)

    # --- head2: Conv2dBlock(ch, num_domain*dim_style, 1, 1, 0, 'none','none')
    h2w, h2b = next(wit), next(wit)
    y2 = _mm(y1, h2w[...]) + h2b[...]                     # (1, DS_pad)

    # --- fused gather_domain: out[s] = y2[dom*dim_style + s] -----------------
    # TODO(synk): out-of-range domain ids silently produce zeros (torch.gather
    # would raise); no cheap in-kernel assert.
    d = dom_ref[pl.program_id(0)]                         # scalar int32 (SMEM)
    lane = jax.lax.broadcasted_iota(jnp.int32, (1, y2.shape[1]), 1)
    lo = d * dim_style
    picked = jnp.where(jnp.logical_and(lane >= lo, lane < lo + dim_style),
                       y2, 0.0)
    out = picked[:, 0:dim_style]
    for g in range(1, num_domain):                        # compact selected block
        out = out + picked[:, g * dim_style:(g + 1) * dim_style]
    o_ref[...] = out.reshape(1, 1, dim_style)


# ---------------------------------------------------------------------------
# Wrapper: lane-padded weight flattening, pooling matrices, one pallas_call.
# ---------------------------------------------------------------------------
@functools.partial(jax.jit, static_argnames=("num_domain", "dim_style"))
def discriminator_forward(params, x_nchw, target_domain, *, num_domain, dim_style):
    """Mirrors Discriminator.forward; returns (B, 1, dim_style)."""
    x = jnp.transpose(x_nchw, (0, 2, 3, 1)).astype(jnp.float32)   # NCHW -> NHWC
    B, H, W, cin0 = x.shape

    operands = []

    def _pad_conv(p, *, taps, pad_cin=True):
        w = p["w"].astype(jnp.float32)
        b = p["b"].astype(jnp.float32)
        kh, kw, ci, co = w.shape
        cip = _rup(ci) if pad_cin else ci
        cop = _rup(co)
        wp = jnp.zeros((kh, kw, cip, cop), jnp.float32).at[:, :, :ci, :co].set(w)
        if taps:
            wf = wp.reshape(kh * kw, cip, cop)            # per-tap matrices
        else:
            wf = wp.reshape(kh * kw * cip, cop)
        bp = jnp.zeros((1, cop), jnp.float32).at[:, :co].set(b.reshape(1, co))
        operands.append(wf.astype(jnp.bfloat16))
        operands.append(bp)

    def _pool_matrix(h, w):
        # S[q, p] = 0.25 iff flat pixel p (row-major over h x w) pools into q.
        h2, w2 = h // 2, w // 2
        p = jnp.arange(h * w)
        q = ((p // w) // 2) * w2 + ((p % w) // 2)
        s = (q[None, :] == jnp.arange(h2 * w2)[:, None]).astype(jnp.float32)
        return (s * 0.25).astype(jnp.bfloat16)

    _pad_conv(params["stem"], taps=False, pad_cin=False)   # (3, Cpad)

    skip_flags = []
    h_, w_ = H, W
    for blk in params["blocks"]:
        _pad_conv(blk["conv1"], taps=True)
        _pad_conv(blk["conv2"], taps=True)
        if "skip" in blk:
            _pad_conv(blk["skip"], taps=False)
            skip_flags.append(True)
        else:
            skip_flags.append(False)
        operands.append(_pool_matrix(h_, w_))
        h_, w_ = h_ // 2, w_ // 2
    skip_flags = tuple(skip_flags)

    _pad_conv(params["head1"], taps=True)    # (ah*ah, Cpad, Cpad)
    _pad_conv(params["head2"], taps=False)   # (Cpad, DS_pad)

    dom = target_domain.reshape(B).astype(jnp.int32)

    kernel = functools.partial(_disc_kernel, (H, W), skip_flags,
                               num_domain, dim_style)

    vmem_full = pl.BlockSpec(memory_space=pltpu.MemorySpace.VMEM)
    # TODO(synk): at production sizes (256x256, ch>=64) add a spatial row-tile
    # grid axis with halo exchange; at these shapes per-sample work fits VMEM.
    out = pl.pallas_call(
        kernel,
        grid=(B,),
        out_shape=jax.ShapeDtypeStruct((B, 1, dim_style), jnp.float32),
        in_specs=([pl.BlockSpec((1, H, W, cin0), lambda b: (b, 0, 0, 0))]
                  + [vmem_full] * len(operands)
                  + [pl.BlockSpec(memory_space=pltpu.MemorySpace.SMEM)]),
        out_specs=pl.BlockSpec((1, 1, dim_style), lambda b: (b, 0, 0)),
        compiler_params=pltpu.CompilerParams(
            dimension_semantics=("parallel",)),
    )(x, *operands, dom)
    return out


# ---------------------------------------------------------------------------
# Parameter initialization (deterministic, synthetic).
# ---------------------------------------------------------------------------
def _conv_init(key, kh, kw, cin, cout):
    kw_, kb_ = jax.random.split(key)
    return {
        "w": jax.random.normal(kw_, (kh, kw, cin, cout), jnp.float32) * 0.1,
        "b": jax.random.normal(kb_, (cout,), jnp.float32) * 0.1,
    }


def init_discriminator_params(key, *, ch, n_intermediates, num_domain,
                              dim_style, img_size):
    keys = iter(jax.random.split(key, 4 * n_intermediates + 8))
    params = {"stem": _conv_init(next(keys), 1, 1, 3, ch)}
    blocks = []
    c = ch
    for n in range(n_intermediates):
        if n < n_intermediates - 1:
            blocks.append({
                "conv1": _conv_init(next(keys), 3, 3, c, 2 * c),
                "conv2": _conv_init(next(keys), 3, 3, 2 * c, 2 * c),
                "skip": _conv_init(next(keys), 1, 1, c, 2 * c),
            })
            c *= 2
        else:
            blocks.append({
                "conv1": _conv_init(next(keys), 3, 3, c, c),
                "conv2": _conv_init(next(keys), 3, 3, c, c),
            })
    params["blocks"] = blocks
    ah = img_size // 2 ** n_intermediates
    params["head1"] = _conv_init(next(keys), ah, ah, c, c)
    params["head2"] = _conv_init(next(keys), 1, 1, c, num_domain * dim_style)
    return params


if __name__ == "__main__":
    B = 2
    img_size = 16
    ch = 8
    n_intermediates = 2
    num_domain = 3
    dim_style = 8

    key = jax.random.PRNGKey(0)
    kp, kx, kd = jax.random.split(key, 3)

    params = init_discriminator_params(
        kp, ch=ch, n_intermediates=n_intermediates,
        num_domain=num_domain, dim_style=dim_style, img_size=img_size)

    x = jax.random.normal(kx, (B, 3, img_size, img_size), jnp.float32)   # NCHW
    target_domain = jax.random.randint(kd, (B, 1, 1), 0, num_domain)

    out = discriminator_forward(params, x, target_domain,
                                num_domain=num_domain, dim_style=dim_style)
    out = jax.block_until_ready(out)
    assert out.shape == (B, 1, dim_style), out.shape
    print("KERNEL_OK")
</pallas_src>

<mosaic_0001>
module attributes {stable_mosaic.version = 11 : i64} {
  func.func @_disc_kernel(%arg0: i32, %arg1: memref<1x16x16x3xf32, #tpu.memory_space<vmem>>, %arg2: memref<3x128xbf16, #tpu.memory_space<vmem>>, %arg3: memref<1x128xf32, #tpu.memory_space<vmem>>, %arg4: memref<9x128x128xbf16, #tpu.memory_space<vmem>>, %arg5: memref<1x128xf32, #tpu.memory_space<vmem>>, %arg6: memref<9x128x128xbf16, #tpu.memory_space<vmem>>, %arg7: memref<1x128xf32, #tpu.memory_space<vmem>>, %arg8: memref<128x128xbf16, #tpu.memory_space<vmem>>, %arg9: memref<1x128xf32, #tpu.memory_space<vmem>>, %arg10: memref<64x256xbf16, #tpu.memory_space<vmem>>, %arg11: memref<9x128x128xbf16, #tpu.memory_space<vmem>>, %arg12: memref<1x128xf32, #tpu.memory_space<vmem>>, %arg13: memref<9x128x128xbf16, #tpu.memory_space<vmem>>, %arg14: memref<1x128xf32, #tpu.memory_space<vmem>>, %arg15: memref<16x64xbf16, #tpu.memory_space<vmem>>, %arg16: memref<16x128x128xbf16, #tpu.memory_space<vmem>>, %arg17: memref<1x128xf32, #tpu.memory_space<vmem>>, %arg18: memref<128x128xbf16, #tpu.memory_space<vmem>>, %arg19: memref<1x128xf32, #tpu.memory_space<vmem>>, %arg20: memref<2xi32, #tpu.memory_space<smem>>, %arg21: memref<1x1x8xf32, #tpu.memory_space<vmem>>) attributes {dimension_semantics = [#tpu.dimension_semantics<parallel>], iteration_bounds = array<i64: 2>, scalar_prefetch = 0 : i64, scratch_operands = 0 : i64, tpu.core_type = #tpu.core_type<tc>, window_params = [{transform_indices = @transform_0, window_bounds = array<i64: 1, 16, 16, 3>}, {pipeline_mode = #tpu.pipeline_mode<synchronous>, transform_indices = @transform_1, window_bounds = array<i64: 3, 128>}, {pipeline_mode = #tpu.pipeline_mode<synchronous>, transform_indices = @transform_2, window_bounds = array<i64: 1, 128>}, {pipeline_mode = #tpu.pipeline_mode<synchronous>, transform_indices = @transform_3, window_bounds = array<i64: 9, 128, 128>}, {pipeline_mode = #tpu.pipeline_mode<synchronous>, transform_indices = @transform_4, window_bounds = array<i64: 1, 128>}, {pipeline_mode = #tpu.pipeline_mode<synchronous>, transform_indices = @transform_5, window_bounds = array<i64: 9, 128, 128>}, {pipeline_mode = #tpu.pipeline_mode<synchronous>, transform_indices = @transform_6, window_bounds = array<i64: 1, 128>}, {pipeline_mode = #tpu.pipeline_mode<synchronous>, transform_indices = @transform_7, window_bounds = array<i64: 128, 128>}, {pipeline_mode = #tpu.pipeline_mode<synchronous>, transform_indices = @transform_8, window_bounds = array<i64: 1, 128>}, {pipeline_mode = #tpu.pipeline_mode<synchronous>, transform_indices = @transform_9, window_bounds = array<i64: 64, 256>}, {pipeline_mode = #tpu.pipeline_mode<synchronous>, transform_indices = @transform_10, window_bounds = array<i64: 9, 128, 128>}, {pipeline_mode = #tpu.pipeline_mode<synchronous>, transform_indices = @transform_11, window_bounds = array<i64: 1, 128>}, {pipeline_mode = #tpu.pipeline_mode<synchronous>, transform_indices = @transform_12, window_bounds = array<i64: 9, 128, 128>}, {pipeline_mode = #tpu.pipeline_mode<synchronous>, transform_indices = @transform_13, window_bounds = array<i64: 1, 128>}, {pipeline_mode = #tpu.pipeline_mode<synchronous>, transform_indices = @transform_14, window_bounds = array<i64: 16, 64>}, {pipeline_mode = #tpu.pipeline_mode<synchronous>, transform_indices = @transform_15, window_bounds = array<i64: 16, 128, 128>}, {pipeline_mode = #tpu.pipeline_mode<synchronous>, transform_indices = @transform_16, window_bounds = array<i64: 1, 128>}, {pipeline_mode = #tpu.pipeline_mode<synchronous>, transform_indices = @transform_17, window_bounds = array<i64: 128, 128>}, {pipeline_mode = #tpu.pipeline_mode<synchronous>, transform_indices = @transform_18, window_bounds = array<i64: 1, 128>}, {transform_indices = @transform_19, window_bounds = array<i64: 2>}, {transform_indices = @transform_20, window_bounds = array<i64: 1, 1, 8>}]} {
    %c0 = arith.constant 0 : index
    %c0_0 = arith.constant 0 : index
    %c0_1 = arith.constant 0 : index
    %c0_2 = arith.constant 0 : index
    %0 = vector.load %arg1[%c0, %c0_0, %c0_1, %c0_2] : memref<1x16x16x3xf32, #tpu.memory_space<vmem>>, vector<1x16x16x3xf32>
    %1 = vector.shape_cast %0 : vector<1x16x16x3xf32> to vector<16x16x3xf32>
    %2 = vector.shape_cast %1 : vector<16x16x3xf32> to vector<256x3xf32>
    %c0_3 = arith.constant 0 : index
    %c0_4 = arith.constant 0 : index
    %3 = vector.load %arg2[%c0_3, %c0_4] : memref<3x128xbf16, #tpu.memory_space<vmem>>, vector<3x128xbf16>
    %4 = arith.truncf %2 : vector<256x3xf32> to vector<256x3xbf16>
    %cst = arith.constant dense<0.000000e+00> : vector<256x128xf32>
    %5 = tpu.matmul %4, %3, %cst {dimension_numbers = #tpu.dot_dimension_numbers<[1], [0], [0], [1], [0, 0, 1, 1], [], []>} : vector<256x3xbf16>, vector<3x128xbf16>, vector<256x128xf32> -> vector<256x128xf32>
    %c0_5 = arith.constant 0 : index
    %c0_6 = arith.constant 0 : index
    %6 = vector.load %arg3[%c0_5, %c0_6] : memref<1x128xf32, #tpu.memory_space<vmem>>, vector<1x128xf32>
    %7 = vector.broadcast %6 : vector<1x128xf32> to vector<256x128xf32>
    %8 = arith.addf %5, %7 : vector<256x128xf32>
    %cst_7 = arith.constant 0.000000e+00 : f32
    %9 = vector.broadcast %cst_7 : f32 to vector<256x128xf32>
    %10 = arith.cmpf oge, %8, %9 : vector<256x128xf32>
    %cst_8 = arith.constant 2.000000e-01 : f32
    %11 = vector.broadcast %cst_8 : f32 to vector<256x128xf32>
    %12 = arith.mulf %11, %8 : vector<256x128xf32>
    %13 = arith.select %10, %8, %12 : vector<256x128xi1>, vector<256x128xf32>
    %14 = tpu.iota {dimensions = array<i32: 0>} : vector<16x16x128xi32>
    %15 = vector.shape_cast %14 : vector<16x16x128xi32> to vector<256x128xi32>
    %16 = tpu.iota {dimensions = array<i32: 1>} : vector<16x16x128xi32>
    %17 = vector.shape_cast %16 : vector<16x16x128xi32> to vector<256x128xi32>
    %c17_i32 = arith.constant 17 : i32
    %18 = tpu.dynamic_rotate %13 by %c17_i32 dim 0 : vector<256x128xf32>, i32 -> vector<256x128xf32>
    %c1_i32 = arith.constant 1 : i32
    %19 = vector.broadcast %c1_i32 : i32 to vector<256x128xi32>
    %20 = arith.cmpi sge, %15, %19 : vector<256x128xi32>
    %c1_i32_9 = arith.constant 1 : i32
    %21 = vector.broadcast %c1_i32_9 : i32 to vector<256x128xi32>
    %22 = arith.cmpi sge, %17, %21 : vector<256x128xi32>
    %23 = arith.andi %20, %22 : vector<256x128xi1>
    %cst_10 = arith.constant 0.000000e+00 : f32
    %24 = vector.broadcast %cst_10 : f32 to vector<256x128xf32>
    %25 = arith.select %23, %18, %24 : vector<256x128xi1>, vector<256x128xf32>
    %26 = arith.truncf %25 : vector<256x128xf32> to vector<256x128xbf16>
    %c0_11 = arith.constant 0 : index
    %c0_12 = arith.constant 0 : index
    %c0_13 = arith.constant 0 : index
    %27 = vector.load %arg4[%c0_11, %c0_12, %c0_13] : memref<9x128x128xbf16, #tpu.memory_space<vmem>>, vector<1x128x128xbf16>
    %28 = vector.shape_cast %27 : vector<1x128x128xbf16> to vector<128x128xbf16>
    %cst_14 = arith.constant dense<0.000000e+00> : vector<256x128xf32>
    %29 = tpu.matmul %26, %28, %cst_14 {dimension_numbers = #tpu.dot_dimension_numbers<[1], [0], [0], [1], [0, 0, 1, 1], [], []>} : vector<256x128xbf16>, vector<128x128xbf16>, vector<256x128xf32> -> vector<256x128xf32>
    %c16_i32 = arith.constant 16 : i32
    %30 = tpu.dynamic_rotate %13 by %c16_i32 dim 0 : vector<256x128xf32>, i32 -> vector<256x128xf32>
    %c1_i32_15 = arith.constant 1 : i32
    %31 = vector.broadcast %c1_i32_15 : i32 to vector<256x128xi32>
    %32 = arith.cmpi sge, %15, %31 : vector<256x128xi32>
    %cst_16 = arith.constant 0.000000e+00 : f32
    %33 = vector.broadcast %cst_16 : f32 to vector<256x128xf32>
    %34 = arith.select %32, %30, %33 : vector<256x128xi1>, vector<256x128xf32>
    %35 = arith.truncf %34 : vector<256x128xf32> to vector<256x128xbf16>
    %c1 = arith.constant 1 : index
    %c0_17 = arith.constant 0 : index
    %c0_18 = arith.constant 0 : index
    %36 = vector.load %arg4[%c1, %c0_17, %c0_18] : memref<9x128x128xbf16, #tpu.memory_space<vmem>>, vector<1x128x128xbf16>
    %37 = vector.shape_cast %36 : vector<1x128x128xbf16> to vector<128x128xbf16>
    %cst_19 = arith.constant dense<0.000000e+00> : vector<256x128xf32>
    %38 = tpu.matmul %35, %37, %cst_19 {dimension_numbers = #tpu.dot_dimension_numbers<[1], [0], [0], [1], [0, 0, 1, 1], [], []>} : vector<256x128xbf16>, vector<128x128xbf16>, vector<256x128xf32> -> vector<256x128xf32>
    %39 = arith.addf %29, %38 : vector<256x128xf32>
    %c15_i32 = arith.constant 15 : i32
    %40 = tpu.dynamic_rotate %13 by %c15_i32 dim 0 : vector<256x128xf32>, i32 -> vector<256x128xf32>
    %c1_i32_20 = arith.constant 1 : i32
    %41 = vector.broadcast %c1_i32_20 : i32 to vector<256x128xi32>
    %42 = arith.cmpi sge, %15, %41 : vector<256x128xi32>
    %c14_i32 = arith.constant 14 : i32
    %43 = vector.broadcast %c14_i32 : i32 to vector<256x128xi32>
    %44 = arith.cmpi sle, %17, %43 : vector<256x128xi32>
    %45 = arith.andi %42, %44 : vector<256x128xi1>
    %cst_21 = arith.constant 0.000000e+00 : f32
    %46 = vector.broadcast %cst_21 : f32 to vector<256x128xf32>
    %47 = arith.select %45, %40, %46 : vector<256x128xi1>, vector<256x128xf32>
    %48 = arith.truncf %47 : vector<256x128xf32> to vector<256x128xbf16>
    %c2 = arith.constant 2 : index
    %c0_22 = arith.constant 0 : index
    %c0_23 = arith.constant 0 : index
    %49 = vector.load %arg4[%c2, %c0_22, %c0_23] : memref<9x128x128xbf16, #tpu.memory_space<vmem>>, vector<1x128x128xbf16>
    %50 = vector.shape_cast %49 : vector<1x128x128xbf16> to vector<128x128xbf16>
    %cst_24 = arith.constant dense<0.000000e+00> : vector<256x128xf32>
    %51 = tpu.matmul %48, %50, %cst_24 {dimension_numbers = #tpu.dot_dimension_numbers<[1], [0], [0], [1], [0, 0, 1, 1], [], []>} : vector<256x128xbf16>, vector<128x128xbf16>, vector<256x128xf32> -> vector<256x128xf32>
    %52 = arith.addf %39, %51 : vector<256x128xf32>
    %c1_i32_25 = arith.constant 1 : i32
    %53 = tpu.dynamic_rotate %13 by %c1_i32_25 dim 0 : vector<256x128xf32>, i32 -> vector<256x128xf32>
    %c1_i32_26 = arith.constant 1 : i32
    %54 = vector.broadcast %c1_i32_26 : i32 to vector<256x128xi32>
    %55 = arith.cmpi sge, %17, %54 : vector<256x128xi32>
    %cst_27 = arith.constant 0.000000e+00 : f32
    %56 = vector.broadcast %cst_27 : f32 to vector<256x128xf32>
    %57 = arith.select %55, %53, %56 : vector<256x128xi1>, vector<256x128xf32>
    %58 = arith.truncf %57 : vector<256x128xf32> to vector<256x128xbf16>
    %c3 = arith.constant 3 : index
    %c0_28 = arith.constant 0 : index
    %c0_29 = arith.constant 0 : index
    %59 = vector.load %arg4[%c3, %c0_28, %c0_29] : memref<9x128x128xbf16, #tpu.memory_space<vmem>>, vector<1x128x128xbf16>
    %60 = vector.shape_cast %59 : vector<1x128x128xbf16> to vector<128x128xbf16>
    %cst_30 = arith.constant dense<0.000000e+00> : vector<256x128xf32>
    %61 = tpu.matmul %58, %60, %cst_30 {dimension_numbers = #tpu.dot_dimension_numbers<[1], [0], [0], [1], [0, 0, 1, 1], [], []>} : vector<256x128xbf16>, vector<128x128xbf16>, vector<256x128xf32> -> vector<256x128xf32>
    %62 = arith.addf %52, %61 : vector<256x128xf32>
    %63 = arith.truncf %13 : vector<256x128xf32> to vector<256x128xbf16>
    %c4 = arith.constant 4 : index
    %c0_31 = arith.constant 0 : index
    %c0_32 = arith.constant 0 : index
    %64 = vector.load %arg4[%c4, %c0_31, %c0_32] : memref<9x128x128xbf16, #tpu.memory_space<vmem>>, vector<1x128x128xbf16>
    %65 = vector.shape_cast %64 : vector<1x128x128xbf16> to vector<128x128xbf16>
    %cst_33 = arith.constant dense<0.000000e+00> : vector<256x128xf32>
    %66 = tpu.matmul %63, %65, %cst_33 {dimension_numbers = #tpu.dot_dimension_numbers<[1], [0], [0], [1], [0, 0, 1, 1], [], []>} : vector<256x128xbf16>, vector<128x128xbf16>, vector<256x128xf32> -> vector<256x128xf32>
    %67 = arith.addf %62, %66 : vector<256x128xf32>
    %c255_i32 = arith.constant 255 : i32
    %68 = tpu.dynamic_rotate %13 by %c255_i32 dim 0 : vector<256x128xf32>, i32 -> vector<256x128xf32>
    %c14_i32_34 = arith.constant 14 : i32
    %69 = vector.broadcast %c14_i32_34 : i32 to vector<256x128xi32>
    %70 = arith.cmpi sle, %17, %69 : vector<256x128xi32>
    %cst_35 = arith.constant 0.000000e+00 : f32
    %71 = vector.broadcast %cst_35 : f32 to vector<256x128xf32>
    %72 = arith.select %70, %68, %71 : vector<256x128xi1>, vector<256x128xf32>
    %73 = arith.truncf %72 : vector<256x128xf32> to vector<256x128xbf16>
    %c5 = arith.constant 5 : index
    %c0_36 = arith.constant 0 : index
    %c0_37 = arith.constant 0 : index
    %74 = vector.load %arg4[%c5, %c0_36, %c0_37] : memref<9x128x128xbf16, #tpu.memory_space<vmem>>, vector<1x128x128xbf16>
    %75 = vector.shape_cast %74 : vector<1x128x128xbf16> to vector<128x128xbf16>
    %cst_38 = arith.constant dense<0.000000e+00> : vector<256x128xf32>
    %76 = tpu.matmul %73, %75, %cst_38 {dimension_numbers = #tpu.dot_dimension_numbers<[1], [0], [0], [1], [0, 0, 1, 1], [], []>} : vector<256x128xbf16>, vector<128x128xbf16>, vector<256x128xf32> -> vector<256x128xf32>
    %77 = arith.addf %67, %76 : vector<256x128xf32>
    %c241_i32 = arith.constant 241 : i32
    %78 = tpu.dynamic_rotate %13 by %c241_i32 dim 0 : vector<256x128xf32>, i32 -> vector<256x128xf32>
    %c14_i32_39 = arith.constant 14 : i32
    %79 = vector.broadcast %c14_i32_39 : i32 to vector<256x128xi32>
    %80 = arith.cmpi sle, %15, %79 : vector<256x128xi32>
    %c1_i32_40 = arith.constant 1 : i32
    %81 = vector.broadcast %c1_i32_40 : i32 to vector<256x128xi32>
    %82 = arith.cmpi sge, %17, %81 : vector<256x128xi32>
    %83 = arith.andi %80, %82 : vector<256x128xi1>
    %cst_41 = arith.constant 0.000000e+00 : f32
    %84 = vector.broadcast %cst_41 : f32 to vector<256x128xf32>
    %85 = arith.select %83, %78, %84 : vector<256x128xi1>, vector<256x128xf32>
    %86 = arith.truncf %85 : vector<256x128xf32> to vector<256x128xbf16>
    %c6 = arith.constant 6 : index
    %c0_42 = arith.constant 0 : index
    %c0_43 = arith.constant 0 : index
    %87 = vector.load %arg4[%c6, %c0_42, %c0_43] : memref<9x128x128xbf16, #tpu.memory_space<vmem>>, vector<1x128x128xbf16>
    %88 = vector.shape_cast %87 : vector<1x128x128xbf16> to vector<128x128xbf16>
    %cst_44 = arith.constant dense<0.000000e+00> : vector<256x128xf32>
    %89 = tpu.matmul %86, %88, %cst_44 {dimension_numbers = #tpu.dot_dimension_numbers<[1], [0], [0], [1], [0, 0, 1, 1], [], []>} : vector<256x128xbf16>, vector<128x128xbf16>, vector<256x128xf32> -> vector<256x128xf32>
    %90 = arith.addf %77, %89 : vector<256x128xf32>
    %c240_i32 = arith.constant 240 : i32
    %91 = tpu.dynamic_rotate %13 by %c240_i32 dim 0 : vector<256x128xf32>, i32 -> vector<256x128xf32>
    %c14_i32_45 = arith.constant 14 : i32
    %92 = vector.broadcast %c14_i32_45 : i32 to vector<256x128xi32>
    %93 = arith.cmpi sle, %15, %92 : vector<256x128xi32>
    %cst_46 = arith.constant 0.000000e+00 : f32
    %94 = vector.broadcast %cst_46 : f32 to vector<256x128xf32>
    %95 = arith.select %93, %91, %94 : vector<256x128xi1>, vector<256x128xf32>
    %96 = arith.truncf %95 : vector<256x128xf32> to vector<256x128xbf16>
    %c7 = arith.constant 7 : index
    %c0_47 = arith.constant 0 : index
    %c0_48 = arith.constant 0 : index
    %97 = vector.load %arg4[%c7, %c0_47, %c0_48] : memref<9x128x128xbf16, #tpu.memory_space<vmem>>, vector<1x128x128xbf16>
    %98 = vector.shape_cast %97 : vector<1x128x128xbf16> to vector<128x128xbf16>
    %cst_49 = arith.constant dense<0.000000e+00> : vector<256x128xf32>
    %99 = tpu.matmul %96, %98, %cst_49 {dimension_numbers = #tpu.dot_dimension_numbers<[1], [0], [0], [1], [0, 0, 1, 1], [], []>} : vector<256x128xbf16>, vector<128x128xbf16>, vector<256x128xf32> -> vector<256x128xf32>
    %100 = arith.addf %90, %99 : vector<256x128xf32>
    %c239_i32 = arith.constant 239 : i32
    %101 = tpu.dynamic_rotate %13 by %c239_i32 dim 0 : vector<256x128xf32>, i32 -> vector<256x128xf32>
    %c14_i32_50 = arith.constant 14 : i32
    %102 = vector.broadcast %c14_i32_50 : i32 to vector<256x128xi32>
    %103 = arith.cmpi sle, %15, %102 : vector<256x128xi32>
    %c14_i32_51 = arith.constant 14 : i32
    %104 = vector.broadcast %c14_i32_51 : i32 to vector<256x128xi32>
    %105 = arith.cmpi sle, %17, %104 : vector<256x128xi32>
    %106 = arith.andi %103, %105 : vector<256x128xi1>
    %cst_52 = arith.constant 0.000000e+00 : f32
    %107 = vector.broadcast %cst_52 : f32 to vector<256x128xf32>
    %108 = arith.select %106, %101, %107 : vector<256x128xi1>, vector<256x128xf32>
    %109 = arith.truncf %108 : vector<256x128xf32> to vector<256x128xbf16>
    %c8 = arith.constant 8 : index
    %c0_53 = arith.constant 0 : index
    %c0_54 = arith.constant 0 : index
    %110 = vector.load %arg4[%c8, %c0_53, %c0_54] : memref<9x128x128xbf16, #tpu.memory_space<vmem>>, vector<1x128x128xbf16>
    %111 = vector.shape_cast %110 : vector<1x128x128xbf16> to vector<128x128xbf16>
    %cst_55 = arith.constant dense<0.000000e+00> : vector<256x128xf32>
    %112 = tpu.matmul %109, %111, %cst_55 {dimension_numbers = #tpu.dot_dimension_numbers<[1], [0], [0], [1], [0, 0, 1, 1], [], []>} : vector<256x128xbf16>, vector<128x128xbf16>, vector<256x128xf32> -> vector<256x128xf32>
    %113 = arith.addf %100, %112 : vector<256x128xf32>
    %c0_56 = arith.constant 0 : index
    %c0_57 = arith.constant 0 : index
    %114 = vector.load %arg5[%c0_56, %c0_57] : memref<1x128xf32, #tpu.memory_space<vmem>>, vector<1x128xf32>
    %115 = vector.broadcast %114 : vector<1x128xf32> to vector<256x128xf32>
    %116 = arith.addf %113, %115 : vector<256x128xf32>
    %cst_58 = arith.constant 0.000000e+00 : f32
    %117 = vector.broadcast %cst_58 : f32 to vector<256x128xf32>
    %118 = arith.cmpf oge, %116, %117 : vector<256x128xf32>
    %cst_59 = arith.constant 2.000000e-01 : f32
    %119 = vector.broadcast %cst_59 : f32 to vector<256x128xf32>
    %120 = arith.mulf %119, %116 : vector<256x128xf32>
    %121 = arith.select %118, %116, %120 : vector<256x128xi1>, vector<256x128xf32>
    %122 = tpu.iota {dimensions = array<i32: 0>} : vector<16x16x128xi32>
    %123 = vector.shape_cast %122 : vector<16x16x128xi32> to vector<256x128xi32>
    %124 = tpu.iota {dimensions = array<i32: 1>} : vector<16x16x128xi32>
    %125 = vector.shape_cast %124 : vector<16x16x128xi32> to vector<256x128xi32>
    %c17_i32_60 = arith.constant 17 : i32
    %126 = tpu.dynamic_rotate %121 by %c17_i32_60 dim 0 : vector<256x128xf32>, i32 -> vector<256x128xf32>
    %c1_i32_61 = arith.constant 1 : i32
    %127 = vector.broadcast %c1_i32_61 : i32 to vector<256x128xi32>
    %128 = arith.cmpi sge, %123, %127 : vector<256x128xi32>
    %c1_i32_62 = arith.constant 1 : i32
    %129 = vector.broadcast %c1_i32_62 : i32 to vector<256x128xi32>
    %130 = arith.cmpi sge, %125, %129 : vector<256x128xi32>
    %131 = arith.andi %128, %130 : vector<256x128xi1>
    %cst_63 = arith.constant 0.000000e+00 : f32
    %132 = vector.broadcast %cst_63 : f32 to vector<256x128xf32>
    %133 = arith.select %131, %126, %132 : vector<256x128xi1>, vector<256x128xf32>
    %134 = arith.truncf %133 : vector<256x128xf32> to vector<256x128xbf16>
    %c0_64 = arith.constant 0 : index
    %c0_65 = arith.constant 0 : index
    %c0_66 = arith.constant 0 : index
    %135 = vector.load %arg6[%c0_64, %c0_65, %c0_66] : memref<9x128x128xbf16, #tpu.memory_space<vmem>>, vector<1x128x128xbf16>
    %136 = vector.shape_cast %135 : vector<1x128x128xbf16> to vector<128x128xbf16>
    %cst_67 = arith.constant dense<0.000000e+00> : vector<256x128xf32>
    %137 = tpu.matmul %134, %136, %cst_67 {dimension_numbers = #tpu.dot_dimension_numbers<[1], [0], [0], [1], [0, 0, 1, 1], [], []>} : vector<256x128xbf16>, vector<128x128xbf16>, vector<256x128xf32> -> vector<256x128xf32>
    %c16_i32_68 = arith.constant 16 : i32
    %138 = tpu.dynamic_rotate %121 by %c16_i32_68 dim 0 : vector<256x128xf32>, i32 -> vector<256x128xf32>
    %c1_i32_69 = arith.constant 1 : i32
    %139 = vector.broadcast %c1_i32_69 : i32 to vector<256x128xi32>
    %140 = arith.cmpi sge, %123, %139 : vector<256x128xi32>
    %cst_70 = arith.constant 0.000000e+00 : f32
    %141 = vector.broadcast %cst_70 : f32 to vector<256x128xf32>
    %142 = arith.select %140, %138, %141 : vector<256x128xi1>, vector<256x128xf32>
    %143 = arith.truncf %142 : vector<256x128xf32> to vector<256x128xbf16>
    %c1_71 = arith.constant 1 : index
    %c0_72 = arith.constant 0 : index
    %c0_73 = arith.constant 0 : index
    %144 = vector.load %arg6[%c1_71, %c0_72, %c0_73] : memref<9x128x128xbf16, #tpu.memory_space<vmem>>, vector<1x128x128xbf16>
    %145 = vector.shape_cast %144 : vector<1x128x128xbf16> to vector<128x128xbf16>
    %cst_74 = arith.constant dense<0.000000e+00> : vector<256x128xf32>
    %146 = tpu.matmul %143, %145, %cst_74 {dimension_numbers = #tpu.dot_dimension_numbers<[1], [0], [0], [1], [0, 0, 1, 1], [], []>} : vector<256x128xbf16>, vector<128x128xbf16>, vector<256x128xf32> -> vector<256x128xf32>
    %147 = arith.addf %137, %146 : vector<256x128xf32>
    %c15_i32_75 = arith.constant 15 : i32
    %148 = tpu.dynamic_rotate %121 by %c15_i32_75 dim 0 : vector<256x128xf32>, i32 -> vector<256x128xf32>
    %c1_i32_76 = arith.constant 1 : i32
    %149 = vector.broadcast %c1_i32_76 : i32 to vector<256x128xi32>
    %150 = arith.cmpi sge, %123, %149 : vector<256x128xi32>
    %c14_i32_77 = arith.constant 14 : i32
    %151 = vector.broadcast %c14_i32_77 : i32 to vector<256x128xi32>
    %152 = arith.cmpi sle, %125, %151 : vector<256x128xi32>
    %153 = arith.andi %150, %152 : vector<256x128xi1>
    %cst_78 = arith.constant 0.000000e+00 : f32
    %154 = vector.broadcast %cst_78 : f32 to vector<256x128xf32>
    %155 = arith.select %153, %148, %154 : vector<256x128xi1>, vector<256x128xf32>
    %156 = arith.truncf %155 : vector<256x128xf32> to vector<256x128xbf16>
    %c2_79 = arith.constant 2 : index
    %c0_80 = arith.constant 0 : index
    %c0_81 = arith.constant 0 : index
    %157 = vector.load %arg6[%c2_79, %c0_80, %c0_81] : memref<9x128x128xbf16, #tpu.memory_space<vmem>>, vector<1x128x128xbf16>
    %158 = vector.shape_cast %157 : vector<1x128x128xbf16> to vector<128x128xbf16>
    %cst_82 = arith.constant dense<0.000000e+00> : vector<256x128xf32>
    %159 = tpu.matmul %156, %158, %cst_82 {dimension_numbers = #tpu.dot_dimension_numbers<[1], [0], [0], [1], [0, 0, 1, 1], [], []>} : vector<256x128xbf16>, vector<128x128xbf16>, vector<256x128xf32> -> vector<256x128xf32>
    %160 = arith.addf %147, %159 : vector<256x128xf32>
    %c1_i32_83 = arith.constant 1 : i32
    %161 = tpu.dynamic_rotate %121 by %c1_i32_83 dim 0 : vector<256x128xf32>, i32 -> vector<256x128xf32>
    %c1_i32_84 = arith.constant 1 : i32
    %162 = vector.broadcast %c1_i32_84 : i32 to vector<256x128xi32>
    %163 = arith.cmpi sge, %125, %162 : vector<256x128xi32>
    %cst_85 = arith.constant 0.000000e+00 : f32
    %164 = vector.broadcast %cst_85 : f32 to vector<256x128xf32>
    %165 = arith.select %163, %161, %164 : vector<256x128xi1>, vector<256x128xf32>
    %166 = arith.truncf %165 : vector<256x128xf32> to vector<256x128xbf16>
    %c3_86 = arith.constant 3 : index
    %c0_87 = arith.constant 0 : index
    %c0_88 = arith.constant 0 : index
    %167 = vector.load %arg6[%c3_86, %c0_87, %c0_88] : memref<9x128x128xbf16, #tpu.memory_space<vmem>>, vector<1x128x128xbf16>
    %168 = vector.shape_cast %167 : vector<1x128x128xbf16> to vector<128x128xbf16>
    %cst_89 = arith.constant dense<0.000000e+00> : vector<256x128xf32>
    %169 = tpu.matmul %166, %168, %cst_89 {dimension_numbers = #tpu.dot_dimension_numbers<[1], [0], [0], [1], [0, 0, 1, 1], [], []>} : vector<256x128xbf16>, vector<128x128xbf16>, vector<256x128xf32> -> vector<256x128xf32>
    %170 = arith.addf %160, %169 : vector<256x128xf32>
    %171 = arith.truncf %121 : vector<256x128xf32> to vector<256x128xbf16>
    %c4_90 = arith.constant 4 : index
    %c0_91 = arith.constant 0 : index
    %c0_92 = arith.constant 0 : index
    %172 = vector.load %arg6[%c4_90, %c0_91, %c0_92] : memref<9x128x128xbf16, #tpu.memory_space<vmem>>, vector<1x128x128xbf16>
    %173 = vector.shape_cast %172 : vector<1x128x128xbf16> to vector<128x128xbf16>
    %cst_93 = arith.constant dense<0.000000e+00> : vector<256x128xf32>
    %174 = tpu.matmul %171, %173, %cst_93 {dimension_numbers = #tpu.dot_dimension_numbers<[1], [0], [0], [1], [0, 0, 1, 1], [], []>} : vector<256x128xbf16>, vector<128x128xbf16>, vector<256x128xf32> -> vector<256x128xf32>
    %175 = arith.addf %170, %174 : vector<256x128xf32>
    %c255_i32_94 = arith.constant 255 : i32
    %176 = tpu.dynamic_rotate %121 by %c255_i32_94 dim 0 : vector<256x128xf32>, i32 -> vector<256x128xf32>
    %c14_i32_95 = arith.constant 14 : i32
    %177 = vector.broadcast %c14_i32_95 : i32 to vector<256x128xi32>
    %178 = arith.cmpi sle, %125, %177 : vector<256x128xi32>
    %cst_96 = arith.constant 0.000000e+00 : f32
    %179 = vector.broadcast %cst_96 : f32 to vector<256x128xf32>
    %180 = arith.select %178, %176, %179 : vector<256x128xi1>, vector<256x128xf32>
    %181 = arith.truncf %180 : vector<256x128xf32> to vector<256x128xbf16>
    %c5_97 = arith.constant 5 : index
    %c0_98 = arith.constant 0 : index
    %c0_99 = arith.constant 0 : index
    %182 = vector.load %arg6[%c5_97, %c0_98, %c0_99] : memref<9x128x128xbf16, #tpu.memory_space<vmem>>, vector<1x128x128xbf16>
    %183 = vector.shape_cast %182 : vector<1x128x128xbf16> to vector<128x128xbf16>
    %cst_100 = arith.constant dense<0.000000e+00> : vector<256x128xf32>
    %184 = tpu.matmul %181, %183, %cst_100 {dimension_numbers = #tpu.dot_dimension_numbers<[1], [0], [0], [1], [0, 0, 1, 1], [], []>} : vector<256x128xbf16>, vector<128x128xbf16>, vector<256x128xf32> -> vector<256x128xf32>
    %185 = arith.addf %175, %184 : vector<256x128xf32>
    %c241_i32_101 = arith.constant 241 : i32
    %186 = tpu.dynamic_rotate %121 by %c241_i32_101 dim 0 : vector<256x128xf32>, i32 -> vector<256x128xf32>
    %c14_i32_102 = arith.constant 14 : i32
    %187 = vector.broadcast %c14_i32_102 : i32 to vector<256x128xi32>
    %188 = arith.cmpi sle, %123, %187 : vector<256x128xi32>
    %c1_i32_103 = arith.constant 1 : i32
    %189 = vector.broadcast %c1_i32_103 : i32 to vector<256x128xi32>
    %190 = arith.cmpi sge, %125, %189 : vector<256x128xi32>
    %191 = arith.andi %188, %190 : vector<256x128xi1>
    %cst_104 = arith.constant 0.000000e+00 : f32
    %192 = vector.broadcast %cst_104 : f32 to vector<256x128xf32>
    %193 = arith.select %191, %186, %192 : vector<256x128xi1>, vector<256x128xf32>
    %194 = arith.truncf %193 : vector<256x128xf32> to vector<256x128xbf16>
    %c6_105 = arith.constant 6 : index
    %c0_106 = arith.constant 0 : index
    %c0_107 = arith.constant 0 : index
    %195 = vector.load %arg6[%c6_105, %c0_106, %c0_107] : memref<9x128x128xbf16, #tpu.memory_space<vmem>>, vector<1x128x128xbf16>
    %196 = vector.shape_cast %195 : vector<1x128x128xbf16> to vector<128x128xbf16>
    %cst_108 = arith.constant dense<0.000000e+00> : vector<256x128xf32>
    %197 = tpu.matmul %194, %196, %cst_108 {dimension_numbers = #tpu.dot_dimension_numbers<[1], [0], [0], [1], [0, 0, 1, 1], [], []>} : vector<256x128xbf16>, vector<128x128xbf16>, vector<256x128xf32> -> vector<256x128xf32>
    %198 = arith.addf %185, %197 : vector<256x128xf32>
    %c240_i32_109 = arith.constant 240 : i32
    %199 = tpu.dynamic_rotate %121 by %c240_i32_109 dim 0 : vector<256x128xf32>, i32 -> vector<256x128xf32>
    %c14_i32_110 = arith.constant 14 : i32
    %200 = vector.broadcast %c14_i32_110 : i32 to vector<256x128xi32>
    %201 = arith.cmpi sle, %123, %200 : vector<256x128xi32>
    %cst_111 = arith.constant 0.000000e+00 : f32
    %202 = vector.broadcast %cst_111 : f32 to vector<256x128xf32>
    %203 = arith.select %201, %199, %202 : vector<256x128xi1>, vector<256x128xf32>
    %204 = arith.truncf %203 : vector<256x128xf32> to vector<256x128xbf16>
    %c7_112 = arith.constant 7 : index
    %c0_113 = arith.constant 0 : index
    %c0_114 = arith.constant 0 : index
    %205 = vector.load %arg6[%c7_112, %c0_113, %c0_114] : memref<9x128x128xbf16, #tpu.memory_space<vmem>>, vector<1x128x128xbf16>
    %206 = vector.shape_cast %205 : vector<1x128x128xbf16> to vector<128x128xbf16>
    %cst_115 = arith.constant dense<0.000000e+00> : vector<256x128xf32>
    %207 = tpu.matmul %204, %206, %cst_115 {dimension_numbers = #tpu.dot_dimension_numbers<[1], [0], [0], [1], [0, 0, 1, 1], [], []>} : vector<256x128xbf16>, vector<128x128xbf16>, vector<256x128xf32> -> vector<256x128xf32>
    %208 = arith.addf %198, %207 : vector<256x128xf32>
    %c239_i32_116 = arith.constant 239 : i32
    %209 = tpu.dynamic_rotate %121 by %c239_i32_116 dim 0 : vector<256x128xf32>, i32 -> vector<256x128xf32>
    %c14_i32_117 = arith.constant 14 : i32
    %210 = vector.broadcast %c14_i32_117 : i32 to vector<256x128xi32>
    %211 = arith.cmpi sle, %123, %210 : vector<256x128xi32>
    %c14_i32_118 = arith.constant 14 : i32
    %212 = vector.broadcast %c14_i32_118 : i32 to vector<256x128xi32>
    %213 = arith.cmpi sle, %125, %212 : vector<256x128xi32>
    %214 = arith.andi %211, %213 : vector<256x128xi1>
    %cst_119 = arith.constant 0.000000e+00 : f32
    %215 = vector.broadcast %cst_119 : f32 to vector<256x128xf32>
    %216 = arith.select %214, %209, %215 : vector<256x128xi1>, vector<256x128xf32>
    %217 = arith.truncf %216 : vector<256x128xf32> to vector<256x128xbf16>
    %c8_120 = arith.constant 8 : index
    %c0_121 = arith.constant 0 : index
    %c0_122 = arith.constant 0 : index
    %218 = vector.load %arg6[%c8_120, %c0_121, %c0_122] : memref<9x128x128xbf16, #tpu.memory_space<vmem>>, vector<1x128x128xbf16>
    %219 = vector.shape_cast %218 : vector<1x128x128xbf16> to vector<128x128xbf16>
    %cst_123 = arith.constant dense<0.000000e+00> : vector<256x128xf32>
    %220 = tpu.matmul %217, %219, %cst_123 {dimension_numbers = #tpu.dot_dimension_numbers<[1], [0], [0], [1], [0, 0, 1, 1], [], []>} : vector<256x128xbf16>, vector<128x128xbf16>, vector<256x128xf32> -> vector<256x128xf32>
    %221 = arith.addf %208, %220 : vector<256x128xf32>
    %c0_124 = arith.constant 0 : index
    %c0_125 = arith.constant 0 : index
    %222 = vector.load %arg7[%c0_124, %c0_125] : memref<1x128xf32, #tpu.memory_space<vmem>>, vector<1x128xf32>
    %223 = vector.broadcast %222 : vector<1x128xf32> to vector<256x128xf32>
    %224 = arith.addf %221, %223 : vector<256x128xf32>
    %c0_126 = arith.constant 0 : index
    %c0_127 = arith.constant 0 : index
    %225 = vector.load %arg8[%c0_126, %c0_127] : memref<128x128xbf16, #tpu.memory_space<vmem>>, vector<128x128xbf16>
    %226 = arith.truncf %8 : vector<256x128xf32> to vector<256x128xbf16>
    %cst_128 = arith.constant dense<0.000000e+00> : vector<256x128xf32>
    %227 = tpu.matmul %226, %225, %cst_128 {dimension_numbers = #tpu.dot_dimension_numbers<[1], [0], [0], [1], [0, 0, 1, 1], [], []>} : vector<256x128xbf16>, vector<128x128xbf16>, vector<256x128xf32> -> vector<256x128xf32>
    %c0_129 = arith.constant 0 : index
    %c0_130 = arith.constant 0 : index
    %228 = vector.load %arg9[%c0_129, %c0_130] : memref<1x128xf32, #tpu.memory_space<vmem>>, vector<1x128xf32>
    %229 = vector.broadcast %228 : vector<1x128xf32> to vector<256x128xf32>
    %230 = arith.addf %227, %229 : vector<256x128xf32>
    %231 = arith.addf %224, %230 : vector<256x128xf32>
    %c0_131 = arith.constant 0 : index
    %c0_132 = arith.constant 0 : index
    %232 = vector.load %arg10[%c0_131, %c0_132] : memref<64x256xbf16, #tpu.memory_space<vmem>>, vector<64x256xbf16>
    %233 = arith.truncf %231 : vector<256x128xf32> to vector<256x128xbf16>
    %cst_133 = arith.constant dense<0.000000e+00> : vector<64x128xf32>
    %234 = tpu.matmul %232, %233, %cst_133 {dimension_numbers = #tpu.dot_dimension_numbers<[1], [0], [0], [1], [0, 0, 1, 1], [], []>} : vector<64x256xbf16>, vector<256x128xbf16>, vector<64x128xf32> -> vector<64x128xf32>
    %cst_134 = arith.constant 0.000000e+00 : f32
    %235 = vector.broadcast %cst_134 : f32 to vector<64x128xf32>
    %236 = arith.cmpf oge, %234, %235 : vector<64x128xf32>
    %cst_135 = arith.constant 2.000000e-01 : f32
    %237 = vector.broadcast %cst_135 : f32 to vector<64x128xf32>
    %238 = arith.mulf %237, %234 : vector<64x128xf32>
    %239 = arith.select %236, %234, %238 : vector<64x128xi1>, vector<64x128xf32>
    %240 = tpu.iota {dimensions = array<i32: 0>} : vector<8x8x128xi32>
    %241 = vector.shape_cast %240 : vector<8x8x128xi32> to vector<64x128xi32>
    %242 = tpu.iota {dimensions = array<i32: 1>} : vector<8x8x128xi32>
    %243 = vector.shape_cast %242 : vector<8x8x128xi32> to vector<64x128xi32>
    %c9_i32 = arith.constant 9 : i32
    %244 = tpu.dynamic_rotate %239 by %c9_i32 dim 0 : vector<64x128xf32>, i32 -> vector<64x128xf32>
    %c1_i32_136 = arith.constant 1 : i32
    %245 = vector.broadcast %c1_i32_136 : i32 to vector<64x128xi32>
    %246 = arith.cmpi sge, %241, %245 : vector<64x128xi32>
    %c1_i32_137 = arith.constant 1 : i32
    %247 = vector.broadcast %c1_i32_137 : i32 to vector<64x128xi32>
    %248 = arith.cmpi sge, %243, %247 : vector<64x128xi32>
    %249 = arith.andi %246, %248 : vector<64x128xi1>
    %cst_138 = arith.constant 0.000000e+00 : f32
    %250 = vector.broadcast %cst_138 : f32 to vector<64x128xf32>
    %251 = arith.select %249, %244, %250 : vector<64x128xi1>, vector<64x128xf32>
    %252 = arith.truncf %251 : vector<64x128xf32> to vector<64x128xbf16>
    %c0_139 = arith.constant 0 : index
    %c0_140 = arith.constant 0 : index
    %c0_141 = arith.constant 0 : index
    %253 = vector.load %arg11[%c0_139, %c0_140, %c0_141] : memref<9x128x128xbf16, #tpu.memory_space<vmem>>, vector<1x128x128xbf16>
    %254 = vector.shape_cast %253 : vector<1x128x128xbf16> to vector<128x128xbf16>
    %cst_142 = arith.constant dense<0.000000e+00> : vector<64x128xf32>
    %255 = tpu.matmul %252, %254, %cst_142 {dimension_numbers = #tpu.dot_dimension_numbers<[1], [0], [0], [1], [0, 0, 1, 1], [], []>} : vector<64x128xbf16>, vector<128x128xbf16>, vector<64x128xf32> -> vector<64x128xf32>
    %c8_i32 = arith.constant 8 : i32
    %256 = tpu.dynamic_rotate %239 by %c8_i32 dim 0 : vector<64x128xf32>, i32 -> vector<64x128xf32>
    %c1_i32_143 = arith.constant 1 : i32
    %257 = vector.broadcast %c1_i32_143 : i32 to vector<64x128xi32>
    %258 = arith.cmpi sge, %241, %257 : vector<64x128xi32>
    %cst_144 = arith.constant 0.000000e+00 : f32
    %259 = vector.broadcast %cst_144 : f32 to vector<64x128xf32>
    %260 = arith.select %258, %256, %259 : vector<64x128xi1>, vector<64x128xf32>
    %261 = arith.truncf %260 : vector<64x128xf32> to vector<64x128xbf16>
    %c1_145 = arith.constant 1 : index
    %c0_146 = arith.constant 0 : index
    %c0_147 = arith.constant 0 : index
    %262 = vector.load %arg11[%c1_145, %c0_146, %c0_147] : memref<9x128x128xbf16, #tpu.memory_space<vmem>>, vector<1x128x128xbf16>
    %263 = vector.shape_cast %262 : vector<1x128x128xbf16> to vector<128x128xbf16>
    %cst_148 = arith.constant dense<0.000000e+00> : vector<64x128xf32>
    %264 = tpu.matmul %261, %263, %cst_148 {dimension_numbers = #tpu.dot_dimension_numbers<[1], [0], [0], [1], [0, 0, 1, 1], [], []>} : vector<64x128xbf16>, vector<128x128xbf16>, vector<64x128xf32> -> vector<64x128xf32>
    %265 = arith.addf %255, %264 : vector<64x128xf32>
    %c7_i32 = arith.constant 7 : i32
    %266 = tpu.dynamic_rotate %239 by %c7_i32 dim 0 : vector<64x128xf32>, i32 -> vector<64x128xf32>
    %c1_i32_149 = arith.constant 1 : i32
    %267 = vector.broadcast %c1_i32_149 : i32 to vector<64x128xi32>
    %268 = arith.cmpi sge, %241, %267 : vector<64x128xi32>
    %c6_i32 = arith.constant 6 : i32
    %269 = vector.broadcast %c6_i32 : i32 to vector<64x128xi32>
    %270 = arith.cmpi sle, %243, %269 : vector<64x128xi32>
    %271 = arith.andi %268, %270 : vector<64x128xi1>
    %cst_150 = arith.constant 0.000000e+00 : f32
    %272 = vector.broadcast %cst_150 : f32 to vector<64x128xf32>
    %273 = arith.select %271, %266, %272 : vector<64x128xi1>, vector<64x128xf32>
    %274 = arith.truncf %273 : vector<64x128xf32> to vector<64x128xbf16>
    %c2_151 = arith.constant 2 : index
    %c0_152 = arith.constant 0 : index
    %c0_153 = arith.constant 0 : index
    %275 = vector.load %arg11[%c2_151, %c0_152, %c0_153] : memref<9x128x128xbf16, #tpu.memory_space<vmem>>, vector<1x128x128xbf16>
    %276 = vector.shape_cast %275 : vector<1x128x128xbf16> to vector<128x128xbf16>
    %cst_154 = arith.constant dense<0.000000e+00> : vector<64x128xf32>
    %277 = tpu.matmul %274, %276, %cst_154 {dimension_numbers = #tpu.dot_dimension_numbers<[1], [0], [0], [1], [0, 0, 1, 1], [], []>} : vector<64x128xbf16>, vector<128x128xbf16>, vector<64x128xf32> -> vector<64x128xf32>
    %278 = arith.addf %265, %277 : vector<64x128xf32>
    %c1_i32_155 = arith.constant 1 : i32
    %279 = tpu.dynamic_rotate %239 by %c1_i32_155 dim 0 : vector<64x128xf32>, i32 -> vector<64x128xf32>
    %c1_i32_156 = arith.constant 1 : i32
    %280 = vector.broadcast %c1_i32_156 : i32 to vector<64x128xi32>
    %281 = arith.cmpi sge, %243, %280 : vector<64x128xi32>
    %cst_157 = arith.constant 0.000000e+00 : f32
    %282 = vector.broadcast %cst_157 : f32 to vector<64x128xf32>
    %283 = arith.select %281, %279, %282 : vector<64x128xi1>, vector<64x128xf32>
    %284 = arith.truncf %283 : vector<64x128xf32> to vector<64x128xbf16>
    %c3_158 = arith.constant 3 : index
    %c0_159 = arith.constant 0 : index
    %c0_160 = arith.constant 0 : index
    %285 = vector.load %arg11[%c3_158, %c0_159, %c0_160] : memref<9x128x128xbf16, #tpu.memory_space<vmem>>, vector<1x128x128xbf16>
    %286 = vector.shape_cast %285 : vector<1x128x128xbf16> to vector<128x128xbf16>
    %cst_161 = arith.constant dense<0.000000e+00> : vector<64x128xf32>
    %287 = tpu.matmul %284, %286, %cst_161 {dimension_numbers = #tpu.dot_dimension_numbers<[1], [0], [0], [1], [0, 0, 1, 1], [], []>} : vector<64x128xbf16>, vector<128x128xbf16>, vector<64x128xf32> -> vector<64x128xf32>
    %288 = arith.addf %278, %287 : vector<64x128xf32>
    %289 = arith.truncf %239 : vector<64x128xf32> to vector<64x128xbf16>
    %c4_162 = arith.constant 4 : index
    %c0_163 = arith.constant 0 : index
    %c0_164 = arith.constant 0 : index
    %290 = vector.load %arg11[%c4_162, %c0_163, %c0_164] : memref<9x128x128xbf16, #tpu.memory_space<vmem>>, vector<1x128x128xbf16>
    %291 = vector.shape_cast %290 : vector<1x128x128xbf16> to vector<128x128xbf16>
    %cst_165 = arith.constant dense<0.000000e+00> : vector<64x128xf32>
    %292 = tpu.matmul %289, %291, %cst_165 {dimension_numbers = #tpu.dot_dimension_numbers<[1], [0], [0], [1], [0, 0, 1, 1], [], []>} : vector<64x128xbf16>, vector<128x128xbf16>, vector<64x128xf32> -> vector<64x128xf32>
    %293 = arith.addf %288, %292 : vector<64x128xf32>
    %c63_i32 = arith.constant 63 : i32
    %294 = tpu.dynamic_rotate %239 by %c63_i32 dim 0 : vector<64x128xf32>, i32 -> vector<64x128xf32>
    %c6_i32_166 = arith.constant 6 : i32
    %295 = vector.broadcast %c6_i32_166 : i32 to vector<64x128xi32>
    %296 = arith.cmpi sle, %243, %295 : vector<64x128xi32>
    %cst_167 = arith.constant 0.000000e+00 : f32
    %297 = vector.broadcast %cst_167 : f32 to vector<64x128xf32>
    %298 = arith.select %296, %294, %297 : vector<64x128xi1>, vector<64x128xf32>
    %299 = arith.truncf %298 : vector<64x128xf32> to vector<64x128xbf16>
    %c5_168 = arith.constant 5 : index
    %c0_169 = arith.constant 0 : index
    %c0_170 = arith.constant 0 : index
    %300 = vector.load %arg11[%c5_168, %c0_169, %c0_170] : memref<9x128x128xbf16, #tpu.memory_space<vmem>>, vector<1x128x128xbf16>
    %301 = vector.shape_cast %300 : vector<1x128x128xbf16> to vector<128x128xbf16>
    %cst_171 = arith.constant dense<0.000000e+00> : vector<64x128xf32>
    %302 = tpu.matmul %299, %301, %cst_171 {dimension_numbers = #tpu.dot_dimension_numbers<[1], [0], [0], [1], [0, 0, 1, 1], [], []>} : vector<64x128xbf16>, vector<128x128xbf16>, vector<64x128xf32> -> vector<64x128xf32>
    %303 = arith.addf %293, %302 : vector<64x128xf32>
    %c57_i32 = arith.constant 57 : i32
    %304 = tpu.dynamic_rotate %239 by %c57_i32 dim 0 : vector<64x128xf32>, i32 -> vector<64x128xf32>
    %c6_i32_172 = arith.constant 6 : i32
    %305 = vector.broadcast %c6_i32_172 : i32 to vector<64x128xi32>
    %306 = arith.cmpi sle, %241, %305 : vector<64x128xi32>
    %c1_i32_173 = arith.constant 1 : i32
    %307 = vector.broadcast %c1_i32_173 : i32 to vector<64x128xi32>
    %308 = arith.cmpi sge, %243, %307 : vector<64x128xi32>
    %309 = arith.andi %306, %308 : vector<64x128xi1>
    %cst_174 = arith.constant 0.000000e+00 : f32
    %310 = vector.broadcast %cst_174 : f32 to vector<64x128xf32>
    %311 = arith.select %309, %304, %310 : vector<64x128xi1>, vector<64x128xf32>
    %312 = arith.truncf %311 : vector<64x128xf32> to vector<64x128xbf16>
    %c6_175 = arith.constant 6 : index
    %c0_176 = arith.constant 0 : index
    %c0_177 = arith.constant 0 : index
    %313 = vector.load %arg11[%c6_175, %c0_176, %c0_177] : memref<9x128x128xbf16, #tpu.memory_space<vmem>>, vector<1x128x128xbf16>
    %314 = vector.shape_cast %313 : vector<1x128x128xbf16> to vector<128x128xbf16>
    %cst_178 = arith.constant dense<0.000000e+00> : vector<64x128xf32>
    %315 = tpu.matmul %312, %314, %cst_178 {dimension_numbers = #tpu.dot_dimension_numbers<[1], [0], [0], [1], [0, 0, 1, 1], [], []>} : vector<64x128xbf16>, vector<128x128xbf16>, vector<64x128xf32> -> vector<64x128xf32>
    %316 = arith.addf %303, %315 : vector<64x128xf32>
    %c56_i32 = arith.constant 56 : i32
    %317 = tpu.dynamic_rotate %239 by %c56_i32 dim 0 : vector<64x128xf32>, i32 -> vector<64x128xf32>
    %c6_i32_179 = arith.constant 6 : i32
    %318 = vector.broadcast %c6_i32_179 : i32 to vector<64x128xi32>
    %319 = arith.cmpi sle, %241, %318 : vector<64x128xi32>
    %cst_180 = arith.constant 0.000000e+00 : f32
    %320 = vector.broadcast %cst_180 : f32 to vector<64x128xf32>
    %321 = arith.select %319, %317, %320 : vector<64x128xi1>, vector<64x128xf32>
    %322 = arith.truncf %321 : vector<64x128xf32> to vector<64x128xbf16>
    %c7_181 = arith.constant 7 : index
    %c0_182 = arith.constant 0 : index
    %c0_183 = arith.constant 0 : index
    %323 = vector.load %arg11[%c7_181, %c0_182, %c0_183] : memref<9x128x128xbf16, #tpu.memory_space<vmem>>, vector<1x128x128xbf16>
    %324 = vector.shape_cast %323 : vector<1x128x128xbf16> to vector<128x128xbf16>
    %cst_184 = arith.constant dense<0.000000e+00> : vector<64x128xf32>
    %325 = tpu.matmul %322, %324, %cst_184 {dimension_numbers = #tpu.dot_dimension_numbers<[1], [0], [0], [1], [0, 0, 1, 1], [], []>} : vector<64x128xbf16>, vector<128x128xbf16>, vector<64x128xf32> -> vector<64x128xf32>
    %326 = arith.addf %316, %325 : vector<64x128xf32>
    %c55_i32 = arith.constant 55 : i32
    %327 = tpu.dynamic_rotate %239 by %c55_i32 dim 0 : vector<64x128xf32>, i32 -> vector<64x128xf32>
    %c6_i32_185 = arith.constant 6 : i32
    %328 = vector.broadcast %c6_i32_185 : i32 to vector<64x128xi32>
    %329 = arith.cmpi sle, %241, %328 : vector<64x128xi32>
    %c6_i32_186 = arith.constant 6 : i32
    %330 = vector.broadcast %c6_i32_186 : i32 to vector<64x128xi32>
    %331 = arith.cmpi sle, %243, %330 : vector<64x128xi32>
    %332 = arith.andi %329, %331 : vector<64x128xi1>
    %cst_187 = arith.constant 0.000000e+00 : f32
    %333 = vector.broadcast %cst_187 : f32 to vector<64x128xf32>
    %334 = arith.select %332, %327, %333 : vector<64x128xi1>, vector<64x128xf32>
    %335 = arith.truncf %334 : vector<64x128xf32> to vector<64x128xbf16>
    %c8_188 = arith.constant 8 : index
    %c0_189 = arith.constant 0 : index
    %c0_190 = arith.constant 0 : index
    %336 = vector.load %arg11[%c8_188, %c0_189, %c0_190] : memref<9x128x128xbf16, #tpu.memory_space<vmem>>, vector<1x128x128xbf16>
    %337 = vector.shape_cast %336 : vector<1x128x128xbf16> to vector<128x128xbf16>
    %cst_191 = arith.constant dense<0.000000e+00> : vector<64x128xf32>
    %338 = tpu.matmul %335, %337, %cst_191 {dimension_numbers = #tpu.dot_dimension_numbers<[1], [0], [0], [1], [0, 0, 1, 1], [], []>} : vector<64x128xbf16>, vector<128x128xbf16>, vector<64x128xf32> -> vector<64x128xf32>
    %339 = arith.addf %326, %338 : vector<64x128xf32>
    %c0_192 = arith.constant 0 : index
    %c0_193 = arith.constant 0 : index
    %340 = vector.load %arg12[%c0_192, %c0_193] : memref<1x128xf32, #tpu.memory_space<vmem>>, vector<1x128xf32>
    %341 = vector.broadcast %340 : vector<1x128xf32> to vector<64x128xf32>
    %342 = arith.addf %339, %341 : vector<64x128xf32>
    %cst_194 = arith.constant 0.000000e+00 : f32
    %343 = vector.broadcast %cst_194 : f32 to vector<64x128xf32>
    %344 = arith.cmpf oge, %342, %343 : vector<64x128xf32>
    %cst_195 = arith.constant 2.000000e-01 : f32
    %345 = vector.broadcast %cst_195 : f32 to vector<64x128xf32>
    %346 = arith.mulf %345, %342 : vector<64x128xf32>
    %347 = arith.select %344, %342, %346 : vector<64x128xi1>, vector<64x128xf32>
    %348 = tpu.iota {dimensions = array<i32: 0>} : vector<8x8x128xi32>
    %349 = vector.shape_cast %348 : vector<8x8x128xi32> to vector<64x128xi32>
    %350 = tpu.iota {dimensions = array<i32: 1>} : vector<8x8x128xi32>
    %351 = vector.shape_cast %350 : vector<8x8x128xi32> to vector<64x128xi32>
    %c9_i32_196 = arith.constant 9 : i32
    %352 = tpu.dynamic_rotate %347 by %c9_i32_196 dim 0 : vector<64x128xf32>, i32 -> vector<64x128xf32>
    %c1_i32_197 = arith.constant 1 : i32
    %353 = vector.broadcast %c1_i32_197 : i32 to vector<64x128xi32>
    %354 = arith.cmpi sge, %349, %353 : vector<64x128xi32>
    %c1_i32_198 = arith.constant 1 : i32
    %355 = vector.broadcast %c1_i32_198 : i32 to vector<64x128xi32>
    %356 = arith.cmpi sge, %351, %355 : vector<64x128xi32>
    %357 = arith.andi %354, %356 : vector<64x128xi1>
    %cst_199 = arith.constant 0.000000e+00 : f32
    %358 = vector.broadcast %cst_199 : f32 to vector<64x128xf32>
    %359 = arith.select %357, %352, %358 : vector<64x128xi1>, vector<64x128xf32>
    %360 = arith.truncf %359 : vector<64x128xf32> to vector<64x128xbf16>
    %c0_200 = arith.constant 0 : index
    %c0_201 = arith.constant 0 : index
    %c0_202 = arith.constant 0 : index
    %361 = vector.load %arg13[%c0_200, %c0_201, %c0_202] : memref<9x128x128xbf16, #tpu.memory_space<vmem>>, vector<1x128x128xbf16>
    %362 = vector.shape_cast %361 : vector<1x128x128xbf16> to vector<128x128xbf16>
    %cst_203 = arith.constant dense<0.000000e+00> : vector<64x128xf32>
    %363 = tpu.matmul %360, %362, %cst_203 {dimension_numbers = #tpu.dot_dimension_numbers<[1], [0], [0], [1], [0, 0, 1, 1], [], []>} : vector<64x128xbf16>, vector<128x128xbf16>, vector<64x128xf32> -> vector<64x128xf32>
    %c8_i32_204 = arith.constant 8 : i32
    %364 = tpu.dynamic_rotate %347 by %c8_i32_204 dim 0 : vector<64x128xf32>, i32 -> vector<64x128xf32>
    %c1_i32_205 = arith.constant 1 : i32
    %365 = vector.broadcast %c1_i32_205 : i32 to vector<64x128xi32>
    %366 = arith.cmpi sge, %349, %365 : vector<64x128xi32>
    %cst_206 = arith.constant 0.000000e+00 : f32
    %367 = vector.broadcast %cst_206 : f32 to vector<64x128xf32>
    %368 = arith.select %366, %364, %367 : vector<64x128xi1>, vector<64x128xf32>
    %369 = arith.truncf %368 : vector<64x128xf32> to vector<64x128xbf16>
    %c1_207 = arith.constant 1 : index
    %c0_208 = arith.constant 0 : index
    %c0_209 = arith.constant 0 : index
    %370 = vector.load %arg13[%c1_207, %c0_208, %c0_209] : memref<9x128x128xbf16, #tpu.memory_space<vmem>>, vector<1x128x128xbf16>
    %371 = vector.shape_cast %370 : vector<1x128x128xbf16> to vector<128x128xbf16>
    %cst_210 = arith.constant dense<0.000000e+00> : vector<64x128xf32>
    %372 = tpu.matmul %369, %371, %cst_210 {dimension_numbers = #tpu.dot_dimension_numbers<[1], [0], [0], [1], [0, 0, 1, 1], [], []>} : vector<64x128xbf16>, vector<128x128xbf16>, vector<64x128xf32> -> vector<64x128xf32>
    %373 = arith.addf %363, %372 : vector<64x128xf32>
    %c7_i32_211 = arith.constant 7 : i32
    %374 = tpu.dynamic_rotate %347 by %c7_i32_211 dim 0 : vector<64x128xf32>, i32 -> vector<64x128xf32>
    %c1_i32_212 = arith.constant 1 : i32
    %375 = vector.broadcast %c1_i32_212 : i32 to vector<64x128xi32>
    %376 = arith.cmpi sge, %349, %375 : vector<64x128xi32>
    %c6_i32_213 = arith.constant 6 : i32
    %377 = vector.broadcast %c6_i32_213 : i32 to vector<64x128xi32>
    %378 = arith.cmpi sle, %351, %377 : vector<64x128xi32>
    %379 = arith.andi %376, %378 : vector<64x128xi1>
    %cst_214 = arith.constant 0.000000e+00 : f32
    %380 = vector.broadcast %cst_214 : f32 to vector<64x128xf32>
    %381 = arith.select %379, %374, %380 : vector<64x128xi1>, vector<64x128xf32>
    %382 = arith.truncf %381 : vector<64x128xf32> to vector<64x128xbf16>
    %c2_215 = arith.constant 2 : index
    %c0_216 = arith.constant 0 : index
    %c0_217 = arith.constant 0 : index
    %383 = vector.load %arg13[%c2_215, %c0_216, %c0_217] : memref<9x128x128xbf16, #tpu.memory_space<vmem>>, vector<1x128x128xbf16>
    %384 = vector.shape_cast %383 : vector<1x128x128xbf16> to vector<128x128xbf16>
    %cst_218 = arith.constant dense<0.000000e+00> : vector<64x128xf32>
    %385 = tpu.matmul %382, %384, %cst_218 {dimension_numbers = #tpu.dot_dimension_numbers<[1], [0], [0], [1], [0, 0, 1, 1], [], []>} : vector<64x128xbf16>, vector<128x128xbf16>, vector<64x128xf32> -> vector<64x128xf32>
    %386 = arith.addf %373, %385 : vector<64x128xf32>
    %c1_i32_219 = arith.constant 1 : i32
    %387 = tpu.dynamic_rotate %347 by %c1_i32_219 dim 0 : vector<64x128xf32>, i32 -> vector<64x128xf32>
    %c1_i32_220 = arith.constant 1 : i32
    %388 = vector.broadcast %c1_i32_220 : i32 to vector<64x128xi32>
    %389 = arith.cmpi sge, %351, %388 : vector<64x128xi32>
    %cst_221 = arith.constant 0.000000e+00 : f32
    %390 = vector.broadcast %cst_221 : f32 to vector<64x128xf32>
    %391 = arith.select %389, %387, %390 : vector<64x128xi1>, vector<64x128xf32>
    %392 = arith.truncf %391 : vector<64x128xf32> to vector<64x128xbf16>
    %c3_222 = arith.constant 3 : index
    %c0_223 = arith.constant 0 : index
    %c0_224 = arith.constant 0 : index
    %393 = vector.load %arg13[%c3_222, %c0_223, %c0_224] : memref<9x128x128xbf16, #tpu.memory_space<vmem>>, vector<1x128x128xbf16>
    %394 = vector.shape_cast %393 : vector<1x128x128xbf16> to vector<128x128xbf16>
    %cst_225 = arith.constant dense<0.000000e+00> : vector<64x128xf32>
    %395 = tpu.matmul %392, %394, %cst_225 {dimension_numbers = #tpu.dot_dimension_numbers<[1], [0], [0], [1], [0, 0, 1, 1], [], []>} : vector<64x128xbf16>, vector<128x128xbf16>, vector<64x128xf32> -> vector<64x128xf32>
    %396 = arith.addf %386, %395 : vector<64x128xf32>
    %397 = arith.truncf %347 : vector<64x128xf32> to vector<64x128xbf16>
    %c4_226 = arith.constant 4 : index
    %c0_227 = arith.constant 0 : index
    %c0_228 = arith.constant 0 : index
    %398 = vector.load %arg13[%c4_226, %c0_227, %c0_228] : memref<9x128x128xbf16, #tpu.memory_space<vmem>>, vector<1x128x128xbf16>
    %399 = vector.shape_cast %398 : vector<1x128x128xbf16> to vector<128x128xbf16>
    %cst_229 = arith.constant dense<0.000000e+00> : vector<64x128xf32>
    %400 = tpu.matmul %397, %399, %cst_229 {dimension_numbers = #tpu.dot_dimension_numbers<[1], [0], [0], [1], [0, 0, 1, 1], [], []>} : vector<64x128xbf16>, vector<128x128xbf16>, vector<64x128xf32> -> vector<64x128xf32>
    %401 = arith.addf %396, %400 : vector<64x128xf32>
    %c63_i32_230 = arith.constant 63 : i32
    %402 = tpu.dynamic_rotate %347 by %c63_i32_230 dim 0 : vector<64x128xf32>, i32 -> vector<64x128xf32>
    %c6_i32_231 = arith.constant 6 : i32
    %403 = vector.broadcast %c6_i32_231 : i32 to vector<64x128xi32>
    %404 = arith.cmpi sle, %351, %403 : vector<64x128xi32>
    %cst_232 = arith.constant 0.000000e+00 : f32
    %405 = vector.broadcast %cst_232 : f32 to vector<64x128xf32>
    %406 = arith.select %404, %402, %405 : vector<64x128xi1>, vector<64x128xf32>
    %407 = arith.truncf %406 : vector<64x128xf32> to vector<64x128xbf16>
    %c5_233 = arith.constant 5 : index
    %c0_234 = arith.constant 0 : index
    %c0_235 = arith.constant 0 : index
    %408 = vector.load %arg13[%c5_233, %c0_234, %c0_235] : memref<9x128x128xbf16, #tpu.memory_space<vmem>>, vector<1x128x128xbf16>
    %409 = vector.shape_cast %408 : vector<1x128x128xbf16> to vector<128x128xbf16>
    %cst_236 = arith.constant dense<0.000000e+00> : vector<64x128xf32>
    %410 = tpu.matmul %407, %409, %cst_236 {dimension_numbers = #tpu.dot_dimension_numbers<[1], [0], [0], [1], [0, 0, 1, 1], [], []>} : vector<64x128xbf16>, vector<128x128xbf16>, vector<64x128xf32> -> vector<64x128xf32>
    %411 = arith.addf %401, %410 : vector<64x128xf32>
    %c57_i32_237 = arith.constant 57 : i32
    %412 = tpu.dynamic_rotate %347 by %c57_i32_237 dim 0 : vector<64x128xf32>, i32 -> vector<64x128xf32>
    %c6_i32_238 = arith.constant 6 : i32
    %413 = vector.broadcast %c6_i32_238 : i32 to vector<64x128xi32>
    %414 = arith.cmpi sle, %349, %413 : vector<64x128xi32>
    %c1_i32_239 = arith.constant 1 : i32
    %415 = vector.broadcast %c1_i32_239 : i32 to vector<64x128xi32>
    %416 = arith.cmpi sge, %351, %415 : vector<64x128xi32>
    %417 = arith.andi %414, %416 : vector<64x128xi1>
    %cst_240 = arith.constant 0.000000e+00 : f32
    %418 = vector.broadcast %cst_240 : f32 to vector<64x128xf32>
    %419 = arith.select %417, %412, %418 : vector<64x128xi1>, vector<64x128xf32>
    %420 = arith.truncf %419 : vector<64x128xf32> to vector<64x128xbf16>
    %c6_241 = arith.constant 6 : index
    %c0_242 = arith.constant 0 : index
    %c0_243 = arith.constant 0 : index
    %421 = vector.load %arg13[%c6_241, %c0_242, %c0_243] : memref<9x128x128xbf16, #tpu.memory_space<vmem>>, vector<1x128x128xbf16>
    %422 = vector.shape_cast %421 : vector<1x128x128xbf16> to vector<128x128xbf16>
    %cst_244 = arith.constant dense<0.000000e+00> : vector<64x128xf32>
    %423 = tpu.matmul %420, %422, %cst_244 {dimension_numbers = #tpu.dot_dimension_numbers<[1], [0], [0], [1], [0, 0, 1, 1], [], []>} : vector<64x128xbf16>, vector<128x128xbf16>, vector<64x128xf32> -> vector<64x128xf32>
    %424 = arith.addf %411, %423 : vector<64x128xf32>
    %c56_i32_245 = arith.constant 56 : i32
    %425 = tpu.dynamic_rotate %347 by %c56_i32_245 dim 0 : vector<64x128xf32>, i32 -> vector<64x128xf32>
    %c6_i32_246 = arith.constant 6 : i32
    %426 = vector.broadcast %c6_i32_246 : i32 to vector<64x128xi32>
    %427 = arith.cmpi sle, %349, %426 : vector<64x128xi32>
    %cst_247 = arith.constant 0.000000e+00 : f32
    %428 = vector.broadcast %cst_247 : f32 to vector<64x128xf32>
    %429 = arith.select %427, %425, %428 : vector<64x128xi1>, vector<64x128xf32>
    %430 = arith.truncf %429 : vector<64x128xf32> to vector<64x128xbf16>
    %c7_248 = arith.constant 7 : index
    %c0_249 = arith.constant 0 : index
    %c0_250 = arith.constant 0 : index
    %431 = vector.load %arg13[%c7_248, %c0_249, %c0_250] : memref<9x128x128xbf16, #tpu.memory_space<vmem>>, vector<1x128x128xbf16>
    %432 = vector.shape_cast %431 : vector<1x128x128xbf16> to vector<128x128xbf16>
    %cst_251 = arith.constant dense<0.000000e+00> : vector<64x128xf32>
    %433 = tpu.matmul %430, %432, %cst_251 {dimension_numbers = #tpu.dot_dimension_numbers<[1], [0], [0], [1], [0, 0, 1, 1], [], []>} : vector<64x128xbf16>, vector<128x128xbf16>, vector<64x128xf32> -> vector<64x128xf32>
    %434 = arith.addf %424, %433 : vector<64x128xf32>
    %c55_i32_252 = arith.constant 55 : i32
    %435 = tpu.dynamic_rotate %347 by %c55_i32_252 dim 0 : vector<64x128xf32>, i32 -> vector<64x128xf32>
    %c6_i32_253 = arith.constant 6 : i32
    %436 = vector.broadcast %c6_i32_253 : i32 to vector<64x128xi32>
    %437 = arith.cmpi sle, %349, %436 : vector<64x128xi32>
    %c6_i32_254 = arith.constant 6 : i32
    %438 = vector.broadcast %c6_i32_254 : i32 to vector<64x128xi32>
    %439 = arith.cmpi sle, %351, %438 : vector<64x128xi32>
    %440 = arith.andi %437, %439 : vector<64x128xi1>
    %cst_255 = arith.constant 0.000000e+00 : f32
    %441 = vector.broadcast %cst_255 : f32 to vector<64x128xf32>
    %442 = arith.select %440, %435, %441 : vector<64x128xi1>, vector<64x128xf32>
    %443 = arith.truncf %442 : vector<64x128xf32> to vector<64x128xbf16>
    %c8_256 = arith.constant 8 : index
    %c0_257 = arith.constant 0 : index
    %c0_258 = arith.constant 0 : index
    %444 = vector.load %arg13[%c8_256, %c0_257, %c0_258] : memref<9x128x128xbf16, #tpu.memory_space<vmem>>, vector<1x128x128xbf16>
    %445 = vector.shape_cast %444 : vector<1x128x128xbf16> to vector<128x128xbf16>
    %cst_259 = arith.constant dense<0.000000e+00> : vector<64x128xf32>
    %446 = tpu.matmul %443, %445, %cst_259 {dimension_numbers = #tpu.dot_dimension_numbers<[1], [0], [0], [1], [0, 0, 1, 1], [], []>} : vector<64x128xbf16>, vector<128x128xbf16>, vector<64x128xf32> -> vector<64x128xf32>
    %447 = arith.addf %434, %446 : vector<64x128xf32>
    %c0_260 = arith.constant 0 : index
    %c0_261 = arith.constant 0 : index
    %448 = vector.load %arg14[%c0_260, %c0_261] : memref<1x128xf32, #tpu.memory_space<vmem>>, vector<1x128xf32>
    %449 = vector.broadcast %448 : vector<1x128xf32> to vector<64x128xf32>
    %450 = arith.addf %447, %449 : vector<64x128xf32>
    %451 = arith.addf %234, %450 : vector<64x128xf32>
    %c0_262 = arith.constant 0 : index
    %c0_263 = arith.constant 0 : index
    %452 = vector.load %arg15[%c0_262, %c0_263] : memref<16x64xbf16, #tpu.memory_space<vmem>>, vector<16x64xbf16>
    %453 = arith.truncf %451 : vector<64x128xf32> to vector<64x128xbf16>
    %cst_264 = arith.constant dense<0.000000e+00> : vector<16x128xf32>
    %454 = tpu.matmul %452, %453, %cst_264 {dimension_numbers = #tpu.dot_dimension_numbers<[1], [0], [0], [1], [0, 0, 1, 1], [], []>} : vector<16x64xbf16>, vector<64x128xbf16>, vector<16x128xf32> -> vector<16x128xf32>
    %cst_265 = arith.constant 0.000000e+00 : f32
    %455 = vector.broadcast %cst_265 : f32 to vector<16x128xf32>
    %456 = arith.cmpf oge, %454, %455 : vector<16x128xf32>
    %cst_266 = arith.constant 1.000000e-01 : f32
    %457 = vector.broadcast %cst_266 : f32 to vector<16x128xf32>
    %458 = arith.mulf %457, %454 : vector<16x128xf32>
    %459 = arith.select %456, %454, %458 : vector<16x128xi1>, vector<16x128xf32>
    %460 = vector.extract_strided_slice %459 {offsets = [0, 0], sizes = [1, 128], strides = [1, 1]} : vector<16x128xf32> to vector<1x128xf32>
    %461 = arith.truncf %460 : vector<1x128xf32> to vector<1x128xbf16>
    %c0_267 = arith.constant 0 : index
    %c0_268 = arith.constant 0 : index
    %c0_269 = arith.constant 0 : index
    %462 = vector.load %arg16[%c0_267, %c0_268, %c0_269] : memref<16x128x128xbf16, #tpu.memory_space<vmem>>, vector<1x128x128xbf16>
    %463 = vector.shape_cast %462 : vector<1x128x128xbf16> to vector<128x128xbf16>
    %cst_270 = arith.constant dense<0.000000e+00> : vector<1x128xf32>
    %464 = tpu.matmul %461, %463, %cst_270 {dimension_numbers = #tpu.dot_dimension_numbers<[1], [0], [0], [1], [0, 0, 1, 1], [], []>} : vector<1x128xbf16>, vector<128x128xbf16>, vector<1x128xf32> -> vector<1x128xf32>
    %465 = vector.extract_strided_slice %459 {offsets = [1, 0], sizes = [1, 128], strides = [1, 1]} : vector<16x128xf32> to vector<1x128xf32>
    %466 = arith.truncf %465 : vector<1x128xf32> to vector<1x128xbf16>
    %c1_271 = arith.constant 1 : index
    %c0_272 = arith.constant 0 : index
    %c0_273 = arith.constant 0 : index
    %467 = vector.load %arg16[%c1_271, %c0_272, %c0_273] : memref<16x128x128xbf16, #tpu.memory_space<vmem>>, vector<1x128x128xbf16>
    %468 = vector.shape_cast %467 : vector<1x128x128xbf16> to vector<128x128xbf16>
    %cst_274 = arith.constant dense<0.000000e+00> : vector<1x128xf32>
    %469 = tpu.matmul %466, %468, %cst_274 {dimension_numbers = #tpu.dot_dimension_numbers<[1], [0], [0], [1], [0, 0, 1, 1], [], []>} : vector<1x128xbf16>, vector<128x128xbf16>, vector<1x128xf32> -> vector<1x128xf32>
    %470 = arith.addf %464, %469 : vector<1x128xf32>
    %471 = vector.extract_strided_slice %459 {offsets = [2, 0], sizes = [1, 128], strides = [1, 1]} : vector<16x128xf32> to vector<1x128xf32>
    %472 = arith.truncf %471 : vector<1x128xf32> to vector<1x128xbf16>
    %c2_275 = arith.constant 2 : index
    %c0_276 = arith.constant 0 : index
    %c0_277 = arith.constant 0 : index
    %473 = vector.load %arg16[%c2_275, %c0_276, %c0_277] : memref<16x128x128xbf16, #tpu.memory_space<vmem>>, vector<1x128x128xbf16>
    %474 = vector.shape_cast %473 : vector<1x128x128xbf16> to vector<128x128xbf16>
    %cst_278 = arith.constant dense<0.000000e+00> : vector<1x128xf32>
    %475 = tpu.matmul %472, %474, %cst_278 {dimension_numbers = #tpu.dot_dimension_numbers<[1], [0], [0], [1], [0, 0, 1, 1], [], []>} : vector<1x128xbf16>, vector<128x128xbf16>, vector<1x128xf32> -> vector<1x128xf32>
    %476 = arith.addf %470, %475 : vector<1x128xf32>
    %477 = vector.extract_strided_slice %459 {offsets = [3, 0], sizes = [1, 128], strides = [1, 1]} : vector<16x128xf32> to vector<1x128xf32>
    %478 = arith.truncf %477 : vector<1x128xf32> to vector<1x128xbf16>
    %c3_279 = arith.constant 3 : index
    %c0_280 = arith.constant 0 : index
    %c0_281 = arith.constant 0 : index
    %479 = vector.load %arg16[%c3_279, %c0_280, %c0_281] : memref<16x128x128xbf16, #tpu.memory_space<vmem>>, vector<1x128x128xbf16>
    %480 = vector.shape_cast %479 : vector<1x128x128xbf16> to vector<128x128xbf16>
    %cst_282 = arith.constant dense<0.000000e+00> : vector<1x128xf32>
    %481 = tpu.matmul %478, %480, %cst_282 {dimension_numbers = #tpu.dot_dimension_numbers<[1], [0], [0], [1], [0, 0, 1, 1], [], []>} : vector<1x128xbf16>, vector<128x128xbf16>, vector<1x128xf32> -> vector<1x128xf32>
    %482 = arith.addf %476, %481 : vector<1x128xf32>
    %483 = vector.extract_strided_slice %459 {offsets = [4, 0], sizes = [1, 128], strides = [1, 1]} : vector<16x128xf32> to vector<1x128xf32>
    %484 = arith.truncf %483 : vector<1x128xf32> to vector<1x128xbf16>
    %c4_283 = arith.constant 4 : index
    %c0_284 = arith.constant 0 : index
    %c0_285 = arith.constant 0 : index
    %485 = vector.load %arg16[%c4_283, %c0_284, %c0_285] : memref<16x128x128xbf16, #tpu.memory_space<vmem>>, vector<1x128x128xbf16>
    %486 = vector.shape_cast %485 : vector<1x128x128xbf16> to vector<128x128xbf16>
    %cst_286 = arith.constant dense<0.000000e+00> : vector<1x128xf32>
    %487 = tpu.matmul %484, %486, %cst_286 {dimension_numbers = #tpu.dot_dimension_numbers<[1], [0], [0], [1], [0, 0, 1, 1], [], []>} : vector<1x128xbf16>, vector<128x128xbf16>, vector<1x128xf32> -> vector<1x128xf32>
    %488 = arith.addf %482, %487 : vector<1x128xf32>
    %489 = vector.extract_strided_slice %459 {offsets = [5, 0], sizes = [1, 128], strides = [1, 1]} : vector<16x128xf32> to vector<1x128xf32>
    %490 = arith.truncf %489 : vector<1x128xf32> to vector<1x128xbf16>
    %c5_287 = arith.constant 5 : index
    %c0_288 = arith.constant 0 : index
    %c0_289 = arith.constant 0 : index
    %491 = vector.load %arg16[%c5_287, %c0_288, %c0_289] : memref<16x128x128xbf16, #tpu.memory_space<vmem>>, vector<1x128x128xbf16>
    %492 = vector.shape_cast %491 : vector<1x128x128xbf16> to vector<128x128xbf16>
    %cst_290 = arith.constant dense<0.000000e+00> : vector<1x128xf32>
    %493 = tpu.matmul %490, %492, %cst_290 {dimension_numbers = #tpu.dot_dimension_numbers<[1], [0], [0], [1], [0, 0, 1, 1], [], []>} : vector<1x128xbf16>, vector<128x128xbf16>, vector<1x128xf32> -> vector<1x128xf32>
    %494 = arith.addf %488, %493 : vector<1x128xf32>
    %495 = vector.extract_strided_slice %459 {offsets = [6, 0], sizes = [1, 128], strides = [1, 1]} : vector<16x128xf32> to vector<1x128xf32>
    %496 = arith.truncf %495 : vector<1x128xf32> to vector<1x128xbf16>
    %c6_291 = arith.constant 6 : index
    %c0_292 = arith.constant 0 : index
    %c0_293 = arith.constant 0 : index
    %497 = vector.load %arg16[%c6_291, %c0_292, %c0_293] : memref<16x128x128xbf16, #tpu.memory_space<vmem>>, vector<1x128x128xbf16>
    %498 = vector.shape_cast %497 : vector<1x128x128xbf16> to vector<128x128xbf16>
    %cst_294 = arith.constant dense<0.000000e+00> : vector<1x128xf32>
    %499 = tpu.matmul %496, %498, %cst_294 {dimension_numbers = #tpu.dot_dimension_numbers<[1], [0], [0], [1], [0, 0, 1, 1], [], []>} : vector<1x128xbf16>, vector<128x128xbf16>, vector<1x128xf32> -> vector<1x128xf32>
    %500 = arith.addf %494, %499 : vector<1x128xf32>
    %501 = vector.extract_strided_slice %459 {offsets = [7, 0], sizes = [1, 128], strides = [1, 1]} : vector<16x128xf32> to vector<1x128xf32>
    %502 = arith.truncf %501 : vector<1x128xf32> to vector<1x128xbf16>
    %c7_295 = arith.constant 7 : index
    %c0_296 = arith.constant 0 : index
    %c0_297 = arith.constant 0 : index
    %503 = vector.load %arg16[%c7_295, %c0_296, %c0_297] : memref<16x128x128xbf16, #tpu.memory_space<vmem>>, vector<1x128x128xbf16>
    %504 = vector.shape_cast %503 : vector<1x128x128xbf16> to vector<128x128xbf16>
    %cst_298 = arith.constant dense<0.000000e+00> : vector<1x128xf32>
    %505 = tpu.matmul %502, %504, %cst_298 {dimension_numbers = #tpu.dot_dimension_numbers<[1], [0], [0], [1], [0, 0, 1, 1], [], []>} : vector<1x128xbf16>, vector<128x128xbf16>, vector<1x128xf32> -> vector<1x128xf32>
    %506 = arith.addf %500, %505 : vector<1x128xf32>
    %507 = vector.extract_strided_slice %459 {offsets = [8, 0], sizes = [1, 128], strides = [1, 1]} : vector<16x128xf32> to vector<1x128xf32>
    %508 = arith.truncf %507 : vector<1x128xf32> to vector<1x128xbf16>
    %c8_299 = arith.constant 8 : index
    %c0_300 = arith.constant 0 : index
    %c0_301 = arith.constant 0 : index
    %509 = vector.load %arg16[%c8_299, %c0_300, %c0_301] : memref<16x128x128xbf16, #tpu.memory_space<vmem>>, vector<1x128x128xbf16>
    %510 = vector.shape_cast %509 : vector<1x128x128xbf16> to vector<128x128xbf16>
    %cst_302 = arith.constant dense<0.000000e+00> : vector<1x128xf32>
    %511 = tpu.matmul %508, %510, %cst_302 {dimension_numbers = #tpu.dot_dimension_numbers<[1], [0], [0], [1], [0, 0, 1, 1], [], []>} : vector<1x128xbf16>, vector<128x128xbf16>, vector<1x128xf32> -> vector<1x128xf32>
    %512 = arith.addf %506, %511 : vector<1x128xf32>
    %513 = vector.extract_strided_slice %459 {offsets = [9, 0], sizes = [1, 128], strides = [1, 1]} : vector<16x128xf32> to vector<1x128xf32>
    %514 = arith.truncf %513 : vector<1x128xf32> to vector<1x128xbf16>
    %c9 = arith.constant 9 : index
    %c0_303 = arith.constant 0 : index
    %c0_304 = arith.constant 0 : index
    %515 = vector.load %arg16[%c9, %c0_303, %c0_304] : memref<16x128x128xbf16, #tpu.memory_space<vmem>>, vector<1x128x128xbf16>
    %516 = vector.shape_cast %515 : vector<1x128x128xbf16> to vector<128x128xbf16>
    %cst_305 = arith.constant dense<0.000000e+00> : vector<1x128xf32>
    %517 = tpu.matmul %514, %516, %cst_305 {dimension_numbers = #tpu.dot_dimension_numbers<[1], [0], [0], [1], [0, 0, 1, 1], [], []>} : vector<1x128xbf16>, vector<128x128xbf16>, vector<1x128xf32> -> vector<1x128xf32>
    %518 = arith.addf %512, %517 : vector<1x128xf32>
    %519 = vector.extract_strided_slice %459 {offsets = [10, 0], sizes = [1, 128], strides = [1, 1]} : vector<16x128xf32> to vector<1x128xf32>
    %520 = arith.truncf %519 : vector<1x128xf32> to vector<1x128xbf16>
    %c10 = arith.constant 10 : index
    %c0_306 = arith.constant 0 : index
    %c0_307 = arith.constant 0 : index
    %521 = vector.load %arg16[%c10, %c0_306, %c0_307] : memref<16x128x128xbf16, #tpu.memory_space<vmem>>, vector<1x128x128xbf16>
    %522 = vector.shape_cast %521 : vector<1x128x128xbf16> to vector<128x128xbf16>
    %cst_308 = arith.constant dense<0.000000e+00> : vector<1x128xf32>
    %523 = tpu.matmul %520, %522, %cst_308 {dimension_numbers = #tpu.dot_dimension_numbers<[1], [0], [0], [1], [0, 0, 1, 1], [], []>} : vector<1x128xbf16>, vector<128x128xbf16>, vector<1x128xf32> -> vector<1x128xf32>
    %524 = arith.addf %518, %523 : vector<1x128xf32>
    %525 = vector.extract_strided_slice %459 {offsets = [11, 0], sizes = [1, 128], strides = [1, 1]} : vector<16x128xf32> to vector<1x128xf32>
    %526 = arith.truncf %525 : vector<1x128xf32> to vector<1x128xbf16>
    %c11 = arith.constant 11 : index
    %c0_309 = arith.constant 0 : index
    %c0_310 = arith.constant 0 : index
    %527 = vector.load %arg16[%c11, %c0_309, %c0_310] : memref<16x128x128xbf16, #tpu.memory_space<vmem>>, vector<1x128x128xbf16>
    %528 = vector.shape_cast %527 : vector<1x128x128xbf16> to vector<128x128xbf16>
    %cst_311 = arith.constant dense<0.000000e+00> : vector<1x128xf32>
    %529 = tpu.matmul %526, %528, %cst_311 {dimension_numbers = #tpu.dot_dimension_numbers<[1], [0], [0], [1], [0, 0, 1, 1], [], []>} : vector<1x128xbf16>, vector<128x128xbf16>, vector<1x128xf32> -> vector<1x128xf32>
    %530 = arith.addf %524, %529 : vector<1x128xf32>
    %531 = vector.extract_strided_slice %459 {offsets = [12, 0], sizes = [1, 128], strides = [1, 1]} : vector<16x128xf32> to vector<1x128xf32>
    %532 = arith.truncf %531 : vector<1x128xf32> to vector<1x128xbf16>
    %c12 = arith.constant 12 : index
    %c0_312 = arith.constant 0 : index
    %c0_313 = arith.constant 0 : index
    %533 = vector.load %arg16[%c12, %c0_312, %c0_313] : memref<16x128x128xbf16, #tpu.memory_space<vmem>>, vector<1x128x128xbf16>
    %534 = vector.shape_cast %533 : vector<1x128x128xbf16> to vector<128x128xbf16>
    %cst_314 = arith.constant dense<0.000000e+00> : vector<1x128xf32>
    %535 = tpu.matmul %532, %534, %cst_314 {dimension_numbers = #tpu.dot_dimension_numbers<[1], [0], [0], [1], [0, 0, 1, 1], [], []>} : vector<1x128xbf16>, vector<128x128xbf16>, vector<1x128xf32> -> vector<1x128xf32>
    %536 = arith.addf %530, %535 : vector<1x128xf32>
    %537 = vector.extract_strided_slice %459 {offsets = [13, 0], sizes = [1, 128], strides = [1, 1]} : vector<16x128xf32> to vector<1x128xf32>
    %538 = arith.truncf %537 : vector<1x128xf32> to vector<1x128xbf16>
    %c13 = arith.constant 13 : index
    %c0_315 = arith.constant 0 : index
    %c0_316 = arith.constant 0 : index
    %539 = vector.load %arg16[%c13, %c0_315, %c0_316] : memref<16x128x128xbf16, #tpu.memory_space<vmem>>, vector<1x128x128xbf16>
    %540 = vector.shape_cast %539 : vector<1x128x128xbf16> to vector<128x128xbf16>
    %cst_317 = arith.constant dense<0.000000e+00> : vector<1x128xf32>
    %541 = tpu.matmul %538, %540, %cst_317 {dimension_numbers = #tpu.dot_dimension_numbers<[1], [0], [0], [1], [0, 0, 1, 1], [], []>} : vector<1x128xbf16>, vector<128x128xbf16>, vector<1x128xf32> -> vector<1x128xf32>
    %542 = arith.addf %536, %541 : vector<1x128xf32>
    %543 = vector.extract_strided_slice %459 {offsets = [14, 0], sizes = [1, 128], strides = [1, 1]} : vector<16x128xf32> to vector<1x128xf32>
    %544 = arith.truncf %543 : vector<1x128xf32> to vector<1x128xbf16>
    %c14 = arith.constant 14 : index
    %c0_318 = arith.constant 0 : index
    %c0_319 = arith.constant 0 : index
    %545 = vector.load %arg16[%c14, %c0_318, %c0_319] : memref<16x128x128xbf16, #tpu.memory_space<vmem>>, vector<1x128x128xbf16>
    %546 = vector.shape_cast %545 : vector<1x128x128xbf16> to vector<128x128xbf16>
    %cst_320 = arith.constant dense<0.000000e+00> : vector<1x128xf32>
    %547 = tpu.matmul %544, %546, %cst_320 {dimension_numbers = #tpu.dot_dimension_numbers<[1], [0], [0], [1], [0, 0, 1, 1], [], []>} : vector<1x128xbf16>, vector<128x128xbf16>, vector<1x128xf32> -> vector<1x128xf32>
    %548 = arith.addf %542, %547 : vector<1x128xf32>
    %549 = vector.extract_strided_slice %459 {offsets = [15, 0], sizes = [1, 128], strides = [1, 1]} : vector<16x128xf32> to vector<1x128xf32>
    %550 = arith.truncf %549 : vector<1x128xf32> to vector<1x128xbf16>
    %c15 = arith.constant 15 : index
    %c0_321 = arith.constant 0 : index
    %c0_322 = arith.constant 0 : index
    %551 = vector.load %arg16[%c15, %c0_321, %c0_322] : memref<16x128x128xbf16, #tpu.memory_space<vmem>>, vector<1x128x128xbf16>
    %552 = vector.shape_cast %551 : vector<1x128x128xbf16> to vector<128x128xbf16>
    %cst_323 = arith.constant dense<0.000000e+00> : vector<1x128xf32>
    %553 = tpu.matmul %550, %552, %cst_323 {dimension_numbers = #tpu.dot_dimension_numbers<[1], [0], [0], [1], [0, 0, 1, 1], [], []>} : vector<1x128xbf16>, vector<128x128xbf16>, vector<1x128xf32> -> vector<1x128xf32>
    %554 = arith.addf %548, %553 : vector<1x128xf32>
    %c0_324 = arith.constant 0 : index
    %c0_325 = arith.constant 0 : index
    %555 = vector.load %arg17[%c0_324, %c0_325] : memref<1x128xf32, #tpu.memory_space<vmem>>, vector<1x128xf32>
    %556 = arith.addf %554, %555 : vector<1x128xf32>
    %cst_326 = arith.constant 0.000000e+00 : f32
    %557 = vector.broadcast %cst_326 : f32 to vector<1x128xf32>
    %558 = arith.cmpf oge, %556, %557 : vector<1x128xf32>
    %cst_327 = arith.constant 2.000000e-01 : f32
    %559 = vector.broadcast %cst_327 : f32 to vector<1x128xf32>
    %560 = arith.mulf %559, %556 : vector<1x128xf32>
    %561 = arith.select %558, %556, %560 : vector<1x128xi1>, vector<1x128xf32>
    %c0_328 = arith.constant 0 : index
    %c0_329 = arith.constant 0 : index
    %562 = vector.load %arg18[%c0_328, %c0_329] : memref<128x128xbf16, #tpu.memory_space<vmem>>, vector<128x128xbf16>
    %563 = arith.truncf %561 : vector<1x128xf32> to vector<1x128xbf16>
    %cst_330 = arith.constant dense<0.000000e+00> : vector<1x128xf32>
    %564 = tpu.matmul %563, %562, %cst_330 {dimension_numbers = #tpu.dot_dimension_numbers<[1], [0], [0], [1], [0, 0, 1, 1], [], []>} : vector<1x128xbf16>, vector<128x128xbf16>, vector<1x128xf32> -> vector<1x128xf32>
    %c0_331 = arith.constant 0 : index
    %c0_332 = arith.constant 0 : index
    %565 = vector.load %arg19[%c0_331, %c0_332] : memref<1x128xf32, #tpu.memory_space<vmem>>, vector<1x128xf32>
    %566 = arith.addf %564, %565 : vector<1x128xf32>
    %567 = arith.index_cast %arg0 : i32 to index
    %568 = memref.load %arg20[%567] : memref<2xi32, #tpu.memory_space<smem>>
    %569 = tpu.iota {dimensions = array<i32: 1>} : vector<1x128xi32>
    %c8_i32_333 = arith.constant 8 : i32
    %570 = arith.muli %568, %c8_i32_333 : i32
    %571 = vector.broadcast %570 : i32 to vector<1x128xi32>
    %572 = arith.cmpi sge, %569, %571 : vector<1x128xi32>
    %c8_i32_334 = arith.constant 8 : i32
    %573 = arith.addi %570, %c8_i32_334 : i32
    %574 = vector.broadcast %573 : i32 to vector<1x128xi32>
    %575 = arith.cmpi slt, %569, %574 : vector<1x128xi32>
    %576 = arith.andi %572, %575 : vector<1x128xi1>
    %cst_335 = arith.constant 0.000000e+00 : f32
    %577 = vector.broadcast %cst_335 : f32 to vector<1x128xf32>
    %578 = arith.select %576, %566, %577 : vector<1x128xi1>, vector<1x128xf32>
    %579 = vector.extract_strided_slice %578 {offsets = [0, 0], sizes = [1, 8], strides = [1, 1]} : vector<1x128xf32> to vector<1x8xf32>
    %580 = vector.extract_strided_slice %578 {offsets = [0, 8], sizes = [1, 8], strides = [1, 1]} : vector<1x128xf32> to vector<1x8xf32>
    %581 = arith.addf %579, %580 : vector<1x8xf32>
    %582 = vector.extract_strided_slice %578 {offsets = [0, 16], sizes = [1, 8], strides = [1, 1]} : vector<1x128xf32> to vector<1x8xf32>
    %583 = arith.addf %581, %582 : vector<1x8xf32>
    %584 = vector.shape_cast %583 : vector<1x8xf32> to vector<1x1x8xf32>
    %c0_336 = arith.constant 0 : index
    %c0_337 = arith.constant 0 : index
    %c0_338 = arith.constant 0 : index
    %585 = vector.load %arg21[%c0_336, %c0_337, %c0_338] : memref<1x1x8xf32, #tpu.memory_space<vmem>>, vector<1x1x8xf32>
    tpu.vector_store %arg21[%c0_336, %c0_337, %c0_338], %584 {strides = array<i32>} : memref<1x1x8xf32, #tpu.memory_space<vmem>>, vector<1x1x8xf32>,
    return
  }
  func.func @transform_0(%arg0: i32) -> (i32, i32, i32, i32) {
    %c0_i32 = arith.constant 0 : i32
    %c0_i32_0 = arith.constant 0 : i32
    %c0_i32_1 = arith.constant 0 : i32
    %c0_i32_2 = arith.constant 0 : i32
    return %arg0, %c0_i32, %c0_i32_0, %c0_i32_1 : i32, i32, i32, i32
  }
  func.func @transform_1(%arg0: i32) -> (i32, i32) {
    %c0_i32 = arith.constant 0 : i32
    %c0_i32_0 = arith.constant 0 : i32
    %c0_i32_1 = arith.constant 0 : i32
    return %c0_i32, %c0_i32_0 : i32, i32
  }
  func.func @transform_2(%arg0: i32) -> (i32, i32) {
    %c0_i32 = arith.constant 0 : i32
    %c0_i32_0 = arith.constant 0 : i32
    %c0_i32_1 = arith.constant 0 : i32
    return %c0_i32, %c0_i32_0 : i32, i32
  }
  func.func @transform_3(%arg0: i32) -> (i32, i32, i32) {
    %c0_i32 = arith.constant 0 : i32
    %c0_i32_0 = arith.constant 0 : i32
    %c0_i32_1 = arith.constant 0 : i32
    %c0_i32_2 = arith.constant 0 : i32
    return %c0_i32, %c0_i32_0, %c0_i32_1 : i32, i32, i32
  }
  func.func @transform_4(%arg0: i32) -> (i32, i32) {
    %c0_i32 = arith.constant 0 : i32
    %c0_i32_0 = arith.constant 0 : i32
    %c0_i32_1 = arith.constant 0 : i32
    return %c0_i32, %c0_i32_0 : i32, i32
  }
  func.func @transform_5(%arg0: i32) -> (i32, i32, i32) {
    %c0_i32 = arith.constant 0 : i32
    %c0_i32_0 = arith.constant 0 : i32
    %c0_i32_1 = arith.constant 0 : i32
    %c0_i32_2 = arith.constant 0 : i32
    return %c0_i32, %c0_i32_0, %c0_i32_1 : i32, i32, i32
  }
  func.func @transform_6(%arg0: i32) -> (i32, i32) {
    %c0_i32 = arith.constant 0 : i32
    %c0_i32_0 = arith.constant 0 : i32
    %c0_i32_1 = arith.constant 0 : i32
    return %c0_i32, %c0_i32_0 : i32, i32
  }
  func.func @transform_7(%arg0: i32) -> (i32, i32) {
    %c0_i32 = arith.constant 0 : i32
    %c0_i32_0 = arith.constant 0 : i32
    %c0_i32_1 = arith.constant 0 : i32
    return %c0_i32, %c0_i32_0 : i32, i32
  }
  func.func @transform_8(%arg0: i32) -> (i32, i32) {
    %c0_i32 = arith.constant 0 : i32
    %c0_i32_0 = arith.constant 0 : i32
    %c0_i32_1 = arith.constant 0 : i32
    return %c0_i32, %c0_i32_0 : i32, i32
  }
  func.func @transform_9(%arg0: i32) -> (i32, i32) {
    %c0_i32 = arith.constant 0 : i32
    %c0_i32_0 = arith.constant 0 : i32
    %c0_i32_1 = arith.constant 0 : i32
    return %c0_i32, %c0_i32_0 : i32, i32
  }
  func.func @transform_10(%arg0: i32) -> (i32, i32, i32) {
    %c0_i32 = arith.constant 0 : i32
    %c0_i32_0 = arith.constant 0 : i32
    %c0_i32_1 = arith.constant 0 : i32
    %c0_i32_2 = arith.constant 0 : i32
    return %c0_i32, %c0_i32_0, %c0_i32_1 : i32, i32, i32
  }
  func.func @transform_11(%arg0: i32) -> (i32, i32) {
    %c0_i32 = arith.constant 0 : i32
    %c0_i32_0 = arith.constant 0 : i32
    %c0_i32_1 = arith.constant 0 : i32
    return %c0_i32, %c0_i32_0 : i32, i32
  }
  func.func @transform_12(%arg0: i32) -> (i32, i32, i32) {
    %c0_i32 = arith.constant 0 : i32
    %c0_i32_0 = arith.constant 0 : i32
    %c0_i32_1 = arith.constant 0 : i32
    %c0_i32_2 = arith.constant 0 : i32
    return %c0_i32, %c0_i32_0, %c0_i32_1 : i32, i32, i32
  }
  func.func @transform_13(%arg0: i32) -> (i32, i32) {
    %c0_i32 = arith.constant 0 : i32
    %c0_i32_0 = arith.constant 0 : i32
    %c0_i32_1 = arith.constant 0 : i32
    return %c0_i32, %c0_i32_0 : i32, i32
  }
  func.func @transform_14(%arg0: i32) -> (i32, i32) {
    %c0_i32 = arith.constant 0 : i32
    %c0_i32_0 = arith.constant 0 : i32
    %c0_i32_1 = arith.constant 0 : i32
    return %c0_i32, %c0_i32_0 : i32, i32
  }
  func.func @transform_15(%arg0: i32) -> (i32, i32, i32) {
    %c0_i32 = arith.constant 0 : i32
    %c0_i32_0 = arith.constant 0 : i32
    %c0_i32_1 = arith.constant 0 : i32
    %c0_i32_2 = arith.constant 0 : i32
    return %c0_i32, %c0_i32_0, %c0_i32_1 : i32, i32, i32
  }
  func.func @transform_16(%arg0: i32) -> (i32, i32) {
    %c0_i32 = arith.constant 0 : i32
    %c0_i32_0 = arith.constant 0 : i32
    %c0_i32_1 = arith.constant 0 : i32
    return %c0_i32, %c0_i32_0 : i32, i32
  }
  func.func @transform_17(%arg0: i32) -> (i32, i32) {
    %c0_i32 = arith.constant 0 : i32
    %c0_i32_0 = arith.constant 0 : i32
    %c0_i32_1 = arith.constant 0 : i32
    return %c0_i32, %c0_i32_0 : i32, i32
  }
  func.func @transform_18(%arg0: i32) -> (i32, i32) {
    %c0_i32 = arith.constant 0 : i32
    %c0_i32_0 = arith.constant 0 : i32
    %c0_i32_1 = arith.constant 0 : i32
    return %c0_i32, %c0_i32_0 : i32, i32
  }
  func.func @transform_19(%arg0: i32) -> i32 {
    %c0_i32 = arith.constant 0 : i32
    %c0_i32_0 = arith.constant 0 : i32
    return %c0_i32 : i32
  }
  func.func @transform_20(%arg0: i32) -> (i32, i32, i32) {
    %c0_i32 = arith.constant 0 : i32
    %c0_i32_0 = arith.constant 0 : i32
    %c0_i32_1 = arith.constant 0 : i32
    return %arg0, %c0_i32, %c0_i32_0 : i32, i32, i32
  }
}

</mosaic_0001>

<bundles_post_ra>
// kernel: discriminator_forward.1
= control target key start
LH: loop header
LB: loop body
LE: loop exit
PB: predicated region body
PF: predicated region fallthrough
CT: control target
= control target key end

     0   :  { %s21811_s0 = inlined_call_operand.vmem [shape: f32[2,16,16,3], index: 0, kind: input, shape index: {}]   ;;  %s21812_s1 = inlined_call_operand.vmem [shape: bf16[3,128], index: 1, kind: input, shape index: {}]   ;;  %s21813_s2 = inlined_call_operand.vmem [shape: f32[1,128], index: 2, kind: input, shape index: {}]   ;;  %s21814_s3 = inlined_call_operand.vmem [shape: bf16[9,128,128], index: 3, kind: input, shape index: {}]   ;;  %s21815_s4 = inlined_call_operand.vmem [shape: f32[1,128], index: 4, kind: input, shape index: {}]   ;;  %s21816_s5 = inlined_call_operand.vmem [shape: bf16[9,128,128], index: 5, kind: input, shape index: {}]   ;;  %s21817_s6 = inlined_call_operand.vmem [shape: f32[1,128], index: 6, kind: input, shape index: {}]   ;;  %s21818_s7 = inlined_call_operand.vmem [shape: bf16[128,128], index: 7, kind: input, shape index: {}]   ;;  %s21819_s8 = inlined_call_operand.vmem [shape: f32[1,128], index: 8, kind: input, shape index: {}]   ;;  %s21820_s9 = inlined_call_operand.vmem [shape: bf16[64,256], index: 9, kind: input, shape index: {}]   ;;  %s21821_s10 = inlined_call_operand.vmem [shape: bf16[9,128,128], index: 10, kind: input, shape index: {}]   ;;  %s21822_s11 = inlined_call_operand.vmem [shape: f32[1,128], index: 11, kind: input, shape index: {}]   ;;  %s21823_s12 = inlined_call_operand.vmem [shape: bf16[9,128,128], index: 12, kind: input, shape index: {}]   ;;  %s21824_s13 = inlined_call_operand.vmem [shape: f32[1,128], index: 13, kind: input, shape index: {}]   ;;  %s21825_s14 = inlined_call_operand.vmem [shape: bf16[16,64], index: 14, kind: input, shape index: {}]   ;;  %s21826_s15 = inlined_call_operand.vmem [shape: bf16[16,128,128], index: 15, kind: input, shape index: {}]   ;;  %s21827_s16 = inlined_call_operand.vmem [shape: f32[1,128], index: 16, kind: input, shape index: {}]   ;;  %s21828_s17 = inlined_call_operand.vmem [shape: bf16[128,128], index: 17, kind: input, shape index: {}]   ;;  %s21829_s18 = inlined_call_operand.vmem [shape: f32[1,128], index: 18, kind: input, shape index: {}]   ;;  %s21830_s19 = inlined_call_operand.vmem [shape: s32[2], index: 19, kind: input, shape index: {}]   ;;  %s21831_s20 = inlined_call_operand.hbm [shape: f32[2,1,8], index: 20, kind: output, shape index: {}]  }
   0x1   :  { %21952 = sst [smem:[#allocation62_spill]] %s21811_s0 }
   0x2   :  { %21953 = sst [smem:[#allocation63_spill]] %s21812_s1 }
   0x3   :  { %21954 = sst [smem:[#allocation64_spill]] %s21813_s2 }
   0x4   :  { %21955 = sst [smem:[#allocation65_spill]] %s21814_s3 }
   0x5   :  { %21956 = sst [smem:[#allocation66_spill]] %s21815_s4 }
   0x6   :  { %21957 = sst [smem:[#allocation67_spill]] %s21816_s5 }
   0x7   :  { %21958 = sst [smem:[#allocation68_spill]] %s21817_s6 }
   0x8   :  { %21959 = sst [smem:[#allocation69_spill]] %s21830_s19 }
   0x9   :  { %25 = vsyncpa [#allocation4], 0 }
   0xa   :  { %26 = vsyncpa [#allocation3], 0 }
   0xb   :  { %28 = vsyncpa [#allocation3 + $0x1], 0  ;;  %s17268_s1 = smov 0   ;;  %s17270_s22 = smov 0  }
   0xc   :  { %s17272_s23 = smov 0   ;;  %s17274_s24 = smov 0  }
   0xd LB: > { %21960 = sst [smem:[#allocation8_spill]] %s17148_s23  ;;  %s17289_s2 = sadd.s32 4294967295, %s17152_s24   ;;  %s17152_s24 = sphi %s17274_s24, %s22314_s24   ;;  %s17148_s23 = sphi %s17272_s23, %s22316_s23   ;;  %s17144_s22 = sphi %s17270_s22, %s22318_s22   ;;  %s17140_s1 = sphi %s17268_s1, %s22317_s1  }
   0xe   : > { %s11289_s25 = sadd.s32 4294967294, %s17152_s24   ;;  %s17293_s3 = sadd.s32 1, %s17152_s24  }
   0xf   : > { %21961 = sst [smem:[#allocation9_spill]] %s17293_s3  ;;  %s466_s26 = sadd.s32 1, %s17148_s23 }
  0x10   : > { %s463_s27 = ssub.s32 %s17152_s24, %s17293_s3  ;;  %p476_p0 = scmp.ne.s32.totalorder %s17148_s23, %s17144_s22 }
  0x11   : > { %p464_p1 = scmp.eq.s32.totalorder %s463_s27, 0  ;;  %p477_p2 = scmp.eq.s32.totalorder %s17289_s2, 1 }
  0x12   : > { %p482_p3 = scmp.ne.s32.totalorder %s17144_s22, %s17140_s1  ;;  %p483_p4 = scmp.eq.s32.totalorder %s11289_s25, 1 }
  0x13   : > { %s17304_s28 = scalar_select %p464_p1, %s17148_s23, %s466_s26  }
  0x14   : > { %p17306_p5 = por %p477_p2, %p476_p0  ;;  %p17310_p6 = por %p483_p4, %p482_p3 }
  0x15   : > { %21962 = sst [smem:[#allocation10_spill]] %s17304_s28  ;;  %p11290_p7 = scmp.ge.s32.totalorder %s17152_s24, 1 }
  0x16   : > { %p490_p8 = scmp.lt.s32.totalorder %s17152_s24, 3  ;;  %p16583_p9 = scmp.eq.s32.totalorder %s17289_s2, 0 }
  0x17   : > { %s21966_s19 = sld [smem:[#allocation69_spill]] }
  0x18   : > { %p17317_p10 = pnand %p11290_p7, %p490_p8 }
  0x1a   : > { %p16575_p11 = pneg %p17317_p10 }
  0x1c   : > { %p16576_p12 = pnand %p16583_p9, %p16575_p11 }
  0x1d   : > { %s557_s25 = sshll.u32 %s21966_s19, 4  ;;  %s558_s25 = int_to_ptr.vmem [resolvable:$true] %s557_s25 }
  0x1e   : > { %s17071_s26 = scalar_lea.vmem %s558_s25, 16  ;;  %p17073_p0 = pneg %p16576_p12 }
  0x1f   : > { %p17072_p13 = scmp.ne.s32.totalorder %s558_s25, %s17071_s26  ;;  %p17079_p3 = scmp.lt.s32.totalorder %s558_s25, %s558_s25 }
  0x20   : > { %p17080_p4 = scmp.lt.s32.totalorder %s17071_s26, %s17071_s26 }
  0x21   : > { %p17074_p1 = pnand %p17073_p0, %p17072_p13 }
  0x22   : > { %p17081_p7 = por %p17080_p4, %p17079_p3 }
  0x23   : > { %p17075_p2 = pneg %p17074_p1 }
  0x25   : > { %p17082_p8 = pnand %p17081_p7, %p17075_p2 }
  0x27   : > { %17085 = shalt.err (!%p17082_p8)
}
  0x28   : > { %s17154_s27 = smov [#allocation2]   ;;  %578 = sbr.rel (%p17317_p10) target bundleno = 4134 (0x1026), region = 100 }
  0x29   : > { %16578 = dma.vmem_to_smem (!%p16576_p12), %s558_s25, 16, %s17154_s27, [#allocation4]  }
  0x2f   : > { %17131 = dma.done.wait (%p16583_p9), [#allocation4], 16  }
  0x30   : > { %17133 = vsyncadd (%p16583_p9), [#allocation4], 4294967280 }
  0x31   : > { %584 = sfence }
  0x32   : > { %s21967_s19 = sld [smem:[#allocation63_spill]]  ;;  %vm747_vm0 = vcmask 1040384   ;;  %vm748_vm1 = vcmask 1041408   ;;  %p636_p11 = scmp.lt.s32.totalorder %s17289_s2, 1  ;;  %v17155_v1 = vmov 65535   ;;  %vm698_vm2 = vcmask 23552  }
  0x33   : > { %v749_v2 = vsel %vm747_vm0, 4294967295, %v17155_v1  ;;  %s21968_s27 = sld [smem:[#allocation65_spill]]  ;;  %s21969_s21 = sld [smem:[#allocation62_spill]]  ;;  %v21838_v61 = vmov 0.0|0.0   ;;  %v21836_v63 = vlaneseq }
  0x34   : > { %v750_v3 = vsel %vm748_vm1, %v749_v2, 0  ;;  %s637_s30 = scalar_select %p636_p11, %s17289_s2, 1 }
  0x35   : > { %s21970_s23 = sld [smem:[#allocation64_spill]]  ;;  %s22152_s5 = sld [smem:[#allocation67_spill]] }
  0x36   : > { %s13213_s28 = sshll.u32 %s637_s30, 8  ;;  %s22301_s6 = sld [smem:[#allocation68_spill]] }
  0x37   : > { %s11187_s26 = sld [smem:[#allocation2 + %s17289_s2]]  ;;  %s17161_s30 = smov 112  }
  0x38   : > { %v674_v0 = vld [vmem:[%s21967_s19] sm:$0x3]  ;;  %s13210_s25 = sshll.u32 %s17289_s2, 4  ;;  %s17162_s2 = smov [#allocation5]  }
  0x39   : > { %v16626_v4 = vld [vmem:[%s21968_s27 + $0x40] sm:$0xff]   ;;  %v752_v5 = vand.u32 %v750_v3, %v674_v0  ;;  %s17345_s3 = scalar_lea.vmem %s21969_s21, %s13213_s28  ;;  %v16627_v24 = vld [vmem:[%s21968_s27 + $0x48] sm:$0xff]   ;;  %v16628_v34 = vld [vmem:[%s21968_s27 + $0x50] sm:$0xff]   ;;  %v17425_v0 = vshrl.u32 %v21836_v63, 7  ;;  %s17160_s28 = smov 120  }
  0x3a   : > { %v642_v6 = vld [vmem:[%s17345_s3] sm:$0xff]  ;;  %v643_v7 = vld [vmem:[%s17345_s3 + $0x8] sm:$0xff]  ;;  %v644_v11 = vld [vmem:[%s17345_s3 + $0x10] sm:$0xff] }
  0x3b   : > { %14101 = vmatprep.subr.bf16.mxu0 %v752_v5  ;;  %15831 = vmatprep.subr.bf16.mxu1 %v752_v5  ;;  %v658_v8 = vld [vmem:[%s17345_s3 + $0x80] sm:$0xff]  ;;  %v675_v9 = vpack.c.bf16 %v643_v7, %v642_v6  ;;  %v659_v10 = vld [vmem:[%s17345_s3 + $0x88] sm:$0xff]  ;;  %v645_v12 = vld [vmem:[%s17345_s3 + $0x18] sm:$0xff]  ;;  %vm1045_vm3 = vcmp.lt.s32.totalorder %v17425_v0, 1  ;;  %vm1621_vm4 = vcmp.lt.s32.totalorder %v17425_v0, 7 }
  0x3c   : > { %14102 = vmatpush3.bf16.msra.mxu0 %v752_v5  ;;  %15832 = vmatpush3.bf16.msra.mxu1 %v752_v5  ;;  %v683_v13 = vpack.c.bf16 %v659_v10, %v658_v8  ;;  %v676_v14 = vpack.c.bf16 %v645_v12, %v644_v11  ;;  %v660_v15 = vld [vmem:[%s17345_s3 + $0x90] sm:$0xff]  ;;  %v661_v16 = vld [vmem:[%s17345_s3 + $0x98] sm:$0xff]  ;;  %v646_v17 = vld [vmem:[%s17345_s3 + $0x20] sm:$0xff] }
  0x3d   : > { %14135 = vmatprep.subr.bf16.mxu1 %v16626_v4  ;;  %14103 = vmatprep.mubr.msk.bf16.mxu0 %vm698_vm2, %v675_v9  ;;  %v684_v18 = vpack.c.bf16 %v661_v16, %v660_v15  ;;  %v647_v19 = vld [vmem:[%s17345_s3 + $0x28] sm:$0xff]  ;;  %v662_v20 = vld [vmem:[%s17345_s3 + $0xa0] sm:$0xff]  ;;  %v648_v25 = vld [vmem:[%s17345_s3 + $0x30] sm:$0xff]  ;;  %s13209_s0 = sshll.u32 %s11187_s26, 3 }
  0x3e   : > { %v663_v21 = vld [vmem:[%s17345_s3 + $0xa8] sm:$0xff]  ;;  %14119 = vmatprep.mubr.msk.bf16.mxu1 %vm698_vm2, %v683_v13  ;;  %v677_v22 = vpack.c.bf16 %v647_v19, %v646_v17  ;;  %v649_v26 = vld [vmem:[%s17345_s3 + $0x38] sm:$0xff]  ;;  %v664_v27 = vld [vmem:[%s17345_s3 + $0xb0] sm:$0xff]  ;;  %s11193_s21 = sadd.s32 8, %s13209_s0 }
  0x3f   : > { %14104 = vmatmul.mubr.msk.bf16.vlgmr.msra.gmra.mrb[0].mxu0 %vm698_vm2, %v676_v14  ;;  %v685_v23 = vpack.c.bf16 %v663_v21, %v662_v20  ;;  %14120 = vmatmul.mubr.msk.bf16.vlgmr.msra.gmra.mrb[0].mxu1 %vm698_vm2, %v684_v18  ;;  %v665_v28 = vld [vmem:[%s17345_s3 + $0xb8] sm:$0xff]  ;;  %v650_v29 = vld [vmem:[%s17345_s3 + $0x40] sm:$0xff]  ;;  %v651_v30 = vld [vmem:[%s17345_s3 + $0x48] sm:$0xff]  ;;  %v678_v33 = vpack.c.bf16 %v649_v26, %v648_v25 }
  0x40   : > { %14107 = vmatprep.mubr.msk.bf16.mxu0 %vm698_vm2, %v677_v22  ;;  %v666_v31 = vld [vmem:[%s17345_s3 + $0xc0] sm:$0xff]  ;;  %v667_v32 = vld [vmem:[%s17345_s3 + $0xc8] sm:$0xff]  ;;  %14136 = vmatpush3.bf16.msra.mxu1 %v16626_v4  ;;  %v686_v35 = vpack.c.bf16 %v665_v28, %v664_v27  ;;  %v679_v36 = vpack.c.bf16 %v651_v30, %v650_v29  ;;  %v16629_v38 = vld [vmem:[%s21968_s27 + $0x58] sm:$0xff]  }
  0x41   : > { %14123 = vmatprep.mubr.msk.bf16.mxu1 %vm698_vm2, %v685_v23  ;;  %14137 = vmatprep.subr.bf16.mxu1 %v16627_v24  ;;  %v687_v37 = vpack.c.bf16 %v667_v32, %v666_v31  ;;  %v652_v39 = vld [vmem:[%s17345_s3 + $0x50] sm:$0xff]  ;;  %v653_v40 = vld [vmem:[%s17345_s3 + $0x58] sm:$0xff]  ;;  %v654_v43 = vld [vmem:[%s17345_s3 + $0x60] sm:$0xff] }
  0x42   : > { %v668_v41 = vld [vmem:[%s17345_s3 + $0xd0] sm:$0xff]  ;;  %v669_v42 = vld [vmem:[%s17345_s3 + $0xd8] sm:$0xff]  ;;  %v655_v44 = vld [vmem:[%s17345_s3 + $0x68] sm:$0xff]  ;;  %v680_v48 = vpack.c.bf16 %v653_v40, %v652_v39 }
  0x43   : > { %v670_v45 = vld [vmem:[%s17345_s3 + $0xe0] sm:$0xff]  ;;  %v671_v46 = vld [vmem:[%s17345_s3 + $0xe8] sm:$0xff]  ;;  %v688_v49 = vpack.c.bf16 %v669_v42, %v668_v41  ;;  %v681_v50 = vpack.c.bf16 %v655_v44, %v654_v43  ;;  %v656_v53 = vld [vmem:[%s17345_s3 + $0x70] sm:$0xff] }
  0x44   : > { %14138 = vmatpush3.bf16.msra.mxu1 %v16627_v24  ;;  %v16630_v47 = vld [vmem:[%s21968_s27 + $0x60] sm:$0xff]   ;;  %v689_v51 = vpack.c.bf16 %v671_v46, %v670_v45  ;;  %v16631_v52 = vld [vmem:[%s21968_s27 + $0x68] sm:$0xff]   ;;  %v657_v54 = vld [vmem:[%s17345_s3 + $0x78] sm:$0xff] }
  0x45   : > { %14139 = vmatprep.subr.bf16.mxu1 %v16628_v34  ;;  %v672_v55 = vld [vmem:[%s17345_s3 + $0xf0] sm:$0xff]  ;;  %v673_v56 = vld [vmem:[%s17345_s3 + $0xf8] sm:$0xff]  ;;  %v682_v57 = vpack.c.bf16 %v657_v54, %v656_v53  ;;  %v17421_v62 = vld [vmem:[%s21968_s27] sm:$0xff]   ;;  %s22153_s3 = sld [smem:[#allocation66_spill]] }
  0x46   : > { %v690_v58 = vpack.c.bf16 %v673_v56, %v672_v55  ;;  %v16632_v59 = vld [vmem:[%s21968_s27 + $0x70] sm:$0xff]   ;;  %v16633_v60 = vld [vmem:[%s21968_s27 + $0x78] sm:$0xff]   ;;  %v17430_v1 = vld [vmem:[%s21970_s23] ss:$0 sm:$0xff]  ;;  %s21769_s23 = scalar_lea.hbm %s21831_s20, %s13210_s25 }
  0x47   : > { %14108 = vmatmul.mubr.msk.bf16.gmra.mrb[4].mxu0 %vm698_vm2, %v678_v33  ;;  %14124 = vmatmul.mubr.msk.bf16.gmra.mrb[4].mxu1 %vm698_vm2, %v686_v35 }
  0x48   : > { %14111 = vmatprep.mubr.msk.bf16.mxu0 %vm698_vm2, %v679_v36  ;;  %14127 = vmatprep.mubr.msk.bf16.mxu1 %vm698_vm2, %v687_v37 }
  0x49   : > { %14140 = vmatpush3.bf16.msra.mxu1 %v16628_v34  ;;  %v16635_v34 = vld [vmem:[%s21968_s27 + $0x8] sm:$0xff]  }
  0x4a   : > { %14141 = vmatprep.subr.bf16.mxu1 %v16629_v38 }
  0x4d   : > { %14142 = vmatpush3.bf16.msra.mxu1 %v16629_v38 }
  0x4e   : > { %14143 = vmatprep.subr.bf16.mxu1 %v16630_v47 }
  0x4f   : > { %14112 = vmatmul.mubr.msk.bf16.gmra.mrb[8].mxu0 %vm698_vm2, %v680_v48  ;;  %14128 = vmatmul.mubr.msk.bf16.gmra.mrb[8].mxu1 %vm698_vm2, %v688_v49 }
  0x50   : > { %14115 = vmatprep.mubr.msk.bf16.mxu0 %vm698_vm2, %v681_v50  ;;  %14131 = vmatprep.mubr.msk.bf16.mxu1 %vm698_vm2, %v689_v51 }
  0x51   : > { %14144 = vmatpush3.bf16.msra.mxu1 %v16630_v47 }
  0x52   : > { %14145 = vmatprep.subr.bf16.mxu1 %v16631_v52 }
  0x55   : > { %14146 = vmatpush3.bf16.msra.mxu1 %v16631_v52 }
  0x56   : > { %14147 = vmatprep.subr.bf16.mxu1 %v16632_v59 }
  0x57   : > { %14116 = vmatmul.mubr.msk.bf16.gmra.mrb[12].mxu0 %vm698_vm2, %v682_v57  ;;  %14132 = vmatmul.mubr.msk.bf16.gmra.mrb[12].mxu1 %vm698_vm2, %v690_v58  ;;  %v16636_v57 = vld [vmem:[%s21968_s27 + $0x10] sm:$0xff]  }
  0x58   : > { %14151 = vmatprep.mubr.bf16.mxu1 %v21838_v61  ;;  %14583 = vmatprep.mubr.bf16.mxu0 %v21838_v61  ;;  %v16638_v61 = vld [vmem:[%s21968_s27 + $0x20] sm:$0xff]  }
  0x59   : > { %14148 = vmatpush3.bf16.msra.mxu1 %v16632_v59 }
  0x5a   : > { %14149 = vmatprep.subr.bf16.mxu1 %v16633_v60 }
  0x5d   : > { %14150 = vmatpush3.bf16.msra.mxu1 %v16633_v60 }
  0x5e   : > { %14183 = vmatprep.subr.bf16.mxu1 %v17421_v62 }
 0x112   : > { %v14105_v2 = vpop.f32.mrb[0].mxu0  ;;  %v14121_v5 = vpop.f32.mrb[0].mxu1 }
 0x113   : > { %v17435_v3 = vadd.f32 %v14105_v2, %v17430_v1  ;;  %v788_v4 = vpop.f32.mrb[1].mxu0  ;;  %v17441_v8 = vadd.f32 %v14121_v5, %v17430_v1  ;;  %v852_v9 = vpop.f32.mrb[1].mxu1 }
 0x114   : > { %v17438_v6 = vadd.f32 %v17430_v1, %v788_v4  ;;  %v14106_v7 = vpop.f32.mrb[2].mxu0  ;;  %v17449_v13 = vadd.f32 %v17430_v1, %v852_v9  ;;  %v14122_v14 = vpop.f32.mrb[2].mxu1 }
 0x115   : > { %21971 = vst [vmem:[#allocation11_spill] sm:$0xff] %v17435_v3  ;;  %21973 = vst [vmem:[#allocation13_spill] sm:$0xff] %v17441_v8  ;;  %v949_v10 = vmul.f32 0.2, %v17435_v3  ;;  %v17445_v11 = vadd.f32 %v14106_v7, %v17430_v1  ;;  %v791_v12 = vpop.f32.mrb[3].mxu0  ;;  %vm917_vm5 = vcmp.ge.f32.partialorder %v17435_v3, 0.0  ;;  %v17506_v44 = vadd.f32 %v14122_v14, %v17430_v1 }
 0x116   : > { %21972 = vst [vmem:[#allocation12_spill] sm:$0xff] %v17438_v6  ;;  %21975 = vst [vmem:[#allocation15_spill] sm:$0xff] %v17449_v13  ;;  %vm915_vm6 = vcmp.ge.f32.partialorder %v17438_v6, 0.0  ;;  %v947_v15 = vmul.f32 0.2, %v17438_v6  ;;  %v17454_v16 = vadd.f32 %v17430_v1, %v791_v12  ;;  %v855_v18 = vpop.f32.mrb[3].mxu1 }
 0x117   : > { %21974 = vst [vmem:[#allocation14_spill] sm:$0xff] %v17445_v11  ;;  %v17457_v17 = vmul.f32 0.2, %v17441_v8  ;;  %v950_v19 = vmul.f32 0.2, %v17445_v11  ;;  %vm918_vm7 = vcmp.ge.f32.partialorder %v17445_v11, 0.0  ;;  %v17464_v21 = vsel %vm917_vm5, %v17435_v3, %v949_v10 }
 0x118   : > { %21976 = vst [vmem:[#allocation16_spill] sm:$0xff] %v17454_v16  ;;  %v17467_v22 = vsel %vm915_vm6, %v17438_v6, %v947_v15  ;;  %vm916_vm8 = vcmp.ge.f32.partialorder %v17454_v16, 0.0  ;;  %v948_v23 = vmul.f32 0.2, %v17454_v16  ;;  %v21840_v28 = vrot.slane %v17464_v21, 1  ;;  %21981 = vst [vmem:[#allocation21_spill] sm:$0xff] %v17506_v44 }
 0x119   : > { %v21842_v25 = vrot.slane %v17467_v22, 7  ;;  %v21837_v26 = vrot.slane %v17467_v22, 1  ;;  %v17475_v27 = vsel %vm918_vm7, %v17445_v11, %v950_v19  ;;  %v17503_v43 = vmul.f32 0.2, %v17449_v13 }
 0x11a   : > { %v17479_v29 = vsel %vm916_vm8, %v17454_v16, %v948_v23  ;;  %v14109_v30 = vpop.f32.mrb[4].mxu0  ;;  %v17484_v32 = vpack.c.bf16 %v17475_v27, %v17464_v21  ;;  %v14125_v40 = vpop.f32.mrb[4].mxu1  ;;  %v17525_v50 = vadd.f32 %v17430_v1, %v855_v18  ;;  %v17545_v60 = vmul.f32 0.2, %v17506_v44  ;;  %v16637_v23 = vld [vmem:[%s21968_s27 + $0x18] sm:$0xff]  }
 0x11b   : > { %v21841_v35 = vrot.slane %v17479_v29, 7  ;;  %v17493_v36 = vpack.c.bf16 %v17479_v29, %v17467_v22  ;;  %v1591_v37 = vrot.slane %v17479_v29, 1  ;;  %v17497_v38 = vadd.f32 %v14109_v30, %v17430_v1  ;;  %v804_v39 = vpop.f32.mrb[5].mxu0  ;;  %v868_v45 = vpop.f32.mrb[5].mxu1 }
 0x11c   : > { %21977 = vst [vmem:[#allocation17_spill] sm:$0xff] %v17484_v32  ;;  %v17500_v41 = vadd.f32 %v17430_v1, %v804_v39  ;;  %v14110_v42 = vpop.f32.mrb[6].mxu0  ;;  %21983 = vst [vmem:[#allocation23_spill] sm:$0xff] %v17525_v50  ;;  %v14126_v51 = vpop.f32.mrb[6].mxu1  ;;  %v17548_v2 = vadd.f32 %v14125_v40, %v17430_v1  ;;  %v17552_v5 = vadd.f32 %v17430_v1, %v868_v45  ;;  %v17561_v9 = vmul.f32 0.2, %v17525_v50 }
 0x11d   : > { %21978 = vst [vmem:[#allocation18_spill] sm:$0xff] %v17493_v36  ;;  %21979 = vst [vmem:[#allocation19_spill] sm:$0xff] %v17497_v38  ;;  %v17514_v46 = vsel %vm1045_vm3, %v21842_v25, %v21841_v35  ;;  %v17517_v47 = vadd.f32 %v14110_v42, %v17430_v1  ;;  %v807_v48 = vpop.f32.mrb[7].mxu0  ;;  %14152 = vmatmul.mubr.bf16.vlgmr.msra.gmra.mrb[16].mxu1 %v17493_v36  ;;  %v1650_v49 = vsel %vm1621_vm4, %v1591_v37, %v21840_v28  ;;  %v871_v56 = vpop.f32.mrb[7].mxu1  ;;  %v16641_v36 = vld [vmem:[%s21968_s27 + $0x38] sm:$0xff]  }
 0x11e   : > { %21980 = vst [vmem:[#allocation20_spill] sm:$0xff] %v17500_v41  ;;  %v953_v52 = vmul.f32 0.2, %v17497_v38  ;;  %v951_v53 = vmul.f32 0.2, %v17500_v41  ;;  %v17530_v54 = vadd.f32 %v17430_v1, %v807_v48  ;;  %14155 = vmatprep.mubr.bf16.mxu1 %v17484_v32  ;;  %v1651_v55 = vsel %vm1621_vm4, %v21837_v26, %v1591_v37  ;;  %14184 = vmatpush3.bf16.msra.mxu1 %v17421_v62 }
 0x11f   : > { %21982 = vst [vmem:[#allocation22_spill] sm:$0xff] %v17517_v47  ;;  %v954_v58 = vmul.f32 0.2, %v17517_v47  ;;  %v17542_v59 = vpack.c.bf16 %v1650_v49, %v1651_v55  ;;  %21986 = vst [vmem:[#allocation26_spill] sm:$0xff] %v17548_v2  ;;  %14185 = vmatprep.subr.bf16.mxu1 %v16635_v34  ;;  %v17555_v62 = vadd.f32 %v14126_v51, %v17430_v1  ;;  %v17564_v10 = vmul.f32 0.2, %v17548_v2 }
 0x120   : > { %21984 = vst [vmem:[#allocation24_spill] sm:$0xff] %v17530_v54  ;;  %v952_v4 = vmul.f32 0.2, %v17530_v54  ;;  %21987 = vst [vmem:[#allocation27_spill] sm:$0xff] %v17552_v5  ;;  %v17558_v7 = vadd.f32 %v17430_v1, %v871_v56  ;;  %vm919_vm9 = vcmp.ge.f32.partialorder %v17500_v41, 0.0  ;;  %vm920_vm10 = vcmp.ge.f32.partialorder %v17530_v54, 0.0 }
 0x121   : > { %21985 = vst [vmem:[#allocation25_spill] sm:$0xff] %v17542_v59  ;;  %21988 = vst [vmem:[#allocation28_spill] sm:$0xff] %v17555_v62  ;;  %v17569_v14 = vmul.f32 0.2, %v17552_v5  ;;  %v17572_v15 = vmul.f32 0.2, %v17555_v62  ;;  %v17575_v18 = vsel %vm919_vm9, %v17500_v41, %v951_v53 }
 0x122   : > { %21989 = vst [vmem:[#allocation29_spill] sm:$0xff] %v17558_v7  ;;  %v14113_v12 = vpop.f32.mrb[8].mxu0  ;;  %v17578_v19 = vsel %vm920_vm10, %v17530_v54, %v952_v4  ;;  %14186 = vmatpush3.bf16.msra.mxu1 %v16635_v34  ;;  %v17587_v39 = vmul.f32 0.2, %v17558_v7  ;;  %v14129_v42 = vpop.f32.mrb[8].mxu1  ;;  %vm921_vm11 = vcmp.ge.f32.partialorder %v17497_v38, 0.0 }
 0x123   : > { %v17584_v30 = vadd.f32 %v14113_v12, %v17430_v1  ;;  %v820_v37 = vpop.f32.mrb[9].mxu0  ;;  %14187 = vmatprep.subr.bf16.mxu1 %v16636_v57  ;;  %v17597_v49 = vpack.c.bf16 %v17578_v19, %v17575_v18  ;;  %v884_v53 = vpop.f32.mrb[9].mxu1  ;;  %v17605_v12 = vadd.f32 %v14129_v42, %v17430_v1  ;;  %vm922_vm12 = vcmp.ge.f32.partialorder %v17517_v47, 0.0 }
 0x124   : > { %v17592_v45 = vadd.f32 %v17430_v1, %v820_v37  ;;  %v14114_v34 = vpop.f32.mrb[10].mxu0  ;;  %v14130_v37 = vpop.f32.mrb[10].mxu1  ;;  %v17616_v26 = vsel %vm921_vm11, %v17497_v38, %v953_v52  ;;  %v17638_v35 = vadd.f32 %v17430_v1, %v884_v53  ;;  %vm931_vm9 = vcmp.ge.f32.partialorder %v17449_v13, 0.0 }
 0x125   : > { %21990 = vst [vmem:[#allocation30_spill] sm:$0xff] %v17584_v30  ;;  %21992 = vst [vmem:[#allocation32_spill] sm:$0xff] %v17597_v49  ;;  %v957_v55 = vmul.f32 0.2, %v17584_v30  ;;  %v17602_v56 = vadd.f32 %v14114_v34, %v17430_v1  ;;  %v823_v4 = vpop.f32.mrb[11].mxu0  ;;  %14156 = vmatmul.mubr.bf16.gmra.mrb[20].mxu1 %v17597_v49  ;;  %v17619_v34 = vsel %vm922_vm12, %v17517_v47, %v954_v58  ;;  %v887_v42 = vpop.f32.mrb[11].mxu1 }
 0x126   : > { %21991 = vst [vmem:[#allocation31_spill] sm:$0xff] %v17592_v45  ;;  %21994 = vst [vmem:[#allocation34_spill] sm:$0xff] %v17605_v12  ;;  %v955_v63 = vmul.f32 0.2, %v17592_v45  ;;  %v17610_v20 = vadd.f32 %v17430_v1, %v823_v4  ;;  %v17627_v33 = vmul.f32 0.2, %v17605_v12  ;;  %14188 = vmatpush3.bf16.msra.mxu1 %v16636_v57  ;;  %v17634_v40 = vpack.c.bf16 %v17619_v34, %v17616_v26 }
 0x127   : > { %21993 = vst [vmem:[#allocation33_spill] sm:$0xff] %v17602_v56  ;;  %v958_v28 = vmul.f32 0.2, %v17602_v56  ;;  %14189 = vmatprep.subr.bf16.mxu1 %v16637_v23  ;;  %21997 = vst [vmem:[#allocation37_spill] sm:$0xff] %v17638_v35  ;;  %v17641_v4 = vadd.f32 %v14130_v37, %v17430_v1  ;;  %v17644_v51 = vadd.f32 %v17430_v1, %v887_v42  ;;  %vm923_vm13 = vcmp.ge.f32.partialorder %v17592_v45, 0.0  ;;  %v16639_v57 = vld [vmem:[%s21968_s27 + $0x28] sm:$0xff]  }
 0x128   : > { %21995 = vst [vmem:[#allocation35_spill] sm:$0xff] %v17610_v20  ;;  %v956_v52 = vmul.f32 0.2, %v17610_v20  ;;  %21996 = vst [vmem:[#allocation36_spill] sm:$0xff] %v17634_v40  ;;  %14159 = vmatprep.mubr.bf16.mxu1 %v17634_v40  ;;  %vm924_vm14 = vcmp.ge.f32.partialorder %v17610_v20, 0.0  ;;  %v17651_v48 = vsel %vm923_vm13, %v17592_v45, %v955_v63  ;;  %vm925_vm15 = vcmp.ge.f32.partialorder %v17584_v30, 0.0 }
 0x129   : > { %21998 = vst [vmem:[#allocation38_spill] sm:$0xff] %v17641_v4  ;;  %21999 = vst [vmem:[#allocation39_spill] sm:$0xff] %v17644_v51  ;;  %v17655_v53 = vmul.f32 0.2, %v17638_v35  ;;  %v17658_v37 = vmul.f32 0.2, %v17641_v4 }
 0x12a   : > { %v14117_v58 = vpop.f32.mrb[12].mxu0  ;;  %vm926_vm0 = vcmp.ge.f32.partialorder %v17602_v56, 0.0  ;;  %14190 = vmatpush3.bf16.msra.mxu1 %v16637_v23  ;;  %v17668_v63 = vmul.f32 0.2, %v17644_v51  ;;  %v14133_v24 = vpop.f32.mrb[12].mxu1  ;;  %v17671_v25 = vsel %vm924_vm14, %v17610_v20, %v956_v52  ;;  %vm932_vm10 = vcmp.ge.f32.partialorder %v17525_v50, 0.0 }
 0x12b   : > { %v17661_v42 = vadd.f32 %v14117_v58, %v17430_v1  ;;  %v836_v31 = vpop.f32.mrb[13].mxu0  ;;  %14191 = vmatprep.subr.bf16.mxu1 %v16638_v61  ;;  %v17674_v47 = vadd.f32 %v14133_v24, %v17430_v1  ;;  %v900_v23 = vpop.f32.mrb[13].mxu1  ;;  %v17689_v24 = vpack.c.bf16 %v17671_v25, %v17651_v48  ;;  %v17713_v49 = vsel %vm926_vm0, %v17602_v56, %v958_v28 }
 0x12c   : > { %v17677_v58 = vadd.f32 %v17430_v1, %v836_v31  ;;  %v14118_v38 = vpop.f32.mrb[14].mxu0  ;;  %v17682_v54 = vadd.f32 %v17430_v1, %v900_v23  ;;  %v14134_v52 = vpop.f32.mrb[14].mxu1  ;;  %v17694_v31 = vsel %vm925_vm15, %v17584_v30, %v957_v55  ;;  %vm933_vm11 = vcmp.ge.f32.partialorder %v17441_v8, 0.0 }
 0x12d   : > { %22000 = vst [vmem:[#allocation40_spill] sm:$0xff] %v17661_v42  ;;  %22001 = vst [vmem:[#allocation41_spill] sm:$0xff] %v17674_v47  ;;  %v17685_v41 = vadd.f32 %v14118_v38, %v17430_v1  ;;  %v839_v16 = vpop.f32.mrb[15].mxu0  ;;  %v961_v3 = vmul.f32 0.2, %v17661_v42  ;;  %vm945_vm1 = vcmp.ge.f32.partialorder %v17674_v47, 0.0  ;;  %v17700_v38 = vadd.f32 %v14134_v52, %v17430_v1  ;;  %14160 = vmatmul.mubr.bf16.gmra.mrb[24].mxu1 %v17689_v24 }
 0x12e   : > { %22002 = vst [vmem:[#allocation42_spill] sm:$0xff] %v17677_v58  ;;  %22003 = vst [vmem:[#allocation43_spill] sm:$0xff] %v17682_v54  ;;  %v977_v23 = vmul.f32 0.2, %v17674_v47  ;;  %v17702_v11 = vpop.f32.mrb[15].mxu1  ;;  %14192 = vmatpush3.bf16.msra.mxu1 %v16638_v61  ;;  %v17706_v40 = vadd.f32 %v17430_v1, %v839_v16  ;;  %v16640_v52 = vld [vmem:[%s21968_s27 + $0x30] sm:$0xff]   ;;  %v17739_v55 = vpack.c.bf16 %v17713_v49, %v17694_v31 }
 0x12f   : > { %22004 = vst [vmem:[#allocation44_spill] sm:$0xff] %v17685_v41  ;;  %22005 = vst [vmem:[#allocation45_spill] sm:$0xff] %v17689_v24  ;;  %v959_v6 = vmul.f32 0.2, %v17677_v58  ;;  %14193 = vmatprep.subr.bf16.mxu1 %v16639_v57  ;;  %vm946_vm2 = vcmp.ge.f32.partialorder %v17700_v38, 0.0  ;;  %vm927_vm5 = vcmp.ge.f32.partialorder %v17677_v58, 0.0 }
 0x130   : > { %22006 = vst [vmem:[#allocation46_spill] sm:$0xff] %v17700_v38  ;;  %22007 = vst [vmem:[#allocation47_spill] sm:$0xff] %v17706_v40  ;;  %v17719_v61 = vsel %vm945_vm1, %v17674_v47, %v977_v23  ;;  %v978_v16 = vmul.f32 0.2, %v17700_v38  ;;  %v17725_v24 = vmul.f32 0.2, %v17682_v54  ;;  %14163 = vmatprep.mubr.bf16.mxu1 %v17739_v55 }
 0x131   : > { %v962_v28 = vmul.f32 0.2, %v17685_v41  ;;  %v960_v32 = vmul.f32 0.2, %v17706_v40  ;;  %22008 = vst [vmem:[#allocation48_spill] sm:$0xff] %v17739_v55  ;;  %vm928_vm6 = vcmp.ge.f32.partialorder %v17706_v40, 0.0 }
 0x132   : > { %v17734_v59 = vsel %vm946_vm2, %v17700_v38, %v978_v16  ;;  %14194 = vmatpush3.bf16.msra.mxu1 %v16639_v57  ;;  %v17747_v16 = vsel %vm927_vm5, %v17677_v58, %v959_v6  ;;  %vm929_vm7 = vcmp.ge.f32.partialorder %v17661_v42, 0.0  ;;  %vm930_vm8 = vcmp.ge.f32.partialorder %v17685_v41, 0.0 }
 0x133   : > { %v21875_v30 = vrot.slane %v17734_v59, 7  ;;  %14195 = vmatprep.subr.bf16.mxu1 %v16640_v52  ;;  %v17750_v23 = vsel %vm928_vm6, %v17706_v40, %v960_v32  ;;  %v22009_v57 = vrot.slane %v17467_v22, 7  ;;  %vm934_vm12 = vcmp.ge.f32.partialorder %v17506_v44, 0.0 }
 0x134   : > { %v17764_v6 = vpack.c.bf16 %v17750_v23, %v17747_v16  ;;  %v17815_v40 = vsel %vm934_vm12, %v17506_v44, %v17545_v60  ;;  %vm935_vm13 = vcmp.ge.f32.partialorder %v17552_v5, 0.0  ;;  %vm936_vm14 = vcmp.ge.f32.partialorder %v17558_v7, 0.0 }
 0x135   : > { %v1075_v56 = vsel %vm1045_vm3, %v21875_v30, %v22009_v57  ;;  %v17774_v57 = vsel %vm929_vm7, %v17661_v42, %v961_v3  ;;  %v17777_v30 = vsel %vm930_vm8, %v17685_v41, %v962_v28  ;;  %v17794_v3 = vsel %vm931_vm9, %v17449_v13, %v17503_v43 }
 0x136   : > { %22010 = vst [vmem:[#allocation49_spill] sm:$0xff] %v17764_v6  ;;  %v17767_v32 = vpack.c.bf16 %v17514_v46, %v1075_v56  ;;  %14196 = vmatpush3.bf16.msra.mxu1 %v16640_v52  ;;  %v17783_v46 = vld [vmem:[%s21968_s27 + $0x80] sm:$0xff]   ;;  %v17789_v38 = vpack.c.bf16 %v17777_v30, %v17774_v57  ;;  %v17798_v28 = vsel %vm932_vm10, %v17525_v50, %v17561_v9  ;;  %vm937_vm15 = vcmp.ge.f32.partialorder %v17548_v2, 0.0 }
 0x137   : > { %14164 = vmatmul.mubr.bf16.gmra.mrb[28].mxu1 %v17764_v6  ;;  %14197 = vmatprep.subr.bf16.mxu1 %v16641_v36  ;;  %v17811_v56 = vsel %vm933_vm11, %v17441_v8, %v17457_v17  ;;  %v17821_v58 = vpack.c.bf16 %v17798_v28, %v17794_v3  ;;  %v17826_v9 = vadd.f32 %v17430_v1, %v17702_v11  ;;  %vm938_vm0 = vcmp.ge.f32.partialorder %v17555_v62, 0.0 }
 0x138   : > { %22011 = vst [vmem:[#allocation50_spill] sm:$0xff] %v17789_v38  ;;  %14167 = vmatprep.mubr.bf16.mxu1 %v17789_v38  ;;  %v17831_v60 = vpack.c.bf16 %v17815_v40, %v17811_v56  ;;  %v17837_v52 = vsel %vm935_vm13, %v17552_v5, %v17569_v14  ;;  %v17841_v43 = vsel %vm936_vm14, %v17558_v7, %v17587_v39  ;;  %vm939_vm1 = vcmp.ge.f32.partialorder %v17638_v35, 0.0 }
 0x139   : > { %22012 = vst [vmem:[#allocation51_spill] sm:$0xff] %v17821_v58  ;;  %22013 = vst [vmem:[#allocation52_spill] sm:$0xff] %v17826_v9  ;;  %v976_v14 = vmul.f32 0.2, %v17826_v9  ;;  %v17854_v39 = vsel %vm937_vm15, %v17548_v2, %v17564_v10  ;;  %v17858_v55 = vsel %vm938_vm0, %v17555_v62, %v17572_v15  ;;  %vm940_vm2 = vcmp.ge.f32.partialorder %v17644_v51, 0.0 }
 0x13a   : > { %14198 = vmatpush3.bf16.msra.mxu1 %v16641_v36  ;;  %22014 = vst [vmem:[#allocation53_spill] sm:$0xff] %v17831_v60  ;;  %v17865_v36 = vpack.c.bf16 %v17841_v43, %v17837_v52  ;;  %v17872_v10 = vsel %vm939_vm1, %v17638_v35, %v17655_v53  ;;  %vm941_vm5 = vcmp.ge.f32.partialorder %v17605_v12, 0.0  ;;  %v17878_v1 = vpack.c.bf16 %v17858_v55, %v17854_v39 }
 0x13b   : > { %14231 = vmatprep.subr.bf16.mxu1 %v17783_v46  ;;  %v17882_v11 = vsel %vm940_vm2, %v17644_v51, %v17668_v63  ;;  %vm942_vm6 = vcmp.ge.f32.partialorder %v17641_v4, 0.0  ;;  %v17893_v15 = vsel %vm941_vm5, %v17605_v12, %v17627_v33  ;;  %v1038_v62 = vrot.slane %v17872_v10, 7 }
 0x13c   : > { %22015 = vst [vmem:[#allocation54_spill] sm:$0xff] %v17865_v36  ;;  %22016 = vst [vmem:[#allocation55_spill] sm:$0xff] %v17878_v1  ;;  %v17889_v53 = vpack.c.bf16 %v17882_v11, %v17872_v10  ;;  %v17899_v63 = vsel %vm942_vm6, %v17641_v4, %v17658_v37  ;;  %vm943_vm7 = vcmp.ge.f32.partialorder %v17682_v54, 0.0  ;;  %v1039_v17 = vrot.slane %v17882_v11, 7 }
 0x13d   : > { %v17906_v7 = vpack.c.bf16 %v17899_v63, %v17893_v15  ;;  %vm944_vm8 = vcmp.ge.f32.partialorder %v17826_v9, 0.0  ;;  %v17912_v33 = vsel %vm943_vm7, %v17682_v54, %v17725_v24  ;;  %v22019_v2 = vrot.slane %v17475_v27, 7 }
 0x13e   : > { %22017 = vst [vmem:[#allocation56_spill] sm:$0xff] %v17889_v53  ;;  %v17915_v37 = vsel %vm944_vm8, %v17826_v9, %v976_v14  ;;  %v22020_v5 = vrot.slane %v17464_v21, 7  ;;  %v22022_v8 = vrot.slane %v17479_v29, 7  ;;  %v1040_v24 = vrot.slane %v17893_v15, 7 }
 0x13f   : > { %14168 = vmatmul.mubr.bf16.gmra.mrb[32].mxu1 %v17821_v58  ;;  %22018 = vst [vmem:[#allocation57_spill] sm:$0xff] %v17906_v7  ;;  %v1041_v14 = vrot.slane %v17899_v63, 7  ;;  %v1042_v13 = vrot.slane %v17912_v33, 7  ;;  %v22024_v29 = vrot.slane %v17578_v19, 7  ;;  %v22033_v9 = vrot.slane %v17713_v49, 7 }
 0x140   : > { %14171 = vmatprep.mubr.bf16.mxu1 %v17831_v60  ;;  %v1072_v47 = vsel %vm1045_vm3, %v22020_v5, %v22019_v2  ;;  %v22021_v44 = vmov %v22020_v5  ;;  %v22027_v60 = vmov %v22019_v2  ;;  %v22029_v2 = vrot.slane %v17671_v25, 7 }
 0x141   : > { %v1073_v50 = vsel %vm1045_vm3, %v22022_v8, %v22021_v44  ;;  %v22025_v8 = vrot.slane %v17575_v18, 7  ;;  %vm1076_vm9 = vcmp.ge.s32.totalorder %v17425_v0, 1  ;;  %vm17157_vm10 = vmmov 1  }
 0x142   : > { %v17938_v5 = vpack.c.bf16 %v1072_v47, %v1073_v50  ;;  %v22030_v47 = vrot.slane %v17651_v48, 7  ;;  %vm18138_vm11 = vmpackc.low %vm17157_vm10, %vm1076_vm9  ;;  %v22123_v35 = vrot.slane %v17815_v40, 7  ;;  %v22124_v12 = vrot.slane %v17811_v56, 7 }
 0x143   : > { %v1070_v44 = vsel %vm1045_vm3, %v22025_v8, %v22024_v29  ;;  %v22032_v29 = vrot.slane %v17619_v34, 7 }
 0x144   : > { %v1066_v50 = vsel %vm1045_vm3, %v22030_v47, %v22029_v2  ;;  %v22031_v6 = vmov %v22030_v47 }
 0x147   : > { %14172 = vmatmul.mubr.bf16.gmra.mrb[36].mxu1 %v17865_v36  ;;  %v17935_v36 = vpack.c.bf16 %v17915_v37, %v17912_v33 }
 0x148   : > { %14175 = vmatprep.mubr.bf16.mxu1 %v17878_v1  ;;  %v22026_v1 = vmov %v22025_v8  ;;  %v1067_v8 = vsel %vm1045_vm3, %v22032_v29, %v22031_v6  ;;  %v22037_v6 = vrot.slane %v17750_v23, 7  ;;  %v22038_v29 = vrot.slane %v17747_v16, 7 }
 0x149   : > { %22023 = vst [vmem:[#allocation58_spill] sm:$0xff] %v17935_v36  ;;  %v1071_v58 = vsel %vm1045_vm3, %v22027_v60, %v22026_v1  ;;  %v22034_v60 = vrot.slane %v17694_v31, 7  ;;  %v17978_v47 = vpack.c.bf16 %v1066_v50, %v1067_v8  ;;  %v22041_v8 = vrot.slane %v17777_v30, 7 }
 0x14a   : > { %v17952_v38 = vpack.c.bf16 %v1070_v44, %v1071_v58  ;;  %v22036_v44 = vmov %v22029_v2  ;;  %v1062_v54 = vsel %vm1045_vm3, %v22038_v29, %v22037_v6 }
 0x14b   : > { %v1064_v58 = vsel %vm1045_vm3, %v22034_v60, %v22033_v9  ;;  %v22035_v1 = vmov %v22034_v60  ;;  %v22039_v9 = vmov %v22038_v29  ;;  %v22040_v60 = vrot.slane %v17713_v49, 7 }
 0x14c   : > { %22028 = vst [vmem:[#allocation59_spill] sm:$0xff] %v17952_v38  ;;  %v1065_v2 = vsel %vm1045_vm3, %v22036_v44, %v22035_v1 }
 0x14d   : > { %v17980_v38 = vpack.c.bf16 %v1064_v58, %v1065_v2  ;;  %v1063_v4 = vsel %vm1045_vm3, %v22040_v60, %v22039_v9  ;;  %v22042_v58 = vrot.slane %v17774_v57, 7  ;;  %v22044_v2 = vmov %v22037_v6 }
 0x14e   : > { %v17995_v50 = vpack.c.bf16 %v1062_v54, %v1063_v4  ;;  %v1616_v54 = vrot.slane %v17893_v15, 1  ;;  %v1617_v4 = vrot.slane %v17899_v63, 1  ;;  %v1618_v9 = vrot.slane %v17912_v33, 1 }
 0x14f   : > { %v1060_v1 = vsel %vm1045_vm3, %v22042_v58, %v22041_v8  ;;  %v22043_v44 = vmov %v22042_v58  ;;  %14176 = vmatmul.mubr.bf16.gmra.mrb[40].mxu1 %v17889_v53  ;;  %v1619_v60 = vrot.slane %v17915_v37, 1  ;;  %v1050_v8 = vsel %vm1045_vm3, %v1038_v62, %v1039_v17 }
 0x150   : > { %v1061_v6 = vsel %vm1045_vm3, %v22044_v2, %v22043_v44  ;;  %14179 = vmatprep.mubr.bf16.mxu1 %v17906_v7  ;;  %v22045_v58 = vrot.slane %v17858_v55, 7  ;;  %v1048_v44 = vsel %vm1045_vm3, %v1040_v24, %v1041_v14  ;;  %v1049_v15 = vsel %vm1045_vm3, %v1039_v17, %v1040_v24 }
 0x151   : > { %v18009_v29 = vpack.c.bf16 %v1060_v1, %v1061_v6  ;;  %v18029_v2 = vpack.c.bf16 %v1048_v44, %v1049_v15  ;;  %v22046_v33 = vrot.slane %v17915_v37, 7  ;;  %v1047_v7 = vsel %vm1045_vm3, %v1041_v14, %v1042_v13 }
 0x152   : > { %v1051_v1 = vsel %vm1045_vm3, %v22045_v58, %v1038_v62  ;;  %v22047_v62 = vrot.slane %v17575_v18, 1  ;;  %v22048_v58 = vrot.slane %v17475_v27, 1  ;;  %v22051_v44 = vrot.slane %v17616_v26, 1 }
 0x153   : > { %v18027_v63 = vpack.c.bf16 %v1050_v8, %v1051_v1  ;;  %v1046_v6 = vsel %vm1045_vm3, %v1042_v13, %v22046_v33  ;;  %v22050_v8 = vrot.slane %v17464_v21, 1  ;;  %v22052_v13 = vrot.slane %v17578_v19, 1 }
 0x154   : > { %v18037_v53 = vpack.c.bf16 %v1046_v6, %v1047_v7  ;;  %v1648_v17 = vsel %vm1621_vm4, %v22048_v58, %v22047_v62  ;;  %v22049_v24 = vmov %v22048_v58  ;;  %v22054_v33 = vmov %v22047_v62 }
 0x155   : > { %v1649_v1 = vsel %vm1621_vm4, %v22050_v8, %v22049_v24  ;;  %v1646_v7 = vsel %vm1621_vm4, %v22052_v13, %v22051_v44  ;;  %v22053_v15 = vmov %v22052_v13  ;;  %v22055_v21 = vrot.slane %v17651_v48, 1 }
 0x156   : > { %v18057_v14 = vpack.c.bf16 %v1648_v17, %v1649_v1  ;;  %v1647_v27 = vsel %vm1621_vm4, %v22054_v33, %v22053_v15  ;;  %v22056_v6 = vrot.slane %v17619_v34, 1  ;;  %v22058_v24 = vmov %v22051_v44 }
 0x157   : > { %v18077_v8 = vpack.c.bf16 %v1646_v7, %v1647_v27  ;;  %v22059_v1 = vrot.slane %v17694_v31, 1  ;;  %v22060_v44 = vrot.slane %v17671_v25, 1  ;;  %v22062_v33 = vmov %v22055_v21  ;;  %14180 = vmatmul.mubr.bf16.gmra.mrb[44].mxu1 %v17935_v36 }
 0x158   : > { %v1644_v62 = vsel %vm1621_vm4, %v22056_v6, %v22055_v21  ;;  %v22057_v58 = vmov %v22056_v6  ;;  %v22063_v7 = vrot.slane %v17747_v16, 1  ;;  %v22064_v27 = vrot.slane %v17713_v49, 1  ;;  %v16924_v16 = vld [vmem:[%s21823_s12 + $0x1f0] sm:$0xff]  }
 0x159   : > { %v1645_v17 = vsel %vm1621_vm4, %v22058_v24, %v22057_v58  ;;  %v1642_v13 = vsel %vm1621_vm4, %v22060_v44, %v22059_v1  ;;  %v22061_v15 = vmov %v22060_v44  ;;  %v22066_v24 = vmov %v22059_v1 }
 0x15a   : > { %v18079_v18 = vpack.c.bf16 %v1644_v62, %v1645_v17  ;;  %v1643_v21 = vsel %vm1621_vm4, %v22062_v33, %v22061_v15  ;;  %v1640_v62 = vsel %vm1621_vm4, %v22064_v27, %v22063_v7  ;;  %v22065_v58 = vmov %v22064_v27 }
 0x15b   : > { %v18093_v6 = vpack.c.bf16 %v1642_v13, %v1643_v21  ;;  %v1641_v25 = vsel %vm1621_vm4, %v22066_v24, %v22065_v58  ;;  %v22067_v48 = vrot.slane %v17774_v57, 1  ;;  %v22068_v17 = vrot.slane %v17750_v23, 1 }
 0x15c   : > { %v18114_v44 = vpack.c.bf16 %v1640_v62, %v1641_v25  ;;  %v22070_v49 = vmov %v22063_v7  ;;  %v22071_v15 = vrot.slane %v17794_v3, 1  ;;  %v22072_v33 = vrot.slane %v17777_v30, 1 }
 0x15d   : > { %v1638_v1 = vsel %vm1621_vm4, %v22068_v17, %v22067_v48  ;;  %v22069_v13 = vmov %v22068_v17  ;;  %v22074_v27 = vmov %v22067_v48  ;;  %v22075_v23 = vmov 0.0|0.0  }
 0x15e   : > { %v1639_v31 = vsel %vm1621_vm4, %v22070_v49, %v22069_v13  ;;  %v1636_v21 = vsel %vm1621_vm4, %v22072_v33, %v22071_v15  ;;  %v22073_v7 = vmov %v22072_v33  ;;  %14199 = vmatprep.mubr.bf16.mxu1 %v22075_v23  ;;  %v22078_v25 = vrot.slane %v17811_v56, 1 }
 0x15f   : > { %v1637_v62 = vsel %vm1621_vm4, %v22074_v27, %v22073_v7  ;;  %v18142_v58 = vpack.c.bf16 %v1638_v1, %v1639_v31  ;;  %v22079_v57 = vrot.slane %v17798_v28, 1  ;;  %v22081_v13 = vmov %v22071_v15  ;;  %14200 = vmatmul.mubr.msk.bf16.vlgmr.msra.gmra.mrb[16].mxu1 %vm18138_vm11, %v17767_v32 }
 0x160   : > { %v18144_v24 = vpack.c.bf16 %v1636_v21, %v1637_v62  ;;  %v22082_v1 = vrot.slane %v17837_v52, 1  ;;  %v22083_v31 = vrot.slane %v17815_v40, 1  ;;  %v22085_v7 = vmov %v22078_v25  ;;  %14203 = vmatprep.mubr.msk.bf16.mxu1 %vm18138_vm11, %v17938_v5  ;;  %14232 = vmatpush3.bf16.msra.mxu1 %v17783_v46 }
 0x161   : > { %v1634_v48 = vsel %vm1621_vm4, %v22079_v57, %v22078_v25  ;;  %v22080_v17 = vmov %v22079_v57  ;;  %v22086_v62 = vrot.slane %v17854_v39, 1  ;;  %v22087_v25 = vrot.slane %v17841_v43, 1 }
 0x162   : > { %v1635_v49 = vsel %vm1621_vm4, %v22081_v13, %v22080_v17  ;;  %v1632_v33 = vsel %vm1621_vm4, %v22083_v31, %v22082_v1  ;;  %v22084_v21 = vmov %v22083_v31  ;;  %v22089_v13 = vmov %v22082_v1 }
 0x163   : > { %v18158_v15 = vpack.c.bf16 %v1634_v48, %v1635_v49  ;;  %v1633_v27 = vsel %vm1621_vm4, %v22085_v7, %v22084_v21  ;;  %v1630_v57 = vsel %vm1621_vm4, %v22087_v25, %v22086_v62  ;;  %v22088_v17 = vmov %v22087_v25 }
 0x164   : > { %v18178_v48 = vpack.c.bf16 %v1632_v33, %v1633_v27  ;;  %v1631_v49 = vsel %vm1621_vm4, %v22089_v13, %v22088_v17  ;;  %v22090_v1 = vrot.slane %v17872_v10, 1  ;;  %v22091_v31 = vrot.slane %v17858_v55, 1  ;;  %v16643_v27 = vld [vmem:[%s21968_s27 + $0x88] sm:$0xff]  }
 0x165   : > { %v18201_v25 = vpack.c.bf16 %v1630_v57, %v1631_v49  ;;  %v22093_v13 = vrot.slane %v17882_v11, 1  ;;  %v22095_v36 = vrot.slane %v17872_v10, 1  ;;  %v1624_v57 = vsel %vm1621_vm4, %v1617_v4, %v1618_v9  ;;  %14233 = vmatprep.subr.bf16.mxu1 %v16643_v27 }
 0x166   : > { %v1628_v21 = vsel %vm1621_vm4, %v22091_v31, %v22090_v1  ;;  %v22092_v7 = vmov %v22091_v31  ;;  %v1625_v49 = vsel %vm1621_vm4, %v1616_v54, %v1617_v4  ;;  %v1623_v11 = vsel %vm1621_vm4, %v1618_v9, %v1619_v60  ;;  %14234 = vmatpush3.bf16.msra.mxu1 %v16643_v27  ;;  %v16647_v27 = vld [vmem:[%s21968_s27 + $0xa8] sm:$0xff]  }
 0x167   : > { %v1629_v33 = vsel %vm1621_vm4, %v22086_v62, %v22092_v7  ;;  %v1626_v1 = vsel %vm1621_vm4, %v22093_v13, %v1616_v54  ;;  %v22094_v31 = vmov %v22093_v13  ;;  %v18225_v13 = vpack.c.bf16 %v1624_v57, %v1625_v49 }
 0x168   : > { %v18203_v17 = vpack.c.bf16 %v1628_v21, %v1629_v33  ;;  %v1627_v7 = vsel %vm1621_vm4, %v22095_v36, %v22094_v31  ;;  %v22096_v21 = vrot.slane %v17719_v61, 1  ;;  %v22097_v36 = vrot.slane %v17734_v59, 7 }
 0x169   : > { %v18215_v62 = vpack.c.bf16 %v1626_v1, %v1627_v7  ;;  %v22098_v10 = vrot.slane %v17719_v61, 7  ;;  %v22100_v54 = vrot.slane %v17915_v37, 7  ;;  %v18247_v9 = vpack.c.bf16 %v17734_v59, %v17719_v61  ;;  %v16644_v37 = vld [vmem:[%s21968_s27 + $0x90] sm:$0xff]  }
 0x16a   : > { %v1622_v33 = vsel %vm1621_vm4, %v1619_v60, %v22096_v21  ;;  %v22101_v60 = vrot.slane %v17734_v59, 1  ;;  %v22102_v49 = vmov %v22096_v21  ;;  %14235 = vmatprep.subr.bf16.mxu1 %v16644_v37 }
 0x16b   : > { %v1958_v1 = vsel %vm1045_vm3, %v22098_v10, %v22097_v36  ;;  %v22099_v31 = vmov %v22098_v10  ;;  %v18241_v7 = vpack.c.bf16 %v1622_v33, %v1623_v11  ;;  %v22103_v33 = vrot.slane %v17467_v22, 1  ;;  %14236 = vmatpush3.bf16.msra.mxu1 %v16644_v37  ;;  %v16649_v37 = vld [vmem:[%s21968_s27 + $0xb8] sm:$0xff]  }
 0x16c   : > { %v1959_v4 = vsel %vm1045_vm3, %v22100_v54, %v22099_v31  ;;  %v2481_v21 = vsel %vm1621_vm4, %v22102_v49, %v22101_v60  ;;  %v22104_v11 = vmov %v22101_v60  ;;  %v16645_v49 = vld [vmem:[%s21968_s27 + $0x98] sm:$0xff]  }
 0x16d   : > { %v18243_v57 = vpack.c.bf16 %v1958_v1, %v1959_v4  ;;  %v2482_v36 = vsel %vm1621_vm4, %v22104_v11, %v22103_v33  ;;  %v22110_v33 = vrot.slane %v17619_v34, 7  ;;  %v22111_v11 = vrot.slane %v17616_v26, 7  ;;  %v22118_v26 = vld [vmem:[#allocation59_spill] sm:$0xff]  ;;  %14237 = vmatprep.subr.bf16.mxu1 %v16645_v49 }
 0x16e   : > { %v18271_v61 = vpack.c.bf16 %v2482_v36, %v2481_v21  ;;  %v22113_v4 = vrot.slane %v17578_v19, 7  ;;  %14204 = vmatmul.mubr.msk.bf16.gmra.mrb[20].mxu1 %vm18138_vm11, %v22118_v26  ;;  %v16646_v19 = vld [vmem:[%s21968_s27 + $0xa0] sm:$0xff]   ;;  %v22125_v34 = vmov %v22124_v12 }
 0x16f   : > { %v1068_v36 = vsel %vm1045_vm3, %v22111_v11, %v22110_v33  ;;  %v22112_v54 = vmov %v22111_v11  ;;  %14238 = vmatpush3.bf16.msra.mxu1 %v16645_v49  ;;  %v22120_v49 = vrot.slane %v17794_v3, 7 }
 0x170   : > { %v1069_v60 = vsel %vm1045_vm3, %v22113_v4, %v22112_v54  ;;  %14239 = vmatprep.subr.bf16.mxu1 %v16646_v19  ;;  %v16648_v54 = vld [vmem:[%s21968_s27 + $0xb0] sm:$0xff]   ;;  %v16650_v4 = vld [vmem:[%s21968_s27 + $0xc0] sm:$0xff]  }
 0x171   : > { %v18304_v33 = vpack.c.bf16 %v1068_v36, %v1069_v60  ;;  %v22119_v60 = vrot.slane %v17798_v28, 7  ;;  %v22121_v36 = vmov %v22120_v49 }
 0x173   : > { %14207 = vmatprep.mubr.msk.bf16.mxu1 %vm18138_vm11, %v18304_v33  ;;  %14240 = vmatpush3.bf16.msra.mxu1 %v16646_v19  ;;  %v1058_v11 = vsel %vm1045_vm3, %v22120_v49, %v22119_v60  ;;  %v22122_v19 = vrot.slane %v17777_v30, 7  ;;  %v22126_v46 = vmov %v22119_v60  ;;  %v1036_v49 = vrot.slane %v17854_v39, 7 }
 0x174   : > { %14241 = vmatprep.subr.bf16.mxu1 %v16647_v27  ;;  %v1057_v60 = vsel %vm1045_vm3, %v22126_v46, %v22125_v34  ;;  %v22130_v46 = vrot.slane %v17815_v40, 7  ;;  %v22131_v34 = vrot.slane %v17858_v55, 7  ;;  %v1013_v40 = vadd.s32 8, %v17425_v0 }
 0x175   : > { %v22133_v55 = vmov 0 }
 0x176   : > { %14208 = vmatmul.mubr.msk.bf16.gmra.mrb[24].mxu1 %vm18138_vm11, %v17978_v47  ;;  %vm1653_vm12 = vcmp.le.s32.totalorder %v1013_v40, 14  ;;  %v22137_v40 = vld [vmem:[#allocation18_spill] sm:$0xff] }
 0x177   : > { %14211 = vmatprep.mubr.msk.bf16.mxu1 %vm18138_vm11, %v17980_v38  ;;  %14242 = vmatpush3.bf16.msra.mxu1 %v16647_v27  ;;  %v1059_v27 = vsel %vm1045_vm3, %v22122_v19, %v22121_v36  ;;  %vm18416_vm13 = vmpackc.low %vm1653_vm12, %vm17157_vm10 }
 0x178   : > { %14243 = vmatprep.subr.bf16.mxu1 %v16648_v54  ;;  %v18363_v3 = vpack.c.bf16 %v1058_v11, %v1059_v27  ;;  %v22134_v55 = vsel %vm18416_vm13, 4294967295, %v22133_v55 }
 0x179   : > { %22135 = vst [vmem:[#allocation59_spill] sm:$0xff] %v22134_v55 }
 0x17b   : > { %14244 = vmatpush3.bf16.msra.mxu1 %v16648_v54  ;;  %v1056_v54 = vsel %vm1045_vm3, %v22124_v12, %v22123_v35  ;;  %v22127_v35 = vrot.slane %v17841_v43, 7  ;;  %v22128_v12 = vrot.slane %v17837_v52, 7  ;;  %v16651_v52 = vld [vmem:[%s21968_s27 + $0xc8] sm:$0xff]   ;;  %v22136_v43 = vld [vmem:[#allocation25_spill] sm:$0xff] }
 0x17c   : > { %14245 = vmatprep.subr.bf16.mxu1 %v16649_v37  ;;  %v18365_v30 = vpack.c.bf16 %v1056_v54, %v1057_v60  ;;  %v16652_v54 = vld [vmem:[%s21968_s27 + $0xd0] sm:$0xff]   ;;  %v16653_v60 = vld [vmem:[%s21968_s27 + $0xd8] sm:$0xff]  }
 0x17d   : > { %v1054_v56 = vsel %vm1045_vm3, %v22128_v12, %v22127_v35  ;;  %v22129_v28 = vmov %v22128_v12  ;;  %v22132_v11 = vmov %v22127_v35  ;;  %v16656_v35 = vld [vmem:[%s21968_s27 + $0xf0] sm:$0xff]   ;;  %v16657_v12 = vld [vmem:[%s21968_s27 + $0xf8] sm:$0xff]  }
 0x17e   : > { %14212 = vmatmul.mubr.msk.bf16.gmra.mrb[28].mxu1 %vm18138_vm11, %v17995_v50  ;;  %v1055_v39 = vsel %vm1045_vm3, %v22130_v46, %v22129_v28  ;;  %v1053_v36 = vsel %vm1045_vm3, %v22132_v11, %v1036_v49  ;;  %v16659_v28 = vld [vmem:[%s21968_s27 + $0x108] sm:$0xff]   ;;  %v16660_v46 = vld [vmem:[%s21968_s27 + $0x110] sm:$0xff]   ;;  %v16665_v11 = vld [vmem:[%s21968_s27 + $0x138] sm:$0xff]  }
 0x17f   : > { %14215 = vmatprep.mubr.msk.bf16.mxu1 %vm18138_vm11, %v18009_v29  ;;  %14246 = vmatpush3.bf16.msra.mxu1 %v16649_v37  ;;  %v1052_v37 = vsel %vm1045_vm3, %v1036_v49, %v22131_v34  ;;  %v18394_v19 = vpack.c.bf16 %v1054_v56, %v1055_v39  ;;  %v16655_v49 = vld [vmem:[%s21968_s27 + $0xe8] sm:$0xff]   ;;  %v16658_v56 = vld [vmem:[%s21968_s27 + $0x100] sm:$0xff]  }
 0x180   : > { %14279 = vmatprep.subr.bf16.mxu1 %v16650_v4  ;;  %v18396_v27 = vpack.c.bf16 %v1052_v37, %v1053_v36  ;;  %v16662_v39 = vld [vmem:[%s21968_s27 + $0x120] sm:$0xff]   ;;  %v16663_v34 = vld [vmem:[%s21968_s27 + $0x128] sm:$0xff]   ;;  %v16664_v37 = vld [vmem:[%s21968_s27 + $0x130] sm:$0xff]  }
 0x181   : > { %v16666_v36 = vld [vmem:[%s21968_s27 + $0x140] sm:$0xff]  }
 0x186   : > { %14216 = vmatmul.mubr.msk.bf16.gmra.mrb[32].mxu1 %vm18138_vm11, %v18363_v3 }
 0x187   : > { %14219 = vmatprep.mubr.msk.bf16.mxu1 %vm18138_vm11, %v18365_v30 }
 0x18e   : > { %14220 = vmatmul.mubr.msk.bf16.gmra.mrb[36].mxu1 %vm18138_vm11, %v18394_v19 }
 0x18f   : > { %14223 = vmatprep.mubr.msk.bf16.mxu1 %vm18138_vm11, %v18396_v27 }
 0x196   : > { %14224 = vmatmul.mubr.msk.bf16.gmra.mrb[40].mxu1 %vm18138_vm11, %v18027_v63 }
 0x197   : > { %14227 = vmatprep.mubr.msk.bf16.mxu1 %vm18138_vm11, %v18029_v2 }
 0x19e   : > { %14228 = vmatmul.mubr.msk.bf16.gmra.mrb[44].mxu1 %vm18138_vm11, %v18037_v53 }
 0x19f   : > { %14247 = vmatprep.mubr.bf16.mxu1 %v22075_v23 }
 0x1a6   : > { %14248 = vmatmul.mubr.msk.bf16.vlgmr.msra.gmra.mrb[16].mxu1 %vm18416_vm13, %v22136_v43 }
 0x1a7   : > { %14251 = vmatprep.mubr.msk.bf16.mxu1 %vm18416_vm13, %v18057_v14  ;;  %14280 = vmatpush3.bf16.msra.mxu1 %v16650_v4  ;;  %v16654_v4 = vld [vmem:[%s21968_s27 + $0xe0] sm:$0xff]  }
 0x1a8   : > { %14281 = vmatprep.subr.bf16.mxu1 %v16651_v52 }
 0x1ab   : > { %14282 = vmatpush3.bf16.msra.mxu1 %v16651_v52  ;;  %v16667_v52 = vld [vmem:[%s21968_s27 + $0x148] sm:$0xff]  }
 0x1ac   : > { %14283 = vmatprep.subr.bf16.mxu1 %v16652_v54 }
 0x1ae   : > { %14252 = vmatmul.mubr.msk.bf16.gmra.mrb[20].mxu1 %vm18416_vm13, %v18077_v8 }
 0x1af   : > { %14255 = vmatprep.mubr.msk.bf16.mxu1 %vm18416_vm13, %v18079_v18  ;;  %14284 = vmatpush3.bf16.msra.mxu1 %v16652_v54  ;;  %v22138_v54 = vld [vmem:[#allocation17_spill] sm:$0xff] }
 0x1b0   : > { %14285 = vmatprep.subr.bf16.mxu1 %v16653_v60 }
 0x1b3   : > { %14286 = vmatpush3.bf16.msra.mxu1 %v16653_v60  ;;  %v22139_v60 = vld [vmem:[#allocation32_spill] sm:$0xff] }
 0x1b4   : > { %14287 = vmatprep.subr.bf16.mxu1 %v16654_v4 }
 0x1b6   : > { %14256 = vmatmul.mubr.msk.bf16.gmra.mrb[24].mxu1 %vm18416_vm13, %v18093_v6 }
 0x1b7   : > { %14259 = vmatprep.mubr.msk.bf16.mxu1 %vm18416_vm13, %v18114_v44  ;;  %14288 = vmatpush3.bf16.msra.mxu1 %v16654_v4  ;;  %v16668_v4 = vld [vmem:[%s21968_s27 + $0x150] sm:$0xff]  }
 0x1b8   : > { %14289 = vmatprep.subr.bf16.mxu1 %v16655_v49 }
 0x1bb   : > { %14290 = vmatpush3.bf16.msra.mxu1 %v16655_v49  ;;  %v16669_v49 = vld [vmem:[%s21968_s27 + $0x158] sm:$0xff]  }
 0x1bc   : > { %14291 = vmatprep.subr.bf16.mxu1 %v16656_v35 }
 0x1be   : > { %14260 = vmatmul.mubr.msk.bf16.gmra.mrb[28].mxu1 %vm18416_vm13, %v18142_v58 }
 0x1bf   : > { %14263 = vmatprep.mubr.msk.bf16.mxu1 %vm18416_vm13, %v18144_v24  ;;  %14292 = vmatpush3.bf16.msra.mxu1 %v16656_v35  ;;  %v22140_v35 = vld [vmem:[#allocation36_spill] sm:$0xff] }
 0x1c0   : > { %14293 = vmatprep.subr.bf16.mxu1 %v16657_v12 }
 0x1c3   : > { %14294 = vmatpush3.bf16.msra.mxu1 %v16657_v12  ;;  %v22141_v12 = vld [vmem:[#allocation45_spill] sm:$0xff] }
 0x1c4   : > { %14327 = vmatprep.subr.bf16.mxu1 %v16658_v56 }
 0x1c6   : > { %14264 = vmatmul.mubr.msk.bf16.gmra.mrb[32].mxu1 %vm18416_vm13, %v18158_v15 }
 0x1c7   : > { %14267 = vmatprep.mubr.msk.bf16.mxu1 %vm18416_vm13, %v18178_v48 }
 0x1ce   : > { %14268 = vmatmul.mubr.msk.bf16.gmra.mrb[36].mxu1 %vm18416_vm13, %v18201_v25 }
 0x1cf   : > { %14271 = vmatprep.mubr.msk.bf16.mxu1 %vm18416_vm13, %v18203_v17 }
 0x1d6   : > { %14272 = vmatmul.mubr.msk.bf16.gmra.mrb[40].mxu1 %vm18416_vm13, %v18215_v62 }
 0x1d7   : > { %14275 = vmatprep.mubr.msk.bf16.mxu1 %vm18416_vm13, %v18225_v13 }
 0x1de   : > { %14276 = vmatmul.mubr.msk.bf16.gmra.mrb[44].mxu1 %vm18416_vm13, %v18241_v7 }
 0x1df   : > { %14295 = vmatprep.mubr.msk.bf16.mxu1 %vm18138_vm11, %v17767_v32  ;;  %v16661_v32 = vld [vmem:[%s21968_s27 + $0x118] sm:$0xff]  }
 0x1e6   : > { %14296 = vmatmul.mubr.msk.bf16.vlgmr.msra.gmra.mrb[16].mxu1 %vm18138_vm11, %v17938_v5 }
 0x1e7   : > { %14299 = vmatprep.mubr.msk.bf16.mxu1 %vm18138_vm11, %v22118_v26  ;;  %14328 = vmatpush3.bf16.msra.mxu1 %v16658_v56  ;;  %v16670_v56 = vld [vmem:[%s21968_s27 + $0x160] sm:$0xff]  }
 0x1e8   : > { %14329 = vmatprep.subr.bf16.mxu1 %v16659_v28 }
 0x1eb   : > { %14330 = vmatpush3.bf16.msra.mxu1 %v16659_v28  ;;  %v16671_v28 = vld [vmem:[%s21968_s27 + $0x168] sm:$0xff]  }
 0x1ec   : > { %14331 = vmatprep.subr.bf16.mxu1 %v16660_v46 }
 0x1ee   : > { %14300 = vmatmul.mubr.msk.bf16.gmra.mrb[20].mxu1 %vm18138_vm11, %v18304_v33 }
 0x1ef   : > { %14303 = vmatprep.mubr.msk.bf16.mxu1 %vm18138_vm11, %v17978_v47  ;;  %14332 = vmatpush3.bf16.msra.mxu1 %v16660_v46  ;;  %v22142_v46 = vld [vmem:[#allocation48_spill] sm:$0xff] }
 0x1f0   : > { %14333 = vmatprep.subr.bf16.mxu1 %v16661_v32 }
 0x1f3   : > { %14334 = vmatpush3.bf16.msra.mxu1 %v16661_v32  ;;  %v22143_v32 = vld [vmem:[#allocation49_spill] sm:$0xff] }
 0x1f4   : > { %14335 = vmatprep.subr.bf16.mxu1 %v16662_v39 }
 0x1f6   : > { %14304 = vmatmul.mubr.msk.bf16.gmra.mrb[24].mxu1 %vm18138_vm11, %v17980_v38 }
 0x1f7   : > { %14307 = vmatprep.mubr.msk.bf16.mxu1 %vm18138_vm11, %v17995_v50  ;;  %14336 = vmatpush3.bf16.msra.mxu1 %v16662_v39  ;;  %v16672_v39 = vld [vmem:[%s21968_s27 + $0x170] sm:$0xff]  }
 0x1f8   : > { %14337 = vmatprep.subr.bf16.mxu1 %v16663_v34 }
 0x1fb   : > { %14338 = vmatpush3.bf16.msra.mxu1 %v16663_v34  ;;  %v16673_v34 = vld [vmem:[%s21968_s27 + $0x178] sm:$0xff]  }
 0x1fc   : > { %14339 = vmatprep.subr.bf16.mxu1 %v16664_v37 }
 0x1fe   : > { %14308 = vmatmul.mubr.msk.bf16.gmra.mrb[28].mxu1 %vm18138_vm11, %v18009_v29 }
 0x1ff   : > { %14311 = vmatprep.mubr.msk.bf16.mxu1 %vm18138_vm11, %v18363_v3  ;;  %14340 = vmatpush3.bf16.msra.mxu1 %v16664_v37  ;;  %v22144_v37 = vld [vmem:[#allocation50_spill] sm:$0xff] }
 0x200   : > { %14341 = vmatprep.subr.bf16.mxu1 %v16665_v11 }
 0x203   : > { %14342 = vmatpush3.bf16.msra.mxu1 %v16665_v11  ;;  %v22145_v11 = vld [vmem:[#allocation51_spill] sm:$0xff] }
 0x204   : > { %14375 = vmatprep.subr.bf16.mxu1 %v16666_v36 }
 0x206   : > { %14312 = vmatmul.mubr.msk.bf16.gmra.mrb[32].mxu1 %vm18138_vm11, %v18365_v30 }
 0x207   : > { %14315 = vmatprep.mubr.msk.bf16.mxu1 %vm18138_vm11, %v18394_v19 }
 0x20e   : > { %14316 = vmatmul.mubr.msk.bf16.gmra.mrb[36].mxu1 %vm18138_vm11, %v18396_v27 }
 0x20f   : > { %14319 = vmatprep.mubr.msk.bf16.mxu1 %vm18138_vm11, %v18027_v63 }
 0x216   : > { %14320 = vmatmul.mubr.msk.bf16.gmra.mrb[40].mxu1 %vm18138_vm11, %v18029_v2 }
 0x217   : > { %14323 = vmatprep.mubr.msk.bf16.mxu1 %vm18138_vm11, %v18037_v53 }
 0x21e   : > { %14324 = vmatmul.mubr.msk.bf16.gmra.mrb[44].mxu1 %vm18138_vm11, %v18243_v57 }
 0x21f   : > { %14343 = vmatprep.mubr.bf16.mxu1 %v22137_v40  ;;  %v22146_v40 = vld [vmem:[#allocation53_spill] sm:$0xff] }
 0x226   : > { %14344 = vmatmul.mubr.bf16.vlgmr.msra.gmra.mrb[16].mxu1 %v22138_v54 }
 0x227   : > { %14347 = vmatprep.mubr.bf16.mxu1 %v22139_v60  ;;  %14376 = vmatpush3.bf16.msra.mxu1 %v16666_v36  ;;  %v16674_v36 = vld [vmem:[%s21968_s27 + $0x180] sm:$0xff]  }
 0x228   : > { %14377 = vmatprep.subr.bf16.mxu1 %v16667_v52 }
 0x22b   : > { %14378 = vmatpush3.bf16.msra.mxu1 %v16667_v52  ;;  %v22147_v52 = vld [vmem:[#allocation54_spill] sm:$0xff] }
 0x22c   : > { %14379 = vmatprep.subr.bf16.mxu1 %v16668_v4 }
 0x22e   : > { %14348 = vmatmul.mubr.bf16.gmra.mrb[20].mxu1 %v22140_v35 }
 0x22f   : > { %14351 = vmatprep.mubr.bf16.mxu1 %v22141_v12  ;;  %14380 = vmatpush3.bf16.msra.mxu1 %v16668_v4  ;;  %v22148_v4 = vld [vmem:[#allocation55_spill] sm:$0xff] }
 0x230   : > { %14381 = vmatprep.subr.bf16.mxu1 %v16669_v49 }
 0x233   : > { %14382 = vmatpush3.bf16.msra.mxu1 %v16669_v49  ;;  %v22149_v49 = vld [vmem:[#allocation56_spill] sm:$0xff] }
 0x234   : > { %14383 = vmatprep.subr.bf16.mxu1 %v16670_v56 }
 0x236   : > { %14352 = vmatmul.mubr.bf16.gmra.mrb[24].mxu1 %v22142_v46 }
 0x237   : > { %14355 = vmatprep.mubr.bf16.mxu1 %v22143_v32  ;;  %14384 = vmatpush3.bf16.msra.mxu1 %v16670_v56  ;;  %v22150_v56 = vld [vmem:[#allocation57_spill] sm:$0xff] }
 0x238   : > { %14385 = vmatprep.subr.bf16.mxu1 %v16671_v28 }
 0x23b   : > { %14386 = vmatpush3.bf16.msra.mxu1 %v16671_v28  ;;  %v22151_v28 = vld [vmem:[#allocation58_spill] sm:$0xff] }
 0x23c   : > { %14387 = vmatprep.subr.bf16.mxu1 %v16672_v39 }
 0x23e   : > { %14356 = vmatmul.mubr.bf16.gmra.mrb[28].mxu1 %v22144_v37 }
 0x23f   : > { %14359 = vmatprep.mubr.bf16.mxu1 %v22145_v11  ;;  %14388 = vmatpush3.bf16.msra.mxu1 %v16672_v39  ;;  %v16675_v39 = vld [vmem:[%s21968_s27 + $0x188] sm:$0xff]  }
 0x240   : > { %14389 = vmatprep.subr.bf16.mxu1 %v16673_v34 }
 0x243   : > { %14390 = vmatpush3.bf16.msra.mxu1 %v16673_v34  ;;  %v16676_v34 = vld [vmem:[%s21968_s27 + $0x190] sm:$0xff]  }
 0x244   : > { %14423 = vmatprep.subr.bf16.mxu1 %v16674_v36 }
 0x246   : > { %14360 = vmatmul.mubr.bf16.gmra.mrb[32].mxu1 %v22146_v40 }
 0x247   : > { %14363 = vmatprep.mubr.bf16.mxu1 %v22147_v52 }
 0x24e   : > { %14364 = vmatmul.mubr.bf16.gmra.mrb[36].mxu1 %v22148_v4 }
 0x24f   : > { %14367 = vmatprep.mubr.bf16.mxu1 %v22149_v49 }
 0x256   : > { %14368 = vmatmul.mubr.bf16.gmra.mrb[40].mxu1 %v22150_v56 }
 0x257   : > { %14371 = vmatprep.mubr.bf16.mxu1 %v22151_v28 }
 0x25e   : > { %14372 = vmatmul.mubr.bf16.gmra.mrb[44].mxu1 %v18247_v9 }
 0x25f   : > { %14391 = vmatprep.mubr.msk.bf16.mxu1 %vm18416_vm13, %v22136_v43  ;;  %v16677_v43 = vld [vmem:[%s21968_s27 + $0x198] sm:$0xff]  }
 0x266   : > { %14392 = vmatmul.mubr.msk.bf16.vlgmr.msra.gmra.mrb[16].mxu1 %vm18416_vm13, %v18057_v14 }
 0x267   : > { %14395 = vmatprep.mubr.msk.bf16.mxu1 %vm18416_vm13, %v18077_v8  ;;  %14424 = vmatpush3.bf16.msra.mxu1 %v16674_v36  ;;  %v16678_v36 = vld [vmem:[%s21968_s27 + $0x1a0] sm:$0xff]  }
 0x268   : > { %14425 = vmatprep.subr.bf16.mxu1 %v16675_v39 }
 0x26b   : > { %14426 = vmatpush3.bf16.msra.mxu1 %v16675_v39  ;;  %v16679_v39 = vld [vmem:[%s21968_s27 + $0x1a8] sm:$0xff]  }
 0x26c   : > { %14427 = vmatprep.subr.bf16.mxu1 %v16676_v34 }
 0x26e   : > { %14396 = vmatmul.mubr.msk.bf16.gmra.mrb[20].mxu1 %vm18416_vm13, %v18079_v18 }
 0x26f   : > { %14399 = vmatprep.mubr.msk.bf16.mxu1 %vm18416_vm13, %v18093_v6  ;;  %14428 = vmatpush3.bf16.msra.mxu1 %v16676_v34  ;;  %v16680_v34 = vld [vmem:[%s21968_s27 + $0x1b0] sm:$0xff]  }
 0x270   : > { %14429 = vmatprep.subr.bf16.mxu1 %v16677_v43 }
 0x273   : > { %14430 = vmatpush3.bf16.msra.mxu1 %v16677_v43  ;;  %v16681_v43 = vld [vmem:[%s21968_s27 + $0x1b8] sm:$0xff]  }
 0x274   : > { %14431 = vmatprep.subr.bf16.mxu1 %v16678_v36 }
 0x276   : > { %14400 = vmatmul.mubr.msk.bf16.gmra.mrb[24].mxu1 %vm18416_vm13, %v18114_v44 }
 0x277   : > { %14403 = vmatprep.mubr.msk.bf16.mxu1 %vm18416_vm13, %v18142_v58  ;;  %14432 = vmatpush3.bf16.msra.mxu1 %v16678_v36  ;;  %v16682_v36 = vld [vmem:[%s21968_s27 + $0x1c0] sm:$0xff]  }
 0x278   : > { %14433 = vmatprep.subr.bf16.mxu1 %v16679_v39 }
 0x27b   : > { %14434 = vmatpush3.bf16.msra.mxu1 %v16679_v39  ;;  %v16683_v39 = vld [vmem:[%s21968_s27 + $0x1c8] sm:$0xff]  }
 0x27c   : > { %14435 = vmatprep.subr.bf16.mxu1 %v16680_v34 }
 0x27e   : > { %14404 = vmatmul.mubr.msk.bf16.gmra.mrb[28].mxu1 %vm18416_vm13, %v18144_v24 }
 0x27f   : > { %14407 = vmatprep.mubr.msk.bf16.mxu1 %vm18416_vm13, %v18158_v15  ;;  %14436 = vmatpush3.bf16.msra.mxu1 %v16680_v34  ;;  %v16684_v34 = vld [vmem:[%s21968_s27 + $0x1d0] sm:$0xff]  }
 0x280   : > { %14437 = vmatprep.subr.bf16.mxu1 %v16681_v43 }
 0x283   : > { %14438 = vmatpush3.bf16.msra.mxu1 %v16681_v43 }
 0x284   : > { %14471 = vmatprep.subr.bf16.mxu1 %v16682_v36 }
 0x286   : > { %14408 = vmatmul.mubr.msk.bf16.gmra.mrb[32].mxu1 %vm18416_vm13, %v18178_v48 }
 0x287   : > { %14411 = vmatprep.mubr.msk.bf16.mxu1 %vm18416_vm13, %v18201_v25 }
 0x28e   : > { %14412 = vmatmul.mubr.msk.bf16.gmra.mrb[36].mxu1 %vm18416_vm13, %v18203_v17 }
 0x28f   : > { %14415 = vmatprep.mubr.msk.bf16.mxu1 %vm18416_vm13, %v18215_v62 }
 0x296   : > { %14416 = vmatmul.mubr.msk.bf16.gmra.mrb[40].mxu1 %vm18416_vm13, %v18225_v13 }
 0x297   : > { %14419 = vmatprep.mubr.msk.bf16.mxu1 %vm18416_vm13, %v18241_v7 }
 0x29e   : > { %14420 = vmatmul.mubr.msk.bf16.gmra.mrb[44].mxu1 %vm18416_vm13, %v18271_v61 }
 0x29f   : > { %14439 = vmatprep.mubr.msk.bf16.mxu1 %vm18138_vm11, %v17938_v5  ;;  %v16685_v5 = vld [vmem:[%s21968_s27 + $0x1d8] sm:$0xff]  }
 0x2a6   : > { %14440 = vmatmul.mubr.msk.bf16.vlgmr.msra.gmra.mrb[16].mxu1 %vm18138_vm11, %v22118_v26  ;;  %v16687_v26 = vld [vmem:[%s21968_s27 + $0x1e8] sm:$0xff]  }
 0x2a7   : > { %14443 = vmatprep.mubr.msk.bf16.mxu1 %vm18138_vm11, %v18304_v33  ;;  %14472 = vmatpush3.bf16.msra.mxu1 %v16682_v36  ;;  %v16686_v33 = vld [vmem:[%s21968_s27 + $0x1e0] sm:$0xff]  }
 0x2a8   : > { %14473 = vmatprep.subr.bf16.mxu1 %v16683_v39 }
 0x2ab   : > { %14474 = vmatpush3.bf16.msra.mxu1 %v16683_v39 }
 0x2ac   : > { %14475 = vmatprep.subr.bf16.mxu1 %v16684_v34 }
 0x2ae   : > { %14444 = vmatmul.mubr.msk.bf16.gmra.mrb[20].mxu1 %vm18138_vm11, %v17978_v47  ;;  %v16689_v47 = vld [vmem:[%s21968_s27 + $0x1f8] sm:$0xff]  }
 0x2af   : > { %14447 = vmatprep.mubr.msk.bf16.mxu1 %vm18138_vm11, %v17980_v38  ;;  %14476 = vmatpush3.bf16.msra.mxu1 %v16684_v34  ;;  %v16688_v38 = vld [vmem:[%s21968_s27 + $0x1f0] sm:$0xff]  }
 0x2b0   : > { %14477 = vmatprep.subr.bf16.mxu1 %v16685_v5 }
 0x2b3   : > { %14478 = vmatpush3.bf16.msra.mxu1 %v16685_v5 }
 0x2b4   : > { %14479 = vmatprep.subr.bf16.mxu1 %v16686_v33 }
 0x2b6   : > { %14448 = vmatmul.mubr.msk.bf16.gmra.mrb[24].mxu1 %vm18138_vm11, %v17995_v50  ;;  %v16690_v50 = vld [vmem:[%s21968_s27 + $0x200] sm:$0xff]  }
 0x2b7   : > { %14451 = vmatprep.mubr.msk.bf16.mxu1 %vm18138_vm11, %v18009_v29  ;;  %14480 = vmatpush3.bf16.msra.mxu1 %v16686_v33  ;;  %v16698_v29 = vld [vmem:[%s22152_s5 + $0x40] sm:$0xff]  }
 0x2b8   : > { %14481 = vmatprep.subr.bf16.mxu1 %v16687_v26  ;;  %14567 = vmatprep.subr.bf16.mxu0 %v16698_v29 }
 0x2b9   : > { %14568 = vmatpush3.bf16.msra.mxu0 %v16698_v29 }
 0x2bb   : > { %14482 = vmatpush3.bf16.msra.mxu1 %v16687_v26 }
 0x2bc   : > { %14483 = vmatprep.subr.bf16.mxu1 %v16688_v38 }
 0x2be   : > { %14452 = vmatmul.mubr.msk.bf16.gmra.mrb[28].mxu1 %vm18138_vm11, %v18363_v3  ;;  %v16692_v3 = vld [vmem:[%s21968_s27 + $0x210] sm:$0xff]  }
 0x2bf   : > { %14455 = vmatprep.mubr.msk.bf16.mxu1 %vm18138_vm11, %v18365_v30  ;;  %14484 = vmatpush3.bf16.msra.mxu1 %v16688_v38  ;;  %v16702_v30 = vld [vmem:[%s22152_s5 + $0x60] sm:$0xff]  }
 0x2c0   : > { %14485 = vmatprep.subr.bf16.mxu1 %v16689_v47 }
 0x2c3   : > { %14486 = vmatpush3.bf16.msra.mxu1 %v16689_v47 }
 0x2c4   : > { %14519 = vmatprep.subr.bf16.mxu1 %v16690_v50 }
 0x2c6   : > { %14456 = vmatmul.mubr.msk.bf16.gmra.mrb[32].mxu1 %vm18138_vm11, %v18394_v19  ;;  %v16693_v19 = vld [vmem:[%s21968_s27 + $0x218] sm:$0xff]  }
 0x2c7   : > { %14459 = vmatprep.mubr.msk.bf16.mxu1 %vm18138_vm11, %v18396_v27  ;;  %v16703_v27 = vld [vmem:[%s22152_s5 + $0x68] sm:$0xff]  }
 0x2ce   : > { %14460 = vmatmul.mubr.msk.bf16.gmra.mrb[36].mxu1 %vm18138_vm11, %v18027_v63  ;;  %v16699_v63 = vld [vmem:[%s22152_s5 + $0x48] sm:$0xff]  }
 0x2cf   : > { %14463 = vmatprep.mubr.msk.bf16.mxu1 %vm18138_vm11, %v18029_v2  ;;  %14569 = vmatprep.subr.bf16.mxu0 %v16699_v63  ;;  %v16691_v2 = vld [vmem:[%s21968_s27 + $0x208] sm:$0xff]  }
 0x2d0   : > { %14570 = vmatpush3.bf16.msra.mxu0 %v16699_v63 }
 0x2d6   : > { %14464 = vmatmul.mubr.msk.bf16.gmra.mrb[40].mxu1 %vm18138_vm11, %v18037_v53  ;;  %v16700_v53 = vld [vmem:[%s22152_s5 + $0x50] sm:$0xff]  }
 0x2d7   : > { %14467 = vmatprep.mubr.msk.bf16.mxu1 %vm18138_vm11, %v18243_v57  ;;  %14571 = vmatprep.subr.bf16.mxu0 %v16700_v53  ;;  %v16701_v57 = vld [vmem:[%s22152_s5 + $0x58] sm:$0xff]  }
 0x2d8   : > { %14572 = vmatpush3.bf16.msra.mxu0 %v16700_v53 }
 0x2d9   : > { %14573 = vmatprep.subr.bf16.mxu0 %v16701_v57 }
 0x2dc   : > { %14574 = vmatpush3.bf16.msra.mxu0 %v16701_v57 }
 0x2dd   : > { %14575 = vmatprep.subr.bf16.mxu0 %v16702_v30 }
 0x2de   : > { %14468 = vmatmul.mubr.bf16.gmra.mrb[44].mxu1 %v22075_v23 }
 0x2df   : > { %14487 = vmatprep.mubr.bf16.mxu1 %v22138_v54  ;;  %v16694_v54 = vld [vmem:[%s21968_s27 + $0x220] sm:$0xff]  }
 0x2e0   : > { %14576 = vmatpush3.bf16.msra.mxu0 %v16702_v30 }
 0x2e1   : > { %14577 = vmatprep.subr.bf16.mxu0 %v16703_v27 }
 0x2e4   : > { %14578 = vmatpush3.bf16.msra.mxu0 %v16703_v27 }
 0x2e6   : > { %14488 = vmatmul.mubr.bf16.vlgmr.msra.gmra.mrb[16].mxu1 %v22139_v60  ;;  %v16695_v60 = vld [vmem:[%s21968_s27 + $0x228] sm:$0xff]  }
 0x2e7   : > { %14491 = vmatprep.mubr.bf16.mxu1 %v22140_v35  ;;  %14520 = vmatpush3.bf16.msra.mxu1 %v16690_v50  ;;  %v16696_v35 = vld [vmem:[%s21968_s27 + $0x230] sm:$0xff]   ;;  %v16707_v50 = vld [vmem:[%s22152_s5 + $0x8] sm:$0xff]  }
 0x2e8   : > { %14521 = vmatprep.subr.bf16.mxu1 %v16691_v2 }
 0x2eb   : > { %14522 = vmatpush3.bf16.msra.mxu1 %v16691_v2 }
 0x2ec   : > { %14523 = vmatprep.subr.bf16.mxu1 %v16692_v3 }
 0x2ee   : > { %14492 = vmatmul.mubr.bf16.gmra.mrb[20].mxu1 %v22141_v12  ;;  %v16697_v12 = vld [vmem:[%s21968_s27 + $0x238] sm:$0xff]  }
 0x2ef   : > { %14495 = vmatprep.mubr.bf16.mxu1 %v22142_v46  ;;  %14524 = vmatpush3.bf16.msra.mxu1 %v16692_v3 }
 0x2f0   : > { %14525 = vmatprep.subr.bf16.mxu1 %v16693_v19 }
 0x2f3   : > { %14526 = vmatpush3.bf16.msra.mxu1 %v16693_v19 }
 0x2f4   : > { %14527 = vmatprep.subr.bf16.mxu1 %v16694_v54 }
 0x2f6   : > { %14496 = vmatmul.mubr.bf16.gmra.mrb[24].mxu1 %v22143_v32 }
 0x2f7   : > { %14499 = vmatprep.mubr.bf16.mxu1 %v22144_v37  ;;  %14528 = vmatpush3.bf16.msra.mxu1 %v16694_v54 }
 0x2f8   : > { %14529 = vmatprep.subr.bf16.mxu1 %v16695_v60 }
 0x2fb   : > { %14530 = vmatpush3.bf16.msra.mxu1 %v16695_v60 }
 0x2fc   : > { %14531 = vmatprep.subr.bf16.mxu1 %v16696_v35 }
 0x2fe   : > { %14500 = vmatmul.mubr.bf16.gmra.mrb[28].mxu1 %v22145_v11 }
 0x2ff   : > { %14503 = vmatprep.mubr.bf16.mxu1 %v22146_v40  ;;  %14532 = vmatpush3.bf16.msra.mxu1 %v16696_v35 }
 0x300   : > { %14533 = vmatprep.subr.bf16.mxu1 %v16697_v12 }
 0x303   : > { %14534 = vmatpush3.bf16.msra.mxu1 %v16697_v12  ;;  %v16708_v12 = vld [vmem:[%s22152_s5 + $0x10] sm:$0xff]  }
 0x306   : > { %14504 = vmatmul.mubr.bf16.gmra.mrb[32].mxu1 %v22147_v52 }
 0x307   : > { %14507 = vmatprep.mubr.bf16.mxu1 %v22148_v4 }
 0x30e   : > { %14508 = vmatmul.mubr.bf16.gmra.mrb[36].mxu1 %v22149_v49 }
 0x30f   : > { %14511 = vmatprep.mubr.bf16.mxu1 %v22150_v56 }
 0x316   : > { %14512 = vmatmul.mubr.bf16.gmra.mrb[40].mxu1 %v22151_v28 }
 0x317   : > { %14515 = vmatprep.mubr.bf16.mxu1 %v18247_v9 }
 0x31e   : > { %14516 = vmatmul.mubr.bf16.gmra.mrb[44].mxu1 %v22075_v23 }
 0x31f   : > { %14535 = vmatprep.mubr.msk.bf16.mxu1 %vm18416_vm13, %v18057_v14  ;;  %v16704_v14 = vld [vmem:[%s22152_s5 + $0x70] sm:$0xff]  }
 0x320   : > { %14579 = vmatprep.subr.bf16.mxu0 %v16704_v14 }
 0x321   : > { %14580 = vmatpush3.bf16.msra.mxu0 %v16704_v14 }
 0x326   : > { %14536 = vmatmul.mubr.msk.bf16.vlgmr.msra.gmra.mrb[16].mxu1 %vm18416_vm13, %v18077_v8  ;;  %v16705_v8 = vld [vmem:[%s22152_s5 + $0x78] sm:$0xff]  }
 0x327   : > { %14539 = vmatprep.mubr.msk.bf16.mxu1 %vm18416_vm13, %v18079_v18  ;;  %14581 = vmatprep.subr.bf16.mxu0 %v16705_v8  ;;  %v16706_v18 = vld [vmem:[%s22152_s5] sm:$0xff]  }
 0x328   : > { %14582 = vmatpush3.bf16.msra.mxu0 %v16705_v8 }
 0x329   : > { %14615 = vmatprep.subr.bf16.mxu0 %v16706_v18 }
 0x32e   : > { %14540 = vmatmul.mubr.msk.bf16.gmra.mrb[20].mxu1 %vm18416_vm13, %v18093_v6  ;;  %v18856_v6 = vld [vmem:[%s22153_s3] ss:$0 sm:$0xff]  ;;  %s634_s3 = sand.u32 1, %s17144_s22  }
 0x32f   : > { %14543 = vmatprep.mubr.msk.bf16.mxu1 %vm18416_vm13, %v18114_v44  ;;  %s635_s26 = scalar_lea.vmem [#allocation5], %s634_s3 }
 0x336   : > { %14544 = vmatmul.mubr.msk.bf16.gmra.mrb[24].mxu1 %vm18416_vm13, %v18142_v58 }
 0x337   : > { %14547 = vmatprep.mubr.msk.bf16.mxu1 %vm18416_vm13, %v18144_v24 }
 0x33e   : > { %14548 = vmatmul.mubr.msk.bf16.gmra.mrb[28].mxu1 %vm18416_vm13, %v18158_v15 }
 0x33f   : > { %14551 = vmatprep.mubr.msk.bf16.mxu1 %vm18416_vm13, %v18178_v48 }
 0x346   : > { %14552 = vmatmul.mubr.msk.bf16.gmra.mrb[32].mxu1 %vm18416_vm13, %v18201_v25 }
 0x347   : > { %14555 = vmatprep.mubr.msk.bf16.mxu1 %vm18416_vm13, %v18203_v17 }
 0x34e   : > { %14556 = vmatmul.mubr.msk.bf16.gmra.mrb[36].mxu1 %vm18416_vm13, %v18215_v62 }
 0x34f   : > { %14559 = vmatprep.mubr.msk.bf16.mxu1 %vm18416_vm13, %v18225_v13 }
 0x356   : > { %14560 = vmatmul.mubr.msk.bf16.gmra.mrb[40].mxu1 %vm18416_vm13, %v18241_v7 }
 0x357   : > { %14563 = vmatprep.mubr.msk.bf16.mxu1 %vm18416_vm13, %v18271_v61 }
 0x35e   : > { %14564 = vmatmul.mubr.bf16.gmra.mrb[44].mxu1 %v22075_v23 }
 0x3f9   : > { %v14537_v44 = vpop.f32.mrb[16].mxu1 }
 0x3fa   : > { %v3527_v58 = vadd.f32 %v14537_v44, %v18856_v6  ;;  %v3359_v24 = vpop.f32.mrb[17].mxu1 }
 0x3fb   : > { %v3525_v15 = vadd.f32 %v18856_v6, %v3359_v24  ;;  %v14538_v48 = vpop.f32.mrb[18].mxu1 }
 0x3fc   : > { %vm3559_vm14 = vcmp.ge.f32.partialorder %v3527_v58, 0.0  ;;  %v3591_v25 = vmul.f32 0.2, %v3527_v58  ;;  %v3528_v17 = vadd.f32 %v14538_v48, %v18856_v6  ;;  %v3362_v62 = vpop.f32.mrb[19].mxu1 }
 0x3fd   : > { %vm3557_vm15 = vcmp.ge.f32.partialorder %v3525_v15, 0.0  ;;  %v3589_v13 = vmul.f32 0.2, %v3525_v15  ;;  %v3526_v7 = vadd.f32 %v18856_v6, %v3362_v62 }
 0x3fe   : > { %v3623_v9 = vsel %vm3559_vm14, %v3527_v58, %v3591_v25  ;;  %vm3560_vm0 = vcmp.ge.f32.partialorder %v3528_v17, 0.0  ;;  %v3592_v61 = vmul.f32 0.2, %v3528_v17 }
 0x3ff   : > { %v18862_v46 = vsel %vm3557_vm15, %v3525_v15, %v3589_v13  ;;  %vm3558_vm1 = vcmp.ge.f32.partialorder %v3526_v7, 0.0  ;;  %v3655_v32 = vrot.slane %v3623_v9, 7  ;;  %v3590_v11 = vmul.f32 0.2, %v3526_v7 }
 0x400   : > { %v18864_v37 = vsel %vm3560_vm0, %v3528_v17, %v3592_v61  ;;  %v4227_v40 = vrot.slane %v3623_v9, 1  ;;  %v21913_v52 = vrot.slane %v18862_v46, 7  ;;  %v21911_v28 = vrot.slane %v18862_v46, 1  ;;  %v16709_v61 = vld [vmem:[%s22152_s5 + $0x18] sm:$0xff]  }
 0x401   : > { %v3656_v4 = vrot.slane %v18864_v37, 7  ;;  %v14541_v49 = vpop.f32.mrb[20].mxu1  ;;  %v18869_v56 = vpack.c.bf16 %v18864_v37, %v3623_v9  ;;  %v21912_v43 = vrot.slane %v18864_v37, 1  ;;  %v3622_v36 = vsel %vm3558_vm1, %v3526_v7, %v3590_v11 }
 0x402   : > { %v3531_v39 = vadd.f32 %v14541_v49, %v18856_v6  ;;  %v3375_v34 = vpop.f32.mrb[21].mxu1  ;;  %v3654_v5 = vrot.slane %v3622_v36, 7  ;;  %v18875_v33 = vpack.c.bf16 %v3622_v36, %v18862_v46  ;;  %v4226_v26 = vrot.slane %v3622_v36, 1 }
 0x403   : > { %22154 = vst [vmem:[#allocation25_spill] sm:$0xff] %v18869_v56  ;;  %v3529_v38 = vadd.f32 %v18856_v6, %v3375_v34  ;;  %v14542_v47 = vpop.f32.mrb[22].mxu1  ;;  %v3710_v2 = vsel %vm1045_vm3, %v3655_v32, %v3656_v4 }
 0x404   : > { %22155 = vst [vmem:[#allocation18_spill] sm:$0xff] %v18875_v33  ;;  %vm3563_vm2 = vcmp.ge.f32.partialorder %v3531_v39, 0.0  ;;  %v3595_v29 = vmul.f32 0.2, %v3531_v39  ;;  %v3532_v63 = vadd.f32 %v14542_v47, %v18856_v6  ;;  %v3378_v53 = vpop.f32.mrb[23].mxu1  ;;  %v18888_v57 = vsel %vm1045_vm3, %v21913_v52, %v3654_v5  ;;  %14584 = vmatmul.mubr.bf16.vlgmr.msra.gmra.mrb[16].mxu0 %v18875_v33 }
 0x405   : > { %v4284_v3 = vsel %vm1621_vm4, %v4226_v26, %v4227_v40  ;;  %v4285_v30 = vsel %vm1621_vm4, %v21911_v28, %v4226_v26  ;;  %vm3561_vm5 = vcmp.ge.f32.partialorder %v3529_v38, 0.0  ;;  %v3593_v27 = vmul.f32 0.2, %v3529_v38  ;;  %14587 = vmatprep.mubr.bf16.mxu0 %v18869_v56  ;;  %14616 = vmatpush3.bf16.msra.mxu0 %v16706_v18 }
 0x406   : > { %v18897_v19 = vpack.c.bf16 %v4284_v3, %v4285_v30  ;;  %vm3564_vm6 = vcmp.ge.f32.partialorder %v3532_v63, 0.0  ;;  %v18900_v54 = vsel %vm3563_vm2, %v3531_v39, %v3595_v29  ;;  %v3596_v60 = vmul.f32 0.2, %v3532_v63  ;;  %14617 = vmatprep.subr.bf16.mxu0 %v16707_v50 }
 0x407   : > { %v3530_v35 = vadd.f32 %v18856_v6, %v3378_v53  ;;  %v18906_v14 = vsel %vm3561_vm5, %v3529_v38, %v3593_v27  ;;  %v3711_v8 = vsel %vm1045_vm3, %v3654_v5, %v3655_v32  ;;  %v18914_v18 = vsel %vm1621_vm4, %v4227_v40, %v21912_v43 }
 0x408   : > { %22156 = vst [vmem:[#allocation17_spill] sm:$0xff] %v18897_v19  ;;  %v3657_v44 = vrot.slane %v18906_v14, 7  ;;  %v18917_v58 = vsel %vm3564_vm6, %v3532_v63, %v3596_v60  ;;  %v3659_v15 = vrot.slane %v18900_v54, 7  ;;  %v18930_v32 = vpack.c.bf16 %v3710_v2, %v3711_v8  ;;  %v16710_v2 = vld [vmem:[%s22152_s5 + $0x20] sm:$0xff]  }
 0x409   : > { %vm3562_vm7 = vcmp.ge.f32.partialorder %v3530_v35, 0.0  ;;  %v14545_v24 = vpop.f32.mrb[24].mxu1  ;;  %v3594_v25 = vmul.f32 0.2, %v3530_v35  ;;  %14618 = vmatpush3.bf16.msra.mxu0 %v16707_v50  ;;  %v18925_v9 = vpack.c.bf16 %v18917_v58, %v18900_v54  ;;  %v3660_v34 = vrot.slane %v18917_v58, 7 }
 0x40a   : > { %v3535_v17 = vadd.f32 %v14545_v24, %v18856_v6  ;;  %v3391_v62 = vpop.f32.mrb[25].mxu1  ;;  %14619 = vmatprep.subr.bf16.mxu0 %v16708_v12  ;;  %v3709_v11 = vsel %vm1045_vm3, %v3656_v4, %v3657_v44 }
 0x40b   : > { %v3533_v13 = vadd.f32 %v18856_v6, %v3391_v62  ;;  %v14546_v7 = vpop.f32.mrb[26].mxu1  ;;  %22157 = vst [vmem:[#allocation32_spill] sm:$0xff] %v18925_v9  ;;  %v18934_v40 = vsel %vm3562_vm7, %v3530_v35, %v3594_v25 }
 0x40c   : > { %vm3567_vm8 = vcmp.ge.f32.partialorder %v3535_v17, 0.0  ;;  %v3599_v49 = vmul.f32 0.2, %v3535_v17  ;;  %v3536_v36 = vadd.f32 %v14546_v7, %v18856_v6  ;;  %v3394_v39 = vpop.f32.mrb[27].mxu1  ;;  %v3658_v5 = vrot.slane %v18934_v40, 7 }
 0x40d   : > { %vm3565_vm12 = vcmp.ge.f32.partialorder %v3533_v13, 0.0  ;;  %v3597_v26 = vmul.f32 0.2, %v3533_v13  ;;  %v3534_v50 = vadd.f32 %v18856_v6, %v3394_v39  ;;  %14620 = vmatpush3.bf16.msra.mxu0 %v16708_v12  ;;  %v18948_v53 = vpack.c.bf16 %v18934_v40, %v18906_v14 }
 0x40e   : > { %v18939_v38 = vsel %vm3567_vm8, %v3535_v17, %v3599_v49  ;;  %vm3568_vm14 = vcmp.ge.f32.partialorder %v3536_v36, 0.0  ;;  %v3600_v47 = vmul.f32 0.2, %v3536_v36  ;;  %14621 = vmatprep.subr.bf16.mxu0 %v16709_v61  ;;  %v3706_v7 = vsel %vm1045_vm3, %v3659_v15, %v3660_v34 }
 0x40f   : > { %v18944_v63 = vsel %vm3565_vm12, %v3533_v13, %v3597_v26  ;;  %22158 = vst [vmem:[#allocation36_spill] sm:$0xff] %v18948_v53  ;;  %v3663_v30 = vrot.slane %v18939_v38, 7  ;;  %vm3566_vm15 = vcmp.ge.f32.partialorder %v3534_v50, 0.0  ;;  %v3598_v12 = vmul.f32 0.2, %v3534_v50  ;;  %14588 = vmatmul.mubr.bf16.gmra.mrb[20].mxu0 %v18948_v53  ;;  %v16711_v26 = vld [vmem:[%s22152_s5 + $0x28] sm:$0xff]  }
 0x410   : > { %v18955_v27 = vsel %vm3568_vm14, %v3536_v36, %v3600_v47  ;;  %v3661_v35 = vrot.slane %v18944_v63, 7  ;;  %14591 = vmatprep.mubr.bf16.mxu0 %v18925_v9  ;;  %v3708_v13 = vsel %vm1045_vm3, %v3657_v44, %v3658_v5  ;;  %v3707_v44 = vsel %vm1045_vm3, %v3658_v5, %v3659_v15 }
 0x411   : > { %v14549_v8 = vpop.f32.mrb[28].mxu1  ;;  %v18962_v24 = vpack.c.bf16 %v18955_v27, %v18939_v38  ;;  %14622 = vmatpush3.bf16.msra.mxu0 %v16709_v61  ;;  %v18973_v49 = vsel %vm3566_vm15, %v3534_v50, %v3598_v12  ;;  %v18979_v47 = vpack.c.bf16 %v3708_v13, %v3709_v11  ;;  %v3664_v61 = vrot.slane %v18955_v27, 7 }
 0x412   : > { %v3539_v17 = vadd.f32 %v14549_v8, %v18856_v6  ;;  %v3407_v62 = vpop.f32.mrb[29].mxu1  ;;  %14623 = vmatprep.subr.bf16.mxu0 %v16710_v2  ;;  %v3662_v8 = vrot.slane %v18973_v49, 7  ;;  %v18991_v11 = vpack.c.bf16 %v18973_v49, %v18944_v63  ;;  %v18993_v15 = vpack.c.bf16 %v3706_v7, %v3707_v44 }
 0x413   : > { %22159 = vst [vmem:[#allocation45_spill] sm:$0xff] %v18962_v24  ;;  %v3537_v36 = vadd.f32 %v18856_v6, %v3407_v62  ;;  %v14550_v39 = vpop.f32.mrb[30].mxu1 }
 0x414   : > { %vm3571_vm0 = vcmp.ge.f32.partialorder %v3539_v17, 0.0  ;;  %v3603_v50 = vmul.f32 0.2, %v3539_v17  ;;  %v3410_v12 = vpop.f32.mrb[31].mxu1  ;;  %v3540_v28 = vadd.f32 %v14550_v39, %v18856_v6  ;;  %22160 = vst [vmem:[#allocation48_spill] sm:$0xff] %v18991_v11  ;;  %v3704_v5 = vsel %vm1045_vm3, %v3661_v35, %v3662_v8 }
 0x415   : > { %vm3569_vm1 = vcmp.ge.f32.partialorder %v3537_v36, 0.0  ;;  %v3601_v62 = vmul.f32 0.2, %v3537_v36  ;;  %v3538_v60 = vadd.f32 %v18856_v6, %v3410_v12  ;;  %14624 = vmatpush3.bf16.msra.mxu0 %v16710_v2  ;;  %v3702_v12 = vsel %vm1045_vm3, %v3663_v30, %v3664_v61 }
 0x416   : > { %v18987_v29 = vsel %vm3571_vm0, %v3539_v17, %v3603_v50  ;;  %vm3572_vm2 = vcmp.ge.f32.partialorder %v3540_v28, 0.0  ;;  %14625 = vmatprep.subr.bf16.mxu0 %v16711_v26  ;;  %v16712_v17 = vld [vmem:[%s22152_s5 + $0x30] sm:$0xff]   ;;  %v3604_v7 = vmul.f32 0.2, %v3540_v28 }
 0x417   : > { %v18999_v3 = vsel %vm3569_vm1, %v3537_v36, %v3601_v62  ;;  %vm3570_vm5 = vcmp.ge.f32.partialorder %v3538_v60, 0.0  ;;  %v3602_v44 = vmul.f32 0.2, %v3538_v60  ;;  %14592 = vmatmul.mubr.bf16.gmra.mrb[24].mxu0 %v18991_v11  ;;  %v3705_v36 = vsel %vm1045_vm3, %v3660_v34, %v3661_v35 }
 0x418   : > { %v3703_v62 = vsel %vm1045_vm3, %v3662_v8, %v3663_v30  ;;  %v3665_v2 = vrot.slane %v18999_v3, 7  ;;  %v19018_v13 = vsel %vm3572_vm2, %v3540_v28, %v3604_v7  ;;  %14595 = vmatprep.mubr.bf16.mxu0 %v18962_v24  ;;  %v19022_v43 = vpack.c.bf16 %v3704_v5, %v3705_v36  ;;  %v16713_v28 = vld [vmem:[%s22152_s5 + $0x38] sm:$0xff]  }
 0x419   : > { %v14553_v50 = vpop.f32.mrb[32].mxu1  ;;  %14626 = vmatpush3.bf16.msra.mxu0 %v16711_v26  ;;  %v19027_v4 = vsel %vm3570_vm5, %v3538_v60, %v3602_v44  ;;  %v19045_v7 = vpack.c.bf16 %v19018_v13, %v18987_v29  ;;  %v19047_v52 = vpack.c.bf16 %v3702_v12, %v3703_v62  ;;  %v22163_v39 = vrot.slane %v19018_v13, 7 }
 0x41a   : > { %v3543_v25 = vadd.f32 %v14553_v50, %v18856_v6  ;;  %v3423_v48 = vpop.f32.mrb[33].mxu1  ;;  %14627 = vmatprep.subr.bf16.mxu0 %v16712_v17  ;;  %v3666_v26 = vrot.slane %v19027_v4, 7  ;;  %v19041_v34 = vpack.c.bf16 %v19027_v4, %v18999_v3 }
 0x41b   : > { %v3541_v30 = vadd.f32 %v18856_v6, %v3423_v48  ;;  %v14554_v8 = vpop.f32.mrb[34].mxu1  ;;  %22162 = vst [vmem:[#allocation50_spill] sm:$0xff] %v19045_v7 }
 0x41c   : > { %vm3575_vm6 = vcmp.ge.f32.partialorder %v3543_v25, 0.0  ;;  %v3607_v5 = vmul.f32 0.2, %v3543_v25  ;;  %v3426_v50 = vpop.f32.mrb[35].mxu1  ;;  %v3544_v60 = vadd.f32 %v14554_v8, %v18856_v6  ;;  %22161 = vst [vmem:[#allocation49_spill] sm:$0xff] %v19041_v34 }
 0x41d   : > { %vm3573_vm7 = vcmp.ge.f32.partialorder %v3541_v30, 0.0  ;;  %v3605_v36 = vmul.f32 0.2, %v3541_v30  ;;  %v3542_v44 = vadd.f32 %v18856_v6, %v3426_v50  ;;  %14628 = vmatpush3.bf16.msra.mxu0 %v16712_v17 }
 0x41e   : > { %v19037_v48 = vsel %vm3575_vm6, %v3543_v25, %v3607_v5  ;;  %vm3576_vm8 = vcmp.ge.f32.partialorder %v3544_v60, 0.0  ;;  %14629 = vmatprep.subr.bf16.mxu0 %v16713_v28  ;;  %v19056_v25 = vld [vmem:[%s22152_s5 + $0x80] sm:$0xff]   ;;  %v3608_v17 = vmul.f32 0.2, %v3544_v60  ;;  %v22164_v5 = vrot.slane %v18987_v29, 7 }
 0x41f   : > { %v19051_v8 = vsel %vm3573_vm7, %v3541_v30, %v3605_v36  ;;  %vm3574_vm12 = vcmp.ge.f32.partialorder %v3542_v44, 0.0  ;;  %v3606_v12 = vmul.f32 0.2, %v3542_v44  ;;  %14596 = vmatmul.mubr.bf16.gmra.mrb[28].mxu0 %v19041_v34  ;;  %v3700_v30 = vsel %vm1045_vm3, %v3665_v2, %v3666_v26 }
 0x420   : > { %v3669_v50 = vrot.slane %v19051_v8, 7  ;;  %v3701_v36 = vsel %vm1045_vm3, %v3664_v61, %v3665_v2  ;;  %v3698_v35 = vsel %vm1045_vm3, %v22164_v5, %v22163_v39  ;;  %v19074_v21 = vsel %vm3576_vm8, %v3544_v60, %v3608_v17  ;;  %14599 = vmatprep.mubr.bf16.mxu0 %v19045_v7 }
 0x421   : > { %v14557_v62 = vpop.f32.mrb[36].mxu1  ;;  %14630 = vmatpush3.bf16.msra.mxu0 %v16713_v28  ;;  %v19078_v41 = vpack.c.bf16 %v3700_v30, %v3701_v36  ;;  %v19083_v22 = vsel %vm3574_vm12, %v3542_v44, %v3606_v12  ;;  %v19099_v12 = vpack.c.bf16 %v19074_v21, %v19037_v48  ;;  %v22167_v17 = vrot.slane %v18987_v29, 7 }
 0x422   : > { %v3547_v51 = vadd.f32 %v14557_v62, %v18856_v6  ;;  %v3439_v42 = vpop.f32.mrb[37].mxu1  ;;  %14663 = vmatprep.subr.bf16.mxu0 %v19056_v25  ;;  %v3670_v60 = vrot.slane %v19083_v22, 7 }
 0x423   : > { %v3545_v39 = vadd.f32 %v18856_v6, %v3439_v42  ;;  %v14558_v5 = vpop.f32.mrb[38].mxu1  ;;  %v19095_v42 = vpack.c.bf16 %v19083_v22, %v19051_v8  ;;  %22166 = vst [vmem:[#allocation53_spill] sm:$0xff] %v19099_v12  ;;  %v3699_v10 = vsel %vm1045_vm3, %v3666_v26, %v22167_v17  ;;  %v22168_v17 = vrot.slane %v19018_v13, 7 }
 0x424   : > { %vm3579_vm14 = vcmp.ge.f32.partialorder %v3547_v51, 0.0  ;;  %v3611_v28 = vmul.f32 0.2, %v3547_v51  ;;  %v3442_v62 = vpop.f32.mrb[39].mxu1  ;;  %v3548_v36 = vadd.f32 %v14558_v5, %v18856_v6  ;;  %v19112_v45 = vpack.c.bf16 %v3698_v35, %v3699_v10 }
 0x425   : > { %vm3577_vm15 = vcmp.ge.f32.partialorder %v3545_v39, 0.0  ;;  %v3609_v30 = vmul.f32 0.2, %v3545_v39  ;;  %v3546_v2 = vadd.f32 %v18856_v6, %v3442_v62  ;;  %22165 = vst [vmem:[#allocation51_spill] sm:$0xff] %v19095_v42  ;;  %v3696_v26 = vsel %vm1045_vm3, %v3669_v50, %v3670_v60 }
 0x426   : > { %v19091_v44 = vsel %vm3579_vm14, %v3547_v51, %v3611_v28  ;;  %vm3580_vm0 = vcmp.ge.f32.partialorder %v3548_v36, 0.0  ;;  %v3612_v59 = vmul.f32 0.2, %v3548_v36  ;;  %v22169_v10 = vrot.slane %v19074_v21, 7 }
 0x427   : > { %v19107_v62 = vsel %vm3577_vm15, %v3545_v39, %v3609_v30  ;;  %vm3578_vm1 = vcmp.ge.f32.partialorder %v3546_v2, 0.0  ;;  %v3610_v1 = vmul.f32 0.2, %v3546_v2  ;;  %14600 = vmatmul.mubr.bf16.gmra.mrb[32].mxu0 %v19095_v42  ;;  %v3697_v39 = vsel %vm1045_vm3, %v22168_v17, %v3669_v50 }
 0x428   : > { %v3673_v51 = vrot.slane %v19107_v62, 7  ;;  %v19120_v30 = vsel %vm3580_vm0, %v3548_v36, %v3612_v59  ;;  %14603 = vmatprep.mubr.bf16.mxu0 %v19099_v12  ;;  %v19124_v61 = vpack.c.bf16 %v3696_v26, %v3697_v39  ;;  %v22170_v35 = vrot.slane %v19037_v48, 7 }
 0x429   : > { %v14561_v31 = vpop.f32.mrb[40].mxu1  ;;  %v19134_v59 = vsel %vm3578_vm1, %v3546_v2, %v3610_v1  ;;  %v19149_v2 = vpack.c.bf16 %v19120_v30, %v19091_v44 }
 0x42a   : > { %v3551_v5 = vadd.f32 %v14561_v31, %v18856_v6  ;;  %v3455_v28 = vpop.f32.mrb[41].mxu1  ;;  %v3694_v20 = vsel %vm1045_vm3, %v22170_v35, %v22169_v10  ;;  %v3674_v31 = vrot.slane %v19134_v59, 7  ;;  %v19145_v1 = vpack.c.bf16 %v19134_v59, %v19107_v62 }
 0x42b   : > { %v3549_v36 = vadd.f32 %v18856_v6, %v3455_v28  ;;  %v14562_v17 = vpop.f32.mrb[42].mxu1  ;;  %22172 = vst [vmem:[#allocation55_spill] sm:$0xff] %v19149_v2  ;;  %v22173_v28 = vrot.slane %v19037_v48, 7 }
 0x42c   : > { %vm3583_vm2 = vcmp.ge.f32.partialorder %v3551_v5, 0.0  ;;  %v3615_v39 = vmul.f32 0.2, %v3551_v5  ;;  %v3458_v12 = vpop.f32.mrb[43].mxu1  ;;  %v3552_v10 = vadd.f32 %v14562_v17, %v18856_v6  ;;  %22171 = vst [vmem:[#allocation54_spill] sm:$0xff] %v19145_v1 }
 0x42d   : > { %vm3581_vm5 = vcmp.ge.f32.partialorder %v3549_v36, 0.0  ;;  %v3613_v7 = vmul.f32 0.2, %v3549_v36  ;;  %v3550_v35 = vadd.f32 %v18856_v6, %v3458_v12  ;;  %v3695_v50 = vsel %vm1045_vm3, %v3670_v60, %v22173_v28 }
 0x42e   : > { %v19141_v42 = vsel %vm3583_vm2, %v3551_v5, %v3615_v39  ;;  %vm3584_vm6 = vcmp.ge.f32.partialorder %v3552_v10, 0.0  ;;  %v3616_v34 = vmul.f32 0.2, %v3552_v10  ;;  %v19162_v9 = vpack.c.bf16 %v3694_v20, %v3695_v50 }
 0x42f   : > { %v3679_v26 = vrot.slane %v19141_v42, 7  ;;  %v19157_v12 = vsel %vm3581_vm5, %v3549_v36, %v3613_v7  ;;  %vm3582_vm7 = vcmp.ge.f32.partialorder %v3550_v35, 0.0  ;;  %v3614_v24 = vmul.f32 0.2, %v3550_v35  ;;  %14604 = vmatmul.mubr.bf16.gmra.mrb[36].mxu0 %v19145_v1 }
 0x430   : > { %v3677_v5 = vrot.slane %v19157_v12, 7  ;;  %v3692_v60 = vsel %vm1045_vm3, %v3673_v51, %v3674_v31  ;;  %v22174_v28 = vrot.slane %v19074_v21, 7  ;;  %v19170_v36 = vsel %vm3584_vm6, %v3552_v10, %v3616_v34  ;;  %14607 = vmatprep.mubr.bf16.mxu0 %v19149_v2 }
 0x431   : > { %v14565_v11 = vpop.f32.mrb[44].mxu1  ;;  %v22176_v20 = vrot.slane %v19120_v30, 7  ;;  %v22177_v50 = vrot.slane %v19091_v44, 7  ;;  %v3680_v56 = vrot.slane %v19170_v36, 7  ;;  %v19184_v34 = vsel %vm3582_vm7, %v3550_v35, %v3614_v24 }
 0x432   : > { %v3693_v7 = vsel %vm1045_vm3, %v22174_v28, %v3673_v51  ;;  %v3555_v17 = vadd.f32 %v14565_v11, %v18856_v6  ;;  %v3471_v39 = vpop.f32.mrb[45].mxu1  ;;  %v3678_v11 = vrot.slane %v19184_v34, 7  ;;  %v19195_v24 = vpack.c.bf16 %v19184_v34, %v19157_v12 }
 0x433   : > { %v19174_v53 = vpack.c.bf16 %v3692_v60, %v3693_v7  ;;  %v3690_v1 = vsel %vm1045_vm3, %v22177_v50, %v22176_v20  ;;  %v3553_v10 = vadd.f32 %v18856_v6, %v3471_v39  ;;  %v14566_v28 = vpop.f32.mrb[46].mxu1  ;;  %v19199_v35 = vpack.c.bf16 %v19170_v36, %v19141_v42 }
 0x434   : > { %vm3587_vm8 = vcmp.ge.f32.partialorder %v3555_v17, 0.0  ;;  %v3619_v7 = vmul.f32 0.2, %v3555_v17  ;;  %v3474_v2 = vpop.f32.mrb[47].mxu1  ;;  %v3556_v20 = vadd.f32 %v14566_v28, %v18856_v6  ;;  %22178 = vst [vmem:[#allocation57_spill] sm:$0xff] %v19195_v24  ;;  %v22180_v39 = vrot.slane %v19091_v44, 7 }
 0x435   : > { %22175 = vst [vmem:[#allocation56_spill] sm:$0xff] %v19174_v53  ;;  %vm3585_vm12 = vcmp.ge.f32.partialorder %v3553_v10, 0.0  ;;  %v3617_v33 = vmul.f32 0.2, %v3553_v10  ;;  %v3554_v50 = vadd.f32 %v18856_v6, %v3474_v2  ;;  %22179 = vst [vmem:[#allocation58_spill] sm:$0xff] %v19199_v35  ;;  %v3686_v60 = vsel %vm1045_vm3, %v3679_v26, %v3680_v56 }
 0x436   : > { %v19191_v55 = vsel %vm3587_vm8, %v3555_v17, %v3619_v7  ;;  %v3691_v51 = vsel %vm1045_vm3, %v3674_v31, %v22180_v39  ;;  %vm3588_vm14 = vcmp.ge.f32.partialorder %v3556_v20, 0.0  ;;  %v3620_v7 = vmul.f32 0.2, %v3556_v20 }
 0x437   : > { %v19207_v6 = vsel %vm3585_vm12, %v3553_v10, %v3617_v33  ;;  %vm3586_vm15 = vcmp.ge.f32.partialorder %v3554_v50, 0.0  ;;  %v3618_v19 = vmul.f32 0.2, %v3554_v50  ;;  %14608 = vmatmul.mubr.bf16.gmra.mrb[40].mxu0 %v19195_v24  ;;  %v19212_v53 = vpack.c.bf16 %v3690_v1, %v3691_v51  ;;  %vm20262_vm12 = vmpackc.low %vm1076_vm9, %vm17157_vm10 }
 0x438   : > { %v3681_v2 = vrot.slane %v19207_v6, 7  ;;  %v3688_v31 = vsel %vm1045_vm3, %v3677_v5, %v3678_v11  ;;  %v22182_v39 = vrot.slane %v19120_v30, 7  ;;  %v19220_v10 = vsel %vm3588_vm14, %v3556_v20, %v3620_v7  ;;  %14611 = vmatprep.mubr.bf16.mxu0 %v19199_v35  ;;  %vm20311_vm14 = vmpackc.low %vm1076_vm9, %vm1076_vm9 }
 0x439   : > { %22181 = vst [vmem:[#allocation60_spill] sm:$0xff] %v19212_v53  ;;  %v3687_v1 = vsel %vm1045_vm3, %v3678_v11, %v3679_v26  ;;  %v3683_v51 = vrot.slane %v19220_v10, 7  ;;  %v5112_v17 = vrot.slane %v19220_v10, 1  ;;  %v3650_v24 = vsel %vm3586_vm15, %v3554_v50, %v3618_v19 }
 0x43a   : > { %v3689_v33 = vsel %vm1045_vm3, %v22182_v39, %v3677_v5  ;;  %v19231_v53 = vpack.c.bf16 %v3686_v60, %v3687_v1  ;;  %v3682_v5 = vrot.slane %v3650_v24, 7  ;;  %v4254_v20 = vrot.slane %v3650_v24, 1 }
 0x43b   : > { %v19223_v28 = vpack.c.bf16 %v3688_v31, %v3689_v33  ;;  %v19234_v7 = vpack.c.bf16 %v3650_v24, %v19207_v6  ;;  %v3685_v31 = vsel %vm1045_vm3, %v3680_v56, %v3681_v2  ;;  %v22184_v39 = vrot.slane %v18862_v46, 7 }
 0x43c   : > { %22183 = vst [vmem:[#allocation61_spill] sm:$0xff] %v19231_v53  ;;  %v22185_v11 = vrot.slane %v18906_v14, 1  ;;  %v22186_v33 = vrot.slane %v18864_v37, 1  ;;  %v22187_v60 = vrot.slane %v18900_v54, 1  ;;  %v22188_v50 = vrot.slane %v18934_v40, 1 }
 0x43d   : > { %v3713_v26 = vsel %vm1045_vm3, %v3683_v51, %v22184_v39  ;;  %v3684_v37 = vsel %vm1045_vm3, %v3681_v2, %v3682_v5  ;;  %v22191_v40 = vrot.slane %v18944_v63, 1  ;;  %v22192_v14 = vrot.slane %v18917_v58, 1 }
 0x43e   : > { %v4282_v19 = vsel %vm1621_vm4, %v22186_v33, %v22185_v11  ;;  %v4280_v24 = vsel %vm1621_vm4, %v22188_v50, %v22187_v60  ;;  %v22189_v56 = vmov %v22188_v50  ;;  %v22190_v1 = vmov %v22185_v11 }
 0x43f   : > { %v4281_v39 = vsel %vm1621_vm4, %v22190_v1, %v22189_v56  ;;  %v19261_v35 = vpack.c.bf16 %v18888_v57, %v3713_v26  ;;  %v19266_v11 = vpack.c.bf16 %v4282_v19, %v18914_v18  ;;  %v19270_v53 = vpack.c.bf16 %v3684_v37, %v3685_v31  ;;  %14612 = vmatmul.mubr.bf16.gmra.mrb[44].mxu0 %v19234_v7 }
 0x440   : > { %v19268_v33 = vpack.c.bf16 %v4280_v24, %v4281_v39  ;;  %v4278_v60 = vsel %vm1621_vm4, %v22192_v14, %v22191_v40  ;;  %v22193_v57 = vmov %v22192_v14  ;;  %v22194_v26 = vrot.slane %v18900_v54, 1  ;;  %14631 = vmatprep.mubr.bf16.mxu0 %v22075_v23 }
 0x441   : > { %v22195_v18 = vrot.slane %v18939_v38, 1  ;;  %v22196_v19 = vrot.slane %v18973_v49, 1  ;;  %v22198_v56 = vmov %v22191_v40  ;;  %v22199_v54 = vrot.slane %v18999_v3, 1 }
 0x442   : > { %v4279_v2 = vsel %vm1621_vm4, %v22194_v26, %v22193_v57  ;;  %v22200_v1 = vrot.slane %v18955_v27, 1  ;;  %v22204_v57 = vrot.slane %v19027_v4, 1  ;;  %vm6926_vm9 = vcmp.le.s32.totalorder %v17425_v0, 6  ;;  %v16877_v0 = vld [vmem:[%s21823_s12 + $0x38] sm:$0xff]  }
 0x443   : > { %v4276_v31 = vsel %vm1621_vm4, %v22196_v19, %v22195_v18  ;;  %v19290_v50 = vpack.c.bf16 %v4278_v60, %v4279_v2  ;;  %v22197_v24 = vmov %v22196_v19  ;;  %v22202_v40 = vmov %v22195_v18  ;;  %vm20350_vm15 = vmpackc.low %vm6926_vm9, %vm17157_vm10 }
 0x444   : > { %v4277_v58 = vsel %vm1621_vm4, %v22198_v56, %v22197_v24  ;;  %v4274_v39 = vsel %vm1621_vm4, %v22200_v1, %v22199_v54  ;;  %v22201_v37 = vmov %v22200_v1  ;;  %v22203_v60 = vrot.slane %v18987_v29, 1 }
 0x445   : > { %v4275_v14 = vsel %vm1621_vm4, %v22202_v40, %v22201_v37  ;;  %v19311_v63 = vpack.c.bf16 %v4276_v31, %v4277_v58  ;;  %v22205_v27 = vmov %v22204_v57  ;;  %v22206_v38 = vmov %v22199_v54 }
 0x446   : > { %v19313_v49 = vpack.c.bf16 %v4274_v39, %v4275_v14  ;;  %v4272_v26 = vsel %vm1621_vm4, %v22204_v57, %v22203_v60  ;;  %v4273_v2 = vsel %vm1621_vm4, %v22206_v38, %v22205_v27  ;;  %v22207_v19 = vrot.slane %v19051_v8, 1 }
 0x447   : > { %v19328_v18 = vpack.c.bf16 %v4272_v26, %v4273_v2  ;;  %v22208_v31 = vrot.slane %v19018_v13, 1  ;;  %v22210_v4 = vmov %v22203_v60  ;;  %v22211_v58 = vrot.slane %v19037_v48, 1  ;;  %14632 = vmatmul.mubr.msk.bf16.vlgmr.msra.gmra.mrb[16].mxu0 %vm18138_vm11, %v19261_v35 }
 0x448   : > { %v22212_v54 = vrot.slane %v19083_v22, 1  ;;  %v22214_v40 = vmov %v22207_v19  ;;  %v22215_v29 = vrot.slane %v19107_v62, 1  ;;  %v22216_v14 = vrot.slane %v19074_v21, 1  ;;  %14635 = vmatprep.mubr.msk.bf16.mxu0 %vm18138_vm11, %v18930_v32  ;;  %14664 = vmatpush3.bf16.msra.mxu0 %v19056_v25  ;;  %v16718_v25 = vld [vmem:[%s22152_s5 + $0xa0] sm:$0xff]  }
 0x449   : > { %v4270_v24 = vsel %vm1621_vm4, %v22208_v31, %v22207_v19  ;;  %v22209_v56 = vmov %v22208_v31  ;;  %v22218_v26 = vmov %v22211_v58  ;;  %v22219_v38 = vrot.slane %v19091_v44, 1 }
 0x44a   : > { %v4271_v3 = vsel %vm1621_vm4, %v22210_v4, %v22209_v56  ;;  %v4268_v1 = vsel %vm1621_vm4, %v22212_v54, %v22211_v58  ;;  %v22213_v37 = vmov %v22212_v54  ;;  %v4266_v60 = vsel %vm1621_vm4, %v22216_v14, %v22215_v29 }
 0x44b   : > { %v19348_v39 = vpack.c.bf16 %v4270_v24, %v4271_v3  ;;  %v4269_v13 = vsel %vm1621_vm4, %v22214_v40, %v22213_v37  ;;  %v22217_v57 = vmov %v22216_v14  ;;  %v22220_v2 = vrot.slane %v19134_v59, 1 }
 0x44c   : > { %v4267_v27 = vsel %vm1621_vm4, %v22218_v26, %v22217_v57  ;;  %v19368_v22 = vpack.c.bf16 %v4268_v1, %v4269_v13  ;;  %v22222_v21 = vmov %v22215_v29  ;;  %v22223_v56 = vrot.slane %v19157_v12, 1  ;;  %v16715_v12 = vld [vmem:[%s22152_s5 + $0x88] sm:$0xff]  }
 0x44d   : > { %v19370_v8 = vpack.c.bf16 %v4266_v60, %v4267_v27  ;;  %v4264_v19 = vsel %vm1621_vm4, %v22220_v2, %v22219_v38  ;;  %v22221_v31 = vmov %v22220_v2  ;;  %v22224_v4 = vrot.slane %v19120_v30, 1  ;;  %14665 = vmatprep.subr.bf16.mxu0 %v16715_v12 }
 0x44e   : > { %v4265_v48 = vsel %vm1621_vm4, %v22222_v21, %v22221_v31  ;;  %v22226_v54 = vmov %v22219_v38  ;;  %v22227_v62 = vrot.slane %v19141_v42, 1  ;;  %v22228_v1 = vrot.slane %v19184_v34, 1  ;;  %14666 = vmatpush3.bf16.msra.mxu0 %v16715_v12  ;;  %v16729_v12 = vld [vmem:[%s22152_s5 + $0xf8] sm:$0xff]  }
 0x44f   : > { %v19384_v24 = vpack.c.bf16 %v4264_v19, %v4265_v48  ;;  %v4262_v3 = vsel %vm1621_vm4, %v22224_v4, %v22223_v56  ;;  %v22225_v58 = vmov %v22224_v4  ;;  %v22230_v29 = vmov %v22223_v56  ;;  %14636 = vmatmul.mubr.msk.bf16.gmra.mrb[20].mxu0 %vm18138_vm11, %v18979_v47 }
 0x450   : > { %v4263_v59 = vsel %vm1621_vm4, %v22226_v54, %v22225_v58  ;;  %v4260_v37 = vsel %vm1621_vm4, %v22228_v1, %v22227_v62  ;;  %v22229_v13 = vmov %v22228_v1  ;;  %v22231_v44 = vrot.slane %v19207_v6, 1  ;;  %14639 = vmatprep.mubr.msk.bf16.mxu0 %vm18138_vm11, %v18993_v15  ;;  %v16720_v54 = vld [vmem:[%s22152_s5 + $0xb0] sm:$0xff]  }
 0x451   : > { %v19404_v40 = vpack.c.bf16 %v4262_v3, %v4263_v59  ;;  %v4261_v30 = vsel %vm1621_vm4, %v22230_v29, %v22229_v13  ;;  %v22232_v14 = vrot.slane %v19170_v36, 1  ;;  %v22234_v26 = vmov %v22227_v62  ;;  %v16721_v59 = vld [vmem:[%s22152_s5 + $0xb8] sm:$0xff]   ;;  %v16722_v62 = vld [vmem:[%s22152_s5 + $0xc0] sm:$0xff]   ;;  %v22241_v1 = vld [vmem:[#allocation56_spill] sm:$0xff] }
 0x452   : > { %v19427_v34 = vpack.c.bf16 %v4260_v37, %v4261_v30  ;;  %v22235_v2 = vrot.slane %v19191_v55, 1  ;;  %v22236_v36 = vmov %v22231_v44  ;;  %v22237_v21 = vrot.slane %v19191_v55, 7  ;;  %v22242_v37 = vld [vmem:[#allocation60_spill] sm:$0xff]  ;;  %v22243_v13 = vld [vmem:[#allocation61_spill] sm:$0xff] }
 0x453   : > { %v4258_v60 = vsel %vm1621_vm4, %v22232_v14, %v22231_v44  ;;  %v22233_v57 = vmov %v22232_v14  ;;  %v4257_v42 = vsel %vm1621_vm4, %v22236_v36, %v4254_v20  ;;  %v19451_v3 = vpack.c.bf16 %v19220_v10, %v19191_v55  ;;  %v16716_v55 = vld [vmem:[%s22152_s5 + $0x90] sm:$0xff]   ;;  %v16723_v29 = vld [vmem:[%s22152_s5 + $0xc8] sm:$0xff]  }
 0x454   : > { %v4259_v27 = vsel %vm1621_vm4, %v22234_v26, %v22233_v57  ;;  %v4256_v19 = vsel %vm1621_vm4, %v4254_v20, %v22235_v2  ;;  %v4590_v48 = vsel %vm1045_vm3, %v22237_v21, %v3683_v51  ;;  %v22238_v56 = vmov %v22237_v21  ;;  %14667 = vmatprep.subr.bf16.mxu0 %v16716_v55  ;;  %v22244_v30 = vld [vmem:[#allocation17_spill] sm:$0xff]  ;;  %v16726_v57 = vld [vmem:[%s22152_s5 + $0xe0] sm:$0xff]   ;;  %v16727_v26 = vld [vmem:[%s22152_s5 + $0xe8] sm:$0xff]  }
 0x455   : > { %v19429_v38 = vpack.c.bf16 %v4258_v60, %v4259_v27  ;;  %v19439_v31 = vpack.c.bf16 %v4256_v19, %v4257_v42  ;;  %v4591_v4 = vsel %vm1045_vm3, %v3682_v5, %v22238_v56  ;;  %v22239_v20 = vmov %v22235_v2  ;;  %14668 = vmatpush3.bf16.msra.mxu0 %v16716_v55  ;;  %v16724_v14 = vld [vmem:[%s22152_s5 + $0xd0] sm:$0xff]   ;;  %v16725_v60 = vld [vmem:[%s22152_s5 + $0xd8] sm:$0xff]   ;;  %v16730_v2 = vld [vmem:[%s22152_s5 + $0x100] sm:$0xff]  }
 0x456   : > { %v19456_v6 = vpack.c.bf16 %v4590_v48, %v4591_v4  ;;  %v5113_v51 = vsel %vm1621_vm4, %v22239_v20, %v5112_v17  ;;  %v22240_v58 = vrot.slane %v18862_v46, 1  ;;  %v16717_v46 = vld [vmem:[%s22152_s5 + $0x98] sm:$0xff]   ;;  %v16728_v27 = vld [vmem:[%s22152_s5 + $0xf0] sm:$0xff]   ;;  %v16731_v19 = vld [vmem:[%s22152_s5 + $0x108] sm:$0xff]  }
 0x457   : > { %14669 = vmatprep.subr.bf16.mxu0 %v16717_v46  ;;  %14640 = vmatmul.mubr.msk.bf16.gmra.mrb[24].mxu0 %vm18138_vm11, %v19022_v43  ;;  %v16732_v36 = vld [vmem:[%s22152_s5 + $0x110] sm:$0xff]   ;;  %v16734_v42 = vld [vmem:[%s22152_s5 + $0x120] sm:$0xff]   ;;  %v16735_v21 = vld [vmem:[%s22152_s5 + $0x128] sm:$0xff]  }
 0x458   : > { %v5114_v5 = vsel %vm1621_vm4, %v5112_v17, %v22240_v58  ;;  %v16719_v17 = vld [vmem:[%s22152_s5 + $0xa8] sm:$0xff]   ;;  %14643 = vmatprep.mubr.msk.bf16.mxu0 %vm18138_vm11, %v19047_v52  ;;  %v16736_v48 = vld [vmem:[%s22152_s5 + $0x130] sm:$0xff]   ;;  %v16737_v56 = vld [vmem:[%s22152_s5 + $0x138] sm:$0xff]  }
 0x459   : > { %v19470_v10 = vpack.c.bf16 %v5114_v5, %v5113_v51  ;;  %14670 = vmatpush3.bf16.msra.mxu0 %v16717_v46  ;;  %v16738_v4 = vld [vmem:[%s22152_s5 + $0x140] sm:$0xff]   ;;  %v16739_v51 = vld [vmem:[%s22152_s5 + $0x148] sm:$0xff]   ;;  %v22247_v58 = vld [vmem:[#allocation25_spill] sm:$0xff] }
 0x45a   : > { %14671 = vmatprep.subr.bf16.mxu0 %v16718_v25  ;;  %v22246_v20 = vld [vmem:[#allocation18_spill] sm:$0xff]  ;;  %v22248_v5 = vld [vmem:[#allocation36_spill] sm:$0xff]  ;;  %v22269_v44 = vld [vmem:[#allocation35_spill] sm:$0xff] }
 0x45b   : > { %v16740_v55 = vld [vmem:[%s22152_s5 + $0x150] sm:$0xff]   ;;  %v16741_v46 = vld [vmem:[%s22152_s5 + $0x158] sm:$0xff]  }
 0x45d   : > { %14672 = vmatpush3.bf16.msra.mxu0 %v16718_v25  ;;  %v22249_v25 = vld [vmem:[#allocation32_spill] sm:$0xff] }
 0x45e   : > { %14673 = vmatprep.subr.bf16.mxu0 %v16719_v17 }
 0x45f   : > { %14644 = vmatmul.mubr.msk.bf16.gmra.mrb[28].mxu0 %vm18138_vm11, %v19078_v41 }
 0x460   : > { %14647 = vmatprep.mubr.msk.bf16.mxu0 %vm18138_vm11, %v19112_v45 }
 0x461   : > { %14674 = vmatpush3.bf16.msra.mxu0 %v16719_v17  ;;  %v22250_v17 = vld [vmem:[#allocation48_spill] sm:$0xff] }
 0x462   : > { %14675 = vmatprep.subr.bf16.mxu0 %v16720_v54 }
 0x465   : > { %14676 = vmatpush3.bf16.msra.mxu0 %v16720_v54  ;;  %v16742_v54 = vld [vmem:[%s22152_s5 + $0x160] sm:$0xff]  }
 0x466   : > { %14677 = vmatprep.subr.bf16.mxu0 %v16721_v59 }
 0x467   : > { %14648 = vmatmul.mubr.msk.bf16.gmra.mrb[32].mxu0 %vm18138_vm11, %v19124_v61 }
 0x468   : > { %14651 = vmatprep.mubr.msk.bf16.mxu0 %vm18138_vm11, %v19162_v9 }
 0x469   : > { %14678 = vmatpush3.bf16.msra.mxu0 %v16721_v59  ;;  %v16743_v59 = vld [vmem:[%s22152_s5 + $0x168] sm:$0xff]  }
 0x46a   : > { %14711 = vmatprep.subr.bf16.mxu0 %v16722_v62 }
 0x46f   : > { %14652 = vmatmul.mubr.msk.bf16.gmra.mrb[36].mxu0 %vm18138_vm11, %v22241_v1 }
 0x470   : > { %14655 = vmatprep.mubr.msk.bf16.mxu0 %vm18138_vm11, %v22242_v37 }
 0x477   : > { %14656 = vmatmul.mubr.msk.bf16.gmra.mrb[40].mxu0 %vm18138_vm11, %v19223_v28 }
 0x478   : > { %14659 = vmatprep.mubr.msk.bf16.mxu0 %vm18138_vm11, %v22243_v13 }
 0x47f   : > { %14660 = vmatmul.mubr.msk.bf16.gmra.mrb[44].mxu0 %vm18138_vm11, %v19270_v53 }
 0x480   : > { %14679 = vmatprep.mubr.bf16.mxu0 %v22075_v23 }
 0x487   : > { %14680 = vmatmul.mubr.msk.bf16.vlgmr.msra.gmra.mrb[16].mxu0 %vm18416_vm13, %v22244_v30 }
 0x488   : > { %14683 = vmatprep.mubr.msk.bf16.mxu0 %vm18416_vm13, %v19266_v11  ;;  %14712 = vmatpush3.bf16.msra.mxu0 %v16722_v62  ;;  %v22251_v62 = vld [vmem:[#allocation45_spill] sm:$0xff] }
 0x489   : > { %14713 = vmatprep.subr.bf16.mxu0 %v16723_v29 }
 0x48c   : > { %14714 = vmatpush3.bf16.msra.mxu0 %v16723_v29  ;;  %v22252_v29 = vld [vmem:[#allocation49_spill] sm:$0xff] }
 0x48d   : > { %14715 = vmatprep.subr.bf16.mxu0 %v16724_v14 }
 0x48f   : > { %14684 = vmatmul.mubr.msk.bf16.gmra.mrb[20].mxu0 %vm18416_vm13, %v19268_v33 }
 0x490   : > { %14687 = vmatprep.mubr.msk.bf16.mxu0 %vm18416_vm13, %v19290_v50  ;;  %14716 = vmatpush3.bf16.msra.mxu0 %v16724_v14  ;;  %v16744_v14 = vld [vmem:[%s22152_s5 + $0x170] sm:$0xff]  }
 0x491   : > { %14717 = vmatprep.subr.bf16.mxu0 %v16725_v60 }
 0x494   : > { %14718 = vmatpush3.bf16.msra.mxu0 %v16725_v60  ;;  %v16745_v60 = vld [vmem:[%s22152_s5 + $0x178] sm:$0xff]  }
 0x495   : > { %14719 = vmatprep.subr.bf16.mxu0 %v16726_v57 }
 0x497   : > { %14688 = vmatmul.mubr.msk.bf16.gmra.mrb[24].mxu0 %vm18416_vm13, %v19311_v63 }
 0x498   : > { %14691 = vmatprep.mubr.msk.bf16.mxu0 %vm18416_vm13, %v19313_v49  ;;  %14720 = vmatpush3.bf16.msra.mxu0 %v16726_v57  ;;  %v22253_v57 = vld [vmem:[#allocation50_spill] sm:$0xff] }
 0x499   : > { %14721 = vmatprep.subr.bf16.mxu0 %v16727_v26 }
 0x49c   : > { %14722 = vmatpush3.bf16.msra.mxu0 %v16727_v26  ;;  %v22254_v26 = vld [vmem:[#allocation51_spill] sm:$0xff] }
 0x49d   : > { %14723 = vmatprep.subr.bf16.mxu0 %v16728_v27 }
 0x49f   : > { %14692 = vmatmul.mubr.msk.bf16.gmra.mrb[28].mxu0 %vm18416_vm13, %v19328_v18 }
 0x4a0   : > { %14695 = vmatprep.mubr.msk.bf16.mxu0 %vm18416_vm13, %v19348_v39  ;;  %14724 = vmatpush3.bf16.msra.mxu0 %v16728_v27  ;;  %v16746_v27 = vld [vmem:[%s22152_s5 + $0x180] sm:$0xff]  }
 0x4a1   : > { %14725 = vmatprep.subr.bf16.mxu0 %v16729_v12 }
 0x4a4   : > { %14726 = vmatpush3.bf16.msra.mxu0 %v16729_v12  ;;  %v22255_v12 = vld [vmem:[#allocation53_spill] sm:$0xff] }
 0x4a5   : > { %14759 = vmatprep.subr.bf16.mxu0 %v16730_v2 }
 0x4a7   : > { %14696 = vmatmul.mubr.msk.bf16.gmra.mrb[32].mxu0 %vm18416_vm13, %v19368_v22 }
 0x4a8   : > { %14699 = vmatprep.mubr.msk.bf16.mxu0 %vm18416_vm13, %v19370_v8 }
 0x4af   : > { %14700 = vmatmul.mubr.msk.bf16.gmra.mrb[36].mxu0 %vm18416_vm13, %v19384_v24 }
 0x4b0   : > { %14703 = vmatprep.mubr.msk.bf16.mxu0 %vm18416_vm13, %v19404_v40 }
 0x4b7   : > { %14704 = vmatmul.mubr.msk.bf16.gmra.mrb[40].mxu0 %vm18416_vm13, %v19427_v34 }
 0x4b8   : > { %14707 = vmatprep.mubr.msk.bf16.mxu0 %vm18416_vm13, %v19429_v38 }
 0x4bf   : > { %14708 = vmatmul.mubr.msk.bf16.gmra.mrb[44].mxu0 %vm18416_vm13, %v19439_v31 }
 0x4c0   : > { %14727 = vmatprep.mubr.msk.bf16.mxu0 %vm18138_vm11, %v19261_v35  ;;  %v16733_v35 = vld [vmem:[%s22152_s5 + $0x118] sm:$0xff]  }
 0x4c7   : > { %14728 = vmatmul.mubr.msk.bf16.vlgmr.msra.gmra.mrb[16].mxu0 %vm18138_vm11, %v18930_v32 }
 0x4c8   : > { %14731 = vmatprep.mubr.msk.bf16.mxu0 %vm18138_vm11, %v18979_v47  ;;  %14760 = vmatpush3.bf16.msra.mxu0 %v16730_v2  ;;  %v22256_v2 = vld [vmem:[#allocation54_spill] sm:$0xff] }
 0x4c9   : > { %14761 = vmatprep.subr.bf16.mxu0 %v16731_v19 }
 0x4cc   : > { %14762 = vmatpush3.bf16.msra.mxu0 %v16731_v19  ;;  %v22257_v19 = vld [vmem:[#allocation55_spill] sm:$0xff] }
 0x4cd   : > { %14763 = vmatprep.subr.bf16.mxu0 %v16732_v36 }
 0x4cf   : > { %14732 = vmatmul.mubr.msk.bf16.gmra.mrb[20].mxu0 %vm18138_vm11, %v18993_v15 }
 0x4d0   : > { %14735 = vmatprep.mubr.msk.bf16.mxu0 %vm18138_vm11, %v19022_v43  ;;  %14764 = vmatpush3.bf16.msra.mxu0 %v16732_v36  ;;  %v22258_v36 = vld [vmem:[#allocation57_spill] sm:$0xff] }
 0x4d1   : > { %14765 = vmatprep.subr.bf16.mxu0 %v16733_v35 }
 0x4d4   : > { %14766 = vmatpush3.bf16.msra.mxu0 %v16733_v35  ;;  %v22259_v35 = vld [vmem:[#allocation58_spill] sm:$0xff] }
 0x4d5   : > { %14767 = vmatprep.subr.bf16.mxu0 %v16734_v42 }
 0x4d7   : > { %14736 = vmatmul.mubr.msk.bf16.gmra.mrb[24].mxu0 %vm18138_vm11, %v19047_v52 }
 0x4d8   : > { %14739 = vmatprep.mubr.msk.bf16.mxu0 %vm18138_vm11, %v19078_v41  ;;  %14768 = vmatpush3.bf16.msra.mxu0 %v16734_v42  ;;  %v16747_v42 = vld [vmem:[%s22152_s5 + $0x188] sm:$0xff]  }
 0x4d9   : > { %14769 = vmatprep.subr.bf16.mxu0 %v16735_v21 }
 0x4dc   : > { %14770 = vmatpush3.bf16.msra.mxu0 %v16735_v21  ;;  %v16748_v21 = vld [vmem:[%s22152_s5 + $0x190] sm:$0xff]  }
 0x4dd   : > { %14771 = vmatprep.subr.bf16.mxu0 %v16736_v48 }
 0x4df   : > { %14740 = vmatmul.mubr.msk.bf16.gmra.mrb[28].mxu0 %vm18138_vm11, %v19112_v45 }
 0x4e0   : > { %14743 = vmatprep.mubr.msk.bf16.mxu0 %vm18138_vm11, %v19124_v61  ;;  %14772 = vmatpush3.bf16.msra.mxu0 %v16736_v48  ;;  %v16750_v48 = vld [vmem:[%s22152_s5 + $0x1a0] sm:$0xff]  }
 0x4e1   : > { %14773 = vmatprep.subr.bf16.mxu0 %v16737_v56 }
 0x4e4   : > { %14774 = vmatpush3.bf16.msra.mxu0 %v16737_v56  ;;  %v16751_v56 = vld [vmem:[%s22152_s5 + $0x1a8] sm:$0xff]  }
 0x4e5   : > { %14807 = vmatprep.subr.bf16.mxu0 %v16738_v4 }
 0x4e7   : > { %14744 = vmatmul.mubr.msk.bf16.gmra.mrb[32].mxu0 %vm18138_vm11, %v19162_v9 }
 0x4e8   : > { %14747 = vmatprep.mubr.msk.bf16.mxu0 %vm18138_vm11, %v22241_v1 }
 0x4ef   : > { %14748 = vmatmul.mubr.msk.bf16.gmra.mrb[36].mxu0 %vm18138_vm11, %v22242_v37 }
 0x4f0   : > { %14751 = vmatprep.mubr.msk.bf16.mxu0 %vm18138_vm11, %v19223_v28 }
 0x4f7   : > { %14752 = vmatmul.mubr.msk.bf16.gmra.mrb[40].mxu0 %vm18138_vm11, %v22243_v13 }
 0x4f8   : > { %14755 = vmatprep.mubr.msk.bf16.mxu0 %vm18138_vm11, %v19270_v53 }
 0x4ff   : > { %14756 = vmatmul.mubr.msk.bf16.gmra.mrb[44].mxu0 %vm18138_vm11, %v19456_v6 }
 0x500   : > { %14775 = vmatprep.mubr.bf16.mxu0 %v22246_v20  ;;  %v16753_v20 = vld [vmem:[%s22152_s5 + $0x1b8] sm:$0xff]  }
 0x507   : > { %14776 = vmatmul.mubr.bf16.vlgmr.msra.gmra.mrb[16].mxu0 %v22247_v58 }
 0x508   : > { %14779 = vmatprep.mubr.bf16.mxu0 %v22248_v5  ;;  %14808 = vmatpush3.bf16.msra.mxu0 %v16738_v4  ;;  %v16752_v4 = vld [vmem:[%s22152_s5 + $0x1b0] sm:$0xff]  }
 0x509   : > { %14809 = vmatprep.subr.bf16.mxu0 %v16739_v51 }
 0x50c   : > { %14810 = vmatpush3.bf16.msra.mxu0 %v16739_v51  ;;  %v16754_v51 = vld [vmem:[%s22152_s5 + $0x1c0] sm:$0xff]  }
 0x50d   : > { %14811 = vmatprep.subr.bf16.mxu0 %v16740_v55 }
 0x50f   : > { %14780 = vmatmul.mubr.bf16.gmra.mrb[20].mxu0 %v22249_v25 }
 0x510   : > { %14783 = vmatprep.mubr.bf16.mxu0 %v22250_v17  ;;  %14812 = vmatpush3.bf16.msra.mxu0 %v16740_v55  ;;  %v16755_v55 = vld [vmem:[%s22152_s5 + $0x1c8] sm:$0xff]  }
 0x511   : > { %14813 = vmatprep.subr.bf16.mxu0 %v16741_v46 }
 0x514   : > { %14814 = vmatpush3.bf16.msra.mxu0 %v16741_v46  ;;  %v16756_v46 = vld [vmem:[%s22152_s5 + $0x1d0] sm:$0xff]  }
 0x515   : > { %14815 = vmatprep.subr.bf16.mxu0 %v16742_v54 }
 0x517   : > { %14784 = vmatmul.mubr.bf16.gmra.mrb[24].mxu0 %v22251_v62 }
 0x518   : > { %14787 = vmatprep.mubr.bf16.mxu0 %v22252_v29  ;;  %14816 = vmatpush3.bf16.msra.mxu0 %v16742_v54  ;;  %v22273_v54 = vld [vmem:[#allocation30_spill] sm:$0xff] }
 0x519   : > { %14817 = vmatprep.subr.bf16.mxu0 %v16743_v59 }
 0x51c   : > { %14818 = vmatpush3.bf16.msra.mxu0 %v16743_v59  ;;  %v22275_v59 = vld [vmem:[#allocation47_spill] sm:$0xff] }
 0x51d   : > { %14819 = vmatprep.subr.bf16.mxu0 %v16744_v14 }
 0x51f   : > { %14788 = vmatmul.mubr.bf16.gmra.mrb[28].mxu0 %v22253_v57 }
 0x520   : > { %14791 = vmatprep.mubr.bf16.mxu0 %v22254_v26  ;;  %14820 = vmatpush3.bf16.msra.mxu0 %v16744_v14  ;;  %v22278_v14 = vld [vmem:[#allocation15_spill] sm:$0xff] }
 0x521   : > { %14821 = vmatprep.subr.bf16.mxu0 %v16745_v60 }
 0x524   : > { %14822 = vmatpush3.bf16.msra.mxu0 %v16745_v60  ;;  %v22279_v60 = vld [vmem:[#allocation23_spill] sm:$0xff] }
 0x525   : > { %14855 = vmatprep.subr.bf16.mxu0 %v16746_v27 }
 0x527   : > { %14792 = vmatmul.mubr.bf16.gmra.mrb[32].mxu0 %v22255_v12 }
 0x528   : > { %14795 = vmatprep.mubr.bf16.mxu0 %v22256_v2 }
 0x52f   : > { %14796 = vmatmul.mubr.bf16.gmra.mrb[36].mxu0 %v22257_v19 }
 0x530   : > { %14799 = vmatprep.mubr.bf16.mxu0 %v22258_v36 }
 0x537   : > { %14800 = vmatmul.mubr.bf16.gmra.mrb[40].mxu0 %v22259_v35 }
 0x538   : > { %14803 = vmatprep.mubr.bf16.mxu0 %v19234_v7 }
 0x53f   : > { %14804 = vmatmul.mubr.bf16.gmra.mrb[44].mxu0 %v19451_v3 }
 0x540   : > { %14823 = vmatprep.mubr.msk.bf16.mxu0 %vm18416_vm13, %v22244_v30  ;;  %v16749_v30 = vld [vmem:[%s22152_s5 + $0x198] sm:$0xff]  }
 0x547   : > { %14824 = vmatmul.mubr.msk.bf16.vlgmr.msra.gmra.mrb[16].mxu0 %vm18416_vm13, %v19266_v11 }
 0x548   : > { %14827 = vmatprep.mubr.msk.bf16.mxu0 %vm18416_vm13, %v19268_v33  ;;  %14856 = vmatpush3.bf16.msra.mxu0 %v16746_v27  ;;  %v22281_v27 = vld [vmem:[#allocation40_spill] sm:$0xff] }
 0x549   : > { %14857 = vmatprep.subr.bf16.mxu0 %v16747_v42 }
 0x54c   : > { %14858 = vmatpush3.bf16.msra.mxu0 %v16747_v42  ;;  %v22286_v42 = vld [vmem:[#allocation29_spill] sm:$0xff] }
 0x54d   : > { %14859 = vmatprep.subr.bf16.mxu0 %v16748_v21 }
 0x54f   : > { %14828 = vmatmul.mubr.msk.bf16.gmra.mrb[20].mxu0 %vm18416_vm13, %v19290_v50 }
 0x550   : > { %14831 = vmatprep.mubr.msk.bf16.mxu0 %vm18416_vm13, %v19311_v63  ;;  %14860 = vmatpush3.bf16.msra.mxu0 %v16748_v21 }
 0x551   : > { %14861 = vmatprep.subr.bf16.mxu0 %v16749_v30 }
 0x554   : > { %14862 = vmatpush3.bf16.msra.mxu0 %v16749_v30  ;;  %v22287_v30 = vld [vmem:[#allocation26_spill] sm:$0xff] }
 0x555   : > { %14863 = vmatprep.subr.bf16.mxu0 %v16750_v48 }
 0x557   : > { %14832 = vmatmul.mubr.msk.bf16.gmra.mrb[24].mxu0 %vm18416_vm13, %v19313_v49 }
 0x558   : > { %14835 = vmatprep.mubr.msk.bf16.mxu0 %vm18416_vm13, %v19328_v18  ;;  %14864 = vmatpush3.bf16.msra.mxu0 %v16750_v48  ;;  %v22288_v48 = vld [vmem:[#allocation28_spill] sm:$0xff] }
 0x559   : > { %14865 = vmatprep.subr.bf16.mxu0 %v16751_v56 }
 0x55c   : > { %14866 = vmatpush3.bf16.msra.mxu0 %v16751_v56  ;;  %v6216_v56 = vpack.c.bf16 %v22288_v48, %v22287_v30 }
 0x55d   : > { %14867 = vmatprep.subr.bf16.mxu0 %v16752_v4 }
 0x55f   : > { %14836 = vmatmul.mubr.msk.bf16.gmra.mrb[28].mxu0 %vm18416_vm13, %v19348_v39 }
 0x560   : > { %14839 = vmatprep.mubr.msk.bf16.mxu0 %vm18416_vm13, %v19368_v22  ;;  %14868 = vmatpush3.bf16.msra.mxu0 %v16752_v4  ;;  %v22289_v4 = vld [vmem:[#allocation39_spill] sm:$0xff] }
 0x561   : > { %14869 = vmatprep.subr.bf16.mxu0 %v16753_v20 }
 0x564   : > { %14870 = vmatpush3.bf16.msra.mxu0 %v16753_v20  ;;  %v22290_v20 = vld [vmem:[#allocation37_spill] sm:$0xff] }
 0x565   : > { %14903 = vmatprep.subr.bf16.mxu0 %v16754_v51 }
 0x567   : > { %14840 = vmatmul.mubr.msk.bf16.gmra.mrb[32].mxu0 %vm18416_vm13, %v19370_v8 }
 0x568   : > { %14843 = vmatprep.mubr.msk.bf16.mxu0 %vm18416_vm13, %v19384_v24 }
 0x56f   : > { %14844 = vmatmul.mubr.msk.bf16.gmra.mrb[36].mxu0 %vm18416_vm13, %v19404_v40 }
 0x570   : > { %14847 = vmatprep.mubr.msk.bf16.mxu0 %vm18416_vm13, %v19427_v34 }
 0x577   : > { %14848 = vmatmul.mubr.msk.bf16.gmra.mrb[40].mxu0 %vm18416_vm13, %v19429_v38 }
 0x578   : > { %14851 = vmatprep.mubr.msk.bf16.mxu0 %vm18416_vm13, %v19439_v31 }
 0x57f   : > { %14852 = vmatmul.mubr.msk.bf16.gmra.mrb[44].mxu0 %vm18416_vm13, %v19470_v10 }
 0x580   : > { %14871 = vmatprep.mubr.msk.bf16.mxu0 %vm18138_vm11, %v18930_v32  ;;  %v16757_v32 = vld [vmem:[%s22152_s5 + $0x1d8] sm:$0xff]  }
 0x587   : > { %14872 = vmatmul.mubr.msk.bf16.vlgmr.msra.gmra.mrb[16].mxu0 %vm18138_vm11, %v18979_v47  ;;  %v16758_v47 = vld [vmem:[%s22152_s5 + $0x1e0] sm:$0xff]  }
 0x588   : > { %14875 = vmatprep.mubr.msk.bf16.mxu0 %vm18138_vm11, %v18993_v15  ;;  %14904 = vmatpush3.bf16.msra.mxu0 %v16754_v51  ;;  %v16759_v15 = vld [vmem:[%s22152_s5 + $0x1e8] sm:$0xff]   ;;  %v22291_v51 = vpack.c.bf16 %v22289_v4, %v22290_v20 }
 0x589   : > { %14905 = vmatprep.subr.bf16.mxu0 %v16755_v55 }
 0x58c   : > { %14906 = vmatpush3.bf16.msra.mxu0 %v16755_v55  ;;  %v22292_v55 = vld [vmem:[#allocation38_spill] sm:$0xff] }
 0x58d   : > { %14907 = vmatprep.subr.bf16.mxu0 %v16756_v46 }
 0x58f   : > { %14876 = vmatmul.mubr.msk.bf16.gmra.mrb[20].mxu0 %vm18138_vm11, %v19022_v43  ;;  %v16761_v43 = vld [vmem:[%s22152_s5 + $0x1f8] sm:$0xff]  }
 0x590   : > { %14879 = vmatprep.mubr.msk.bf16.mxu0 %vm18138_vm11, %v19047_v52  ;;  %14908 = vmatpush3.bf16.msra.mxu0 %v16756_v46  ;;  %v16760_v52 = vld [vmem:[%s22152_s5 + $0x1f0] sm:$0xff]   ;;  %v22293_v46 = vld [vmem:[#allocation34_spill] sm:$0xff] }
 0x591   : > { %14909 = vmatprep.subr.bf16.mxu0 %v16757_v32 }
 0x594   : > { %14910 = vmatpush3.bf16.msra.mxu0 %v16757_v32  ;;  %v22294_v32 = vpack.c.bf16 %v22292_v55, %v22293_v46 }
 0x595   : > { %14911 = vmatprep.subr.bf16.mxu0 %v16758_v47 }
 0x597   : > { %14880 = vmatmul.mubr.msk.bf16.gmra.mrb[24].mxu0 %vm18138_vm11, %v19078_v41  ;;  %v16762_v41 = vld [vmem:[%s22152_s5 + $0x200] sm:$0xff]  }
 0x598   : > { %14883 = vmatprep.mubr.msk.bf16.mxu0 %vm18138_vm11, %v19112_v45  ;;  %14912 = vmatpush3.bf16.msra.mxu0 %v16758_v47  ;;  %v16763_v45 = vld [vmem:[%s22152_s5 + $0x208] sm:$0xff]  }
 0x599   : > { %14913 = vmatprep.subr.bf16.mxu0 %v16759_v15  ;;  %v22295_v47 = vld [vmem:[#allocation52_spill] sm:$0xff] }
 0x59c   : > { %14914 = vmatpush3.bf16.msra.mxu0 %v16759_v15  ;;  %v22296_v15 = vld [vmem:[#allocation43_spill] sm:$0xff] }
 0x59d   : > { %14915 = vmatprep.subr.bf16.mxu0 %v16760_v52 }
 0x59f   : > { %14884 = vmatmul.mubr.msk.bf16.gmra.mrb[28].mxu0 %vm18138_vm11, %v19124_v61  ;;  %v16766_v61 = vld [vmem:[%s22152_s5 + $0x220] sm:$0xff]  }
 0x5a0   : > { %14887 = vmatprep.mubr.msk.bf16.mxu0 %vm18138_vm11, %v19162_v9  ;;  %14916 = vmatpush3.bf16.msra.mxu0 %v16760_v52  ;;  %v16764_v9 = vld [vmem:[%s22152_s5 + $0x210] sm:$0xff]   ;;  %v22297_v52 = vpack.c.bf16 %v22295_v47, %v22296_v15 }
 0x5a1   : > { %14917 = vmatprep.subr.bf16.mxu0 %v16761_v43 }
 0x5a4   : > { %14918 = vmatpush3.bf16.msra.mxu0 %v16761_v43  ;;  %v22298_v43 = vld [vmem:[#allocation46_spill] sm:$0xff] }
 0x5a5   : > { %14951 = vmatprep.subr.bf16.mxu0 %v16762_v41 }
 0x5a7   : > { %14888 = vmatmul.mubr.msk.bf16.gmra.mrb[32].mxu0 %vm18138_vm11, %v22241_v1  ;;  %v16769_v1 = vld [vmem:[%s22152_s5 + $0x238] sm:$0xff]  }
 0x5a8   : > { %14891 = vmatprep.mubr.msk.bf16.mxu0 %vm18138_vm11, %v22242_v37  ;;  %v16770_v37 = vld [vmem:[%s21818_s7] sm:$0xff]  }
 0x5af   : > { %14892 = vmatmul.mubr.msk.bf16.gmra.mrb[36].mxu0 %vm18138_vm11, %v19223_v28  ;;  %v16767_v28 = vld [vmem:[%s22152_s5 + $0x228] sm:$0xff]  }
 0x5b0   : > { %14895 = vmatprep.mubr.msk.bf16.mxu0 %vm18138_vm11, %v22243_v13  ;;  %v16771_v13 = vld [vmem:[%s21818_s7 + $0x8] sm:$0xff]  }
 0x5b7   : > { %14896 = vmatmul.mubr.msk.bf16.gmra.mrb[40].mxu0 %vm18138_vm11, %v19270_v53  ;;  %v16765_v53 = vld [vmem:[%s22152_s5 + $0x218] sm:$0xff]  }
 0x5b8   : > { %14899 = vmatprep.mubr.msk.bf16.mxu0 %vm18138_vm11, %v19456_v6  ;;  %v16768_v6 = vld [vmem:[%s22152_s5 + $0x230] sm:$0xff]   ;;  %s17090_s5 = sshll.u32 %s17162_s2, 4  ;;  %s17091_s5 = int_to_ptr.vmem [resolvable:$false] %s17090_s5 }
 0x5bf   : > { %14900 = vmatmul.mubr.bf16.gmra.mrb[44].mxu0 %v22075_v23 }
 0x5c0   : > { %14919 = vmatprep.mubr.bf16.mxu0 %v22247_v58  ;;  %v22267_v58 = vld [vmem:[#allocation19_spill] sm:$0xff] }
 0x5c7   : > { %14920 = vmatmul.mubr.bf16.vlgmr.msra.gmra.mrb[16].mxu0 %v22248_v5 }
 0x5c8   : > { %14923 = vmatprep.mubr.bf16.mxu0 %v22249_v25  ;;  %14952 = vmatpush3.bf16.msra.mxu0 %v16762_v41  ;;  %v22299_v41 = vld [vmem:[#allocation41_spill] sm:$0xff] }
 0x5c9   : > { %14953 = vmatprep.subr.bf16.mxu0 %v16763_v45 }
 0x5cc   : > { %14954 = vmatpush3.bf16.msra.mxu0 %v16763_v45  ;;  %v22300_v45 = vpack.c.bf16 %v22298_v43, %v22299_v41 }
 0x5cd   : > { %14955 = vmatprep.subr.bf16.mxu0 %v16764_v9 }
 0x5cf   : > { %14924 = vmatmul.mubr.bf16.gmra.mrb[20].mxu0 %v22250_v17  ;;  %v22272_v17 = vld [vmem:[#allocation33_spill] sm:$0xff] }
 0x5d0   : > { %14927 = vmatprep.mubr.bf16.mxu0 %v22251_v62  ;;  %14956 = vmatpush3.bf16.msra.mxu0 %v16764_v9  ;;  %v22276_v62 = vld [vmem:[#allocation42_spill] sm:$0xff]  ;;  %v16780_v9 = vld [vmem:[%s21820_s9 + $0x4] ss:$8 sps:$4 sm:$0xff]  }
 0x5d1   : > { %14957 = vmatprep.subr.bf16.mxu0 %v16765_v53  ;;  %6565 = vmatprep.mubr.bf16.mxu1 %v16780_v9 }
 0x5d4   : > { %14958 = vmatpush3.bf16.msra.mxu0 %v16765_v53  ;;  %v12267_v53 = vld [vmem:[%s22301_s6] ss:$0 sm:$0xff]  ;;  %s17092_s6 = scalar_lea.vmem %s17091_s5, 32 }
 0x5d5   : > { %14959 = vmatprep.subr.bf16.mxu0 %v16766_v61 }
 0x5d7   : > { %14928 = vmatmul.mubr.bf16.gmra.mrb[24].mxu0 %v22252_v29  ;;  %v22277_v29 = vpack.c.bf16 %v22275_v59, %v22276_v62 }
 0x5d8   : > { %14931 = vmatprep.mubr.bf16.mxu0 %v22253_v57  ;;  %14960 = vmatpush3.bf16.msra.mxu0 %v16766_v61  ;;  %v6213_v57 = vpack.c.bf16 %v22279_v60, %v22278_v14  ;;  %v12268_v61 = vld [vmem:[%s21819_s8] ss:$0 sm:$0xff] }
 0x5d9   : > { %14961 = vmatprep.subr.bf16.mxu0 %v16767_v28 }
 0x5dc   : > { %14962 = vmatpush3.bf16.msra.mxu0 %v16767_v28  ;;  %v20013_v28 = vadd.f32 %v12268_v61, %v12267_v53 }
 0x5dd   : > { %14963 = vmatprep.subr.bf16.mxu0 %v16768_v6 }
 0x5df   : > { %14932 = vmatmul.mubr.bf16.gmra.mrb[28].mxu0 %v22254_v26  ;;  %v22280_v26 = vld [vmem:[#allocation44_spill] sm:$0xff] }
 0x5e0   : > { %14935 = vmatprep.mubr.bf16.mxu0 %v22255_v12  ;;  %14964 = vmatpush3.bf16.msra.mxu0 %v16768_v6  ;;  %v22282_v12 = vpack.c.bf16 %v22280_v26, %v22281_v27 }
 0x5e1   : > { %14965 = vmatprep.subr.bf16.mxu0 %v16769_v1 }
 0x5e4   : > { %14966 = vmatpush3.bf16.msra.mxu0 %v16769_v1 }
 0x5e5   : > { %14999 = vmatprep.subr.bf16.mxu0 %v16770_v37 }
 0x5e7   : > { %14936 = vmatmul.mubr.bf16.gmra.mrb[32].mxu0 %v22256_v2  ;;  %v22283_v2 = vld [vmem:[#allocation13_spill] sm:$0xff] }
 0x5e8   : > { %14939 = vmatprep.mubr.bf16.mxu0 %v22257_v19  ;;  %v22284_v19 = vld [vmem:[#allocation21_spill] sm:$0xff] }
 0x5ef   : > { %14940 = vmatmul.mubr.bf16.gmra.mrb[36].mxu0 %v22258_v36  ;;  %v6214_v36 = vpack.c.bf16 %v22284_v19, %v22283_v2 }
 0x5f0   : > { %14943 = vmatprep.mubr.bf16.mxu0 %v22259_v35  ;;  %v22285_v35 = vld [vmem:[#allocation27_spill] sm:$0xff] }
 0x5f1   : > { %v6215_v21 = vpack.c.bf16 %v22286_v42, %v22285_v35 }
 0x5f7   : > { %14944 = vmatmul.mubr.bf16.gmra.mrb[40].mxu0 %v19234_v7  ;;  %v16772_v7 = vld [vmem:[%s21818_s7 + $0x10] sm:$0xff]  }
 0x5f8   : > { %14947 = vmatprep.mubr.bf16.mxu0 %v19451_v3  ;;  %v22265_v3 = vld [vmem:[#allocation11_spill] sm:$0xff] }
 0x5ff   : > { %14948 = vmatmul.mubr.bf16.gmra.mrb[44].mxu0 %v22075_v23 }
 0x600   : > { %14967 = vmatprep.mubr.msk.bf16.mxu0 %vm18416_vm13, %v19266_v11  ;;  %v16773_v11 = vld [vmem:[%s21818_s7 + $0x18] sm:$0xff]  }
 0x607   : > { %14968 = vmatmul.mubr.msk.bf16.vlgmr.msra.gmra.mrb[16].mxu0 %vm18416_vm13, %v19268_v33  ;;  %v16774_v33 = vld [vmem:[%s21818_s7 + $0x20] sm:$0xff]  }
 0x608   : > { %14971 = vmatprep.mubr.msk.bf16.mxu0 %vm18416_vm13, %v19290_v50  ;;  %15000 = vmatpush3.bf16.msra.mxu0 %v16770_v37  ;;  %v16775_v50 = vld [vmem:[%s21818_s7 + $0x28] sm:$0xff]  }
 0x609   : > { %15001 = vmatprep.subr.bf16.mxu0 %v16771_v13 }
 0x60c   : > { %15002 = vmatpush3.bf16.msra.mxu0 %v16771_v13 }
 0x60d   : > { %15003 = vmatprep.subr.bf16.mxu0 %v16772_v7 }
 0x60f   : > { %14972 = vmatmul.mubr.msk.bf16.gmra.mrb[20].mxu0 %vm18416_vm13, %v19311_v63  ;;  %v16776_v63 = vld [vmem:[%s21818_s7 + $0x30] sm:$0xff]  }
 0x610   : > { %14975 = vmatprep.mubr.msk.bf16.mxu0 %vm18416_vm13, %v19313_v49  ;;  %15004 = vmatpush3.bf16.msra.mxu0 %v16772_v7  ;;  %v16777_v49 = vld [vmem:[%s21818_s7 + $0x38] sm:$0xff]  }
 0x611   : > { %15005 = vmatprep.subr.bf16.mxu0 %v16773_v11 }
 0x614   : > { %15006 = vmatpush3.bf16.msra.mxu0 %v16773_v11 }
 0x615   : > { %15007 = vmatprep.subr.bf16.mxu0 %v16774_v33 }
 0x617   : > { %14976 = vmatmul.mubr.msk.bf16.gmra.mrb[24].mxu0 %vm18416_vm13, %v19328_v18  ;;  %v22260_v18 = vld [vmem:[#allocation12_spill] sm:$0xff] }
 0x618   : > { %14979 = vmatprep.mubr.msk.bf16.mxu0 %vm18416_vm13, %v19348_v39  ;;  %15008 = vmatpush3.bf16.msra.mxu0 %v16774_v33  ;;  %v22261_v39 = vld [vmem:[#allocation16_spill] sm:$0xff] }
 0x619   : > { %15009 = vmatprep.subr.bf16.mxu0 %v16775_v50 }
 0x61c   : > { %15010 = vmatpush3.bf16.msra.mxu0 %v16775_v50 }
 0x61d   : > { %15011 = vmatprep.subr.bf16.mxu0 %v16776_v63 }
 0x61f   : > { %14980 = vmatmul.mubr.msk.bf16.gmra.mrb[28].mxu0 %vm18416_vm13, %v19368_v22  ;;  %v6205_v22 = vpack.c.bf16 %v22261_v39, %v22260_v18 }
 0x620   : > { %14983 = vmatprep.mubr.msk.bf16.mxu0 %vm18416_vm13, %v19370_v8  ;;  %15012 = vmatpush3.bf16.msra.mxu0 %v16776_v63  ;;  %v22262_v8 = vld [vmem:[#allocation20_spill] sm:$0xff] }
 0x621   : > { %15013 = vmatprep.subr.bf16.mxu0 %v16777_v49 }
 0x624   : > { %15014 = vmatpush3.bf16.msra.mxu0 %v16777_v49 }
 0x627   : > { %14984 = vmatmul.mubr.msk.bf16.gmra.mrb[32].mxu0 %vm18416_vm13, %v19384_v24  ;;  %v22263_v24 = vld [vmem:[#allocation24_spill] sm:$0xff] }
 0x628   : > { %14987 = vmatprep.mubr.msk.bf16.mxu0 %vm18416_vm13, %v19404_v40  ;;  %v6207_v40 = vpack.c.bf16 %v22263_v24, %v22262_v8 }
 0x62f   : > { %14988 = vmatmul.mubr.msk.bf16.gmra.mrb[36].mxu0 %vm18416_vm13, %v19427_v34  ;;  %v22264_v34 = vld [vmem:[#allocation14_spill] sm:$0xff] }
 0x630   : > { %14991 = vmatprep.mubr.msk.bf16.mxu0 %vm18416_vm13, %v19429_v38  ;;  %v22266_v38 = vpack.c.bf16 %v22264_v34, %v22265_v3 }
 0x637   : > { %14992 = vmatmul.mubr.msk.bf16.gmra.mrb[40].mxu0 %vm18416_vm13, %v19439_v31  ;;  %v22268_v31 = vld [vmem:[#allocation22_spill] sm:$0xff] }
 0x638   : > { %14995 = vmatprep.mubr.msk.bf16.mxu0 %vm18416_vm13, %v19470_v10  ;;  %v6208_v5 = vpack.c.bf16 %v22268_v31, %v22267_v58  ;;  %v22270_v10 = vld [vmem:[#allocation31_spill] sm:$0xff] }
 0x639   : > { %v22271_v25 = vpack.c.bf16 %v22269_v44, %v22270_v10 }
 0x63f   : > { %14996 = vmatmul.mubr.bf16.gmra.mrb[44].mxu0 %v22075_v23  ;;  %v22274_v23 = vpack.c.bf16 %v22272_v17, %v22273_v54 }
 0x640   : > { %15015 = vmatprep.mubr.bf16.mxu0 %v6205_v22 }
 0x647   : > { %15016 = vmatmul.mubr.bf16.vlgmr.msra.gmra.mrb[16].mxu0 %v22266_v38 }
 0x648   : > { %15019 = vmatprep.mubr.bf16.mxu0 %v6207_v40 }
 0x64f   : > { %15020 = vmatmul.mubr.bf16.gmra.mrb[20].mxu0 %v6208_v5 }
 0x650   : > { %15023 = vmatprep.mubr.bf16.mxu0 %v22271_v25 }
 0x657   : > { %15024 = vmatmul.mubr.bf16.gmra.mrb[24].mxu0 %v22274_v23 }
 0x658   : > { %15027 = vmatprep.mubr.bf16.mxu0 %v22277_v29 }
 0x65f   : > { %15028 = vmatmul.mubr.bf16.gmra.mrb[28].mxu0 %v22282_v12 }
 0x660   : > { %15031 = vmatprep.mubr.bf16.mxu0 %v6213_v57 }
 0x667   : > { %15032 = vmatmul.mubr.bf16.gmra.mrb[32].mxu0 %v6214_v36 }
 0x668   : > { %15035 = vmatprep.mubr.bf16.mxu0 %v6215_v21 }
 0x66f   : > { %15036 = vmatmul.mubr.bf16.gmra.mrb[36].mxu0 %v6216_v56 }
 0x670   : > { %15039 = vmatprep.mubr.bf16.mxu0 %v22291_v51 }
 0x677   : > { %15040 = vmatmul.mubr.bf16.gmra.mrb[40].mxu0 %v22294_v32 }
 0x678   : > { %15043 = vmatprep.mubr.bf16.mxu0 %v22297_v52 }
 0x67f   : > { %15044 = vmatmul.mubr.bf16.gmra.mrb[44].mxu0 %v22300_v45 }
 0x71a   : > { %v15017_v6 = vpop.f32.mrb[16].mxu0 }
 0x71b   : > { %v15833_v1 = vadd.f32 %v15017_v6, %v12267_v53  ;;  %v6310_v37 = vpop.f32.mrb[17].mxu0 }
 0x71c   : > { %v15835_v13 = vadd.f32 %v12267_v53, %v6310_v37  ;;  %v15018_v7 = vpop.f32.mrb[18].mxu0 }
 0x71d   : > { %v15834_v11 = vadd.f32 %v15833_v1, %v12268_v61  ;;  %v15838_v33 = vadd.f32 %v20013_v28, %v15018_v7  ;;  %v6313_v50 = vpop.f32.mrb[19].mxu0 }
 0x71e   : > { %v15836_v63 = vadd.f32 %v15835_v13, %v12268_v61  ;;  %v15840_v49 = vadd.f32 %v20013_v28, %v6313_v50 }
 0x71f   : > { %v6478_v18 = vpack.c.bf16 %v15838_v33, %v15834_v11 }
 0x720   : > { %v6477_v39 = vpack.c.bf16 %v15840_v49, %v15836_v63 }
 0x722   : > { %v15021_v22 = vpop.f32.mrb[20].mxu0 }
 0x723   : > { %v6326_v8 = vpop.f32.mrb[21].mxu0  ;;  %v20018_v40 = vadd.f32 %v20013_v28, %v15021_v22 }
 0x724   : > { %v15022_v24 = vpop.f32.mrb[22].mxu0  ;;  %v15844_v38 = vadd.f32 %v20013_v28, %v6326_v8 }
 0x725   : > { %v15846_v34 = vadd.f32 %v20013_v28, %v15022_v24  ;;  %v6329_v3 = vpop.f32.mrb[23].mxu0 }
 0x726   : > { %v15848_v58 = vadd.f32 %v20013_v28, %v6329_v3 }
 0x727   : > { %v6480_v31 = vpack.c.bf16 %v15846_v34, %v20018_v40 }
 0x728   : > { %v6479_v5 = vpack.c.bf16 %v15848_v58, %v15844_v38 }
 0x72a   : > { %v15025_v44 = vpop.f32.mrb[24].mxu0 }
 0x72b   : > { %v6342_v10 = vpop.f32.mrb[25].mxu0  ;;  %v20025_v17 = vadd.f32 %v20013_v28, %v15025_v44  ;;  %v16778_v44 = vld [vmem:[%s21820_s9] ss:$8 sps:$4 sm:$0xff]  }
 0x72c   : > { %v15026_v25 = vpop.f32.mrb[26].mxu0  ;;  %v15852_v59 = vadd.f32 %v20013_v28, %v6342_v10  ;;  %v16781_v10 = vld [vmem:[%s21820_s9 + $0x14] ss:$8 sps:$4 sm:$0xff]  }
 0x72d   : > { %v20028_v54 = vadd.f32 %v20013_v28, %v15026_v25  ;;  %v6345_v23 = vpop.f32.mrb[27].mxu0  ;;  %v16792_v25 = vld [vmem:[%s21821_s10 + $0x50] sm:$0xff]  }
 0x72e   : > { %v15856_v62 = vadd.f32 %v20013_v28, %v6345_v23  ;;  %v16793_v23 = vld [vmem:[%s21821_s10 + $0x58] sm:$0xff]  }
 0x72f   : > { %v6482_v29 = vpack.c.bf16 %v20028_v54, %v20025_v17  ;;  %v16783_v17 = vld [vmem:[%s21820_s9 + $0x10] ss:$8 sps:$4 sm:$0xff]   ;;  %v16784_v54 = vld [vmem:[%s21820_s9 + $0x24] ss:$8 sps:$4 sm:$0xff]  }
 0x730   : > { %v6481_v14 = vpack.c.bf16 %v15856_v62, %v15852_v59  ;;  %v16794_v59 = vld [vmem:[%s21821_s10 + $0x60] sm:$0xff]  }
 0x731   : > { %v16786_v62 = vld [vmem:[%s21820_s9 + $0x20] ss:$8 sps:$4 sm:$0xff]  }
 0x732   : > { %v15029_v60 = vpop.f32.mrb[28].mxu0 }
 0x733   : > { %v6358_v57 = vpop.f32.mrb[29].mxu0  ;;  %v20035_v27 = vadd.f32 %v20013_v28, %v15029_v60  ;;  %v16795_v60 = vld [vmem:[%s21821_s10 + $0x68] sm:$0xff]  }
 0x734   : > { %v15030_v26 = vpop.f32.mrb[30].mxu0  ;;  %v15860_v19 = vadd.f32 %v20013_v28, %v6358_v57  ;;  %v16796_v57 = vld [vmem:[%s21821_s10 + $0x70] sm:$0xff]  }
 0x735   : > { %v20038_v12 = vadd.f32 %v20013_v28, %v15030_v26  ;;  %v6361_v2 = vpop.f32.mrb[31].mxu0  ;;  %v16797_v26 = vld [vmem:[%s21821_s10 + $0x78] sm:$0xff]  }
 0x736   : > { %v15864_v36 = vadd.f32 %v20013_v28, %v6361_v2 }
 0x737   : > { %v6484_v35 = vpack.c.bf16 %v20038_v12, %v20035_v27  ;;  %v16798_v27 = vld [vmem:[%s21821_s10] sm:$0xff]  }
 0x738   : > { %v6483_v42 = vpack.c.bf16 %v15864_v36, %v15860_v19 }
 0x73a   : > { %v15033_v21 = vpop.f32.mrb[32].mxu0 }
 0x73b   : > { %v6374_v30 = vpop.f32.mrb[33].mxu0  ;;  %v15866_v56 = vadd.f32 %v20013_v28, %v15033_v21 }
 0x73c   : > { %v15034_v48 = vpop.f32.mrb[34].mxu0  ;;  %v15868_v51 = vadd.f32 %v20013_v28, %v6374_v30 }
 0x73d   : > { %v15870_v4 = vadd.f32 %v20013_v28, %v15034_v48  ;;  %v6377_v20 = vpop.f32.mrb[35].mxu0 }
 0x73e   : > { %v15872_v55 = vadd.f32 %v20013_v28, %v6377_v20 }
 0x73f   : > { %v6486_v46 = vpack.c.bf16 %v15870_v4, %v15866_v56  ;;  %v17158_v56 = vmov 0.0  }
 0x740   : > { %v6485_v32 = vpack.c.bf16 %v15872_v55, %v15868_v51 }
 0x742   : > { %v15037_v47 = vpop.f32.mrb[36].mxu0  ;;  %13687 = vmatprep.subr.bf16.mxu1 %v6485_v32 }
 0x743   : > { %v6390_v15 = vpop.f32.mrb[37].mxu0  ;;  %13688 = vmatpush3.bf16.msra.mxu1 %v6477_v39  ;;  %v15874_v43 = vadd.f32 %v20013_v28, %v15037_v47 }
 0x744   : > { %v15038_v52 = vpop.f32.mrb[38].mxu0  ;;  %13689 = vmatprep.subr.bf16.mxu1 %v6486_v46  ;;  %v15876_v9 = vadd.f32 %v20013_v28, %v6390_v15 }
 0x745   : > { %v15878_v41 = vadd.f32 %v20013_v28, %v15038_v52  ;;  %v6393_v45 = vpop.f32.mrb[39].mxu0 }
 0x746   : > { %v15880_v53 = vadd.f32 %v20013_v28, %v6393_v45 }
 0x747   : > { %v6488_v61 = vpack.c.bf16 %v15878_v41, %v15874_v43  ;;  %13690 = vmatpush3.bf16.msra.mxu1 %v6478_v18 }
 0x748   : > { %v6487_v6 = vpack.c.bf16 %v15880_v53, %v15876_v9 }
 0x74a   : > { %v15041_v1 = vpop.f32.mrb[40].mxu0  ;;  %13691 = vmatprep.subr.bf16.mxu1 %v6487_v6 }
 0x74b   : > { %v6406_v37 = vpop.f32.mrb[41].mxu0  ;;  %13692 = vmatpush3.bf16.msra.mxu1 %v6479_v5  ;;  %v15882_v7 = vadd.f32 %v20013_v28, %v15041_v1  ;;  %v16799_v1 = vld [vmem:[%s21821_s10 + $0x8] sm:$0xff]  }
 0x74c   : > { %v15042_v13 = vpop.f32.mrb[42].mxu0  ;;  %13693 = vmatprep.subr.bf16.mxu1 %v6488_v61  ;;  %v15884_v50 = vadd.f32 %v20013_v28, %v6406_v37 }
 0x74d   : > { %v15886_v11 = vadd.f32 %v20013_v28, %v15042_v13  ;;  %v6409_v33 = vpop.f32.mrb[43].mxu0 }
 0x74e   : > { %v15888_v63 = vadd.f32 %v20013_v28, %v6409_v33 }
 0x74f   : > { %v6490_v49 = vpack.c.bf16 %v15886_v11, %v15882_v7  ;;  %13694 = vmatpush3.bf16.msra.mxu1 %v6480_v31  ;;  %v16790_v31 = vld [vmem:[%s21821_s10 + $0x40] sm:$0xff]  }
 0x750   : > { %v6489_v39 = vpack.c.bf16 %v15888_v63, %v15884_v50 }
 0x752   : > { %v15045_v18 = vpop.f32.mrb[44].mxu0  ;;  %13695 = vmatprep.subr.bf16.mxu1 %v6489_v39 }
 0x753   : > { %v6422_v22 = vpop.f32.mrb[45].mxu0  ;;  %13696 = vmatpush3.bf16.msra.mxu1 %v6481_v14  ;;  %v15890_v24 = vadd.f32 %v20013_v28, %v15045_v18  ;;  %v16789_v14 = vld [vmem:[%s21820_s9 + $0x30] ss:$8 sps:$4 sm:$0xff]  }
 0x754   : > { %v15046_v8 = vpop.f32.mrb[46].mxu0  ;;  %13697 = vmatprep.subr.bf16.mxu1 %v6490_v49  ;;  %v15892_v3 = vadd.f32 %v20013_v28, %v6422_v22  ;;  %v16800_v18 = vld [vmem:[%s21821_s10 + $0x10] sm:$0xff]  }
 0x755   : > { %v15894_v40 = vadd.f32 %v20013_v28, %v15046_v8  ;;  %v6425_v34 = vpop.f32.mrb[47].mxu0 }
 0x756   : > { %v15896_v38 = vadd.f32 %v20013_v28, %v6425_v34  ;;  %v16791_v28 = vld [vmem:[%s21821_s10 + $0x48] sm:$0xff]  }
 0x757   : > { %v6492_v58 = vpack.c.bf16 %v15894_v40, %v15890_v24  ;;  %13698 = vmatpush3.bf16.msra.mxu1 %v6482_v29  ;;  %v16787_v29 = vld [vmem:[%s21820_s9 + $0x34] ss:$8 sps:$4 sm:$0xff]  }
 0x758   : > { %v6491_v5 = vpack.c.bf16 %v15896_v38, %v15892_v3  ;;  %v16801_v38 = vld [vmem:[%s21821_s10 + $0x18] sm:$0xff]  }
 0x75a   : > { %13699 = vmatprep.subr.bf16.mxu1 %v6491_v5 }
 0x75b   : > { %13700 = vmatpush3.bf16.msra.mxu1 %v6483_v42 }
 0x75c   : > { %13701 = vmatprep.subr.bf16.mxu1 %v6492_v58 }
 0x75f   : > { %13702 = vmatpush3.bf16.msra.mxu1 %v6484_v35 }
 0x760   : > { %15047 = vmatprep.subr.bf16.mxu1 %v16790_v31 }
 0x762   : > { %6566 = vmatmul.mubr.bf16.vlgmr.msra.gmra.mrb[48].mxu1 %v16778_v44 }
 0x763   : > { %6573 = vmatprep.mubr.bf16.mxu1 %v16781_v10  ;;  %15048 = vmatpush3.bf16.msra.mxu1 %v16790_v31 }
 0x764   : > { %15049 = vmatprep.subr.bf16.mxu1 %v16791_v28 }
 0x767   : > { %15050 = vmatpush3.bf16.msra.mxu1 %v16791_v28 }
 0x768   : > { %15051 = vmatprep.subr.bf16.mxu1 %v16792_v25 }
 0x76a   : > { %6574 = vmatmul.mubr.bf16.gmra.mrb[52].mxu1 %v16783_v17 }
 0x76b   : > { %6581 = vmatprep.mubr.bf16.mxu1 %v16784_v54  ;;  %15052 = vmatpush3.bf16.msra.mxu1 %v16792_v25 }
 0x76c   : > { %15053 = vmatprep.subr.bf16.mxu1 %v16793_v23 }
 0x76f   : > { %15054 = vmatpush3.bf16.msra.mxu1 %v16793_v23 }
 0x770   : > { %15055 = vmatprep.subr.bf16.mxu1 %v16794_v59 }
 0x772   : > { %6582 = vmatmul.mubr.bf16.gmra.mrb[56].mxu1 %v16786_v62 }
 0x773   : > { %6589 = vmatprep.mubr.bf16.mxu1 %v16787_v29  ;;  %15056 = vmatpush3.bf16.msra.mxu1 %v16794_v59  ;;  %v16802_v29 = vld [vmem:[%s21821_s10 + $0x20] sm:$0xff]  }
 0x774   : > { %15057 = vmatprep.subr.bf16.mxu1 %v16795_v60 }
 0x777   : > { %15058 = vmatpush3.bf16.msra.mxu1 %v16795_v60 }
 0x778   : > { %15059 = vmatprep.subr.bf16.mxu1 %v16796_v57 }
 0x77a   : > { %6590 = vmatmul.mubr.bf16.gmra.mrb[60].mxu1 %v16789_v14 }
 0x77b   : > { %15060 = vmatpush3.bf16.msra.mxu1 %v16796_v57 }
 0x77c   : > { %15061 = vmatprep.subr.bf16.mxu1 %v16797_v26 }
 0x77f   : > { %15062 = vmatpush3.bf16.msra.mxu1 %v16797_v26 }
 0x780   : > { %15071 = vmatprep.subr.bf16.mxu1 %v16798_v27 }
 0x835   : > { %v13703_v12 = vpop.f32.mrb[48].mxu1 }
 0x836   : > { %v13704_v2 = vpop.f32.mrb[49].mxu1 }
 0x837   : > { %v20108_v19 = vadd.f32 %v13704_v2, %v13703_v12  ;;  %v13706_v36 = vpop.f32.mrb[50].mxu1  ;;  %v16803_v12 = vld [vmem:[%s21821_s10 + $0x28] sm:$0xff]  }
 0x838   : > { %v13707_v35 = vpop.f32.mrb[51].mxu1 }
 0x839   : > { %vm6598_vm13 = vcmp.ge.f32.partialorder %v20108_v19, 0.0  ;;  %v6606_v42 = vmul.f32 0.2, %v20108_v19  ;;  %v20112_v21 = vadd.f32 %v13707_v35, %v13706_v36 }
 0x83b   : > { %vm6599_vm0 = vcmp.ge.f32.partialorder %v20112_v21, 0.0  ;;  %v6607_v30 = vmul.f32 0.2, %v20112_v21  ;;  %v20117_v48 = vsel %vm6598_vm13, %v20108_v19, %v6606_v42  ;;  %vm20382_vm13 = vmpackc.low %vm6926_vm9, %vm6926_vm9 }
 0x83c   : > { %v6664_v4 = vpack.c.bf16 %v20117_v48, %v17158_v56  ;;  %v6911_v61 = vrot.slane %v20117_v48, 1  ;;  %v6622_v42 = vrot.slane %v20117_v48, 7 }
 0x83d   : > { %v20122_v20 = vsel %vm6599_vm0, %v20112_v21, %v6607_v30  ;;  %v13709_v51 = vpop.f32.mrb[52].mxu1  ;;  %vm20645_vm0 = vmpackc.low %vm17157_vm10, %vm6926_vm9 }
 0x83e   : > { %v13710_v55 = vpop.f32.mrb[53].mxu1  ;;  %15063 = vmatprep.mubr.bf16.mxu1 %v6664_v4  ;;  %v7220_v46 = vpack.c.bf16 %v20122_v20, %v20117_v48  ;;  %v6912_v41 = vrot.slane %v20122_v20, 1  ;;  %v16829_v48 = vld [vmem:[%s21821_s10 + $0x138] sm:$0xff]  }
 0x83f   : > { %v20126_v32 = vadd.f32 %v13710_v55, %v13709_v51  ;;  %v13712_v47 = vpop.f32.mrb[54].mxu1 }
 0x840   : > { %v13713_v15 = vpop.f32.mrb[55].mxu1  ;;  %v20159_v33 = vsel %vm1621_vm4, %v6911_v61, %v6912_v41 }
 0x841   : > { %vm6600_vm1 = vcmp.ge.f32.partialorder %v20126_v32, 0.0  ;;  %v6608_v52 = vmul.f32 0.2, %v20126_v32  ;;  %v20130_v43 = vadd.f32 %v13713_v15, %v13712_v47 }
 0x843   : > { %v20134_v45 = vsel %vm6600_vm1, %v20126_v32, %v6608_v52  ;;  %vm6601_vm2 = vcmp.ge.f32.partialorder %v20130_v43, 0.0  ;;  %v6609_v9 = vmul.f32 0.2, %v20130_v43 }
 0x844   : > { %v6913_v53 = vrot.slane %v20134_v45, 1  ;;  %v20142_v6 = vpack.c.bf16 %v20134_v45, %v20122_v20 }
 0x845   : > { %v13715_v37 = vpop.f32.mrb[56].mxu1  ;;  %v20148_v13 = vsel %vm6601_vm2, %v20130_v43, %v6609_v9 }
 0x846   : > { %v20152_v7 = vsel %vm1621_vm4, %v6912_v41, %v6913_v53  ;;  %15064 = vmatmul.mubr.bf16.vlgmr.msra.gmra.mrb[64].mxu1 %v20142_v6  ;;  %v13716_v11 = vpop.f32.mrb[57].mxu1  ;;  %v7221_v49 = vpack.c.bf16 %v20148_v13, %v20134_v45  ;;  %v6914_v40 = vrot.slane %v20148_v13, 1 }
 0x847   : > { %15072 = vmatpush3.bf16.msra.mxu1 %v16798_v27  ;;  %v20161_v50 = vadd.f32 %v13716_v11, %v13715_v37  ;;  %v13718_v63 = vpop.f32.mrb[58].mxu1  ;;  %v12450_v39 = vpack.c.bf16 %v20152_v7, %v20159_v33 }
 0x848   : > { %15073 = vmatprep.subr.bf16.mxu1 %v16799_v1  ;;  %v13719_v22 = vpop.f32.mrb[59].mxu1  ;;  %v20191_v10 = vsel %vm1621_vm4, %v6913_v53, %v6914_v40  ;;  %v16804_v53 = vld [vmem:[%s21821_s10 + $0x30] sm:$0xff]  }
 0x849   : > { %vm6602_vm5 = vcmp.ge.f32.partialorder %v20161_v50, 0.0  ;;  %v6610_v8 = vmul.f32 0.2, %v20161_v50  ;;  %v20172_v24 = vadd.f32 %v13719_v22, %v13718_v63 }
 0x84b   : > { %15074 = vmatpush3.bf16.msra.mxu1 %v16799_v1  ;;  %vm6603_vm6 = vcmp.ge.f32.partialorder %v20172_v24, 0.0  ;;  %v6611_v34 = vmul.f32 0.2, %v20172_v24  ;;  %v20178_v3 = vsel %vm6602_vm5, %v20161_v50, %v6610_v8 }
 0x84c   : > { %15075 = vmatprep.subr.bf16.mxu1 %v16800_v18  ;;  %v20185_v58 = vpack.c.bf16 %v20178_v3, %v20148_v13  ;;  %v6915_v5 = vrot.slane %v20178_v3, 1 }
 0x84d   : > { %v13721_v31 = vpop.f32.mrb[60].mxu1  ;;  %v20194_v28 = vsel %vm6603_vm6, %v20172_v24, %v6611_v34  ;;  %v16805_v34 = vld [vmem:[%s21821_s10 + $0x38] sm:$0xff]  }
 0x84e   : > { %v13722_v44 = vpop.f32.mrb[61].mxu1  ;;  %15067 = vmatprep.mubr.bf16.mxu1 %v20185_v58  ;;  %v20198_v25 = vsel %vm1621_vm4, %v6914_v40, %v6915_v5  ;;  %v7222_v59 = vpack.c.bf16 %v20194_v28, %v20178_v3  ;;  %v6916_v57 = vrot.slane %v20194_v28, 1  ;;  %v6627_v4 = vrot.slane %v20194_v28, 7 }
 0x84f   : > { %15076 = vmatpush3.bf16.msra.mxu1 %v16800_v18  ;;  %v20200_v17 = vadd.f32 %v13722_v44, %v13721_v31  ;;  %v13724_v54 = vpop.f32.mrb[62].mxu1  ;;  %v12453_v23 = vpack.c.bf16 %v20198_v25, %v20191_v10  ;;  %v6625_v31 = vrot.slane %v20148_v13, 7  ;;  %v16806_v44 = vld [vmem:[%s21821_s10 + $0x80] sm:$0xff]   ;;  %v16863_v13 = vld [vmem:[%s21823_s12 + $0x48] sm:$0xff]  }
 0x850   : > { %15077 = vmatprep.subr.bf16.mxu1 %v16801_v38  ;;  %v13725_v62 = vpop.f32.mrb[63].mxu1  ;;  %v20238_v47 = vsel %vm1621_vm4, %v6915_v5, %v6916_v57  ;;  %v6623_v5 = vrot.slane %v20122_v20, 7  ;;  %v16830_v20 = vld [vmem:[%s21821_s10 + $0x140] sm:$0xff]  }
 0x851   : > { %vm6604_vm7 = vcmp.ge.f32.partialorder %v20200_v17, 0.0  ;;  %v6612_v14 = vmul.f32 0.2, %v20200_v17  ;;  %v20211_v60 = vadd.f32 %v13725_v62, %v13724_v54 }
 0x853   : > { %15078 = vmatpush3.bf16.msra.mxu1 %v16801_v38  ;;  %vm6605_vm8 = vcmp.ge.f32.partialorder %v20211_v60, 0.0  ;;  %v6613_v26 = vmul.f32 0.2, %v20211_v60  ;;  %v20217_v27 = vsel %vm6604_vm7, %v20200_v17, %v6612_v14  ;;  %v6626_v38 = vrot.slane %v20178_v3, 7  ;;  %v16864_v3 = vld [vmem:[%s21823_s12 + $0x50] sm:$0xff]   ;;  %v16922_v14 = vld [vmem:[%s21823_s12 + $0x1e0] sm:$0xff]  }
 0x854   : > { %15079 = vmatprep.subr.bf16.mxu1 %v16802_v29  ;;  %v6628_v2 = vrot.slane %v20217_v27, 7  ;;  %v20225_v36 = vpack.c.bf16 %v20217_v27, %v20194_v28  ;;  %v6917_v35 = vrot.slane %v20217_v27, 1  ;;  %v16866_v28 = vld [vmem:[%s21823_s12 + $0x60] sm:$0xff]  }
 0x855   : > { %v20230_v30 = vsel %vm6605_vm8, %v20211_v60, %v6613_v26  ;;  %v20304_v62 = vsel %vm1045_vm3, %v6625_v31, %v6626_v38 }
 0x856   : > { %v6629_v51 = vrot.slane %v20230_v30, 7  ;;  %v6918_v55 = vrot.slane %v20230_v30, 1  ;;  %15068 = vmatmul.mubr.bf16.gmra.mrb[68].mxu1 %v20225_v36  ;;  %v20242_v15 = vsel %vm1621_vm4, %v6916_v57, %v6917_v35  ;;  %v20246_v52 = vsel %vm1045_vm3, %v6627_v4, %v6628_v2 }
 0x857   : > { %15080 = vmatpush3.bf16.msra.mxu1 %v16802_v29  ;;  %v7223_v41 = vpack.c.bf16 %v20230_v30, %v20217_v27  ;;  %v12456_v9 = vpack.c.bf16 %v20242_v15, %v20238_v47  ;;  %v6635_v29 = vsel %vm1045_vm3, %v6622_v42, %v6623_v5  ;;  %v16867_v27 = vld [vmem:[%s21823_s12 + $0x68] sm:$0xff]  }
 0x858   : > { %15081 = vmatprep.subr.bf16.mxu1 %v16803_v12  ;;  %v20257_v1 = vsel %vm1045_vm3, %v6629_v51, %v6622_v42  ;;  %v20268_v11 = vsel %vm1621_vm4, %v6917_v35, %v6918_v55  ;;  %v20272_v63 = vsel %vm1045_vm3, %v6628_v2, %v6629_v51  ;;  %v20278_v18 = vsel %vm1621_vm4, %v6918_v55, %v6911_v61  ;;  %v16808_v35 = vld [vmem:[%s21821_s10 + $0x90] sm:$0xff]   ;;  %v16885_v55 = vld [vmem:[%s21823_s12 + $0xb8] sm:$0xff]  }
 0x859   : > { %v12318_v22 = vpack.c.bf16 %v20257_v1, %v17158_v56  ;;  %v12399_v8 = vpack.c.bf16 %v20272_v63, %v20246_v52  ;;  %v12459_v40 = vpack.c.bf16 %v20278_v18, %v20268_v11  ;;  %v6624_v61 = vrot.slane %v20134_v45, 7  ;;  %v16862_v45 = vld [vmem:[%s21823_s12 + $0x40] sm:$0xff]  }
 0x85a   : > { %v20341_v42 = vsel %vm1045_vm3, %v6626_v38, %v6627_v4  ;;  %v12354_v4 = vpack.c.bf16 %v20159_v33, %v17158_v56  ;;  %v16813_v38 = vld [vmem:[%s21821_s10 + $0xb8] sm:$0xff]   ;;  %15263 = vmatprep.subr.bf16.mxu0 %v16862_v45 }
 0x85b   : > { %15082 = vmatpush3.bf16.msra.mxu1 %v16803_v12  ;;  %15087 = vmatprep.mubr.msk.bf16.mxu1 %vm20262_vm12, %v12318_v22  ;;  %v20300_v54 = vsel %vm1045_vm3, %v6623_v5, %v6624_v61  ;;  %v20320_v26 = vsel %vm1045_vm3, %v6624_v61, %v6625_v31  ;;  %v16807_v12 = vld [vmem:[%s21821_s10 + $0x88] sm:$0xff]   ;;  %v20345_v51 = vpack.c.bf16 %v20246_v52, %v20341_v42  ;;  %v16810_v22 = vld [vmem:[%s21821_s10 + $0xa0] sm:$0xff]   ;;  %v16812_v61 = vld [vmem:[%s21821_s10 + $0xb0] sm:$0xff]  }
 0x85c   : > { %15083 = vmatprep.subr.bf16.mxu1 %v16804_v53  ;;  %v20316_v57 = vpack.c.bf16 %v20300_v54, %v6635_v29  ;;  %v20327_v2 = vpack.c.bf16 %v20304_v62, %v20320_v26  ;;  %v16814_v5 = vld [vmem:[%s21821_s10 + $0xc0] sm:$0xff]   ;;  %v16828_v52 = vld [vmem:[%s21821_s10 + $0x130] sm:$0xff]   ;;  %15264 = vmatpush3.bf16.msra.mxu0 %v16862_v45  ;;  %v16865_v33 = vld [vmem:[%s21823_s12 + $0x58] sm:$0xff]  }
 0x85d   : > { %15265 = vmatprep.subr.bf16.mxu0 %v16863_v13  ;;  %v16938_v31 = vld [vmem:[%s21826_s15 + $0x88] sm:$0xff]  }
 0x85f   : > { %15084 = vmatpush3.bf16.msra.mxu1 %v16804_v53  ;;  %v16809_v53 = vld [vmem:[%s21821_s10 + $0x98] sm:$0xff]  }
 0x860   : > { %15085 = vmatprep.subr.bf16.mxu1 %v16805_v34  ;;  %15266 = vmatpush3.bf16.msra.mxu0 %v16863_v13 }
 0x861   : > { %15267 = vmatprep.subr.bf16.mxu0 %v16864_v3 }
 0x863   : > { %15086 = vmatpush3.bf16.msra.mxu1 %v16805_v34  ;;  %v16811_v34 = vld [vmem:[%s21821_s10 + $0xa8] sm:$0xff]  }
 0x864   : > { %15095 = vmatprep.subr.bf16.mxu1 %v16806_v44  ;;  %15268 = vmatpush3.bf16.msra.mxu0 %v16864_v3 }
 0x865   : > { %15269 = vmatprep.subr.bf16.mxu0 %v16865_v33 }
 0x866   : > { %15088 = vmatmul.mubr.msk.bf16.vlgmr.msra.gmra.mrb[64].mxu1 %vm20311_vm14, %v20316_v57 }
 0x867   : > { %15091 = vmatprep.mubr.msk.bf16.mxu1 %vm20311_vm14, %v20327_v2  ;;  %15096 = vmatpush3.bf16.msra.mxu1 %v16806_v44  ;;  %v20388_v44 = vpack.c.bf16 %v20191_v10, %v20152_v7  ;;  %v16835_v7 = vld [vmem:[%s21821_s10 + $0x168] sm:$0xff]   ;;  %v16841_v10 = vld [vmem:[%s21821_s10 + $0x198] sm:$0xff]  }
 0x868   : > { %15097 = vmatprep.subr.bf16.mxu1 %v16807_v12  ;;  %15270 = vmatpush3.bf16.msra.mxu0 %v16865_v33 }
 0x869   : > { %15271 = vmatprep.subr.bf16.mxu0 %v16866_v28 }
 0x86b   : > { %15098 = vmatpush3.bf16.msra.mxu1 %v16807_v12  ;;  %v16815_v12 = vld [vmem:[%s21821_s10 + $0xc8] sm:$0xff]  }
 0x86c   : > { %15099 = vmatprep.subr.bf16.mxu1 %v16808_v35  ;;  %15272 = vmatpush3.bf16.msra.mxu0 %v16866_v28 }
 0x86d   : > { %15273 = vmatprep.subr.bf16.mxu0 %v16867_v27 }
 0x86e   : > { %15092 = vmatmul.mubr.msk.bf16.gmra.mrb[68].mxu1 %vm20311_vm14, %v20345_v51 }
 0x86f   : > { %15100 = vmatpush3.bf16.msra.mxu1 %v16808_v35  ;;  %15111 = vmatprep.mubr.msk.bf16.mxu1 %vm20350_vm15, %v12354_v4  ;;  %v20395_v35 = vpack.c.bf16 %v20238_v47, %v20198_v25  ;;  %v20408_v4 = vpack.c.bf16 %v20268_v11, %v20242_v15  ;;  %v16842_v25 = vld [vmem:[%s21821_s10 + $0x1a0] sm:$0xff]   ;;  %v16844_v47 = vld [vmem:[%s21821_s10 + $0x1b0] sm:$0xff]   ;;  %v16845_v15 = vld [vmem:[%s21821_s10 + $0x1b8] sm:$0xff]  }
 0x870   : > { %15101 = vmatprep.subr.bf16.mxu1 %v16809_v53  ;;  %15274 = vmatpush3.bf16.msra.mxu0 %v16867_v27  ;;  %v16847_v11 = vld [vmem:[%s21821_s10 + $0x1c8] sm:$0xff]  }
 0x873   : > { %15102 = vmatpush3.bf16.msra.mxu1 %v16809_v53  ;;  %v16816_v53 = vld [vmem:[%s21821_s10 + $0xd0] sm:$0xff]  }
 0x874   : > { %15103 = vmatprep.subr.bf16.mxu1 %v16810_v22 }
 0x877   : > { %15104 = vmatpush3.bf16.msra.mxu1 %v16810_v22  ;;  %v16817_v22 = vld [vmem:[%s21821_s10 + $0xd8] sm:$0xff]  }
 0x878   : > { %15105 = vmatprep.subr.bf16.mxu1 %v16811_v34 }
 0x87b   : > { %15106 = vmatpush3.bf16.msra.mxu1 %v16811_v34  ;;  %v12390_v34 = vpack.c.bf16 %v6635_v29, %v20257_v1  ;;  %v16820_v1 = vld [vmem:[%s21821_s10 + $0xf0] sm:$0xff]   ;;  %v16821_v29 = vld [vmem:[%s21821_s10 + $0xf8] sm:$0xff]  }
 0x87c   : > { %15107 = vmatprep.subr.bf16.mxu1 %v16812_v61 }
 0x87f   : > { %15108 = vmatpush3.bf16.msra.mxu1 %v16812_v61  ;;  %v16818_v61 = vld [vmem:[%s21821_s10 + $0xe0] sm:$0xff]  }
 0x880   : > { %15109 = vmatprep.subr.bf16.mxu1 %v16813_v38 }
 0x883   : > { %15110 = vmatpush3.bf16.msra.mxu1 %v16813_v38  ;;  %v16819_v38 = vld [vmem:[%s21821_s10 + $0xe8] sm:$0xff]  }
 0x884   : > { %15119 = vmatprep.subr.bf16.mxu1 %v16814_v5 }
 0x886   : > { %15112 = vmatmul.mubr.msk.bf16.vlgmr.msra.gmra.mrb[64].mxu1 %vm20382_vm13, %v20388_v44 }
 0x887   : > { %15115 = vmatprep.mubr.msk.bf16.mxu1 %vm20382_vm13, %v20395_v35  ;;  %15120 = vmatpush3.bf16.msra.mxu1 %v16814_v5  ;;  %v16822_v5 = vld [vmem:[%s21821_s10 + $0x100] sm:$0xff]  }
 0x888   : > { %15121 = vmatprep.subr.bf16.mxu1 %v16815_v12 }
 0x88b   : > { %15122 = vmatpush3.bf16.msra.mxu1 %v16815_v12  ;;  %v12393_v12 = vpack.c.bf16 %v20320_v26, %v20300_v54  ;;  %v16824_v54 = vld [vmem:[%s21821_s10 + $0x110] sm:$0xff]   ;;  %v16825_v26 = vld [vmem:[%s21821_s10 + $0x118] sm:$0xff]  }
 0x88c   : > { %15123 = vmatprep.subr.bf16.mxu1 %v16816_v53 }
 0x88e   : > { %15116 = vmatmul.mubr.msk.bf16.gmra.mrb[68].mxu1 %vm20382_vm13, %v20408_v4 }
 0x88f   : > { %15124 = vmatpush3.bf16.msra.mxu1 %v16816_v53  ;;  %15135 = vmatprep.mubr.msk.bf16.mxu1 %vm20311_vm14, %v12390_v34  ;;  %v16823_v53 = vld [vmem:[%s21821_s10 + $0x108] sm:$0xff]   ;;  %v16833_v34 = vld [vmem:[%s21821_s10 + $0x158] sm:$0xff]  }
 0x890   : > { %15125 = vmatprep.subr.bf16.mxu1 %v16817_v22 }
 0x893   : > { %15126 = vmatpush3.bf16.msra.mxu1 %v16817_v22  ;;  %v12396_v22 = vpack.c.bf16 %v20341_v42, %v20304_v62  ;;  %v16826_v62 = vld [vmem:[%s21821_s10 + $0x120] sm:$0xff]   ;;  %v16827_v42 = vld [vmem:[%s21821_s10 + $0x128] sm:$0xff]  }
 0x894   : > { %15127 = vmatprep.subr.bf16.mxu1 %v16818_v61 }
 0x897   : > { %15128 = vmatpush3.bf16.msra.mxu1 %v16818_v61  ;;  %v16839_v61 = vld [vmem:[%s21821_s10 + $0x188] sm:$0xff]  }
 0x898   : > { %15129 = vmatprep.subr.bf16.mxu1 %v16819_v38 }
 0x89b   : > { %15130 = vmatpush3.bf16.msra.mxu1 %v16819_v38  ;;  %v16840_v38 = vld [vmem:[%s21821_s10 + $0x190] sm:$0xff]  }
 0x89c   : > { %15131 = vmatprep.subr.bf16.mxu1 %v16820_v1 }
 0x89f   : > { %15132 = vmatpush3.bf16.msra.mxu1 %v16820_v1  ;;  %v16849_v1 = vld [vmem:[%s21821_s10 + $0x1d8] sm:$0xff]  }
 0x8a0   : > { %15133 = vmatprep.subr.bf16.mxu1 %v16821_v29 }
 0x8a3   : > { %15134 = vmatpush3.bf16.msra.mxu1 %v16821_v29  ;;  %v16854_v29 = vld [vmem:[%s21821_s10 + $0x200] sm:$0xff]  }
 0x8a4   : > { %15143 = vmatprep.subr.bf16.mxu1 %v16822_v5 }
 0x8a6   : > { %15136 = vmatmul.mubr.msk.bf16.vlgmr.msra.gmra.mrb[64].mxu1 %vm20311_vm14, %v12393_v12  ;;  %v16856_v12 = vld [vmem:[%s21821_s10 + $0x210] sm:$0xff]  }
 0x8a7   : > { %15139 = vmatprep.mubr.msk.bf16.mxu1 %vm20311_vm14, %v12396_v22  ;;  %15144 = vmatpush3.bf16.msra.mxu1 %v16822_v5  ;;  %v16855_v5 = vld [vmem:[%s21821_s10 + $0x208] sm:$0xff]   ;;  %v16857_v22 = vld [vmem:[%s21821_s10 + $0x218] sm:$0xff]  }
 0x8a8   : > { %15145 = vmatprep.subr.bf16.mxu1 %v16823_v53 }
 0x8ab   : > { %15146 = vmatpush3.bf16.msra.mxu1 %v16823_v53  ;;  %v7645_v53 = vpack.c.bf16 %v17158_v56, %v20230_v30  ;;  %v16860_v30 = vld [vmem:[%s21821_s10 + $0x230] sm:$0xff]  }
 0x8ac   : > { %15147 = vmatprep.subr.bf16.mxu1 %v16824_v54 }
 0x8ae   : > { %15140 = vmatmul.mubr.msk.bf16.gmra.mrb[68].mxu1 %vm20311_vm14, %v12399_v8  ;;  %v16832_v8 = vld [vmem:[%s21821_s10 + $0x150] sm:$0xff]  }
 0x8af   : > { %15148 = vmatpush3.bf16.msra.mxu1 %v16824_v54  ;;  %15159 = vmatprep.mubr.bf16.mxu1 %v7220_v46  ;;  %v16831_v46 = vld [vmem:[%s21821_s10 + $0x148] sm:$0xff]   ;;  %v16940_v54 = vld [vmem:[%s21826_s15 + $0x90] sm:$0xff]  }
 0x8b0   : > { %15149 = vmatprep.subr.bf16.mxu1 %v16825_v26 }
 0x8b3   : > { %15150 = vmatpush3.bf16.msra.mxu1 %v16825_v26  ;;  %v12555_v26 = vpack.c.bf16 %v17158_v56, %v20278_v18  ;;  %v12557_v18 = vld [vmem:[%s21822_s11] ss:$0 sm:$0xff] }
 0x8b4   : > { %15151 = vmatprep.subr.bf16.mxu1 %v16826_v62 }
 0x8b7   : > { %15152 = vmatpush3.bf16.msra.mxu1 %v16826_v62  ;;  %v16870_v62 = vld [vmem:[%s21823_s12] sm:$0xff]  }
 0x8b8   : > { %15153 = vmatprep.subr.bf16.mxu1 %v16827_v42 }
 0x8bb   : > { %15154 = vmatpush3.bf16.msra.mxu1 %v16827_v42 }
 0x8bc   : > { %15155 = vmatprep.subr.bf16.mxu1 %v16828_v52 }
 0x8bf   : > { %15156 = vmatpush3.bf16.msra.mxu1 %v16828_v52 }
 0x8c0   : > { %15157 = vmatprep.subr.bf16.mxu1 %v16829_v48 }
 0x8c3   : > { %15158 = vmatpush3.bf16.msra.mxu1 %v16829_v48 }
 0x8c4   : > { %15167 = vmatprep.subr.bf16.mxu1 %v16830_v20 }
 0x8c6   : > { %15160 = vmatmul.mubr.bf16.vlgmr.msra.gmra.mrb[64].mxu1 %v7221_v49  ;;  %v16834_v49 = vld [vmem:[%s21821_s10 + $0x160] sm:$0xff]  }
 0x8c7   : > { %15163 = vmatprep.mubr.bf16.mxu1 %v7222_v59  ;;  %15168 = vmatpush3.bf16.msra.mxu1 %v16830_v20  ;;  %v16837_v59 = vld [vmem:[%s21821_s10 + $0x178] sm:$0xff]  }
 0x8c8   : > { %15169 = vmatprep.subr.bf16.mxu1 %v16831_v46 }
 0x8cb   : > { %15170 = vmatpush3.bf16.msra.mxu1 %v16831_v46 }
 0x8cc   : > { %15171 = vmatprep.subr.bf16.mxu1 %v16832_v8 }
 0x8ce   : > { %15164 = vmatmul.mubr.bf16.gmra.mrb[68].mxu1 %v7223_v41  ;;  %v16838_v41 = vld [vmem:[%s21821_s10 + $0x180] sm:$0xff]  }
 0x8cf   : > { %15172 = vmatpush3.bf16.msra.mxu1 %v16832_v8  ;;  %15183 = vmatprep.mubr.msk.bf16.mxu1 %vm20382_vm13, %v12450_v39  ;;  %v16836_v39 = vld [vmem:[%s21821_s10 + $0x170] sm:$0xff]  }
 0x8d0   : > { %15173 = vmatprep.subr.bf16.mxu1 %v16833_v34 }
 0x8d3   : > { %15174 = vmatpush3.bf16.msra.mxu1 %v16833_v34 }
 0x8d4   : > { %15175 = vmatprep.subr.bf16.mxu1 %v16834_v49 }
 0x8d7   : > { %15176 = vmatpush3.bf16.msra.mxu1 %v16834_v49 }
 0x8d8   : > { %15177 = vmatprep.subr.bf16.mxu1 %v16835_v7 }
 0x8db   : > { %15178 = vmatpush3.bf16.msra.mxu1 %v16835_v7 }
 0x8dc   : > { %15179 = vmatprep.subr.bf16.mxu1 %v16836_v39 }
 0x8df   : > { %15180 = vmatpush3.bf16.msra.mxu1 %v16836_v39 }
 0x8e0   : > { %15181 = vmatprep.subr.bf16.mxu1 %v16837_v59 }
 0x8e3   : > { %15182 = vmatpush3.bf16.msra.mxu1 %v16837_v59 }
 0x8e4   : > { %15191 = vmatprep.subr.bf16.mxu1 %v16838_v41 }
 0x8e6   : > { %15184 = vmatmul.mubr.msk.bf16.vlgmr.msra.gmra.mrb[64].mxu1 %vm20382_vm13, %v12453_v23  ;;  %v16843_v23 = vld [vmem:[%s21821_s10 + $0x1a8] sm:$0xff]  }
 0x8e7   : > { %15187 = vmatprep.mubr.msk.bf16.mxu1 %vm20382_vm13, %v12456_v9  ;;  %15192 = vmatpush3.bf16.msra.mxu1 %v16838_v41  ;;  %v16846_v9 = vld [vmem:[%s21821_s10 + $0x1c0] sm:$0xff]  }
 0x8e8   : > { %15193 = vmatprep.subr.bf16.mxu1 %v16839_v61 }
 0x8eb   : > { %15194 = vmatpush3.bf16.msra.mxu1 %v16839_v61 }
 0x8ec   : > { %15195 = vmatprep.subr.bf16.mxu1 %v16840_v38 }
 0x8ee   : > { %15188 = vmatmul.mubr.msk.bf16.gmra.mrb[68].mxu1 %vm20382_vm13, %v12459_v40  ;;  %v16848_v40 = vld [vmem:[%s21821_s10 + $0x1d0] sm:$0xff]  }
 0x8ef   : > { %15196 = vmatpush3.bf16.msra.mxu1 %v16840_v38  ;;  %15207 = vmatprep.mubr.msk.bf16.mxu1 %vm20311_vm14, %v20316_v57  ;;  %v12495_v57 = vpack.c.bf16 %v17158_v56, %v20272_v63  ;;  %v16851_v63 = vld [vmem:[%s21821_s10 + $0x1e8] sm:$0xff]  }
 0x8f0   : > { %15197 = vmatprep.subr.bf16.mxu1 %v16841_v10 }
 0x8f3   : > { %15198 = vmatpush3.bf16.msra.mxu1 %v16841_v10 }
 0x8f4   : > { %15199 = vmatprep.subr.bf16.mxu1 %v16842_v25 }
 0x8f7   : > { %15200 = vmatpush3.bf16.msra.mxu1 %v16842_v25 }
 0x8f8   : > { %15201 = vmatprep.subr.bf16.mxu1 %v16843_v23 }
 0x8fb   : > { %15202 = vmatpush3.bf16.msra.mxu1 %v16843_v23 }
 0x8fc   : > { %15203 = vmatprep.subr.bf16.mxu1 %v16844_v47 }
 0x8ff   : > { %15204 = vmatpush3.bf16.msra.mxu1 %v16844_v47 }
 0x900   : > { %15205 = vmatprep.subr.bf16.mxu1 %v16845_v15 }
 0x903   : > { %15206 = vmatpush3.bf16.msra.mxu1 %v16845_v15 }
 0x904   : > { %15215 = vmatprep.subr.bf16.mxu1 %v16846_v9 }
 0x906   : > { %15208 = vmatmul.mubr.msk.bf16.vlgmr.msra.gmra.mrb[64].mxu1 %vm20311_vm14, %v20327_v2  ;;  %v16850_v2 = vld [vmem:[%s21821_s10 + $0x1e0] sm:$0xff]  }
 0x907   : > { %15211 = vmatprep.mubr.msk.bf16.mxu1 %vm20311_vm14, %v20345_v51  ;;  %15216 = vmatpush3.bf16.msra.mxu1 %v16846_v9  ;;  %v16852_v51 = vld [vmem:[%s21821_s10 + $0x1f0] sm:$0xff]  }
 0x908   : > { %15217 = vmatprep.subr.bf16.mxu1 %v16847_v11 }
 0x90b   : > { %15218 = vmatpush3.bf16.msra.mxu1 %v16847_v11 }
 0x90c   : > { %15219 = vmatprep.subr.bf16.mxu1 %v16848_v40 }
 0x90e   : > { %15212 = vmatmul.mubr.msk.bf16.gmra.mrb[68].mxu1 %vm18138_vm11, %v12495_v57 }
 0x90f   : > { %15220 = vmatpush3.bf16.msra.mxu1 %v16848_v40  ;;  %15231 = vmatprep.mubr.bf16.mxu1 %v20142_v6  ;;  %v16853_v6 = vld [vmem:[%s21821_s10 + $0x1f8] sm:$0xff]  }
 0x910   : > { %15221 = vmatprep.subr.bf16.mxu1 %v16849_v1 }
 0x913   : > { %15222 = vmatpush3.bf16.msra.mxu1 %v16849_v1 }
 0x914   : > { %15223 = vmatprep.subr.bf16.mxu1 %v16850_v2 }
 0x917   : > { %15224 = vmatpush3.bf16.msra.mxu1 %v16850_v2 }
 0x918   : > { %15225 = vmatprep.subr.bf16.mxu1 %v16851_v63 }
 0x91b   : > { %15226 = vmatpush3.bf16.msra.mxu1 %v16851_v63  ;;  %v16871_v63 = vld [vmem:[%s21823_s12 + $0x8] sm:$0xff]  }
 0x91c   : > { %15227 = vmatprep.subr.bf16.mxu1 %v16852_v51 }
 0x91f   : > { %15228 = vmatpush3.bf16.msra.mxu1 %v16852_v51 }
 0x920   : > { %15229 = vmatprep.subr.bf16.mxu1 %v16853_v6 }
 0x923   : > { %15230 = vmatpush3.bf16.msra.mxu1 %v16853_v6 }
 0x924   : > { %15239 = vmatprep.subr.bf16.mxu1 %v16854_v29 }
 0x926   : > { %15232 = vmatmul.mubr.bf16.vlgmr.msra.gmra.mrb[64].mxu1 %v20185_v58  ;;  %v16858_v58 = vld [vmem:[%s21821_s10 + $0x220] sm:$0xff]  }
 0x927   : > { %15235 = vmatprep.mubr.bf16.mxu1 %v20225_v36  ;;  %15240 = vmatpush3.bf16.msra.mxu1 %v16854_v29  ;;  %v16859_v36 = vld [vmem:[%s21821_s10 + $0x228] sm:$0xff]  }
 0x928   : > { %15241 = vmatprep.subr.bf16.mxu1 %v16855_v5 }
 0x92b   : > { %15242 = vmatpush3.bf16.msra.mxu1 %v16855_v5 }
 0x92c   : > { %15243 = vmatprep.subr.bf16.mxu1 %v16856_v12 }
 0x92e   : > { %15236 = vmatmul.mubr.bf16.gmra.mrb[68].mxu1 %v7645_v53 }
 0x92f   : > { %15244 = vmatpush3.bf16.msra.mxu1 %v16856_v12  ;;  %15255 = vmatprep.mubr.msk.bf16.mxu1 %vm20382_vm13, %v20388_v44  ;;  %v16861_v44 = vld [vmem:[%s21821_s10 + $0x238] sm:$0xff]  }
 0x930   : > { %15245 = vmatprep.subr.bf16.mxu1 %v16857_v22 }
 0x933   : > { %15246 = vmatpush3.bf16.msra.mxu1 %v16857_v22 }
 0x934   : > { %15247 = vmatprep.subr.bf16.mxu1 %v16858_v58 }
 0x937   : > { %15248 = vmatpush3.bf16.msra.mxu1 %v16858_v58 }
 0x938   : > { %15249 = vmatprep.subr.bf16.mxu1 %v16859_v36 }
 0x93b   : > { %15250 = vmatpush3.bf16.msra.mxu1 %v16859_v36 }
 0x93c   : > { %15251 = vmatprep.subr.bf16.mxu1 %v16860_v30 }
 0x93f   : > { %15252 = vmatpush3.bf16.msra.mxu1 %v16860_v30 }
 0x940   : > { %15253 = vmatprep.subr.bf16.mxu1 %v16861_v44 }
 0x943   : > { %15254 = vmatpush3.bf16.msra.mxu1 %v16861_v44 }
 0x944   : > { %15479 = vmatprep.subr.bf16.mxu1 %v17158_v56 }
 0x946   : > { %15256 = vmatmul.mubr.msk.bf16.vlgmr.msra.gmra.mrb[64].mxu1 %vm20382_vm13, %v20395_v35  ;;  %v16868_v35 = vld [vmem:[%s21823_s12 + $0x70] sm:$0xff]  }
 0x947   : > { %15259 = vmatprep.mubr.msk.bf16.mxu1 %vm20382_vm13, %v20408_v4  ;;  %15275 = vmatprep.subr.bf16.mxu0 %v16868_v35  ;;  %v16869_v4 = vld [vmem:[%s21823_s12 + $0x78] sm:$0xff]  }
 0x948   : > { %15276 = vmatpush3.bf16.msra.mxu0 %v16868_v35 }
 0x949   : > { %15277 = vmatprep.subr.bf16.mxu0 %v16869_v4 }
 0x94c   : > { %15278 = vmatpush3.bf16.msra.mxu0 %v16869_v4 }
 0x94d   : > { %15287 = vmatprep.subr.bf16.mxu0 %v16870_v62 }
 0x94e   : > { %15260 = vmatmul.mubr.msk.bf16.gmra.mrb[68].mxu1 %vm20645_vm0, %v12555_v26 }
 0xa19   : > { %v15257_v42 = vpop.f32.mrb[64].mxu1 }
 0xa1a   : > { %v7932_v52 = vadd.f32 %v15257_v42, %v12557_v18  ;;  %v7884_v48 = vpop.f32.mrb[65].mxu1 }
 0xa1b   : > { %v7930_v20 = vadd.f32 %v12557_v18, %v7884_v48  ;;  %v15258_v46 = vpop.f32.mrb[66].mxu1 }
 0xa1c   : > { %vm7940_vm10 = vcmp.ge.f32.partialorder %v7932_v52, 0.0  ;;  %v7948_v8 = vmul.f32 0.2, %v7932_v52  ;;  %v7933_v34 = vadd.f32 %v15258_v46, %v12557_v18  ;;  %v7887_v45 = vpop.f32.mrb[67].mxu1 }
 0xa1d   : > { %vm7938_vm1 = vcmp.ge.f32.partialorder %v7930_v20, 0.0  ;;  %v7946_v13 = vmul.f32 0.2, %v7930_v20  ;;  %v7931_v49 = vadd.f32 %v12557_v18, %v7887_v45 }
 0xa1e   : > { %v20665_v3 = vsel %vm7940_vm10, %v7932_v52, %v7948_v8  ;;  %vm7941_vm2 = vcmp.ge.f32.partialorder %v7933_v34, 0.0  ;;  %v7949_v7 = vmul.f32 0.2, %v7933_v34  ;;  %vm11207_vm10 = vcmask 57344  }
 0xa1f   : > { %v20667_v33 = vsel %vm7938_vm1, %v7930_v20, %v7946_v13  ;;  %vm7939_vm5 = vcmp.ge.f32.partialorder %v7931_v49, 0.0  ;;  %v7964_v39 = vrot.slane %v20665_v3, 7  ;;  %v7947_v59 = vmul.f32 0.2, %v7931_v49 }
 0xa20   : > { %v20670_v28 = vsel %vm7941_vm2, %v7933_v34, %v7949_v7  ;;  %v8253_v27 = vrot.slane %v20665_v3, 1  ;;  %v8004_v10 = vpack.c.bf16 %v20667_v33, %v17158_v56  ;;  %v7962_v25 = vrot.slane %v20667_v33, 7 }
 0xa21   : > { %v8254_v41 = vrot.slane %v20670_v28, 1  ;;  %v8560_v61 = vpack.c.bf16 %v20670_v28, %v20665_v3  ;;  %v15261_v38 = vpop.f32.mrb[68].mxu1  ;;  %v7965_v23 = vrot.slane %v20670_v28, 7  ;;  %v20680_v47 = vsel %vm7939_vm5, %v7931_v49, %v7947_v59 }
 0xa22   : > { %v7936_v15 = vadd.f32 %v15261_v38, %v12557_v18  ;;  %v7900_v9 = vpop.f32.mrb[69].mxu1  ;;  %v7963_v40 = vrot.slane %v20680_v47, 7  ;;  %v20691_v57 = vpack.c.bf16 %v20665_v3, %v20680_v47  ;;  %v8252_v1 = vrot.slane %v20680_v47, 1  ;;  %15279 = vmatprep.mubr.bf16.mxu0 %v8004_v10  ;;  %v16873_v38 = vld [vmem:[%s21823_s12 + $0x18] sm:$0xff]   ;;  %v16906_v3 = vld [vmem:[%s21823_s12 + $0x160] sm:$0xff]  }
 0xa23   : > { %v20686_v11 = vsel %vm1621_vm4, %v8253_v27, %v8254_v41  ;;  %v15262_v2 = vpop.f32.mrb[70].mxu1  ;;  %v7934_v6 = vadd.f32 %v12557_v18, %v7900_v9  ;;  %v8251_v26 = vrot.slane %v20667_v33, 1  ;;  %v20727_v48 = vsel %vm1045_vm3, %v7964_v39, %v7965_v23 }
 0xa24   : > { %vm7944_vm6 = vcmp.ge.f32.partialorder %v7936_v15, 0.0  ;;  %v7952_v51 = vmul.f32 0.2, %v7936_v15  ;;  %v7937_v29 = vadd.f32 %v15262_v2, %v12557_v18  ;;  %v7903_v5 = vpop.f32.mrb[71].mxu1  ;;  %v20699_v12 = vsel %vm1045_vm3, %v7963_v40, %v7964_v39  ;;  %15280 = vmatmul.mubr.bf16.vlgmr.msra.gmra.mrb[48].mxu0 %v20691_v57 }
 0xa25   : > { %v20703_v53 = vsel %vm1045_vm3, %v7962_v25, %v7963_v40  ;;  %v20707_v22 = vsel %vm1621_vm4, %v8252_v1, %v8253_v27  ;;  %v7935_v58 = vadd.f32 %v12557_v18, %v7903_v5  ;;  %vm7942_vm7 = vcmp.ge.f32.partialorder %v7934_v6, 0.0  ;;  %15288 = vmatpush3.bf16.msra.mxu0 %v16870_v62  ;;  %v16872_v18 = vld [vmem:[%s21823_s12 + $0x10] sm:$0xff]  }
 0xa26   : > { %v20712_v36 = vpack.c.bf16 %v20699_v12, %v20703_v53  ;;  %v20716_v30 = vpack.c.bf16 %v20686_v11, %v20707_v22  ;;  %v20718_v44 = vsel %vm7944_vm6, %v7936_v15, %v7952_v51  ;;  %v7950_v4 = vmul.f32 0.2, %v7934_v6  ;;  %15289 = vmatprep.subr.bf16.mxu0 %v16871_v63 }
 0xa27   : > { %v7968_v35 = vrot.slane %v20718_v44, 7  ;;  %vm7945_vm8 = vcmp.ge.f32.partialorder %v7937_v29, 0.0  ;;  %v7953_v42 = vmul.f32 0.2, %v7937_v29  ;;  %vm7943_vm9 = vcmp.ge.f32.partialorder %v7935_v58, 0.0 }
 0xa28   : > { %v7951_v52 = vmul.f32 0.2, %v7935_v58  ;;  %v20729_v20 = vsel %vm7942_vm7, %v7934_v6, %v7950_v4  ;;  %v12666_v62 = vpack.c.bf16 %v20727_v48, %v20699_v12  ;;  %v20735_v46 = vsel %vm1621_vm4, %v8251_v26, %v8252_v1  ;;  %v16897_v12 = vld [vmem:[%s21823_s12 + $0x118] sm:$0xff]  }
 0xa29   : > { %v8559_v8 = vpack.c.bf16 %v20680_v47, %v20667_v33  ;;  %v7966_v34 = vrot.slane %v20729_v20, 7  ;;  %v8255_v45 = vrot.slane %v20729_v20, 1  ;;  %v20741_v13 = vsel %vm7945_vm8, %v7937_v29, %v7953_v42  ;;  %15290 = vmatpush3.bf16.msra.mxu0 %v16871_v63  ;;  %v16874_v29 = vld [vmem:[%s21823_s12 + $0x20] sm:$0xff]   ;;  %v16876_v42 = vld [vmem:[%s21823_s12 + $0x30] sm:$0xff]   ;;  %v16901_v33 = vld [vmem:[%s21823_s12 + $0x138] sm:$0xff]  }
 0xa2a   : > { %v20743_v49 = vsel %vm7943_vm9, %v7935_v58, %v7951_v52  ;;  %v7969_v7 = vrot.slane %v20741_v13, 7  ;;  %v8258_v39 = vrot.slane %v20741_v13, 1  ;;  %15291 = vmatprep.subr.bf16.mxu0 %v16872_v18  ;;  %v8257_v10 = vrot.slane %v20718_v44, 1  ;;  %v16902_v47 = vld [vmem:[%s21823_s12 + $0x140] sm:$0xff]  }
 0xa2b   : > { %v7967_v59 = vrot.slane %v20743_v49, 7  ;;  %v8256_v27 = vrot.slane %v20743_v49, 1  ;;  %v20755_v15 = vpack.c.bf16 %v20729_v20, %v20670_v28  ;;  %v20759_v9 = vpack.c.bf16 %v20718_v44, %v20743_v49  ;;  %v16907_v28 = vld [vmem:[%s21823_s12 + $0x168] sm:$0xff]  }
 0xa2c   : > { %v20763_v40 = vsel %vm1045_vm3, %v7965_v23, %v7966_v34  ;;  %v20767_v1 = vsel %vm1045_vm3, %v7969_v7, %v7962_v25  ;;  %v20800_v5 = vsel %vm1621_vm4, %v8254_v41, %v8255_v45  ;;  %v20804_v58 = vsel %vm1621_vm4, %v8257_v10, %v8258_v39 }
 0xa2d   : > { %v20771_v2 = vpack.c.bf16 %v20763_v40, %v20727_v48  ;;  %v20775_v63 = vsel %vm1045_vm3, %v7967_v59, %v7968_v35  ;;  %v20779_v51 = vsel %vm1045_vm3, %v7966_v34, %v7967_v59  ;;  %15283 = vmatprep.mubr.bf16.mxu0 %v20755_v15  ;;  %15292 = vmatpush3.bf16.msra.mxu0 %v16872_v18  ;;  %v16898_v48 = vld [vmem:[%s21823_s12 + $0x120] sm:$0xff]  }
 0xa2e   : > { %v12591_v23 = vpack.c.bf16 %v20767_v1, %v17158_v56  ;;  %v20786_v25 = vpack.c.bf16 %v20775_v63, %v20779_v51  ;;  %v20790_v6 = vsel %vm1621_vm4, %v8255_v45, %v8256_v27  ;;  %15284 = vmatmul.mubr.bf16.gmra.mrb[52].mxu0 %v20759_v9  ;;  %15293 = vmatprep.subr.bf16.mxu0 %v16873_v38 }
 0xa2f   : > { %v20808_v4 = vsel %vm1621_vm4, %v8256_v27, %v8257_v10  ;;  %v20814_v18 = vpack.c.bf16 %v20790_v6, %v20800_v5  ;;  %v12663_v52 = vpack.c.bf16 %v20703_v53, %v20767_v1  ;;  %v12669_v34 = vpack.c.bf16 %v20779_v51, %v20763_v40  ;;  %v16892_v53 = vld [vmem:[%s21823_s12 + $0xf0] sm:$0xff]   ;;  %v16893_v1 = vld [vmem:[%s21823_s12 + $0xf8] sm:$0xff]  }
 0xa30   : > { %15303 = vmatprep.mubr.msk.bf16.mxu0 %vm20262_vm12, %v12591_v23  ;;  %v20820_v41 = vpack.c.bf16 %v20804_v58, %v20808_v4  ;;  %v20828_v37 = vsel %vm1045_vm3, %v7968_v35, %v7969_v7  ;;  %v8561_v45 = vpack.c.bf16 %v20743_v49, %v20729_v20  ;;  %v8562_v59 = vpack.c.bf16 %v20741_v13, %v20718_v44  ;;  %v16875_v7 = vld [vmem:[%s21823_s12 + $0x28] sm:$0xff]   ;;  %v16900_v40 = vld [vmem:[%s21823_s12 + $0x130] sm:$0xff]   ;;  %v16905_v51 = vld [vmem:[%s21823_s12 + $0x158] sm:$0xff]  }
 0xa31   : > { %15294 = vmatpush3.bf16.msra.mxu0 %v16873_v38  ;;  %v12672_v27 = vpack.c.bf16 %v20828_v37, %v20775_v63  ;;  %v12723_v10 = vpack.c.bf16 %v20707_v22, %v20735_v46  ;;  %v12729_v23 = vpack.c.bf16 %v20808_v4, %v20790_v6  ;;  %v20842_v35 = vsel %vm1621_vm4, %v8258_v39, %v8251_v26  ;;  %v16878_v26 = vld [vmem:[%s21823_s12 + $0x80] sm:$0xff]   ;;  %v16879_v39 = vld [vmem:[%s21823_s12 + $0x88] sm:$0xff]   ;;  %v16904_v63 = vld [vmem:[%s21823_s12 + $0x150] sm:$0xff]  }
 0xa32   : > { %15295 = vmatprep.subr.bf16.mxu0 %v16874_v29  ;;  %v12732_v38 = vpack.c.bf16 %v20842_v35, %v20804_v58  ;;  %v16909_v22 = vld [vmem:[%s21823_s12 + $0x178] sm:$0xff]   ;;  %v16910_v44 = vld [vmem:[%s21823_s12 + $0x180] sm:$0xff]   ;;  %v16911_v20 = vld [vmem:[%s21823_s12 + $0x188] sm:$0xff]   ;;  %vm17159_vm3 = vmmov 0   ;;  %vm9296_vm4 = vcmask 523264  }
 0xa33   : > { %v16912_v49 = vld [vmem:[%s21823_s12 + $0x190] sm:$0xff]   ;;  %v16914_v6 = vld [vmem:[%s21823_s12 + $0x1a0] sm:$0xff]   ;;  %15487 = vmatprep.mubr.msk.bf16.mxu1 %vm17159_vm3, %v17158_v56 }
 0xa34   : > { %v16916_v58 = vld [vmem:[%s21823_s12 + $0x1b0] sm:$0xff]   ;;  %v16918_v4 = vld [vmem:[%s21823_s12 + $0x1c0] sm:$0xff]  }
 0xa35   : > { %15296 = vmatpush3.bf16.msra.mxu0 %v16874_v29  ;;  %v16880_v29 = vld [vmem:[%s21823_s12 + $0x90] sm:$0xff]  }
 0xa36   : > { %15297 = vmatprep.subr.bf16.mxu0 %v16875_v7 }
 0xa39   : > { %15298 = vmatpush3.bf16.msra.mxu0 %v16875_v7  ;;  %v12627_v7 = vpack.c.bf16 %v20735_v46, %v17158_v56  ;;  %v22312_v46 = vpack.c.bf16 %v20800_v5, %v20686_v11  ;;  %v16913_v11 = vld [vmem:[%s21823_s12 + $0x198] sm:$0xff]   ;;  %v16915_v5 = vld [vmem:[%s21823_s12 + $0x1a8] sm:$0xff]  }
 0xa3a   : > { %15299 = vmatprep.subr.bf16.mxu0 %v16876_v42 }
 0xa3d   : > { %15300 = vmatpush3.bf16.msra.mxu0 %v16876_v42  ;;  %v16881_v42 = vld [vmem:[%s21823_s12 + $0x98] sm:$0xff]  }
 0xa3e   : > { %15301 = vmatprep.subr.bf16.mxu0 %v16877_v0 }
 0xa41   : > { %15302 = vmatpush3.bf16.msra.mxu0 %v16877_v0  ;;  %v16882_v0 = vld [vmem:[%s21823_s12 + $0xa0] sm:$0xff]  }
 0xa42   : > { %15311 = vmatprep.subr.bf16.mxu0 %v16878_v26 }
 0xa44   : > { %15304 = vmatmul.mubr.msk.bf16.vlgmr.msra.gmra.mrb[48].mxu0 %vm20311_vm14, %v20712_v36 }
 0xa45   : > { %15307 = vmatprep.mubr.msk.bf16.mxu0 %vm20311_vm14, %v20771_v2  ;;  %15312 = vmatpush3.bf16.msra.mxu0 %v16878_v26  ;;  %v16883_v26 = vld [vmem:[%s21823_s12 + $0xa8] sm:$0xff]  }
 0xa46   : > { %15313 = vmatprep.subr.bf16.mxu0 %v16879_v39 }
 0xa49   : > { %15314 = vmatpush3.bf16.msra.mxu0 %v16879_v39  ;;  %v16884_v39 = vld [vmem:[%s21823_s12 + $0xb0] sm:$0xff]  }
 0xa4a   : > { %15315 = vmatprep.subr.bf16.mxu0 %v16880_v29 }
 0xa4c   : > { %15308 = vmatmul.mubr.msk.bf16.gmra.mrb[52].mxu0 %vm20311_vm14, %v20786_v25 }
 0xa4d   : > { %15316 = vmatpush3.bf16.msra.mxu0 %v16880_v29  ;;  %15327 = vmatprep.mubr.msk.bf16.mxu0 %vm20350_vm15, %v12627_v7  ;;  %v16886_v29 = vld [vmem:[%s21823_s12 + $0xc0] sm:$0xff]   ;;  %v16888_v7 = vld [vmem:[%s21823_s12 + $0xd0] sm:$0xff]  }
 0xa4e   : > { %15317 = vmatprep.subr.bf16.mxu0 %v16881_v42 }
 0xa51   : > { %15318 = vmatpush3.bf16.msra.mxu0 %v16881_v42  ;;  %v16887_v42 = vld [vmem:[%s21823_s12 + $0xc8] sm:$0xff]  }
 0xa52   : > { %15319 = vmatprep.subr.bf16.mxu0 %v16882_v0 }
 0xa55   : > { %15320 = vmatpush3.bf16.msra.mxu0 %v16882_v0  ;;  %v16889_v0 = vld [vmem:[%s21823_s12 + $0xd8] sm:$0xff]  }
 0xa56   : > { %15321 = vmatprep.subr.bf16.mxu0 %v16883_v26 }
 0xa59   : > { %15322 = vmatpush3.bf16.msra.mxu0 %v16883_v26  ;;  %v16890_v26 = vld [vmem:[%s21823_s12 + $0xe0] sm:$0xff]  }
 0xa5a   : > { %15323 = vmatprep.subr.bf16.mxu0 %v16884_v39 }
 0xa5d   : > { %15324 = vmatpush3.bf16.msra.mxu0 %v16884_v39  ;;  %v16891_v39 = vld [vmem:[%s21823_s12 + $0xe8] sm:$0xff]  }
 0xa5e   : > { %15325 = vmatprep.subr.bf16.mxu0 %v16885_v55 }
 0xa61   : > { %15326 = vmatpush3.bf16.msra.mxu0 %v16885_v55  ;;  %v16895_v55 = vld [vmem:[%s21823_s12 + $0x108] sm:$0xff]  }
 0xa62   : > { %15335 = vmatprep.subr.bf16.mxu0 %v16886_v29 }
 0xa64   : > { %15328 = vmatmul.mubr.msk.bf16.vlgmr.msra.gmra.mrb[48].mxu0 %vm20382_vm13, %v20716_v30 }
 0xa65   : > { %15331 = vmatprep.mubr.msk.bf16.mxu0 %vm20382_vm13, %v20814_v18  ;;  %15336 = vmatpush3.bf16.msra.mxu0 %v16886_v29  ;;  %v16896_v29 = vld [vmem:[%s21823_s12 + $0x110] sm:$0xff]  }
 0xa66   : > { %15337 = vmatprep.subr.bf16.mxu0 %v16887_v42 }
 0xa69   : > { %15338 = vmatpush3.bf16.msra.mxu0 %v16887_v42  ;;  %v12828_v42 = vpack.c.bf16 %v17158_v56, %v20842_v35  ;;  %v16944_v35 = vld [vmem:[%s21826_s15 + $0xa0] sm:$0xff]  }
 0xa6a   : > { %15339 = vmatprep.subr.bf16.mxu0 %v16888_v7 }
 0xa6c   : > { %15332 = vmatmul.mubr.msk.bf16.gmra.mrb[52].mxu0 %vm20382_vm13, %v20820_v41 }
 0xa6d   : > { %15340 = vmatpush3.bf16.msra.mxu0 %v16888_v7  ;;  %15351 = vmatprep.mubr.msk.bf16.mxu0 %vm20311_vm14, %v12663_v52  ;;  %v16894_v52 = vld [vmem:[%s21823_s12 + $0x100] sm:$0xff]   ;;  %v16946_v7 = vld [vmem:[%s21826_s15 + $0xa8] sm:$0xff]  }
 0xa6e   : > { %15341 = vmatprep.subr.bf16.mxu0 %v16889_v0 }
 0xa71   : > { %15342 = vmatpush3.bf16.msra.mxu0 %v16889_v0  ;;  %v12830_v0 = vld [vmem:[%s21824_s13] ss:$0 sm:$0xff] }
 0xa72   : > { %15343 = vmatprep.subr.bf16.mxu0 %v16890_v26 }
 0xa75   : > { %15344 = vmatpush3.bf16.msra.mxu0 %v16890_v26 }
 0xa76   : > { %15345 = vmatprep.subr.bf16.mxu0 %v16891_v39 }
 0xa79   : > { %15346 = vmatpush3.bf16.msra.mxu0 %v16891_v39 }
 0xa7a   : > { %15347 = vmatprep.subr.bf16.mxu0 %v16892_v53 }
 0xa7d   : > { %15348 = vmatpush3.bf16.msra.mxu0 %v16892_v53 }
 0xa7e   : > { %15349 = vmatprep.subr.bf16.mxu0 %v16893_v1 }
 0xa81   : > { %15350 = vmatpush3.bf16.msra.mxu0 %v16893_v1 }
 0xa82   : > { %15359 = vmatprep.subr.bf16.mxu0 %v16894_v52 }
 0xa84   : > { %15352 = vmatmul.mubr.msk.bf16.vlgmr.msra.gmra.mrb[48].mxu0 %vm20311_vm14, %v12666_v62  ;;  %v16899_v62 = vld [vmem:[%s21823_s12 + $0x128] sm:$0xff]  }
 0xa85   : > { %15355 = vmatprep.mubr.msk.bf16.mxu0 %vm20311_vm14, %v12669_v34  ;;  %15360 = vmatpush3.bf16.msra.mxu0 %v16894_v52  ;;  %v16919_v34 = vld [vmem:[%s21823_s12 + $0x1c8] sm:$0xff]  }
 0xa86   : > { %15361 = vmatprep.subr.bf16.mxu0 %v16895_v55 }
 0xa89   : > { %15362 = vmatpush3.bf16.msra.mxu0 %v16895_v55 }
 0xa8a   : > { %15363 = vmatprep.subr.bf16.mxu0 %v16896_v29 }
 0xa8c   : > { %15356 = vmatmul.mubr.msk.bf16.gmra.mrb[52].mxu0 %vm20311_vm14, %v12672_v27  ;;  %v16921_v27 = vld [vmem:[%s21823_s12 + $0x1d8] sm:$0xff]  }
 0xa8d   : > { %15364 = vmatpush3.bf16.msra.mxu0 %v16896_v29  ;;  %15375 = vmatprep.mubr.bf16.mxu0 %v8559_v8  ;;  %v16903_v8 = vld [vmem:[%s21823_s12 + $0x148] sm:$0xff]  }
 0xa8e   : > { %15365 = vmatprep.subr.bf16.mxu0 %v16897_v12 }
 0xa91   : > { %15366 = vmatpush3.bf16.msra.mxu0 %v16897_v12 }
 0xa92   : > { %15367 = vmatprep.subr.bf16.mxu0 %v16898_v48 }
 0xa95   : > { %15368 = vmatpush3.bf16.msra.mxu0 %v16898_v48 }
 0xa96   : > { %15369 = vmatprep.subr.bf16.mxu0 %v16899_v62 }
 0xa99   : > { %15370 = vmatpush3.bf16.msra.mxu0 %v16899_v62 }
 0xa9a   : > { %15371 = vmatprep.subr.bf16.mxu0 %v16900_v40 }
 0xa9d   : > { %15372 = vmatpush3.bf16.msra.mxu0 %v16900_v40 }
 0xa9e   : > { %15373 = vmatprep.subr.bf16.mxu0 %v16901_v33 }
 0xaa1   : > { %15374 = vmatpush3.bf16.msra.mxu0 %v16901_v33 }
 0xaa2   : > { %15383 = vmatprep.subr.bf16.mxu0 %v16902_v47 }
 0xaa4   : > { %15376 = vmatmul.mubr.bf16.vlgmr.msra.gmra.mrb[48].mxu0 %v8560_v61  ;;  %v16908_v61 = vld [vmem:[%s21823_s12 + $0x170] sm:$0xff]  }
 0xaa5   : > { %15379 = vmatprep.mubr.bf16.mxu0 %v8561_v45  ;;  %15384 = vmatpush3.bf16.msra.mxu0 %v16902_v47  ;;  %v16920_v45 = vld [vmem:[%s21823_s12 + $0x1d0] sm:$0xff]  }
 0xaa6   : > { %15385 = vmatprep.subr.bf16.mxu0 %v16903_v8 }
 0xaa9   : > { %15386 = vmatpush3.bf16.msra.mxu0 %v16903_v8 }
 0xaaa   : > { %15387 = vmatprep.subr.bf16.mxu0 %v16904_v63 }
 0xaac   : > { %15380 = vmatmul.mubr.bf16.gmra.mrb[52].mxu0 %v8562_v59  ;;  %v12768_v59 = vpack.c.bf16 %v17158_v56, %v20828_v37  ;;  %v16927_v37 = vld [vmem:[%s21823_s12 + $0x208] sm:$0xff]  }
 0xaad   : > { %15388 = vmatpush3.bf16.msra.mxu0 %v16904_v63  ;;  %15399 = vmatprep.mubr.msk.bf16.mxu0 %vm20382_vm13, %v12723_v10  ;;  %v16928_v10 = vld [vmem:[%s21823_s12 + $0x210] sm:$0xff]  }
 0xaae   : > { %15389 = vmatprep.subr.bf16.mxu0 %v16905_v51 }
 0xab1   : > { %15390 = vmatpush3.bf16.msra.mxu0 %v16905_v51 }
 0xab2   : > { %15391 = vmatprep.subr.bf16.mxu0 %v16906_v3 }
 0xab5   : > { %15392 = vmatpush3.bf16.msra.mxu0 %v16906_v3 }
 0xab6   : > { %15393 = vmatprep.subr.bf16.mxu0 %v16907_v28 }
 0xab9   : > { %15394 = vmatpush3.bf16.msra.mxu0 %v16907_v28 }
 0xaba   : > { %15395 = vmatprep.subr.bf16.mxu0 %v16908_v61 }
 0xabd   : > { %15396 = vmatpush3.bf16.msra.mxu0 %v16908_v61 }
 0xabe   : > { %15397 = vmatprep.subr.bf16.mxu0 %v16909_v22 }
 0xac1   : > { %15398 = vmatpush3.bf16.msra.mxu0 %v16909_v22 }
 0xac2   : > { %15407 = vmatprep.subr.bf16.mxu0 %v16910_v44 }
 0xac4   : > { %15400 = vmatmul.mubr.msk.bf16.vlgmr.msra.gmra.mrb[48].mxu0 %vm20382_vm13, %v22312_v46 }
 0xac5   : > { %15403 = vmatprep.mubr.msk.bf16.mxu0 %vm20382_vm13, %v12729_v23  ;;  %15408 = vmatpush3.bf16.msra.mxu0 %v16910_v44  ;;  %v8984_v23 = vpack.c.bf16 %v17158_v56, %v20741_v13  ;;  %v16931_v13 = vld [vmem:[%s21823_s12 + $0x228] sm:$0xff]  }
 0xac6   : > { %15409 = vmatprep.subr.bf16.mxu0 %v16911_v20 }
 0xac9   : > { %15410 = vmatpush3.bf16.msra.mxu0 %v16911_v20 }
 0xaca   : > { %15411 = vmatprep.subr.bf16.mxu0 %v16912_v49 }
 0xacc   : > { %15404 = vmatmul.mubr.msk.bf16.gmra.mrb[52].mxu0 %vm20382_vm13, %v12732_v38  ;;  %v16929_v38 = vld [vmem:[%s21823_s12 + $0x218] sm:$0xff]  }
 0xacd   : > { %15412 = vmatpush3.bf16.msra.mxu0 %v16912_v49  ;;  %15423 = vmatprep.mubr.msk.bf16.mxu0 %vm20311_vm14, %v20712_v36  ;;  %v16917_v36 = vld [vmem:[%s21823_s12 + $0x1b8] sm:$0xff]  }
 0xace   : > { %15413 = vmatprep.subr.bf16.mxu0 %v16913_v11 }
 0xad1   : > { %15414 = vmatpush3.bf16.msra.mxu0 %v16913_v11  ;;  %v16934_v11 = vld [vmem:[%s21825_s14] sm:$0xff]  }
 0xad2   : > { %15415 = vmatprep.subr.bf16.mxu0 %v16914_v6 }
 0xad5   : > { %15416 = vmatpush3.bf16.msra.mxu0 %v16914_v6  ;;  %v16943_v6 = vld [vmem:[%s21826_s15 + $0x60] sm:$0xff]  }
 0xad6   : > { %15417 = vmatprep.subr.bf16.mxu0 %v16915_v5 }
 0xad9   : > { %15418 = vmatpush3.bf16.msra.mxu0 %v16915_v5  ;;  %v16945_v5 = vld [vmem:[%s21826_s15 + $0x68] sm:$0xff]  }
 0xada   : > { %15419 = vmatprep.subr.bf16.mxu0 %v16916_v58 }
 0xadd   : > { %15420 = vmatpush3.bf16.msra.mxu0 %v16916_v58  ;;  %v16947_v58 = vld [vmem:[%s21826_s15 + $0x70] sm:$0xff]  }
 0xade   : > { %15421 = vmatprep.subr.bf16.mxu0 %v16917_v36 }
 0xae1   : > { %15422 = vmatpush3.bf16.msra.mxu0 %v16917_v36  ;;  %v16948_v36 = vld [vmem:[%s21826_s15 + $0xb0] sm:$0xff]  }
 0xae2   : > { %15431 = vmatprep.subr.bf16.mxu0 %v16918_v4 }
 0xae4   : > { %15424 = vmatmul.mubr.msk.bf16.vlgmr.msra.gmra.mrb[48].mxu0 %vm20311_vm14, %v20771_v2  ;;  %v16923_v2 = vld [vmem:[%s21823_s12 + $0x1e8] sm:$0xff]  }
 0xae5   : > { %15427 = vmatprep.mubr.msk.bf16.mxu0 %vm20311_vm14, %v20786_v25  ;;  %15432 = vmatpush3.bf16.msra.mxu0 %v16918_v4  ;;  %v16926_v25 = vld [vmem:[%s21823_s12 + $0x200] sm:$0xff]   ;;  %v16949_v4 = vld [vmem:[%s21826_s15 + $0x78] sm:$0xff]  }
 0xae6   : > { %15433 = vmatprep.subr.bf16.mxu0 %v16919_v34 }
 0xae9   : > { %15434 = vmatpush3.bf16.msra.mxu0 %v16919_v34  ;;  %v16950_v34 = vld [vmem:[%s21826_s15 + $0xb8] sm:$0xff]  }
 0xaea   : > { %15435 = vmatprep.subr.bf16.mxu0 %v16920_v45 }
 0xaec   : > { %15428 = vmatmul.mubr.msk.bf16.gmra.mrb[52].mxu0 %vm18138_vm11, %v12768_v59 }
 0xaed   : > { %15436 = vmatpush3.bf16.msra.mxu0 %v16920_v45  ;;  %15447 = vmatprep.mubr.bf16.mxu0 %v20691_v57  ;;  %v16925_v57 = vld [vmem:[%s21823_s12 + $0x1f8] sm:$0xff]  }
 0xaee   : > { %15437 = vmatprep.subr.bf16.mxu0 %v16921_v27 }
 0xaf1   : > { %15438 = vmatpush3.bf16.msra.mxu0 %v16921_v27 }
 0xaf2   : > { %15439 = vmatprep.subr.bf16.mxu0 %v16922_v14 }
 0xaf5   : > { %15440 = vmatpush3.bf16.msra.mxu0 %v16922_v14 }
 0xaf6   : > { %15441 = vmatprep.subr.bf16.mxu0 %v16923_v2 }
 0xaf9   : > { %15442 = vmatpush3.bf16.msra.mxu0 %v16923_v2 }
 0xafa   : > { %15443 = vmatprep.subr.bf16.mxu0 %v16924_v16 }
 0xafd   : > { %15444 = vmatpush3.bf16.msra.mxu0 %v16924_v16 }
 0xafe   : > { %15445 = vmatprep.subr.bf16.mxu0 %v16925_v57 }
 0xb01   : > { %15446 = vmatpush3.bf16.msra.mxu0 %v16925_v57 }
 0xb02   : > { %15455 = vmatprep.subr.bf16.mxu0 %v16926_v25 }
 0xb04   : > { %15448 = vmatmul.mubr.bf16.vlgmr.msra.gmra.mrb[48].mxu0 %v20755_v15  ;;  %v16930_v15 = vld [vmem:[%s21823_s12 + $0x220] sm:$0xff]  }
 0xb05   : > { %15451 = vmatprep.mubr.bf16.mxu0 %v20759_v9  ;;  %15456 = vmatpush3.bf16.msra.mxu0 %v16926_v25  ;;  %v16932_v9 = vld [vmem:[%s21823_s12 + $0x230] sm:$0xff]   ;;  %v16951_v25 = vld [vmem:[%s21826_s15] sm:$0xff]  }
 0xb06   : > { %15457 = vmatprep.subr.bf16.mxu0 %v16927_v37 }
 0xb09   : > { %15458 = vmatpush3.bf16.msra.mxu0 %v16927_v37  ;;  %v16952_v37 = vld [vmem:[%s21826_s15 + $0x100] sm:$0xff]  }
 0xb0a   : > { %15459 = vmatprep.subr.bf16.mxu0 %v16928_v10 }
 0xb0c   : > { %15452 = vmatmul.mubr.bf16.gmra.mrb[52].mxu0 %v8984_v23 }
 0xb0d   : > { %15460 = vmatpush3.bf16.msra.mxu0 %v16928_v10  ;;  %15471 = vmatprep.mubr.msk.bf16.mxu0 %vm20382_vm13, %v20716_v30  ;;  %v16933_v30 = vld [vmem:[%s21823_s12 + $0x238] sm:$0xff]  }
 0xb0e   : > { %15461 = vmatprep.subr.bf16.mxu0 %v16929_v38 }
 0xb11   : > { %15462 = vmatpush3.bf16.msra.mxu0 %v16929_v38  ;;  %v16953_v38 = vld [vmem:[%s21826_s15 + $0x8] sm:$0xff]  }
 0xb12   : > { %15463 = vmatprep.subr.bf16.mxu0 %v16930_v15 }
 0xb15   : > { %15464 = vmatpush3.bf16.msra.mxu0 %v16930_v15  ;;  %v16954_v15 = vld [vmem:[%s21826_s15 + $0x108] sm:$0xff]  }
 0xb16   : > { %15465 = vmatprep.subr.bf16.mxu0 %v16931_v13 }
 0xb19   : > { %15466 = vmatpush3.bf16.msra.mxu0 %v16931_v13  ;;  %v16955_v13 = vld [vmem:[%s21826_s15 + $0x10] sm:$0xff]  }
 0xb1a   : > { %15467 = vmatprep.subr.bf16.mxu0 %v16932_v9 }
 0xb1d   : > { %15468 = vmatpush3.bf16.msra.mxu0 %v16932_v9  ;;  %v16956_v9 = vld [vmem:[%s21826_s15 + $0x110] sm:$0xff]  }
 0xb1e   : > { %15469 = vmatprep.subr.bf16.mxu0 %v16933_v30 }
 0xb21   : > { %15470 = vmatpush3.bf16.msra.mxu0 %v16933_v30  ;;  %v16957_v30 = vld [vmem:[%s21826_s15 + $0x18] sm:$0xff]  }
 0xb22   : > { %15531 = vmatprep.subr.bf16.mxu0 %v17158_v56 }
 0xb24   : > { %15472 = vmatmul.mubr.msk.bf16.vlgmr.msra.gmra.mrb[48].mxu0 %vm20382_vm13, %v20814_v18  ;;  %v16936_v18 = vld [vmem:[%s21826_s15 + $0x80] sm:$0xff]  }
 0xb25   : > { %15475 = vmatprep.mubr.msk.bf16.mxu0 %vm20382_vm13, %v20820_v41  ;;  %15532 = vmatpush3.bf16.msra.mxu0 %v16936_v18  ;;  %v16942_v41 = vld [vmem:[%s21826_s15 + $0x98] sm:$0xff]   ;;  %v16959_v18 = vld [vmem:[%s21826_s15 + $0x20] sm:$0xff]  }
 0xb26   : > { %15533 = vmatprep.subr.bf16.mxu0 %v17158_v56 }
 0xb29   : > { %15534 = vmatpush3.bf16.msra.mxu0 %v16938_v31  ;;  %v16960_v31 = vld [vmem:[%s21826_s15 + $0x120] sm:$0xff]  }
 0xb2a   : > { %15535 = vmatprep.subr.bf16.mxu0 %v17158_v56 }
 0xb2c   : > { %15476 = vmatmul.mubr.msk.bf16.gmra.mrb[52].mxu0 %vm20645_vm0, %v12828_v42  ;;  %v16958_v42 = vld [vmem:[%s21826_s15 + $0x118] sm:$0xff]  }
 0xb2d   : > { %15547 = vmatprep.mubr.msk.bf16.mxu0 %vm17159_vm3, %v17158_v56  ;;  %15536 = vmatpush3.bf16.msra.mxu0 %v16940_v54  ;;  %v16961_v54 = vld [vmem:[%s21826_s15 + $0x28] sm:$0xff]  }
 0xb2e   : > { %15537 = vmatprep.subr.bf16.mxu0 %v17158_v56 }
 0xb31   : > { %15538 = vmatpush3.bf16.msra.mxu0 %v16942_v41  ;;  %v16962_v41 = vld [vmem:[%s21826_s15 + $0x128] sm:$0xff]  }
 0xb32   : > { %15539 = vmatprep.subr.bf16.mxu0 %v17158_v56 }
 0xb35   : > { %15540 = vmatpush3.bf16.msra.mxu0 %v16944_v35  ;;  %v16963_v35 = vld [vmem:[%s21826_s15 + $0x30] sm:$0xff]  }
 0xb36   : > { %15541 = vmatprep.subr.bf16.mxu0 %v17158_v56 }
 0xb39   : > { %15542 = vmatpush3.bf16.msra.mxu0 %v16946_v7  ;;  %v16964_v7 = vld [vmem:[%s21826_s15 + $0x130] sm:$0xff]  }
 0xb3a   : > { %15543 = vmatprep.subr.bf16.mxu0 %v17158_v56 }
 0xb3d   : > { %15544 = vmatpush3.bf16.msra.mxu0 %v16948_v36  ;;  %v16998_v36 = vld [vmem:[%s21826_s15 + $0x238] sm:$0xff]  }
 0xb3e   : > { %15545 = vmatprep.subr.bf16.mxu0 %v17158_v56 }
 0xb41   : > { %15546 = vmatpush3.bf16.msra.mxu0 %v16950_v34  ;;  %v16999_v34 = vld [vmem:[%s21826_s15 + $0x1c0] sm:$0xff]  }
 0xb42   : > { %15571 = vmatprep.subr.bf16.mxu0 %v17158_v56 }
 0xbf7   : > { %v15473_v26 = vpop.f32.mrb[48].mxu0 }
 0xbf8   : > { %v9271_v39 = vadd.f32 %v15473_v26, %v12830_v0  ;;  %v9223_v53 = vpop.f32.mrb[49].mxu0  ;;  %v16966_v26 = vld [vmem:[%s21826_s15 + $0x138] sm:$0xff]  }
 0xbf9   : > { %v9269_v1 = vadd.f32 %v12830_v0, %v9223_v53  ;;  %v15474_v52 = vpop.f32.mrb[50].mxu0  ;;  %v16968_v53 = vld [vmem:[%s21826_s15 + $0x180] sm:$0xff]  }
 0xbfa   : > { %v9272_v55 = vadd.f32 %v15474_v52, %v12830_v0  ;;  %v9226_v29 = vpop.f32.mrb[51].mxu0  ;;  %v9279_v48 = vadd.f32 %v20126_v32, %v9271_v39  ;;  %v16967_v39 = vld [vmem:[%s21826_s15 + $0xc0] sm:$0xff]   ;;  %v16969_v52 = vld [vmem:[%s21826_s15 + $0xc8] sm:$0xff]  }
 0xbfb   : > { %v9270_v12 = vadd.f32 %v12830_v0, %v9226_v29  ;;  %v9277_v40 = vadd.f32 %v20108_v19, %v9269_v1  ;;  %v16971_v29 = vld [vmem:[%s21826_s15 + $0xd0] sm:$0xff]  }
 0xbfc   : > { %v9280_v62 = vadd.f32 %v20130_v43, %v9272_v55  ;;  %v16970_v55 = vld [vmem:[%s21826_s15 + $0x188] sm:$0xff]  }
 0xbfd   : > { %v9278_v33 = vadd.f32 %v20112_v21, %v9270_v12  ;;  %v16972_v12 = vld [vmem:[%s21826_s15 + $0x190] sm:$0xff]  }
 0xbfe   : > { %v9288_v47 = vpack.c.bf16 %v9280_v62, %v9279_v48  ;;  %v16973_v48 = vld [vmem:[%s21826_s15 + $0xd8] sm:$0xff]  }
 0xbff   : > { %v9287_v8 = vpack.c.bf16 %v9278_v33, %v9277_v40  ;;  %v15477_v63 = vpop.f32.mrb[52].mxu0  ;;  %v16974_v62 = vld [vmem:[%s21826_s15 + $0x198] sm:$0xff]   ;;  %v16975_v40 = vld [vmem:[%s21826_s15 + $0xe0] sm:$0xff]  }
 0xc00   : > { %v9275_v51 = vadd.f32 %v15477_v63, %v12830_v0  ;;  %v9239_v3 = vpop.f32.mrb[53].mxu0  ;;  %v16976_v33 = vld [vmem:[%s21826_s15 + $0x1a0] sm:$0xff]   ;;  %v16979_v63 = vld [vmem:[%s21826_s15 + $0xf0] sm:$0xff]  }
 0xc01   : > { %v9273_v28 = vadd.f32 %v12830_v0, %v9239_v3  ;;  %v15478_v61 = vpop.f32.mrb[54].mxu0  ;;  %15480 = vmatpush3.bf16.msra.mxu1 %v9287_v8  ;;  %v16978_v8 = vld [vmem:[%s21826_s15 + $0x1a8] sm:$0xff]   ;;  %v16981_v3 = vld [vmem:[%s21826_s15 + $0xf8] sm:$0xff]  }
 0xc02   : > { %v9276_v22 = vadd.f32 %v15478_v61, %v12830_v0  ;;  %v9242_v44 = vpop.f32.mrb[55].mxu0  ;;  %15481 = vmatprep.subr.bf16.mxu1 %v17158_v56  ;;  %v9283_v32 = vadd.f32 %v20200_v17, %v9275_v51  ;;  %v16939_v17 = vld [vmem:[%s21826_s15 + $0x50] sm:$0xff]   ;;  %v16983_v61 = vld [vmem:[%s21826_s15 + $0x140] sm:$0xff]  }
 0xc03   : > { %v9274_v20 = vadd.f32 %v12830_v0, %v9242_v44  ;;  %v9281_v19 = vadd.f32 %v20161_v50, %v9273_v28  ;;  %v16935_v50 = vld [vmem:[%s21826_s15 + $0x40] sm:$0xff]   ;;  %v16965_v0 = vld [vmem:[%s21826_s15 + $0x38] sm:$0xff]   ;;  %v16980_v51 = vld [vmem:[%s21826_s15 + $0x1b0] sm:$0xff]  }
 0xc04   : > { %v9284_v43 = vadd.f32 %v20211_v60, %v9276_v22  ;;  %v16941_v60 = vld [vmem:[%s21826_s15 + $0x58] sm:$0xff]   ;;  %v16984_v22 = vld [vmem:[%s21826_s15 + $0x200] sm:$0xff]  }
 0xc05   : > { %v9282_v21 = vadd.f32 %v20172_v24, %v9274_v20  ;;  %15482 = vmatpush3.bf16.msra.mxu1 %v9288_v47  ;;  %v16937_v24 = vld [vmem:[%s21826_s15 + $0x48] sm:$0xff]   ;;  %v16982_v28 = vld [vmem:[%s21826_s15 + $0x1b8] sm:$0xff]  }
 0xc06   : > { %v9290_v46 = vpack.c.bf16 %v9284_v43, %v9283_v32  ;;  %15483 = vmatprep.subr.bf16.mxu1 %v17158_v56  ;;  %v16977_v47 = vld [vmem:[%s21826_s15 + $0xe8] sm:$0xff]  }
 0xc07   : > { %v9289_v49 = vpack.c.bf16 %v9282_v21, %v9281_v19  ;;  %v16985_v32 = vld [vmem:[%s21826_s15 + $0x148] sm:$0xff]   ;;  %v16987_v19 = vld [vmem:[%s21826_s15 + $0x150] sm:$0xff]  }
 0xc08   : > { %v16986_v43 = vld [vmem:[%s21826_s15 + $0x208] sm:$0xff]   ;;  %v16988_v21 = vld [vmem:[%s21826_s15 + $0x210] sm:$0xff]  }
 0xc09   : > { %15484 = vmatpush3.bf16.msra.mxu1 %v9289_v49  ;;  %v16990_v49 = vld [vmem:[%s21826_s15 + $0x218] sm:$0xff]  }
 0xc0a   : > { %15485 = vmatprep.subr.bf16.mxu1 %v17158_v56 }
 0xc0d   : > { %15486 = vmatpush3.bf16.msra.mxu1 %v9290_v46  ;;  %v16989_v46 = vld [vmem:[%s21826_s15 + $0x158] sm:$0xff]  }
 0xc0e   : > { %15491 = vmatprep.subr.bf16.mxu1 %v17158_v56 }
 0xc10   : > { %15488 = vmatmul.mubr.msk.bf16.vlgmr.msra.gmra.mrb[72].mxu1 %vm9296_vm4, %v16934_v11  ;;  %v16991_v11 = vld [vmem:[%s21826_s15 + $0x160] sm:$0xff]  }
 0xc11   : > { %15492 = vmatpush3.bf16.msra.mxu1 %v16935_v50  ;;  %15507 = vmatprep.mubr.msk.bf16.mxu1 %vm17159_vm3, %v17158_v56  ;;  %v16992_v50 = vld [vmem:[%s21826_s15 + $0x220] sm:$0xff]  }
 0xc12   : > { %15493 = vmatprep.subr.bf16.mxu1 %v17158_v56 }
 0xc15   : > { %15494 = vmatpush3.bf16.msra.mxu1 %v16937_v24  ;;  %v16993_v24 = vld [vmem:[%s21826_s15 + $0x168] sm:$0xff]  }
 0xc16   : > { %15495 = vmatprep.subr.bf16.mxu1 %v17158_v56 }
 0xc19   : > { %15496 = vmatpush3.bf16.msra.mxu1 %v16939_v17  ;;  %v16994_v17 = vld [vmem:[%s21826_s15 + $0x228] sm:$0xff]  }
 0xc1a   : > { %15497 = vmatprep.subr.bf16.mxu1 %v17158_v56 }
 0xc1d   : > { %15498 = vmatpush3.bf16.msra.mxu1 %v16941_v60  ;;  %v16995_v60 = vld [vmem:[%s21826_s15 + $0x170] sm:$0xff]  }
 0xc1e   : > { %15499 = vmatprep.subr.bf16.mxu1 %v17158_v56 }
 0xc21   : > { %15500 = vmatpush3.bf16.msra.mxu1 %v16943_v6  ;;  %v16996_v6 = vld [vmem:[%s21826_s15 + $0x230] sm:$0xff]  }
 0xc22   : > { %15501 = vmatprep.subr.bf16.mxu1 %v17158_v56 }
 0xc25   : > { %15502 = vmatpush3.bf16.msra.mxu1 %v16945_v5 }
 0xc26   : > { %15503 = vmatprep.subr.bf16.mxu1 %v17158_v56 }
 0xc29   : > { %15504 = vmatpush3.bf16.msra.mxu1 %v16947_v58  ;;  %v16997_v58 = vld [vmem:[%s21826_s15 + $0x178] sm:$0xff]  }
 0xc2a   : > { %15505 = vmatprep.subr.bf16.mxu1 %v17158_v56 }
 0xc2d   : > { %15506 = vmatpush3.bf16.msra.mxu1 %v16949_v4 }
 0xc2e   : > { %15511 = vmatprep.subr.bf16.mxu1 %v17158_v56 }
 0xce3   : > { %v9334_v45 = vpop.f32.mrb[72].mxu1 }
 0xce4   : > { %vm9341_vm11 = vcmp.ge.f32.partialorder %v9334_v45, 0.0  ;;  %v9343_v59 = vmul.f32 0.1, %v9334_v45  ;;  %v15489_v27 = vpop.f32.mrb[73].mxu1 }
 0xce5   : > { %v21217_v14 = vpop.f32.mrb[74].mxu1 }
 0xce6   : > { %v9345_v2 = vsel %vm9341_vm11, %v9334_v45, %v9343_v59  ;;  %v15490_v16 = vpop.f32.mrb[75].mxu1  ;;  %v9344_v5 = vmul.f32 0.1, %v21217_v14  ;;  %vm9342_vm12 = vcmp.ge.f32.partialorder %v21217_v14, 0.0  ;;  %v17000_v45 = vld [vmem:[%s21826_s15 + $0x280] sm:$0xff]  }
 0xce7   : > { %v21219_v57 = vpack.c.bf16 %v9345_v2, %v9345_v2  ;;  %v17002_v2 = vld [vmem:[%s21826_s15 + $0x288] sm:$0xff]   ;;  %v17003_v16 = vld [vmem:[%s21826_s15 + $0x1d0] sm:$0xff]  }
 0xce8   : > { %v9346_v4 = vsel %vm9342_vm12, %v21217_v14, %v9344_v5  ;;  %v17001_v14 = vld [vmem:[%s21826_s15 + $0x1c8] sm:$0xff]   ;;  %v17050_v5 = vld [vmem:[%s21826_s15 + $0x358] sm:$0xff]  }
 0xce9   : > { %v21228_v10 = vshrl.u32 %v21219_v57, 16  ;;  %v9579_v23 = vrot.slane %v21219_v57, 1  ;;  %v9795_v1 = vrot.slane %v21219_v57, 2  ;;  %v10011_v20 = vrot.slane %v21219_v57, 3 }
 0xcea   : > { %v21441_v59 = vpack.c.bf16 %v9346_v4, %v9346_v4 }
 0xceb   : > { %15508 = vmatmul.mubr.bf16.vlgmr.msra.gmra.mrb[76].mxu1 %v21228_v10  ;;  %15548 = vmatmul.mubr.bf16.vlgmr.msra.gmra.mrb[56].mxu0 %v9579_v23  ;;  %v9687_v44 = vrot.slane %v21228_v10, 1  ;;  %v9903_v27 = vrot.slane %v21228_v10, 2  ;;  %v17007_v23 = vld [vmem:[%s21826_s15 + $0x1e0] sm:$0xff]  }
 0xcec   : > { %15512 = vmatpush3.bf16.msra.mxu1 %v16951_v25  ;;  %15572 = vmatpush3.bf16.msra.mxu0 %v16952_v37  ;;  %v17005_v25 = vld [vmem:[%s21826_s15 + $0x1d8] sm:$0xff]  }
 0xced   : > { %15513 = vmatprep.subr.bf16.mxu1 %v17158_v56  ;;  %15573 = vmatprep.subr.bf16.mxu0 %v17158_v56  ;;  %v17006_v37 = vld [vmem:[%s21826_s15 + $0x298] sm:$0xff]  }
 0xcee   : > { %15527 = vmatprep.mubr.msk.bf16.mxu1 %vm17159_vm3, %v17158_v56  ;;  %15587 = vmatprep.mubr.msk.bf16.mxu0 %vm17159_vm3, %v17158_v56 }
 0xcf0   : > { %15514 = vmatpush3.bf16.msra.mxu1 %v16953_v38  ;;  %15574 = vmatpush3.bf16.msra.mxu0 %v16954_v15  ;;  %v17008_v38 = vld [vmem:[%s21826_s15 + $0x2a0] sm:$0xff]   ;;  %v17009_v15 = vld [vmem:[%s21826_s15 + $0x1e8] sm:$0xff]  }
 0xcf1   : > { %15515 = vmatprep.subr.bf16.mxu1 %v17158_v56  ;;  %15575 = vmatprep.subr.bf16.mxu0 %v17158_v56 }
 0xcf4   : > { %15516 = vmatpush3.bf16.msra.mxu1 %v16955_v13  ;;  %15576 = vmatpush3.bf16.msra.mxu0 %v16956_v9  ;;  %v17010_v13 = vld [vmem:[%s21826_s15 + $0x2a8] sm:$0xff]   ;;  %v17011_v9 = vld [vmem:[%s21826_s15 + $0x1f0] sm:$0xff]  }
 0xcf5   : > { %15517 = vmatprep.subr.bf16.mxu1 %v17158_v56  ;;  %15577 = vmatprep.subr.bf16.mxu0 %v17158_v56 }
 0xcf8   : > { %15518 = vmatpush3.bf16.msra.mxu1 %v16957_v30  ;;  %15578 = vmatpush3.bf16.msra.mxu0 %v16958_v42  ;;  %v17012_v30 = vld [vmem:[%s21826_s15 + $0x2b0] sm:$0xff]   ;;  %v17013_v42 = vld [vmem:[%s21826_s15 + $0x1f8] sm:$0xff]  }
 0xcf9   : > { %15519 = vmatprep.subr.bf16.mxu1 %v17158_v56  ;;  %15579 = vmatprep.subr.bf16.mxu0 %v17158_v56 }
 0xcfc   : > { %15520 = vmatpush3.bf16.msra.mxu1 %v16959_v18  ;;  %15580 = vmatpush3.bf16.msra.mxu0 %v16960_v31  ;;  %v17014_v18 = vld [vmem:[%s21826_s15 + $0x2b8] sm:$0xff]   ;;  %v17015_v31 = vld [vmem:[%s21826_s15 + $0x240] sm:$0xff]  }
 0xcfd   : > { %15521 = vmatprep.subr.bf16.mxu1 %v17158_v56  ;;  %15581 = vmatprep.subr.bf16.mxu0 %v17158_v56 }
 0xd00   : > { %15522 = vmatpush3.bf16.msra.mxu1 %v16961_v54  ;;  %15582 = vmatpush3.bf16.msra.mxu0 %v16962_v41  ;;  %v17016_v54 = vld [vmem:[%s21826_s15 + $0x300] sm:$0xff]   ;;  %v10119_v41 = vrot.slane %v21228_v10, 3  ;;  %v17019_v10 = vld [vmem:[%s21826_s15 + $0x250] sm:$0xff]  }
 0xd01   : > { %15523 = vmatprep.subr.bf16.mxu1 %v17158_v56  ;;  %15583 = vmatprep.subr.bf16.mxu0 %v17158_v56 }
 0xd04   : > { %15524 = vmatpush3.bf16.msra.mxu1 %v16963_v35  ;;  %15584 = vmatpush3.bf16.msra.mxu0 %v16964_v7  ;;  %v10445_v35 = vrot.slane %v21441_v59, 1  ;;  %v17017_v7 = vld [vmem:[%s21826_s15 + $0x248] sm:$0xff]  }
 0xd05   : > { %15525 = vmatprep.subr.bf16.mxu1 %v17158_v56  ;;  %15585 = vmatprep.subr.bf16.mxu0 %v17158_v56 }
 0xd08   : > { %15526 = vmatpush3.bf16.msra.mxu1 %v16965_v0  ;;  %15586 = vmatpush3.bf16.msra.mxu0 %v16966_v26  ;;  %v17018_v0 = vld [vmem:[%s21826_s15 + $0x308] sm:$0xff]   ;;  %v17020_v26 = vld [vmem:[%s21826_s15 + $0x310] sm:$0xff]  }
 0xd09   : > { %15551 = vmatprep.subr.bf16.mxu1 %v17158_v56  ;;  %15611 = vmatprep.subr.bf16.mxu0 %v17158_v56 }
 0xd0b   : > { %15528 = vmatmul.mubr.bf16.vlgmr.msra.gmra.mrb[80].mxu1 %v21219_v57  ;;  %15588 = vmatmul.mubr.bf16.vlgmr.msra.gmra.mrb[60].mxu0 %v9795_v1  ;;  %v17004_v57 = vld [vmem:[%s21826_s15 + $0x290] sm:$0xff]   ;;  %v17023_v1 = vld [vmem:[%s21826_s15 + $0x260] sm:$0xff]  }
 0xd0c   : > { %15552 = vmatpush3.bf16.msra.mxu1 %v16967_v39  ;;  %15612 = vmatpush3.bf16.msra.mxu0 %v16968_v53  ;;  %v17021_v39 = vld [vmem:[%s21826_s15 + $0x258] sm:$0xff]  }
 0xd0d   : > { %15553 = vmatprep.subr.bf16.mxu1 %v17158_v56  ;;  %15613 = vmatprep.subr.bf16.mxu0 %v17158_v56  ;;  %v17022_v53 = vld [vmem:[%s21826_s15 + $0x318] sm:$0xff]  }
 0xd0e   : > { %15567 = vmatprep.mubr.msk.bf16.mxu1 %vm17159_vm3, %v17158_v56  ;;  %15627 = vmatprep.mubr.msk.bf16.mxu0 %vm17159_vm3, %v17158_v56 }
 0xd10   : > { %15554 = vmatpush3.bf16.msra.mxu1 %v16969_v52  ;;  %15614 = vmatpush3.bf16.msra.mxu0 %v16970_v55  ;;  %v17024_v52 = vld [vmem:[%s21826_s15 + $0x320] sm:$0xff]   ;;  %v17025_v55 = vld [vmem:[%s21826_s15 + $0x268] sm:$0xff]  }
 0xd11   : > { %15555 = vmatprep.subr.bf16.mxu1 %v17158_v56  ;;  %15615 = vmatprep.subr.bf16.mxu0 %v17158_v56 }
 0xd14   : > { %15556 = vmatpush3.bf16.msra.mxu1 %v16971_v29  ;;  %15616 = vmatpush3.bf16.msra.mxu0 %v16972_v12  ;;  %v17026_v29 = vld [vmem:[%s21826_s15 + $0x328] sm:$0xff]   ;;  %v17027_v12 = vld [vmem:[%s21826_s15 + $0x270] sm:$0xff]  }
 0xd15   : > { %15557 = vmatprep.subr.bf16.mxu1 %v17158_v56  ;;  %15617 = vmatprep.subr.bf16.mxu0 %v17158_v56 }
 0xd18   : > { %15558 = vmatpush3.bf16.msra.mxu1 %v16973_v48  ;;  %15618 = vmatpush3.bf16.msra.mxu0 %v16974_v62  ;;  %v17028_v48 = vld [vmem:[%s21826_s15 + $0x330] sm:$0xff]   ;;  %v17029_v62 = vld [vmem:[%s21826_s15 + $0x278] sm:$0xff]  }
 0xd19   : > { %15559 = vmatprep.subr.bf16.mxu1 %v17158_v56  ;;  %15619 = vmatprep.subr.bf16.mxu0 %v17158_v56 }
 0xd1c   : > { %15560 = vmatpush3.bf16.msra.mxu1 %v16975_v40  ;;  %15620 = vmatpush3.bf16.msra.mxu0 %v16976_v33  ;;  %v17030_v40 = vld [vmem:[%s21826_s15 + $0x338] sm:$0xff]   ;;  %v17031_v33 = vld [vmem:[%s21826_s15 + $0x2c0] sm:$0xff]  }
 0xd1d   : > { %15561 = vmatprep.subr.bf16.mxu1 %v17158_v56  ;;  %15621 = vmatprep.subr.bf16.mxu0 %v17158_v56 }
 0xd20   : > { %15562 = vmatpush3.bf16.msra.mxu1 %v16977_v47  ;;  %15622 = vmatpush3.bf16.msra.mxu0 %v16978_v8  ;;  %v17032_v47 = vld [vmem:[%s21826_s15 + $0x380] sm:$0xff]   ;;  %v21584_v8 = vshrl.u32 %v21441_v59, 16 }
 0xd21   : > { %15563 = vmatprep.subr.bf16.mxu1 %v17158_v56  ;;  %15623 = vmatprep.subr.bf16.mxu0 %v17158_v56 }
 0xd24   : > { %15564 = vmatpush3.bf16.msra.mxu1 %v16979_v63  ;;  %15624 = vmatpush3.bf16.msra.mxu0 %v16980_v51  ;;  %v10661_v63 = vrot.slane %v21441_v59, 2  ;;  %v17033_v51 = vld [vmem:[%s21826_s15 + $0x2c8] sm:$0xff]  }
 0xd25   : > { %15565 = vmatprep.subr.bf16.mxu1 %v17158_v56  ;;  %15625 = vmatprep.subr.bf16.mxu0 %v17158_v56 }
 0xd28   : > { %15566 = vmatpush3.bf16.msra.mxu1 %v16981_v3  ;;  %15626 = vmatpush3.bf16.msra.mxu0 %v16982_v28  ;;  %v17034_v3 = vld [vmem:[%s21826_s15 + $0x388] sm:$0xff]   ;;  %v17035_v28 = vld [vmem:[%s21826_s15 + $0x2d0] sm:$0xff]  }
 0xd29   : > { %15591 = vmatprep.subr.bf16.mxu1 %v17158_v56  ;;  %15651 = vmatprep.subr.bf16.mxu0 %v17158_v56 }
 0xd2b   : > { %15568 = vmatmul.mubr.bf16.vlgmr.msra.gmra.mrb[84].mxu1 %v9687_v44  ;;  %15628 = vmatmul.mubr.bf16.vlgmr.msra.gmra.mrb[64].mxu0 %v10011_v20  ;;  %v17038_v44 = vld [vmem:[%s21826_s15 + $0x398] sm:$0xff]   ;;  %v17039_v20 = vld [vmem:[%s21826_s15 + $0x2e0] sm:$0xff]  }
 0xd2c   : > { %15592 = vmatpush3.bf16.msra.mxu1 %v16983_v61  ;;  %15652 = vmatpush3.bf16.msra.mxu0 %v16984_v22  ;;  %v17036_v61 = vld [vmem:[%s21826_s15 + $0x390] sm:$0xff]   ;;  %v17037_v22 = vld [vmem:[%s21826_s15 + $0x2d8] sm:$0xff]  }
 0xd2d   : > { %15593 = vmatprep.subr.bf16.mxu1 %v17158_v56  ;;  %15653 = vmatprep.subr.bf16.mxu0 %v17158_v56 }
 0xd2e   : > { %15607 = vmatprep.mubr.msk.bf16.mxu1 %vm17159_vm3, %v17158_v56  ;;  %15667 = vmatprep.mubr.msk.bf16.mxu0 %vm17159_vm3, %v17158_v56 }
 0xd30   : > { %15594 = vmatpush3.bf16.msra.mxu1 %v16985_v32  ;;  %15654 = vmatpush3.bf16.msra.mxu0 %v16986_v43  ;;  %v17040_v32 = vld [vmem:[%s21826_s15 + $0x3a0] sm:$0xff]   ;;  %v17041_v43 = vld [vmem:[%s21826_s15 + $0x2e8] sm:$0xff]  }
 0xd31   : > { %15595 = vmatprep.subr.bf16.mxu1 %v17158_v56  ;;  %15655 = vmatprep.subr.bf16.mxu0 %v17158_v56 }
 0xd34   : > { %15596 = vmatpush3.bf16.msra.mxu1 %v16987_v19  ;;  %15656 = vmatpush3.bf16.msra.mxu0 %v16988_v21  ;;  %v17042_v19 = vld [vmem:[%s21826_s15 + $0x3a8] sm:$0xff]   ;;  %v17043_v21 = vld [vmem:[%s21826_s15 + $0x2f0] sm:$0xff]  }
 0xd35   : > { %15597 = vmatprep.subr.bf16.mxu1 %v17158_v56  ;;  %15657 = vmatprep.subr.bf16.mxu0 %v17158_v56 }
 0xd38   : > { %15598 = vmatpush3.bf16.msra.mxu1 %v16989_v46  ;;  %15658 = vmatpush3.bf16.msra.mxu0 %v16990_v49  ;;  %v17044_v46 = vld [vmem:[%s21826_s15 + $0x3b0] sm:$0xff]   ;;  %v17045_v49 = vld [vmem:[%s21826_s15 + $0x2f8] sm:$0xff]  }
 0xd39   : > { %15599 = vmatprep.subr.bf16.mxu1 %v17158_v56  ;;  %15659 = vmatprep.subr.bf16.mxu0 %v17158_v56 }
 0xd3c   : > { %15600 = vmatpush3.bf16.msra.mxu1 %v16991_v11  ;;  %15660 = vmatpush3.bf16.msra.mxu0 %v16992_v50  ;;  %v17046_v11 = vld [vmem:[%s21826_s15 + $0x3b8] sm:$0xff]   ;;  %v17047_v50 = vld [vmem:[%s21826_s15 + $0x340] sm:$0xff]  }
 0xd3d   : > { %15601 = vmatprep.subr.bf16.mxu1 %v17158_v56  ;;  %15661 = vmatprep.subr.bf16.mxu0 %v17158_v56 }
 0xd40   : > { %15602 = vmatpush3.bf16.msra.mxu1 %v16993_v24  ;;  %15662 = vmatpush3.bf16.msra.mxu0 %v16994_v17  ;;  %v10553_v24 = vrot.slane %v21584_v8, 1  ;;  %v10877_v17 = vrot.slane %v21441_v59, 3 }
 0xd41   : > { %15603 = vmatprep.subr.bf16.mxu1 %v17158_v56  ;;  %15663 = vmatprep.subr.bf16.mxu0 %v17158_v56 }
 0xd44   : > { %15604 = vmatpush3.bf16.msra.mxu1 %v16995_v60  ;;  %15664 = vmatpush3.bf16.msra.mxu0 %v16996_v6  ;;  %v17048_v60 = vld [vmem:[%s21826_s15 + $0x348] sm:$0xff]   ;;  %v17049_v6 = vld [vmem:[%s21826_s15 + $0x350] sm:$0xff]  }
 0xd45   : > { %15605 = vmatprep.subr.bf16.mxu1 %v17158_v56  ;;  %15665 = vmatprep.subr.bf16.mxu0 %v17158_v56 }
 0xd48   : > { %15606 = vmatpush3.bf16.msra.mxu1 %v16997_v58  ;;  %15666 = vmatpush3.bf16.msra.mxu0 %v16998_v36  ;;  %v17051_v58 = vld [vmem:[%s21826_s15 + $0x360] sm:$0xff]   ;;  %v17052_v36 = vld [vmem:[%s21826_s15 + $0x368] sm:$0xff]  }
 0xd49   : > { %15631 = vmatprep.subr.bf16.mxu1 %v17158_v56  ;;  %15691 = vmatprep.subr.bf16.mxu0 %v17158_v56 }
 0xd4b   : > { %15608 = vmatmul.mubr.bf16.vlgmr.msra.gmra.mrb[88].mxu1 %v9903_v27  ;;  %15668 = vmatmul.mubr.bf16.vlgmr.msra.gmra.mrb[68].mxu0 %v21441_v59  ;;  %v17053_v27 = vld [vmem:[%s21826_s15 + $0x370] sm:$0xff]  }
 0xd4c   : > { %15632 = vmatpush3.bf16.msra.mxu1 %v16999_v34  ;;  %15692 = vmatpush3.bf16.msra.mxu0 %v17000_v45 }
 0xd4d   : > { %15633 = vmatprep.subr.bf16.mxu1 %v17158_v56  ;;  %15693 = vmatprep.subr.bf16.mxu0 %v17158_v56 }
 0xd4e   : > { %15647 = vmatprep.mubr.msk.bf16.mxu1 %vm17159_vm3, %v17158_v56  ;;  %15707 = vmatprep.mubr.msk.bf16.mxu0 %vm17159_vm3, %v17158_v56 }
 0xd50   : > { %15634 = vmatpush3.bf16.msra.mxu1 %v17001_v14  ;;  %15694 = vmatpush3.bf16.msra.mxu0 %v17002_v2 }
 0xd51   : > { %15635 = vmatprep.subr.bf16.mxu1 %v17158_v56  ;;  %15695 = vmatprep.subr.bf16.mxu0 %v17158_v56 }
 0xd54   : > { %15636 = vmatpush3.bf16.msra.mxu1 %v17003_v16  ;;  %15696 = vmatpush3.bf16.msra.mxu0 %v17004_v57 }
 0xd55   : > { %15637 = vmatprep.subr.bf16.mxu1 %v17158_v56  ;;  %15697 = vmatprep.subr.bf16.mxu0 %v17158_v56 }
 0xd58   : > { %15638 = vmatpush3.bf16.msra.mxu1 %v17005_v25  ;;  %15698 = vmatpush3.bf16.msra.mxu0 %v17006_v37  ;;  %v17054_v25 = vld [vmem:[%s21826_s15 + $0x378] sm:$0xff]   ;;  %v17055_v37 = vld [vmem:[%s21826_s15 + $0x3c0] sm:$0xff]  }
 0xd59   : > { %15639 = vmatprep.subr.bf16.mxu1 %v17158_v56  ;;  %15699 = vmatprep.subr.bf16.mxu0 %v17158_v56 }
 0xd5c   : > { %15640 = vmatpush3.bf16.msra.mxu1 %v17007_v23  ;;  %15700 = vmatpush3.bf16.msra.mxu0 %v17008_v38  ;;  %v10769_v23 = vrot.slane %v21584_v8, 2  ;;  %v17056_v38 = vld [vmem:[%s21826_s15 + $0x3c8] sm:$0xff]  }
 0xd5d   : > { %15641 = vmatprep.subr.bf16.mxu1 %v17158_v56  ;;  %15701 = vmatprep.subr.bf16.mxu0 %v17158_v56 }
 0xd60   : > { %15642 = vmatpush3.bf16.msra.mxu1 %v17009_v15  ;;  %15702 = vmatpush3.bf16.msra.mxu0 %v17010_v13  ;;  %v17057_v15 = vld [vmem:[%s21826_s15 + $0x3d0] sm:$0xff]   ;;  %v17058_v13 = vld [vmem:[%s21826_s15 + $0x3d8] sm:$0xff]  }
 0xd61   : > { %15643 = vmatprep.subr.bf16.mxu1 %v17158_v56  ;;  %15703 = vmatprep.subr.bf16.mxu0 %v17158_v56 }
 0xd64   : > { %15644 = vmatpush3.bf16.msra.mxu1 %v17011_v9  ;;  %15704 = vmatpush3.bf16.msra.mxu0 %v17012_v30  ;;  %v17059_v9 = vld [vmem:[%s21826_s15 + $0x3e0] sm:$0xff]   ;;  %v17060_v30 = vld [vmem:[%s21826_s15 + $0x3e8] sm:$0xff]  }
 0xd65   : > { %15645 = vmatprep.subr.bf16.mxu1 %v17158_v56  ;;  %15705 = vmatprep.subr.bf16.mxu0 %v17158_v56 }
 0xd68   : > { %15646 = vmatpush3.bf16.msra.mxu1 %v17013_v42  ;;  %15706 = vmatpush3.bf16.msra.mxu0 %v17014_v18 }
 0xd69   : > { %15671 = vmatprep.subr.bf16.mxu1 %v17158_v56  ;;  %15731 = vmatprep.subr.bf16.mxu0 %v17158_v56 }
 0xd6b   : > { %15648 = vmatmul.mubr.bf16.vlgmr.msra.gmra.mrb[92].mxu1 %v10119_v41  ;;  %15708 = vmatmul.mubr.bf16.vlgmr.msra.gmra.mrb[72].mxu0 %v10445_v35 }
 0xd6c   : > { %15672 = vmatpush3.bf16.msra.mxu1 %v17015_v31  ;;  %15732 = vmatpush3.bf16.msra.mxu0 %v17016_v54 }
 0xd6d   : > { %15673 = vmatprep.subr.bf16.mxu1 %v17158_v56  ;;  %15733 = vmatprep.subr.bf16.mxu0 %v17158_v56 }
 0xd6e   : > { %15687 = vmatprep.mubr.msk.bf16.mxu1 %vm17159_vm3, %v17158_v56  ;;  %15747 = vmatprep.mubr.msk.bf16.mxu0 %vm17159_vm3, %v17158_v56 }
 0xd70   : > { %15674 = vmatpush3.bf16.msra.mxu1 %v17017_v7  ;;  %15734 = vmatpush3.bf16.msra.mxu0 %v17018_v0  ;;  %v17061_v0 = vld [vmem:[%s21826_s15 + $0x3f0] sm:$0xff]  }
 0xd71   : > { %15675 = vmatprep.subr.bf16.mxu1 %v17158_v56  ;;  %15735 = vmatprep.subr.bf16.mxu0 %v17158_v56 }
 0xd74   : > { %15676 = vmatpush3.bf16.msra.mxu1 %v17019_v10  ;;  %15736 = vmatpush3.bf16.msra.mxu0 %v17020_v26 }
 0xd75   : > { %15677 = vmatprep.subr.bf16.mxu1 %v17158_v56  ;;  %15737 = vmatprep.subr.bf16.mxu0 %v17158_v56 }
 0xd78   : > { %15678 = vmatpush3.bf16.msra.mxu1 %v17021_v39  ;;  %15738 = vmatpush3.bf16.msra.mxu0 %v17022_v53  ;;  %v17062_v53 = vld [vmem:[%s21826_s15 + $0x3f8] sm:$0xff]  }
 0xd79   : > { %15679 = vmatprep.subr.bf16.mxu1 %v17158_v56  ;;  %15739 = vmatprep.subr.bf16.mxu0 %v17158_v56 }
 0xd7c   : > { %15680 = vmatpush3.bf16.msra.mxu1 %v17023_v1  ;;  %15740 = vmatpush3.bf16.msra.mxu0 %v17024_v52  ;;  %v10985_v1 = vrot.slane %v21584_v8, 3 }
 0xd7d   : > { %15681 = vmatprep.subr.bf16.mxu1 %v17158_v56  ;;  %15741 = vmatprep.subr.bf16.mxu0 %v17158_v56 }
 0xd80   : > { %15682 = vmatpush3.bf16.msra.mxu1 %v17025_v55  ;;  %15742 = vmatpush3.bf16.msra.mxu0 %v17026_v29 }
 0xd81   : > { %15683 = vmatprep.subr.bf16.mxu1 %v17158_v56  ;;  %15743 = vmatprep.subr.bf16.mxu0 %v17158_v56 }
 0xd84   : > { %15684 = vmatpush3.bf16.msra.mxu1 %v17027_v12  ;;  %15744 = vmatpush3.bf16.msra.mxu0 %v17028_v48 }
 0xd85   : > { %15685 = vmatprep.subr.bf16.mxu1 %v17158_v56  ;;  %15745 = vmatprep.subr.bf16.mxu0 %v17158_v56 }
 0xd88   : > { %15686 = vmatpush3.bf16.msra.mxu1 %v17029_v62  ;;  %15746 = vmatpush3.bf16.msra.mxu0 %v17030_v40 }
 0xd89   : > { %15711 = vmatprep.subr.bf16.mxu1 %v17158_v56  ;;  %15771 = vmatprep.subr.bf16.mxu0 %v17158_v56 }
 0xd8b   : > { %15688 = vmatmul.mubr.bf16.vlgmr.msra.gmra.mrb[96].mxu1 %v21584_v8  ;;  %15748 = vmatmul.mubr.bf16.vlgmr.msra.gmra.mrb[76].mxu0 %v10661_v63 }
 0xd8c   : > { %15712 = vmatpush3.bf16.msra.mxu1 %v17031_v33  ;;  %15772 = vmatpush3.bf16.msra.mxu0 %v17032_v47 }
 0xd8d   : > { %15713 = vmatprep.subr.bf16.mxu1 %v17158_v56  ;;  %15773 = vmatprep.subr.bf16.mxu0 %v17158_v56 }
 0xd8e   : > { %15727 = vmatprep.mubr.msk.bf16.mxu1 %vm17159_vm3, %v17158_v56  ;;  %15787 = vmatprep.mubr.msk.bf16.mxu0 %vm17159_vm3, %v17158_v56 }
 0xd90   : > { %15714 = vmatpush3.bf16.msra.mxu1 %v17033_v51  ;;  %15774 = vmatpush3.bf16.msra.mxu0 %v17034_v3 }
 0xd91   : > { %15715 = vmatprep.subr.bf16.mxu1 %v17158_v56  ;;  %15775 = vmatprep.subr.bf16.mxu0 %v17158_v56 }
 0xd94   : > { %15716 = vmatpush3.bf16.msra.mxu1 %v17035_v28  ;;  %15776 = vmatpush3.bf16.msra.mxu0 %v17036_v61 }
 0xd95   : > { %15717 = vmatprep.subr.bf16.mxu1 %v17158_v56  ;;  %15777 = vmatprep.subr.bf16.mxu0 %v17158_v56 }
 0xd98   : > { %15718 = vmatpush3.bf16.msra.mxu1 %v17037_v22  ;;  %15778 = vmatpush3.bf16.msra.mxu0 %v17038_v44 }
 0xd99   : > { %15719 = vmatprep.subr.bf16.mxu1 %v17158_v56  ;;  %15779 = vmatprep.subr.bf16.mxu0 %v17158_v56 }
 0xd9c   : > { %15720 = vmatpush3.bf16.msra.mxu1 %v17039_v20  ;;  %15780 = vmatpush3.bf16.msra.mxu0 %v17040_v32 }
 0xd9d   : > { %15721 = vmatprep.subr.bf16.mxu1 %v17158_v56  ;;  %15781 = vmatprep.subr.bf16.mxu0 %v17158_v56 }
 0xda0   : > { %15722 = vmatpush3.bf16.msra.mxu1 %v17041_v43  ;;  %15782 = vmatpush3.bf16.msra.mxu0 %v17042_v19  ;;  %v17063_v19 = vld [vmem:[%s21828_s17] sm:$0xff]  }
 0xda1   : > { %15723 = vmatprep.subr.bf16.mxu1 %v17158_v56  ;;  %15783 = vmatprep.subr.bf16.mxu0 %v17158_v56 }
 0xda4   : > { %15724 = vmatpush3.bf16.msra.mxu1 %v17043_v21  ;;  %15784 = vmatpush3.bf16.msra.mxu0 %v17044_v46  ;;  %v17064_v21 = vld [vmem:[%s21828_s17 + $0x8] sm:$0xff]   ;;  %v17065_v46 = vld [vmem:[%s21828_s17 + $0x10] sm:$0xff]  }
 0xda5   : > { %15725 = vmatprep.subr.bf16.mxu1 %v17158_v56  ;;  %15785 = vmatprep.subr.bf16.mxu0 %v17158_v56 }
 0xda8   : > { %15726 = vmatpush3.bf16.msra.mxu1 %v17045_v49  ;;  %15786 = vmatpush3.bf16.msra.mxu0 %v17046_v11  ;;  %v17066_v49 = vld [vmem:[%s21828_s17 + $0x18] sm:$0xff]   ;;  %v17067_v11 = vld [vmem:[%s21828_s17 + $0x20] sm:$0xff]  }
 0xda9   : > { %15751 = vmatprep.subr.bf16.mxu1 %v17158_v56  ;;  %15811 = vmatprep.subr.bf16.mxu0 %v17158_v56 }
 0xdab   : > { %15728 = vmatmul.mubr.bf16.vlgmr.msra.gmra.mrb[100].mxu1 %v10553_v24  ;;  %15788 = vmatmul.mubr.bf16.vlgmr.msra.gmra.mrb[80].mxu0 %v10877_v17 }
 0xdac   : > { %15752 = vmatpush3.bf16.msra.mxu1 %v17047_v50  ;;  %15767 = vmatprep.mubr.msk.bf16.mxu1 %vm17159_vm3, %v17158_v56  ;;  %v17068_v50 = vld [vmem:[%s21828_s17 + $0x28] sm:$0xff]  }
 0xdad   : > { %15753 = vmatprep.subr.bf16.mxu1 %v17158_v56  ;;  %15827 = vmatprep.mubr.msk.bf16.mxu0 %vm17159_vm3, %v17158_v56 }
 0xdae   : > { %15812 = vmatpush3.bf16.msra.mxu0 %v17063_v19 }
 0xdaf   : > { %15813 = vmatprep.subr.bf16.mxu0 %v17158_v56 }
 0xdb0   : > { %15754 = vmatpush3.bf16.msra.mxu1 %v17048_v60 }
 0xdb1   : > { %15755 = vmatprep.subr.bf16.mxu1 %v17158_v56 }
 0xdb2   : > { %15814 = vmatpush3.bf16.msra.mxu0 %v17064_v21 }
 0xdb3   : > { %15815 = vmatprep.subr.bf16.mxu0 %v17158_v56 }
 0xdb4   : > { %15756 = vmatpush3.bf16.msra.mxu1 %v17049_v6 }
 0xdb5   : > { %15757 = vmatprep.subr.bf16.mxu1 %v17158_v56 }
 0xdb6   : > { %15816 = vmatpush3.bf16.msra.mxu0 %v17065_v46 }
 0xdb7   : > { %15817 = vmatprep.subr.bf16.mxu0 %v17158_v56 }
 0xdb8   : > { %15758 = vmatpush3.bf16.msra.mxu1 %v17050_v5 }
 0xdb9   : > { %15759 = vmatprep.subr.bf16.mxu1 %v17158_v56 }
 0xdba   : > { %15818 = vmatpush3.bf16.msra.mxu0 %v17066_v49 }
 0xdbb   : > { %15819 = vmatprep.subr.bf16.mxu0 %v17158_v56 }
 0xdbc   : > { %15760 = vmatpush3.bf16.msra.mxu1 %v17051_v58 }
 0xdbd   : > { %15761 = vmatprep.subr.bf16.mxu1 %v17158_v56 }
 0xdbe   : > { %v9467_v4 = vpop.f32.mrb[76].mxu1  ;;  %v9663_v34 = vpop.f32.mrb[56].mxu0  ;;  %15820 = vmatpush3.bf16.msra.mxu0 %v17067_v11 }
 0xdbf   : > { %v15509_v45 = vpop.f32.mrb[77].mxu1  ;;  %v15549_v59 = vpop.f32.mrb[57].mxu0  ;;  %15821 = vmatprep.subr.bf16.mxu0 %v17158_v56 }
 0xdc0   : > { %15762 = vmatpush3.bf16.msra.mxu1 %v17052_v36  ;;  %v9470_v14 = vpop.f32.mrb[78].mxu1  ;;  %v9666_v2 = vpop.f32.mrb[58].mxu0  ;;  %v17069_v59 = vld [vmem:[%s21828_s17 + $0x30] sm:$0xff]  }
 0xdc1   : > { %15763 = vmatprep.subr.bf16.mxu1 %v17158_v56  ;;  %v15510_v16 = vpop.f32.mrb[79].mxu1  ;;  %v15550_v57 = vpop.f32.mrb[59].mxu0 }
 0xdc2   : > { %15822 = vmatpush3.bf16.msra.mxu0 %v17068_v50 }
 0xdc3   : > { %15823 = vmatprep.subr.bf16.mxu0 %v17158_v56 }
 0xdc4   : > { %15764 = vmatpush3.bf16.msra.mxu1 %v17053_v27  ;;  %v17070_v27 = vld [vmem:[%s21828_s17 + $0x38] sm:$0xff]  }
 0xdc5   : > { %15765 = vmatprep.subr.bf16.mxu1 %v17158_v56 }
 0xdc6   : > { %15824 = vmatpush3.bf16.msra.mxu0 %v17069_v59 }
 0xdc7   : > { %15825 = vmatprep.subr.bf16.mxu0 %v17158_v56 }
 0xdc8   : > { %15766 = vmatpush3.bf16.msra.mxu1 %v17054_v25 }
 0xdc9   : > { %15791 = vmatprep.subr.bf16.mxu1 %v17158_v56 }
 0xdca   : > { %15826 = vmatpush3.bf16.msra.mxu0 %v17070_v27 }
 0xdcb   : > { %15768 = vmatmul.mubr.bf16.vlgmr.msra.gmra.mrb[104].mxu1 %v10769_v23 }
 0xdcc   : > { %15792 = vmatpush3.bf16.msra.mxu1 %v17055_v37  ;;  %15807 = vmatprep.mubr.msk.bf16.mxu1 %vm17159_vm3, %v17158_v56 }
 0xdcd   : > { %15793 = vmatprep.subr.bf16.mxu1 %v17158_v56 }
 0xdd0   : > { %15794 = vmatpush3.bf16.msra.mxu1 %v17056_v38 }
 0xdd1   : > { %15795 = vmatprep.subr.bf16.mxu1 %v17158_v56 }
 0xdd4   : > { %15796 = vmatpush3.bf16.msra.mxu1 %v17057_v15 }
 0xdd5   : > { %15797 = vmatprep.subr.bf16.mxu1 %v17158_v56 }
 0xdd8   : > { %15798 = vmatpush3.bf16.msra.mxu1 %v17058_v13 }
 0xdd9   : > { %15799 = vmatprep.subr.bf16.mxu1 %v17158_v56 }
 0xddc   : > { %15800 = vmatpush3.bf16.msra.mxu1 %v17059_v9 }
 0xddd   : > { %15801 = vmatprep.subr.bf16.mxu1 %v17158_v56 }
 0xdde   : > { %v9555_v42 = vpop.f32.mrb[80].mxu1  ;;  %v9879_v18 = vpop.f32.mrb[60].mxu0 }
 0xddf   : > { %v9556_v31 = vadd.f32 %v9555_v42, %v9467_v4  ;;  %v15529_v54 = vpop.f32.mrb[81].mxu1  ;;  %v15589_v41 = vpop.f32.mrb[61].mxu0 }
 0xde0   : > { %v9558_v35 = vpop.f32.mrb[82].mxu1  ;;  %v9882_v7 = vpop.f32.mrb[62].mxu0  ;;  %15802 = vmatpush3.bf16.msra.mxu1 %v17060_v30 }
 0xde1   : > { %v15530_v10 = vpop.f32.mrb[83].mxu1  ;;  %v15590_v26 = vpop.f32.mrb[63].mxu0  ;;  %15803 = vmatprep.subr.bf16.mxu1 %v17158_v56  ;;  %v9669_v39 = vadd.f32 %v9663_v34, %v9556_v31 }
 0xde4   : > { %15804 = vmatpush3.bf16.msra.mxu1 %v17061_v0 }
 0xde5   : > { %15805 = vmatprep.subr.bf16.mxu1 %v17158_v56 }
 0xde8   : > { %15806 = vmatpush3.bf16.msra.mxu1 %v17062_v53 }
 0xdeb   : > { %15808 = vmatmul.mubr.bf16.vlgmr.msra.gmra.mrb[108].mxu1 %v10985_v1 }
 0xdfe   : > { %v9771_v52 = vpop.f32.mrb[84].mxu1  ;;  %v10095_v55 = vpop.f32.mrb[64].mxu0 }
 0xdff   : > { %v9777_v29 = vadd.f32 %v9771_v52, %v9669_v39  ;;  %v15569_v12 = vpop.f32.mrb[85].mxu1  ;;  %v15629_v48 = vpop.f32.mrb[65].mxu0 }
 0xe00   : > { %v9774_v62 = vpop.f32.mrb[86].mxu1  ;;  %v10098_v40 = vpop.f32.mrb[66].mxu0 }
 0xe01   : > { %v15570_v33 = vpop.f32.mrb[87].mxu1  ;;  %v15630_v47 = vpop.f32.mrb[67].mxu0  ;;  %v9885_v63 = vadd.f32 %v9879_v18, %v9777_v29 }
 0xe1e   : > { %v9987_v51 = vpop.f32.mrb[88].mxu1  ;;  %v10310_v3 = vpop.f32.mrb[68].mxu0 }
 0xe1f   : > { %v9993_v28 = vadd.f32 %v9987_v51, %v9885_v63  ;;  %v15609_v61 = vpop.f32.mrb[89].mxu1  ;;  %v15669_v22 = vpop.f32.mrb[69].mxu0  ;;  %v22313_v51 = vlaneseq }
 0xe20   : > { %v9990_v44 = vpop.f32.mrb[90].mxu1  ;;  %v10313_v20 = vpop.f32.mrb[70].mxu0  ;;  %v11194_v61 = vstv %s11193_s21  ;;  %v11098_v22 = vld [vmem:[%s21829_s18] sm:$0x1] }
 0xe21   : > { %v15610_v32 = vpop.f32.mrb[91].mxu1  ;;  %v15670_v8 = vpop.f32.mrb[71].mxu0  ;;  %v10101_v43 = vadd.f32 %v10095_v55, %v9993_v28  ;;  %v11076_v55 = vld [vmem:[%s21827_s16] sm:$0x1]  ;;  %v11191_v28 = vstv %s13209_s0  ;;  %s11222_s0 = sshll.u32 %s635_s26, 4  ;;  %s21771_s0 = int_to_ptr.vmem [resolvable:$true] %s11222_s0 }
 0xe22   : > { %p17093_p13 = scmp.lt.s32.totalorder %s21771_s0, %s17091_s5 }
 0xe3e   : > { %v10203_v24 = vpop.f32.mrb[92].mxu1  ;;  %v10529_v17 = vpop.f32.mrb[72].mxu0 }
 0xe3f   : > { %v10209_v60 = vadd.f32 %v10203_v24, %v10101_v43  ;;  %v15649_v6 = vpop.f32.mrb[93].mxu1  ;;  %v15709_v5 = vpop.f32.mrb[73].mxu0 }
 0xe40   : > { %v10206_v58 = vpop.f32.mrb[94].mxu1  ;;  %v10532_v36 = vpop.f32.mrb[74].mxu0 }
 0xe41   : > { %v15650_v4 = vpop.f32.mrb[95].mxu1  ;;  %v15710_v34 = vpop.f32.mrb[75].mxu0  ;;  %v10316_v45 = vadd.f32 %v10310_v3, %v10209_v60  ;;  %v11189_v3 = vand.u32 127, %v22313_v51 }
 0xe43   : > { %vm11192_vm15 = vcmp.ge.s32.totalorder %v11189_v3, %v11191_v28  ;;  %vm11195_vm13 = vcmp.lt.s32.totalorder %v11189_v3, %v11194_v61 }
 0xe44   : > { %vm11196_vm0 = vmand %vm11192_vm15, %vm11195_vm13 }
 0xe5e   : > { %v10420_v14 = vpop.f32.mrb[96].mxu1  ;;  %v10745_v2 = vpop.f32.mrb[76].mxu0 }
 0xe5f   : > { %v10426_v16 = vadd.f32 %v10420_v14, %v10316_v45  ;;  %v15689_v57 = vpop.f32.mrb[97].mxu1  ;;  %v15749_v25 = vpop.f32.mrb[77].mxu0 }
 0xe60   : > { %v10423_v37 = vpop.f32.mrb[98].mxu1  ;;  %v10748_v23 = vpop.f32.mrb[78].mxu0 }
 0xe61   : > { %v15690_v38 = vpop.f32.mrb[99].mxu1  ;;  %v15750_v15 = vpop.f32.mrb[79].mxu0  ;;  %v10535_v13 = vadd.f32 %v10529_v17, %v10426_v16 }
 0xe7e   : > { %v10637_v9 = vpop.f32.mrb[100].mxu1  ;;  %v10961_v30 = vpop.f32.mrb[80].mxu0 }
 0xe7f   : > { %v10643_v42 = vadd.f32 %v10637_v9, %v10535_v13  ;;  %v15729_v18 = vpop.f32.mrb[101].mxu1  ;;  %v15789_v31 = vpop.f32.mrb[81].mxu0 }
 0xe80   : > { %v10640_v54 = vpop.f32.mrb[102].mxu1  ;;  %v10964_v41 = vpop.f32.mrb[82].mxu0 }
 0xe81   : > { %v15730_v35 = vpop.f32.mrb[103].mxu1  ;;  %v15790_v56 = vpop.f32.mrb[83].mxu0  ;;  %v10751_v7 = vadd.f32 %v10745_v2, %v10643_v42 }
 0xe9e   : > { %v10853_v0 = vpop.f32.mrb[104].mxu1 }
 0xe9f   : > { %v10859_v10 = vadd.f32 %v10853_v0, %v10751_v7  ;;  %v15769_v26 = vpop.f32.mrb[105].mxu1 }
 0xea0   : > { %v10856_v39 = vpop.f32.mrb[106].mxu1 }
 0xea1   : > { %v15770_v53 = vpop.f32.mrb[107].mxu1  ;;  %v10967_v1 = vadd.f32 %v10961_v30, %v10859_v10 }
 0xebe   : > { %v11069_v52 = vpop.f32.mrb[108].mxu1 }
 0xebf   : > { %v11075_v29 = vadd.f32 %v11069_v52, %v10967_v1  ;;  %v15809_v12 = vpop.f32.mrb[109].mxu1 }
 0xec0   : > { %v11072_v48 = vpop.f32.mrb[110].mxu1 }
 0xec1   : > { %v11077_v62 = vadd.f32 %v11076_v55, %v11075_v29  ;;  %v15810_v40 = vpop.f32.mrb[111].mxu1 }
 0xec3   : > { %vm11078_vm14 = vcmp.ge.f32.partialorder %v11077_v62, 0.0  ;;  %v11079_v33 = vmul.f32 0.2, %v11077_v62 }
 0xec5   : > { %v11080_v47 = vsel %vm11078_vm14, %v11077_v62, %v11079_v33 }
 0xec6   : > { %v11097_v63 = vpack.c.bf16 %v11080_v47, %v11080_v47 }
 0xec8   : > { %15828 = vmatmul.mubr.bf16.vlgmr.msra.gmra.mrb[84].mxu0 %v11097_v63 }
 0xf9b   : > { %v11181_v44 = vpop.f32.mrb[84].mxu0 }
 0xf9c   : > { %v11182_v20 = vadd.f32 %v11181_v44, %v11098_v22  ;;  %v15829_v32 = vpop.f32.mrb[85].mxu0 }
 0xf9d   : > { %v11184_v8 = vpop.f32.mrb[86].mxu0 }
 0xf9e   : > { %v15830_v43 = vpop.f32.mrb[87].mxu0  ;;  %v11197_v19 = vsel %vm11196_vm0, %v11182_v20, 0.0 }
 0xf9f   : > { %11199 = vrot.lane.b32.xlu0 %v11197_v19, %s17160_s28  ;;  %s11210_s28 = scalar_lea.sflag [#allocation3], %s634_s3 }
 0xfa3   : > { %11203 = vrot.lane.b32.xlu0 %v11197_v19, %s17161_s30  ;;  %s17086_s30 = scalar_lea.vmem %s21771_s0, 16 }
 0xfa4   : > { %p17087_p9 = scmp.ne.s32.totalorder %s21771_s0, %s17086_s30  ;;  %p17094_p0 = scmp.lt.s32.totalorder %s17092_s6, %s17086_s30 }
 0xfa6   : > { %p17088_p10 = pnand %p17087_p9, %p17306_p5  ;;  %p17095_p1 = por %p17094_p0, %p17093_p13 }
 0xfa8   : > { %p17089_p12 = pneg %p17088_p10 }
 0xfaa   : > { %p17096_p2 = pnand %p17095_p1, %p17089_p12 }
0x1011   : > { %v11200_v21 = vpop.permute.xlu0 %11199 }
0x1012   : > { %v11202_v46 = vadd.f32 %v11200_v21, %v11197_v19 }
0x1015   : > { %v11204_v49 = vpop.permute.xlu0 %11203 }
0x1016   : > { %v11206_v11 = vadd.f32 %v11204_v49, %v11202_v46 }
0x1018   : > { %11208 = vst.msk [vmem:[%s635_s26] sm:$0x1] %vm11207_vm10, %v11206_v11 }
0x1019   : > { %17099 = shalt.err (!%p17096_p2)
}
0x101a   : > { %s17100_s3 = scalar_lea.hbm %s21769_s23, 16  ;;  %s17104_s21 = scalar_lea.hbm %s21831_s20, 32 }
0x101b   : > { %p17101_p3 = scmp.ne.s32.totalorder %s21769_s23, %s17100_s3  ;;  %p17105_p8 = scmp.lt.u32.totalorder %s21769_s23, %s21831_s20 }
0x101c   : > { %p17106_p11 = scmp.lt.u32.totalorder %s17104_s21, %s17100_s3  ;;  %p17108_p10 = scmp.lt.u32.totalorder %s17100_s3, %s21769_s23 }
0x101d   : > { %p17102_p4 = pnand %p17101_p3, %p17306_p5 }
0x101e   : > { %p17107_p9 = por %p17106_p11, %p17105_p8 }
0x101f   : > { %p17103_p7 = pneg %p17102_p4 }
0x1020   : > { %p17109_p12 = por %p17108_p10, %p17107_p9 }
0x1022   : > { %p17110_p13 = pnand %p17109_p12, %p17103_p7 }
0x1024   : > { %17113 = shalt.err (!%p17110_p13)
}
0x1025   : > { %16573 = dma.vmem_to_hbm [thread:$0]  (%p17306_p5), %s21771_s0, 16, %s21769_s23, %s11210_s28  }
0x1026 PF: > { %p16585_p0 = scmp.ge.s32.totalorder %s17152_s24, 2  ;;  %s11234_s6 = sand.u32 1, %s17140_s1  }
0x1027   : > { %s11235_s30 = scalar_lea.sflag [#allocation3], %s11234_s6 }
0x1028   : > { %p16580_p1 = pnand %p16585_p0, %p17310_p6 }
0x102a   : > { %17135 = dma.done.wait (!%p16580_p1), %s11235_s30, 16  }
0x102b   : > { %17137 = vsyncadd (!%p16580_p1), %s11235_s30, 4294967280  ;;  %s22314_s24 = sld [smem:[#allocation9_spill]]  ;;  %s22315_s2 = sld [smem:[#allocation8_spill]] }
0x102c   : > { %s22316_s23 = sld [smem:[#allocation10_spill]]  ;;  %s22317_s1 = smov %s17144_s22 }
0x1031   : > { %p31_p2 = scmp.ge.s32.totalorder %s22314_s24, 4   ;;  %s22318_s22 = smov %s22315_s2 }
0x1033   :  { %33 = sbr.rel (!%p31_p2) target bundleno = 13 (0xd), region = 187 }
0x103a   :  { %11239 = vsyncpa [#allocation3], 1 }
0x103b   :  { %11241 = vsyncpa [#allocation3 + $0x1], 1 }
0x103c   :  { %11242 = vsyncpa [#allocation4], 1 }
0x103d   :  { %11244 = vsyncpa [#allocation4 + $0x1], 1 }

</bundles_post_ra>
